<compile_context>
chip_gen: v5e
topology: v5e:2x2
jax: 0.10.0
libtpu: 0.0.40
codegen_flags: <defaults>
</compile_context>

<pallas_src>
import jax
import jax.numpy as jnp
import numpy as np
from jax.experimental import pallas as pl
from jax.experimental.pallas import tpu as pltpu

L_IN = 220
C_IN = 2
N_OUT = 481
FC2_PAD = 512                      # lane-dense padded fc2 width (mult. of 128)
IN_ROWS = L_IN * C_IN              # 440 flattened input rows (row = l*2 + c)

# Per-layer row counts in the kernel's internal (features, batch) layout.
A1_ROWS, P1_ROWS = 72 * 8, 36 * 8        # 576, 288
A2_ROWS, P2_ROWS = 32 * 16, 16 * 16      # 512, 256
A3_ROWS, P3_ROWS = 12 * 16, 6 * 16       # 192, 96


def _round_up(x, m):
    return (x + m - 1) // m * m


# ---------------------------------------------------------------------------
# Kernel
# ---------------------------------------------------------------------------
def convcont_kernel(x_ref, w1_ref, b1_ref, w2_ref, b2_ref, w3_ref, b3_ref,
                    fw1_ref, fb1_ref, fw2_ref, fb2_ref, out_ref):
    x = x_ref[...]                                             # (440, B)

    def conv_pool(w_ref, b_ref, v, half_rows):
        a = jnp.dot(w_ref[...], v, preferred_element_type=jnp.float32)
        a = jnp.maximum(a + b_ref[...], 0.0)
        # Toeplitz output rows are ordered [even l | odd l], so MaxPool1d(2)
        # is a max of the two contiguous halves (tile-aligned, no reshape).
        return jnp.maximum(a[:half_rows], a[half_rows:])

    p1 = conv_pool(w1_ref, b1_ref, x, P1_ROWS)                 # (288, B)
    p2 = conv_pool(w2_ref, b2_ref, p1, P2_ROWS)                # (256, B)
    p3 = conv_pool(w3_ref, b3_ref, p2, P3_ROWS)                # (96,  B)

    h = jnp.dot(fw1_ref[...], p3, preferred_element_type=jnp.float32)
    h = jnp.maximum(h + fb1_ref[...], 0.0)                     # (64, B)

    out_ref[...] = (jnp.dot(fw2_ref[...], h,
                            preferred_element_type=jnp.float32)
                    + fb2_ref[...])                            # (512, B)


# ---------------------------------------------------------------------------
# Wrapper
# ---------------------------------------------------------------------------
def _dimension_semantics():
    try:
        kind = jax.devices()[0].device_kind.lower()
    except Exception:
        kind = ""
    if "v7" in kind or "7x" in kind:
        # Shard batch tiles across v7x's two TensorCores.
        return (pltpu.CORE_PARALLEL,)
    return ("parallel",)


def _vmem_limit_bytes(b_tile, params):
    w_bytes = sum(int(np.prod(p.shape)) * 4 for p in params)
    io_bytes = 2 * (IN_ROWS + FC2_PAD) * b_tile * 4            # dbl-buffered io
    act_bytes = 2 * 3000 * b_tile * 4                          # live SSA bound
    total = 2 * w_bytes + io_bytes + act_bytes + 8 * 1024 * 1024
    return int(min(total, 56 * 1024 * 1024))                   # v7x: 64 MiB phys


def convcont_forward(x_ncl, kernel_params, b_tile=512):
    """x_ncl: (N, 2, 220) float32 (PyTorch NCL layout) -> (N, 481)."""
    n = x_ncl.shape[0]
    b_tile = max(128, min(_round_up(b_tile, 128), _round_up(n, 128)))
    n_pad = _round_up(n, b_tile)

    # Single relayout: (N, C, L) -> (L, C, N) -> (L*C, N), pad batch (lanes).
    x_flat = jnp.transpose(x_ncl, (2, 1, 0)).reshape(IN_ROWS, n)
    x_flat = jnp.pad(x_flat, ((0, 0), (0, n_pad - n)))

    (w1, b1, w2, b2, w3, b3, fw1, fb1, fw2, fb2) = kernel_params

    def whole(arr):
        # Grid-invariant operand: full block, fixed index.
        # (pl.Buffered(1) would single-buffer these; left default for safety.)
        return pl.BlockSpec(arr.shape, lambda i: (0, 0))

    out = pl.pallas_call(
        convcont_kernel,
        out_shape=jax.ShapeDtypeStruct((FC2_PAD, n_pad), jnp.float32),
        grid=(n_pad // b_tile,),
        in_specs=[
            pl.BlockSpec((IN_ROWS, b_tile), lambda i: (0, i)),
            whole(w1), whole(b1), whole(w2), whole(b2), whole(w3), whole(b3),
            whole(fw1), whole(fb1), whole(fw2), whole(fb2),
        ],
        out_specs=pl.BlockSpec((FC2_PAD, b_tile), lambda i: (0, i)),
        compiler_params=pltpu.CompilerParams(
            dimension_semantics=_dimension_semantics(),
            vmem_limit_bytes=_vmem_limit_bytes(b_tile, kernel_params)),
    )(x_flat, w1, b1, w2, b2, w3, b3, fw1, fb1, fw2, fb2)

    return out[:N_OUT, :n].T


# ---------------------------------------------------------------------------
# Parameters (PyTorch layouts) and conversion to kernel layouts
# ---------------------------------------------------------------------------
def init_params(key):
    ks = jax.random.split(key, 10)
    s = 0.1
    conv1_w = s * jax.random.normal(ks[0], (8, 2, 7), jnp.float32)
    conv1_b = s * jax.random.normal(ks[1], (8,), jnp.float32)
    conv2_w = s * jax.random.normal(ks[2], (16, 8, 5), jnp.float32)
    conv2_b = s * jax.random.normal(ks[3], (16,), jnp.float32)
    conv3_w = s * jax.random.normal(ks[4], (16, 16, 5), jnp.float32)
    conv3_b = s * jax.random.normal(ks[5], (16,), jnp.float32)
    fc1_w = s * jax.random.normal(ks[6], (64, 96), jnp.float32)
    fc1_b = s * jax.random.normal(ks[7], (64,), jnp.float32)
    fc2_w = s * jax.random.normal(ks[8], (481, 64), jnp.float32)
    fc2_b = s * jax.random.normal(ks[9], (481,), jnp.float32)
    return (conv1_w, conv1_b, conv2_w, conv2_b, conv3_w, conv3_b,
            fc1_w, fc1_b, fc2_w, fc2_b)


def _conv_toeplitz_pooled(w_oik, l_in, stride):
    """Dense banded (Toeplitz) matrix for a VALID Conv1d.

    Input rows are ordered l_in*c_in + c; output rows are ordered
    [even output positions | odd output positions] (each position holding its
    c_out channels contiguously) so MaxPool1d(2) becomes a max of the two
    row-halves of the matmul result."""
    w = np.asarray(w_oik, np.float32)            # (c_out, c_in, k)
    c_out, c_in, k = w.shape
    l_out = (l_in - k) // stride + 1
    assert l_out % 2 == 0
    half = l_out // 2
    flat_taps = w.transpose(0, 2, 1).reshape(c_out, k * c_in)   # [co, kk*c_in+ci]
    m = np.zeros((l_out * c_out, l_in * c_in), np.float32)
    for l in range(l_out):
        row0 = ((l % 2) * half + l // 2) * c_out
        col0 = l * stride * c_in
        m[row0:row0 + c_out, col0:col0 + k * c_in] = flat_taps
    return m


def to_kernel_params(torch_params):
    (c1w, c1b, c2w, c2b, c3w, c3b, f1w, f1b, f2w, f2b) = [
        np.asarray(p, np.float32) for p in torch_params]

    w1 = _conv_toeplitz_pooled(c1w, L_IN, 3)       # (576, 440)
    w2 = _conv_toeplitz_pooled(c2w, 36, 1)         # (512, 288)
    w3 = _conv_toeplitz_pooled(c3w, 16, 1)         # (192, 256)
    b1 = np.tile(c1b, 72).reshape(A1_ROWS, 1)      # row % 8  = out channel
    b2 = np.tile(c2b, 32).reshape(A2_ROWS, 1)      # row % 16 = out channel
    b3 = np.tile(c3b, 12).reshape(A3_ROWS, 1)

    # fc1: torch flatten order j = c*6 + l ; kernel rows are l*16 + c.
    fw1 = f1w.reshape(64, 16, 6).transpose(0, 2, 1).reshape(64, 96)
    fb1 = f1b.reshape(64, 1)

    # fc2 padded to a lane-dense 512-row output (sliced back to 481 outside).
    fw2 = np.zeros((FC2_PAD, 64), np.float32)
    fw2[:N_OUT] = f2w
    fb2 = np.zeros((FC2_PAD, 1), np.float32)
    fb2[:N_OUT, 0] = f2b

    return tuple(jnp.asarray(a, jnp.float32) for a in
                 (w1, b1, w2, b2, w3, b3, fw1, fb1, fw2, fb2))


# ---------------------------------------------------------------------------
# Pure-JAX reference (replica of the PyTorch forward) for verification
# ---------------------------------------------------------------------------
def ref_forward(x, torch_params):
    (c1w, c1b, c2w, c2b, c3w, c3b, f1w, f1b, f2w, f2b) = torch_params
    dn = ('NCH', 'OIH', 'NCH')

    def conv(y, w, b, stride):
        y = jax.lax.conv_general_dilated(y, w, (stride,), 'VALID',
                                         dimension_numbers=dn)
        return jax.nn.relu(y + b[None, :, None])

    def pool(y):
        n_, c_, l_ = y.shape
        return jnp.max(y.reshape(n_, c_, l_ // 2, 2), axis=-1)

    y = pool(conv(x, c1w, c1b, 3))
    y = pool(conv(y, c2w, c2b, 1))
    y = pool(conv(y, c3w, c3b, 1))
    y = y.reshape(y.shape[0], -1)            # (N, 96), channel-major flatten
    y = jax.nn.relu(y @ f1w.T + f1b)
    return y @ f2w.T + f2b


if __name__ == "__main__":
    key = jax.random.PRNGKey(0)
    k_params, k_x = jax.random.split(key)
    torch_params = init_params(k_params)
    kernel_params = to_kernel_params(torch_params)

    x = jax.random.normal(k_x, (2, C_IN, L_IN), jnp.float32)   # NCL, like PyTorch

    out = jax.block_until_ready(convcont_forward(x, kernel_params))
    assert out.shape == (2, N_OUT), out.shape

    ref = jax.block_until_ready(ref_forward(x, torch_params))
    assert jnp.allclose(out, ref, rtol=1e-3, atol=1e-3), float(
        jnp.max(jnp.abs(out - ref)))

    print("KERNEL_OK")
</pallas_src>

<mosaic_0001>
module attributes {stable_mosaic.version = 11 : i64} {
  func.func @convcont_kernel(%arg0: i32, %arg1: memref<440x128xf32, #tpu.memory_space<vmem>>, %arg2: memref<576x440xf32, #tpu.memory_space<vmem>>, %arg3: memref<576x1xf32, #tpu.memory_space<vmem>>, %arg4: memref<512x288xf32, #tpu.memory_space<vmem>>, %arg5: memref<512x1xf32, #tpu.memory_space<vmem>>, %arg6: memref<192x256xf32, #tpu.memory_space<vmem>>, %arg7: memref<192x1xf32, #tpu.memory_space<vmem>>, %arg8: memref<64x96xf32, #tpu.memory_space<vmem>>, %arg9: memref<64x1xf32, #tpu.memory_space<vmem>>, %arg10: memref<512x64xf32, #tpu.memory_space<vmem>>, %arg11: memref<512x1xf32, #tpu.memory_space<vmem>>, %arg12: memref<512x128xf32, #tpu.memory_space<vmem>>) attributes {dimension_semantics = [#tpu.dimension_semantics<parallel>], iteration_bounds = array<i64: 1>, scalar_prefetch = 0 : i64, scratch_operands = 0 : i64, tpu.core_type = #tpu.core_type<tc>, window_params = [{transform_indices = @transform_0, window_bounds = array<i64: 440, 128>}, {pipeline_mode = #tpu.pipeline_mode<synchronous>, transform_indices = @transform_1, window_bounds = array<i64: 576, 440>}, {pipeline_mode = #tpu.pipeline_mode<synchronous>, transform_indices = @transform_2, window_bounds = array<i64: 576, 1>}, {pipeline_mode = #tpu.pipeline_mode<synchronous>, transform_indices = @transform_3, window_bounds = array<i64: 512, 288>}, {pipeline_mode = #tpu.pipeline_mode<synchronous>, transform_indices = @transform_4, window_bounds = array<i64: 512, 1>}, {pipeline_mode = #tpu.pipeline_mode<synchronous>, transform_indices = @transform_5, window_bounds = array<i64: 192, 256>}, {pipeline_mode = #tpu.pipeline_mode<synchronous>, transform_indices = @transform_6, window_bounds = array<i64: 192, 1>}, {pipeline_mode = #tpu.pipeline_mode<synchronous>, transform_indices = @transform_7, window_bounds = array<i64: 64, 96>}, {pipeline_mode = #tpu.pipeline_mode<synchronous>, transform_indices = @transform_8, window_bounds = array<i64: 64, 1>}, {pipeline_mode = #tpu.pipeline_mode<synchronous>, transform_indices = @transform_9, window_bounds = array<i64: 512, 64>}, {pipeline_mode = #tpu.pipeline_mode<synchronous>, transform_indices = @transform_10, window_bounds = array<i64: 512, 1>}, {transform_indices = @transform_11, window_bounds = array<i64: 512, 128>}]} {
    %c0 = arith.constant 0 : index
    %c0_0 = arith.constant 0 : index
    %0 = vector.load %arg1[%c0, %c0_0] : memref<440x128xf32, #tpu.memory_space<vmem>>, vector<440x128xf32>
    %c0_1 = arith.constant 0 : index
    %c0_2 = arith.constant 0 : index
    %1 = vector.load %arg2[%c0_1, %c0_2] : memref<576x440xf32, #tpu.memory_space<vmem>>, vector<576x440xf32>
    %cst = arith.constant dense<0.000000e+00> : vector<576x128xf32>
    %2 = tpu.matmul %1, %0, %cst {dimension_numbers = #tpu.dot_dimension_numbers<[1], [0], [0], [1], [0, 0, 1, 1], [], []>} : vector<576x440xf32>, vector<440x128xf32>, vector<576x128xf32> -> vector<576x128xf32>
    %c0_3 = arith.constant 0 : index
    %c0_4 = arith.constant 0 : index
    %3 = vector.load %arg3[%c0_3, %c0_4] : memref<576x1xf32, #tpu.memory_space<vmem>>, vector<576x1xf32>
    %4 = vector.broadcast %3 : vector<576x1xf32> to vector<576x128xf32>
    %5 = arith.addf %2, %4 : vector<576x128xf32>
    %cst_5 = arith.constant 0.000000e+00 : f32
    %6 = vector.broadcast %cst_5 : f32 to vector<576x128xf32>
    %7 = arith.maximumf %5, %6 : vector<576x128xf32>
    %8 = vector.extract_strided_slice %7 {offsets = [0, 0], sizes = [288, 128], strides = [1, 1]} : vector<576x128xf32> to vector<288x128xf32>
    %9 = vector.extract_strided_slice %7 {offsets = [288, 0], sizes = [288, 128], strides = [1, 1]} : vector<576x128xf32> to vector<288x128xf32>
    %10 = arith.maximumf %8, %9 : vector<288x128xf32>
    %c0_6 = arith.constant 0 : index
    %c0_7 = arith.constant 0 : index
    %11 = vector.load %arg4[%c0_6, %c0_7] : memref<512x288xf32, #tpu.memory_space<vmem>>, vector<512x288xf32>
    %cst_8 = arith.constant dense<0.000000e+00> : vector<512x128xf32>
    %12 = tpu.matmul %11, %10, %cst_8 {dimension_numbers = #tpu.dot_dimension_numbers<[1], [0], [0], [1], [0, 0, 1, 1], [], []>} : vector<512x288xf32>, vector<288x128xf32>, vector<512x128xf32> -> vector<512x128xf32>
    %c0_9 = arith.constant 0 : index
    %c0_10 = arith.constant 0 : index
    %13 = vector.load %arg5[%c0_9, %c0_10] : memref<512x1xf32, #tpu.memory_space<vmem>>, vector<512x1xf32>
    %14 = vector.broadcast %13 : vector<512x1xf32> to vector<512x128xf32>
    %15 = arith.addf %12, %14 : vector<512x128xf32>
    %cst_11 = arith.constant 0.000000e+00 : f32
    %16 = vector.broadcast %cst_11 : f32 to vector<512x128xf32>
    %17 = arith.maximumf %15, %16 : vector<512x128xf32>
    %18 = vector.extract_strided_slice %17 {offsets = [0, 0], sizes = [256, 128], strides = [1, 1]} : vector<512x128xf32> to vector<256x128xf32>
    %19 = vector.extract_strided_slice %17 {offsets = [256, 0], sizes = [256, 128], strides = [1, 1]} : vector<512x128xf32> to vector<256x128xf32>
    %20 = arith.maximumf %18, %19 : vector<256x128xf32>
    %c0_12 = arith.constant 0 : index
    %c0_13 = arith.constant 0 : index
    %21 = vector.load %arg6[%c0_12, %c0_13] : memref<192x256xf32, #tpu.memory_space<vmem>>, vector<192x256xf32>
    %cst_14 = arith.constant dense<0.000000e+00> : vector<192x128xf32>
    %22 = tpu.matmul %21, %20, %cst_14 {dimension_numbers = #tpu.dot_dimension_numbers<[1], [0], [0], [1], [0, 0, 1, 1], [], []>} : vector<192x256xf32>, vector<256x128xf32>, vector<192x128xf32> -> vector<192x128xf32>
    %c0_15 = arith.constant 0 : index
    %c0_16 = arith.constant 0 : index
    %23 = vector.load %arg7[%c0_15, %c0_16] : memref<192x1xf32, #tpu.memory_space<vmem>>, vector<192x1xf32>
    %24 = vector.broadcast %23 : vector<192x1xf32> to vector<192x128xf32>
    %25 = arith.addf %22, %24 : vector<192x128xf32>
    %cst_17 = arith.constant 0.000000e+00 : f32
    %26 = vector.broadcast %cst_17 : f32 to vector<192x128xf32>
    %27 = arith.maximumf %25, %26 : vector<192x128xf32>
    %28 = vector.extract_strided_slice %27 {offsets = [0, 0], sizes = [96, 128], strides = [1, 1]} : vector<192x128xf32> to vector<96x128xf32>
    %29 = vector.extract_strided_slice %27 {offsets = [96, 0], sizes = [96, 128], strides = [1, 1]} : vector<192x128xf32> to vector<96x128xf32>
    %30 = arith.maximumf %28, %29 : vector<96x128xf32>
    %c0_18 = arith.constant 0 : index
    %c0_19 = arith.constant 0 : index
    %31 = vector.load %arg8[%c0_18, %c0_19] : memref<64x96xf32, #tpu.memory_space<vmem>>, vector<64x96xf32>
    %cst_20 = arith.constant dense<0.000000e+00> : vector<64x128xf32>
    %32 = tpu.matmul %31, %30, %cst_20 {dimension_numbers = #tpu.dot_dimension_numbers<[1], [0], [0], [1], [0, 0, 1, 1], [], []>} : vector<64x96xf32>, vector<96x128xf32>, vector<64x128xf32> -> vector<64x128xf32>
    %c0_21 = arith.constant 0 : index
    %c0_22 = arith.constant 0 : index
    %33 = vector.load %arg9[%c0_21, %c0_22] : memref<64x1xf32, #tpu.memory_space<vmem>>, vector<64x1xf32>
    %34 = vector.broadcast %33 : vector<64x1xf32> to vector<64x128xf32>
    %35 = arith.addf %32, %34 : vector<64x128xf32>
    %cst_23 = arith.constant 0.000000e+00 : f32
    %36 = vector.broadcast %cst_23 : f32 to vector<64x128xf32>
    %37 = arith.maximumf %35, %36 : vector<64x128xf32>
    %c0_24 = arith.constant 0 : index
    %c0_25 = arith.constant 0 : index
    %38 = vector.load %arg10[%c0_24, %c0_25] : memref<512x64xf32, #tpu.memory_space<vmem>>, vector<512x64xf32>
    %cst_26 = arith.constant dense<0.000000e+00> : vector<512x128xf32>
    %39 = tpu.matmul %38, %37, %cst_26 {dimension_numbers = #tpu.dot_dimension_numbers<[1], [0], [0], [1], [0, 0, 1, 1], [], []>} : vector<512x64xf32>, vector<64x128xf32>, vector<512x128xf32> -> vector<512x128xf32>
    %c0_27 = arith.constant 0 : index
    %c0_28 = arith.constant 0 : index
    %40 = vector.load %arg11[%c0_27, %c0_28] : memref<512x1xf32, #tpu.memory_space<vmem>>, vector<512x1xf32>
    %41 = vector.broadcast %40 : vector<512x1xf32> to vector<512x128xf32>
    %42 = arith.addf %39, %41 : vector<512x128xf32>
    %c0_29 = arith.constant 0 : index
    %c0_30 = arith.constant 0 : index
    %43 = vector.load %arg12[%c0_29, %c0_30] : memref<512x128xf32, #tpu.memory_space<vmem>>, vector<512x128xf32>
    tpu.vector_store %arg12[%c0_29, %c0_30], %42 {strides = array<i32>} : memref<512x128xf32, #tpu.memory_space<vmem>>, vector<512x128xf32>,
    return
  }
  func.func @transform_0(%arg0: i32) -> (i32, i32) {
    %c0_i32 = arith.constant 0 : i32
    %c0_i32_0 = arith.constant 0 : i32
    return %c0_i32, %arg0 : i32, i32
  }
  func.func @transform_1(%arg0: i32) -> (i32, i32) {
    %c0_i32 = arith.constant 0 : i32
    %c0_i32_0 = arith.constant 0 : i32
    %c0_i32_1 = arith.constant 0 : i32
    return %c0_i32, %c0_i32_0 : i32, i32
  }
  func.func @transform_2(%arg0: i32) -> (i32, i32) {
    %c0_i32 = arith.constant 0 : i32
    %c0_i32_0 = arith.constant 0 : i32
    %c0_i32_1 = arith.constant 0 : i32
    return %c0_i32, %c0_i32_0 : i32, i32
  }
  func.func @transform_3(%arg0: i32) -> (i32, i32) {
    %c0_i32 = arith.constant 0 : i32
    %c0_i32_0 = arith.constant 0 : i32
    %c0_i32_1 = arith.constant 0 : i32
    return %c0_i32, %c0_i32_0 : i32, i32
  }
  func.func @transform_4(%arg0: i32) -> (i32, i32) {
    %c0_i32 = arith.constant 0 : i32
    %c0_i32_0 = arith.constant 0 : i32
    %c0_i32_1 = arith.constant 0 : i32
    return %c0_i32, %c0_i32_0 : i32, i32
  }
  func.func @transform_5(%arg0: i32) -> (i32, i32) {
    %c0_i32 = arith.constant 0 : i32
    %c0_i32_0 = arith.constant 0 : i32
    %c0_i32_1 = arith.constant 0 : i32
    return %c0_i32, %c0_i32_0 : i32, i32
  }
  func.func @transform_6(%arg0: i32) -> (i32, i32) {
    %c0_i32 = arith.constant 0 : i32
    %c0_i32_0 = arith.constant 0 : i32
    %c0_i32_1 = arith.constant 0 : i32
    return %c0_i32, %c0_i32_0 : i32, i32
  }
  func.func @transform_7(%arg0: i32) -> (i32, i32) {
    %c0_i32 = arith.constant 0 : i32
    %c0_i32_0 = arith.constant 0 : i32
    %c0_i32_1 = arith.constant 0 : i32
    return %c0_i32, %c0_i32_0 : i32, i32
  }
  func.func @transform_8(%arg0: i32) -> (i32, i32) {
    %c0_i32 = arith.constant 0 : i32
    %c0_i32_0 = arith.constant 0 : i32
    %c0_i32_1 = arith.constant 0 : i32
    return %c0_i32, %c0_i32_0 : i32, i32
  }
  func.func @transform_9(%arg0: i32) -> (i32, i32) {
    %c0_i32 = arith.constant 0 : i32
    %c0_i32_0 = arith.constant 0 : i32
    %c0_i32_1 = arith.constant 0 : i32
    return %c0_i32, %c0_i32_0 : i32, i32
  }
  func.func @transform_10(%arg0: i32) -> (i32, i32) {
    %c0_i32 = arith.constant 0 : i32
    %c0_i32_0 = arith.constant 0 : i32
    %c0_i32_1 = arith.constant 0 : i32
    return %c0_i32, %c0_i32_0 : i32, i32
  }
  func.func @transform_11(%arg0: i32) -> (i32, i32) {
    %c0_i32 = arith.constant 0 : i32
    %c0_i32_0 = arith.constant 0 : i32
    return %c0_i32, %arg0 : i32, i32
  }
}

</mosaic_0001>

<bundles_post_ra>
// kernel: tpu_custom_call.1
= control target key start
LH: loop header
LB: loop body
LE: loop exit
PB: predicated region body
PF: predicated region fallthrough
CT: control target
= control target key end

     0   :  { %v5311_v2 = vmov 0   ;;  %s9669_s0 = inlined_call_operand.vmem [shape: f32[440,128], index: 0, kind: input, shape index: {}]   ;;  %s9670_s1 = inlined_call_operand.vmem [shape: f32[576,440], index: 1, kind: input, shape index: {}]   ;;  %s9671_s2 = inlined_call_operand.vmem [shape: f32[576,1], index: 2, kind: input, shape index: {}]   ;;  %s9672_s3 = inlined_call_operand.vmem [shape: f32[512,288], index: 3, kind: input, shape index: {}]   ;;  %s9673_s4 = inlined_call_operand.vmem [shape: f32[512,1], index: 4, kind: input, shape index: {}]   ;;  %s9674_s5 = inlined_call_operand.vmem [shape: f32[192,256], index: 5, kind: input, shape index: {}]   ;;  %s9675_s6 = inlined_call_operand.vmem [shape: f32[192,1], index: 6, kind: input, shape index: {}]   ;;  %s9676_s7 = inlined_call_operand.vmem [shape: f32[64,96], index: 7, kind: input, shape index: {}]   ;;  %s9677_s8 = inlined_call_operand.vmem [shape: f32[64,1], index: 8, kind: input, shape index: {}]   ;;  %s9678_s9 = inlined_call_operand.vmem [shape: f32[512,64], index: 9, kind: input, shape index: {}]   ;;  %s9679_s10 = inlined_call_operand.vmem [shape: f32[512,1], index: 10, kind: input, shape index: {}]   ;;  %s9680_s11 = inlined_call_operand.hbm [shape: f32[512,128], index: 11, kind: output, shape index: {}]  }
   0x1   :  { %v54_v0 = vld [vmem:[%s9669_s0 + $0x78] sm:$0xff]  ;;  %5284 = vset.pattern.permute.xlu2 %v5311_v2  ;;  %5283 = vset.pattern.permute.xlu1 %v5311_v2  ;;  %v396_v3 = vld [vmem:[%s9671_s2 + $0x70] sm:$0xff]  ;;  %v395_v4 = vld [vmem:[%s9671_s2 + $0x68] sm:$0xff] }
   0x2   :  { %v397_v1 = vld [vmem:[%s9671_s2 + $0x78] sm:$0xff]  ;;  %5282 = vset.pattern.permute.xlu0 %v5311_v2  ;;  %1031 = vmatpush.msra.mxu0 %v54_v0  ;;  %v53_v5 = vld [vmem:[%s9669_s0 + $0x70] sm:$0xff]  ;;  %v52_v6 = vld [vmem:[%s9669_s0 + $0x68] sm:$0xff] }
   0x3   :  { %5239 = vmatpush.msra.mxu1 %v54_v0  ;;  %531 = vperm.xlu0 %5282, %v397_v1   ;;  %v51_v7 = vld [vmem:[%s9669_s0 + $0x60] sm:$0xff]  ;;  %v50_v8 = vld [vmem:[%s9669_s0 + $0x58] sm:$0xff]  ;;  %v432_v10 = vld [vmem:[%s9671_s2 + $0x190] sm:$0xff] }
   0x4   :  { %526 = vperm.xlu1 %5283, %v396_v3   ;;  %521 = vperm.xlu2 %5284, %v395_v4   ;;  %v433_v9 = vld [vmem:[%s9671_s2 + $0x198] sm:$0xff]  ;;  %v431_v11 = vld [vmem:[%s9671_s2 + $0x188] sm:$0xff]  ;;  %v49_v12 = vld [vmem:[%s9669_s0 + $0x50] sm:$0xff] }
   0x5   :  { %1032 = vmatpush.msra.mxu0 %v53_v5  ;;  %5240 = vmatpush.msra.mxu1 %v53_v5  ;;  %v48_v13 = vld [vmem:[%s9669_s0 + $0x48] sm:$0xff]  ;;  %v47_v14 = vld [vmem:[%s9669_s0 + $0x40] sm:$0xff] }
   0x7   :  { %1033 = vmatpush.msra.mxu0 %v52_v6  ;;  %5241 = vmatpush.msra.mxu1 %v52_v6 }
   0x9   :  { %1034 = vmatpush.msra.mxu0 %v51_v7  ;;  %5242 = vmatpush.msra.mxu1 %v51_v7 }
   0xb   :  { %1035 = vmatpush.msra.mxu0 %v50_v8  ;;  %5243 = vmatpush.msra.mxu1 %v50_v8 }
   0xc   :  { %711 = vperm.xlu0 %5282, %v433_v9   ;;  %706 = vperm.xlu1 %5283, %v432_v10  }
   0xd   :  { %701 = vperm.xlu2 %5284, %v431_v11   ;;  %1036 = vmatpush.msra.mxu0 %v49_v12 }
   0xe   :  { %5244 = vmatpush.msra.mxu1 %v49_v12 }
   0xf   :  { %16 = vsyncpa [#allocation3], 0  ;;  %1037 = vmatpush.msra.mxu0 %v48_v13  ;;  %v46_v15 = vld [vmem:[%s9669_s0 + $0x38] sm:$0xff]  ;;  %v430_v16 = vld [vmem:[%s9671_s2 + $0x180] sm:$0xff]  ;;  %vm814_vm0 = vcmask 457728   ;;  %vm2647_vm1 = vcmask 261120  }
  0x10   :  { %5245 = vmatpush.msra.mxu1 %v48_v13  ;;  %v394_v17 = vld [vmem:[%s9671_s2 + $0x60] sm:$0xff]  ;;  %v393_v18 = vld [vmem:[%s9671_s2 + $0x58] sm:$0xff]  ;;  %v45_v19 = vld [vmem:[%s9669_s0 + $0x30] sm:$0xff]  ;;  %vm4025_vm2 = vcmask 785408   ;;  %vm4547_vm3 = vcmask 523264   ;;  %s5019_s22 = sshll.u32 %s9680_s11, 4  ;;  %s5020_s22 = int_to_ptr.hbm [resolvable:$true] %s5019_s22 }
  0x11   :  { %1038 = vmatpush.msra.mxu0 %v47_v14  ;;  %v44_v20 = vld [vmem:[%s9669_s0 + $0x28] sm:$0xff]  ;;  %v43_v21 = vld [vmem:[%s9669_s0 + $0x20] sm:$0xff]  ;;  %v42_v22 = vld [vmem:[%s9669_s0 + $0x18] sm:$0xff]  ;;  %s5313_s23 = smov 128  }
  0x12   :  { %5246 = vmatpush.msra.mxu1 %v47_v14  ;;  %v429_v23 = vld [vmem:[%s9671_s2 + $0x178] sm:$0xff]  ;;  %v41_v26 = vld [vmem:[%s9669_s0 + $0x10] sm:$0xff]  ;;  %v40_v27 = vld [vmem:[%s9669_s0 + $0x8] sm:$0xff] }
  0x13   :  { %1039 = vmatpush.msra.mxu0 %v46_v15  ;;  %v413_v24 = vld [vmem:[%s9671_s2 + $0xf8] sm:$0xff]  ;;  %v39_v28 = vld [vmem:[%s9669_s0] sm:$0xff]  ;;  %v412_v32 = vld [vmem:[%s9671_s2 + $0xf0] sm:$0xff] }
  0x14   :  { %5247 = vmatpush.msra.mxu1 %v46_v15  ;;  %696 = vperm.xlu1 %5283, %v430_v16   ;;  %v449_v25 = vld [vmem:[%s9671_s2 + $0x218] sm:$0xff]  ;;  %v94_v29 = vld [vmem:[%s9670_s1] sm:$0xff]  ;;  %v428_v33 = vld [vmem:[%s9671_s2 + $0x170] sm:$0xff] }
  0x15   :  { %516 = vperm.xlu0 %5282, %v394_v17   ;;  %511 = vperm.xlu2 %5284, %v393_v18   ;;  %v366_v30 = vld [vmem:[%s9670_s1 + $0x880] sm:$0xff]  ;;  %v70_v31 = vld [vmem:[%s9669_s0 + $0xf8] sm:$0xff]  ;;  %v392_v34 = vld [vmem:[%s9671_s2 + $0x50] sm:$0xff] }
  0x16   :  { %1040 = vmatpush.msra.mxu0 %v45_v19  ;;  %5248 = vmatpush.msra.mxu1 %v45_v19  ;;  %v69_v35 = vld [vmem:[%s9669_s0 + $0xf0] sm:$0xff]  ;;  %v68_v36 = vld [vmem:[%s9669_s0 + $0xe8] sm:$0xff]  ;;  %v67_v37 = vld [vmem:[%s9669_s0 + $0xe0] sm:$0xff] }
  0x17   :  { %v98_v38 = vld [vmem:[%s9670_s1 + $0x20] sm:$0xff]  ;;  %v66_v40 = vld [vmem:[%s9669_s0 + $0xd8] sm:$0xff]  ;;  %v391_v41 = vld [vmem:[%s9671_s2 + $0x48] sm:$0xff] }
  0x18   :  { %1041 = vmatpush.msra.mxu0 %v44_v20  ;;  %5249 = vmatpush.msra.mxu1 %v44_v20  ;;  %v370_v39 = vld [vmem:[%s9670_s1 + $0x8a0] sm:$0xff]  ;;  %v411_v42 = vld [vmem:[%s9671_s2 + $0xe8] sm:$0xff]  ;;  %v448_v43 = vld [vmem:[%s9671_s2 + $0x210] sm:$0xff] }
  0x19   :  { %v65_v44 = vld [vmem:[%s9669_s0 + $0xd0] sm:$0xff]  ;;  %v64_v45 = vld [vmem:[%s9669_s0 + $0xc8] sm:$0xff]  ;;  %v63_v46 = vld [vmem:[%s9669_s0 + $0xc0] sm:$0xff] }
  0x1a   :  { %1042 = vmatpush.msra.mxu0 %v43_v21  ;;  %5250 = vmatpush.msra.mxu1 %v43_v21  ;;  %v102_v47 = vld [vmem:[%s9670_s1 + $0x40] sm:$0xff]  ;;  %v62_v49 = vld [vmem:[%s9669_s0 + $0xb8] sm:$0xff]  ;;  %v447_v50 = vld [vmem:[%s9671_s2 + $0x208] sm:$0xff] }
  0x1b   :  { %v374_v48 = vld [vmem:[%s9670_s1 + $0x8c0] sm:$0xff]  ;;  %v427_v51 = vld [vmem:[%s9671_s2 + $0x168] sm:$0xff]  ;;  %v61_v53 = vld [vmem:[%s9669_s0 + $0xb0] sm:$0xff] }
  0x1c   :  { %1043 = vmatpush.msra.mxu0 %v42_v22  ;;  %5251 = vmatpush.msra.mxu1 %v42_v22  ;;  %v390_v52 = vld [vmem:[%s9671_s2 + $0x40] sm:$0xff]  ;;  %v60_v54 = vld [vmem:[%s9669_s0 + $0xa8] sm:$0xff]  ;;  %v58_v58 = vld [vmem:[%s9669_s0 + $0x98] sm:$0xff] }
  0x1d   :  { %691 = vperm.xlu1 %5283, %v429_v23   ;;  %611 = vperm.xlu0 %5282, %v413_v24   ;;  %v59_v55 = vld [vmem:[%s9669_s0 + $0xa0] sm:$0xff]  ;;  %v57_v62 = vld [vmem:[%s9669_s0 + $0x90] sm:$0xff]  ;;  %v56_v63 = vld [vmem:[%s9669_s0 + $0x88] sm:$0xff] }
  0x1e   :  { %791 = vperm.xlu2 %5284, %v449_v25   ;;  %1044 = vmatpush.msra.mxu0 %v41_v26  ;;  %v106_v56 = vld [vmem:[%s9670_s1 + $0x60] sm:$0xff]  ;;  %v95_v2 = vld [vmem:[%s9670_s1 + $0x8] sm:$0xff]  ;;  %v409_v3 = vld [vmem:[%s9671_s2 + $0xd8] sm:$0xff] }
  0x1f   :  { %5252 = vmatpush.msra.mxu1 %v41_v26  ;;  %v378_v57 = vld [vmem:[%s9670_s1 + $0x8e0] sm:$0xff]  ;;  %v425_v4 = vld [vmem:[%s9671_s2 + $0x158] sm:$0xff]  ;;  %v99_v7 = vld [vmem:[%s9670_s1 + $0x28] sm:$0xff] }
  0x20   :  { %1045 = vmatpush.msra.mxu0 %v40_v27  ;;  %v426_v59 = vld [vmem:[%s9671_s2 + $0x160] sm:$0xff]  ;;  %v389_v5 = vld [vmem:[%s9671_s2 + $0x38] sm:$0xff]  ;;  %v388_v8 = vld [vmem:[%s9671_s2 + $0x30] sm:$0xff] }
  0x21   :  { %5253 = vmatpush.msra.mxu1 %v40_v27  ;;  %v410_v60 = vld [vmem:[%s9671_s2 + $0xe0] sm:$0xff]  ;;  %v408_v9 = vld [vmem:[%s9671_s2 + $0xd0] sm:$0xff]  ;;  %v445_v10 = vld [vmem:[%s9671_s2 + $0x1f8] sm:$0xff] }
  0x22   :  { %1046 = vmatpush.msra.mxu0 %v39_v28  ;;  %v446_v61 = vld [vmem:[%s9671_s2 + $0x200] sm:$0xff]  ;;  %v103_v12 = vld [vmem:[%s9670_s1 + $0x48] sm:$0xff]  ;;  %v444_v13 = vld [vmem:[%s9671_s2 + $0x1f0] sm:$0xff] }
  0x23   :  { %5254 = vmatpush.msra.mxu1 %v39_v28  ;;  %1047 = vmatmul.f32.vlgmr.msra.gmra.mxu0 %v94_v29  ;;  %v55_v0 = vld [vmem:[%s9669_s0 + $0x80] sm:$0xff]  ;;  %v424_v14 = vld [vmem:[%s9671_s2 + $0x150] sm:$0xff]  ;;  %v387_v15 = vld [vmem:[%s9671_s2 + $0x28] sm:$0xff] }
  0x24   :  { %1251 = vmatmul.f32.vlgmr.msra.gmra.mxu1 %v366_v30  ;;  %v110_v1 = vld [vmem:[%s9670_s1 + $0x80] sm:$0xff]  ;;  %v93_v16 = vld [vmem:[%s9669_s0 + $0x1b0] sm:$0xff]  ;;  %v92_v17 = vld [vmem:[%s9669_s0 + $0x1a8] sm:$0xff] }
  0x25   :  { %1264 = vmatpush.msrb.mxu1 %v70_v31  ;;  %606 = vperm.xlu1 %5283, %v412_v32   ;;  %v114_v6 = vld [vmem:[%s9670_s1 + $0xa0] sm:$0xff]  ;;  %v90_v20 = vld [vmem:[%s9669_s0 + $0x198] sm:$0xff]  ;;  %v107_v21 = vld [vmem:[%s9670_s1 + $0x68] sm:$0xff] }
  0x26   :  { %686 = vperm.xlu2 %5284, %v428_v33   ;;  %506 = vperm.xlu0 %5282, %v392_v34   ;;  %v118_v11 = vld [vmem:[%s9670_s1 + $0xc0] sm:$0xff]  ;;  %v423_v22 = vld [vmem:[%s9671_s2 + $0x148] sm:$0xff]  ;;  %v89_v25 = vld [vmem:[%s9669_s0 + $0x190] sm:$0xff] }
  0x27   :  { %1265 = vmatpush.msrb.mxu1 %v69_v35  ;;  %5271 = vmatpush.msra.mxu3 %v93_v16  ;;  %v122_v18 = vld [vmem:[%s9670_s1 + $0xe0] sm:$0xff]  ;;  %v407_v23 = vld [vmem:[%s9671_s2 + $0xc8] sm:$0xff]  ;;  %v129_v29 = vld [vmem:[%s9670_s1 + $0x118] sm:$0xff] }
  0x28   :  { %v91_v19 = vld [vmem:[%s9669_s0 + $0x1a0] sm:$0xff]  ;;  %v443_v24 = vld [vmem:[%s9671_s2 + $0x1e8] sm:$0xff]  ;;  %v133_v35 = vld [vmem:[%s9670_s1 + $0x138] sm:$0xff] }
  0x29   :  { %1266 = vmatpush.msrb.mxu1 %v68_v36  ;;  %5272 = vmatpush.msra.mxu3 %v92_v17  ;;  %v88_v26 = vld [vmem:[%s9669_s0 + $0x188] sm:$0xff]  ;;  %v126_v27 = vld [vmem:[%s9670_s1 + $0x100] sm:$0xff] }
  0x2a   :  { %v87_v28 = vld [vmem:[%s9669_s0 + $0x180] sm:$0xff]  ;;  %v111_v30 = vld [vmem:[%s9670_s1 + $0x88] sm:$0xff] }
  0x2b   :  { %1267 = vmatpush.msrb.mxu1 %v67_v37  ;;  %1050 = vmatmul.f32.gmra.mxu0 %v98_v38  ;;  %v406_v31 = vld [vmem:[%s9671_s2 + $0xc0] sm:$0xff]  ;;  %v115_v36 = vld [vmem:[%s9670_s1 + $0xa8] sm:$0xff]  ;;  %v385_v37 = vld [vmem:[%s9671_s2 + $0x18] sm:$0xff] }
  0x2c   :  { %1254 = vmatmul.f32.gmra.mxu1 %v370_v39  ;;  %5273 = vmatpush.msra.mxu3 %v91_v19  ;;  %v422_v32 = vld [vmem:[%s9671_s2 + $0x140] sm:$0xff]  ;;  %v405_v38 = vld [vmem:[%s9671_s2 + $0xb8] sm:$0xff] }
  0x2d   :  { %1268 = vmatpush.msrb.mxu1 %v66_v40  ;;  %501 = vperm.xlu1 %5283, %v391_v41   ;;  %v386_v33 = vld [vmem:[%s9671_s2 + $0x20] sm:$0xff]  ;;  %v137_v41 = vld [vmem:[%s9670_s1 + $0x158] sm:$0xff] }
  0x2e   :  { %601 = vperm.xlu2 %5284, %v411_v42   ;;  %786 = vperm.xlu0 %5282, %v448_v43   ;;  %v130_v34 = vld [vmem:[%s9670_s1 + $0x120] sm:$0xff]  ;;  %v119_v42 = vld [vmem:[%s9670_s1 + $0xc8] sm:$0xff]  ;;  %v441_v43 = vld [vmem:[%s9671_s2 + $0x1d8] sm:$0xff] }
  0x2f   :  { %1269 = vmatpush.msrb.mxu1 %v65_v44  ;;  %5274 = vmatpush.msra.mxu3 %v90_v20  ;;  %v442_v39 = vld [vmem:[%s9671_s2 + $0x1e0] sm:$0xff]  ;;  %v421_v44 = vld [vmem:[%s9671_s2 + $0x138] sm:$0xff] }
  0x30   :  { %v134_v40 = vld [vmem:[%s9670_s1 + $0x140] sm:$0xff] }
  0x31   :  { %1270 = vmatpush.msrb.mxu1 %v64_v45  ;;  %5275 = vmatpush.msra.mxu3 %v89_v25  ;;  %v384_v45 = vld [vmem:[%s9671_s2 + $0x10] sm:$0xff] }
  0x33   :  { %1271 = vmatpush.msrb.mxu1 %v63_v46  ;;  %1053 = vmatmul.f32.gmra.mxu0 %v102_v47  ;;  %v138_v47 = vld [vmem:[%s9670_s1 + $0x160] sm:$0xff] }
  0x34   :  { %1257 = vmatmul.f32.gmra.mxu1 %v374_v48  ;;  %5276 = vmatpush.msra.mxu3 %v88_v26  ;;  %v141_v48 = vld [vmem:[%s9670_s1 + $0x178] sm:$0xff] }
  0x35   :  { %1272 = vmatpush.msrb.mxu1 %v62_v49  ;;  %781 = vperm.xlu1 %5283, %v447_v50   ;;  %v123_v49 = vld [vmem:[%s9670_s1 + $0xe8] sm:$0xff]  ;;  %v420_v50 = vld [vmem:[%s9671_s2 + $0x130] sm:$0xff] }
  0x36   :  { %681 = vperm.xlu0 %5282, %v427_v51   ;;  %496 = vperm.xlu2 %5284, %v390_v52   ;;  %v404_v51 = vld [vmem:[%s9671_s2 + $0xb0] sm:$0xff] }
  0x37   :  { %1273 = vmatpush.msrb.mxu1 %v61_v53  ;;  %5277 = vmatpush.msra.mxu3 %v87_v28  ;;  %v440_v52 = vld [vmem:[%s9671_s2 + $0x1d0] sm:$0xff] }
  0x38   :  { %5039 = vmatmul.msk.f32.vlgmr.msra.gmra.mxu3 %vm814_vm0, %v129_v29 }
  0x39   :  { %1274 = vmatpush.msrb.mxu1 %v60_v54  ;;  %v142_v54 = vld [vmem:[%s9670_s1 + $0x180] sm:$0xff] }
  0x3b   :  { %1275 = vmatpush.msrb.mxu1 %v59_v55  ;;  %1056 = vmatmul.f32.gmra.mxu0 %v106_v56  ;;  %v127_v55 = vld [vmem:[%s9670_s1 + $0x108] sm:$0xff]  ;;  %v145_v56 = vld [vmem:[%s9670_s1 + $0x198] sm:$0xff] }
  0x3c   :  { %1260 = vmatmul.f32.gmra.mxu1 %v378_v57  ;;  %v403_v57 = vld [vmem:[%s9671_s2 + $0xa8] sm:$0xff] }
  0x3d   :  { %1276 = vmatpush.msrb.mxu1 %v58_v58  ;;  %676 = vperm.xlu1 %5283, %v426_v59   ;;  %v419_v58 = vld [vmem:[%s9671_s2 + $0x128] sm:$0xff] }
  0x3e   :  { %596 = vperm.xlu0 %5282, %v410_v60   ;;  %776 = vperm.xlu2 %5284, %v446_v61   ;;  %v383_v59 = vld [vmem:[%s9671_s2 + $0x8] sm:$0xff]  ;;  %v146_v61 = vld [vmem:[%s9670_s1 + $0x1a0] sm:$0xff] }
  0x3f   :  { %1277 = vmatpush.msrb.mxu1 %v57_v62  ;;  %v131_v62 = vld [vmem:[%s9670_s1 + $0x128] sm:$0xff] }
  0x40   :  { %5040 = vmatmul.msk.f32.gmra.mxu3 %vm814_vm0, %v133_v35  ;;  %v399_v35 = vld [vmem:[%s9671_s2 + $0x88] sm:$0xff] }
  0x41   :  { %1278 = vmatpush.msrb.mxu1 %v56_v63  ;;  %v149_v63 = vld [vmem:[%s9670_s1 + $0x1b8] sm:$0xff] }
  0x43   :  { %1279 = vmatpush.msrb.mxu1 %v55_v0  ;;  %1059 = vmatmul.f32.gmra.mxu0 %v110_v1  ;;  %v382_v0 = vld [vmem:[%s9671_s2] sm:$0xff] }
  0x44   :  { %1280 = vmatmul.f32.vlgmr.msrb.gmra.mxu1 %v95_v2  ;;  %v402_v1 = vld [vmem:[%s9671_s2 + $0xa0] sm:$0xff]  ;;  %v439_v2 = vld [vmem:[%s9671_s2 + $0x1c8] sm:$0xff] }
  0x45   :  { %591 = vperm.xlu1 %5283, %v409_v3   ;;  %1739 = vmatpush.msra.mxu1 %v93_v16  ;;  %v82_v16 = vld [vmem:[%s9669_s0 + $0x158] sm:$0xff] }
  0x46   :  { %671 = vperm.xlu2 %5284, %v425_v4   ;;  %491 = vperm.xlu0 %5282, %v389_v5   ;;  %v150_v4 = vld [vmem:[%s9670_s1 + $0x1c0] sm:$0xff]  ;;  %v86_v5 = vld [vmem:[%s9669_s0 + $0x178] sm:$0xff] }
  0x47   :  { %1740 = vmatpush.msra.mxu1 %v92_v17  ;;  %5255 = vmatpush.msra.mxu2 %v86_v5  ;;  %v139_v17 = vld [vmem:[%s9670_s1 + $0x168] sm:$0xff] }
  0x48   :  { %5041 = vmatmul.msk.f32.gmra.mxu3 %vm814_vm0, %v137_v41  ;;  %1497 = vmatpush.msrb.mxu0 %v86_v5  ;;  %v74_v41 = vld [vmem:[%s9669_s0 + $0x118] sm:$0xff]  ;;  %v172_v5 = vld [vmem:[%s9670_s1 + $0x270] sm:$0xff] }
  0x49   :  { %1741 = vmatpush.msra.mxu1 %v91_v19  ;;  %v81_v19 = vld [vmem:[%s9669_s0 + $0x150] sm:$0xff] }
  0x4b   :  { %1062 = vmatmul.f32.gmra.mxu0 %v114_v6  ;;  %1742 = vmatpush.msra.mxu1 %v90_v20  ;;  %v135_v6 = vld [vmem:[%s9670_s1 + $0x148] sm:$0xff]  ;;  %v400_v20 = vld [vmem:[%s9671_s2 + $0x90] sm:$0xff] }
  0x4c   :  { %1283 = vmatmul.f32.gmra.mxu1 %v99_v7  ;;  %v153_v7 = vld [vmem:[%s9670_s1 + $0x1d8] sm:$0xff] }
  0x4d   :  { %486 = vperm.xlu1 %5283, %v388_v8   ;;  %1743 = vmatpush.msra.mxu1 %v89_v25  ;;  %v85_v8 = vld [vmem:[%s9669_s0 + $0x170] sm:$0xff] }
  0x4e   :  { %586 = vperm.xlu2 %5284, %v408_v9   ;;  %771 = vperm.xlu0 %5282, %v445_v10   ;;  %v438_v9 = vld [vmem:[%s9671_s2 + $0x1c0] sm:$0xff]  ;;  %v401_v10 = vld [vmem:[%s9671_s2 + $0x98] sm:$0xff] }
  0x4f   :  { %1744 = vmatpush.msra.mxu1 %v88_v26  ;;  %5256 = vmatpush.msra.mxu2 %v85_v8  ;;  %v158_v26 = vld [vmem:[%s9670_s1 + $0x200] sm:$0xff] }
  0x50   :  { %5042 = vmatmul.msk.f32.gmra.mxu3 %vm814_vm0, %v141_v48  ;;  %1498 = vmatpush.msrb.mxu0 %v85_v8  ;;  %v73_v48 = vld [vmem:[%s9669_s0 + $0x110] sm:$0xff] }
  0x51   :  { %1745 = vmatpush.msra.mxu1 %v87_v28 }
  0x53   :  { %1065 = vmatmul.f32.gmra.mxu0 %v118_v11  ;;  %v418_v11 = vld [vmem:[%s9671_s2 + $0x120] sm:$0xff] }
  0x54   :  { %1286 = vmatmul.f32.gmra.mxu1 %v103_v12  ;;  %v84_v12 = vld [vmem:[%s9669_s0 + $0x168] sm:$0xff] }
  0x55   :  { %766 = vperm.xlu1 %5283, %v444_v13   ;;  %5257 = vmatpush.msra.mxu2 %v84_v12  ;;  %v83_v13 = vld [vmem:[%s9669_s0 + $0x160] sm:$0xff] }
  0x56   :  { %666 = vperm.xlu0 %5282, %v424_v14   ;;  %481 = vperm.xlu2 %5284, %v387_v15   ;;  %v154_v15 = vld [vmem:[%s9670_s1 + $0x1e0] sm:$0xff] }
  0x57   :  { %5258 = vmatpush.msra.mxu2 %v83_v13  ;;  %1499 = vmatpush.msrb.mxu0 %v84_v12  ;;  %v450_v12 = vld [vmem:[%s9671_s2 + $0x220] sm:$0xff] }
  0x58   :  { %5043 = vmatmul.msk.f32.gmra.mxu3 %vm814_vm0, %v145_v56  ;;  %v168_v56 = vld [vmem:[%s9670_s1 + $0x250] sm:$0xff] }
  0x59   :  { %5259 = vmatpush.msra.mxu2 %v82_v16  ;;  %1500 = vmatpush.msrb.mxu0 %v83_v13  ;;  %v451_v13 = vld [vmem:[%s9671_s2 + $0x228] sm:$0xff] }
  0x5b   :  { %1068 = vmatmul.f32.gmra.mxu0 %v122_v18  ;;  %v157_v18 = vld [vmem:[%s9670_s1 + $0x1f8] sm:$0xff]  ;;  %5260 = vmatpush.msra.mxu2 %v81_v19 }
  0x5c   :  { %1289 = vmatmul.f32.gmra.mxu1 %v107_v21  ;;  %v417_v21 = vld [vmem:[%s9671_s2 + $0x118] sm:$0xff]  ;;  %1501 = vmatpush.msrb.mxu0 %v82_v16  ;;  %v176_v16 = vld [vmem:[%s9670_s1 + $0x290] sm:$0xff] }
  0x5d   :  { %661 = vperm.xlu1 %5283, %v423_v22   ;;  %v437_v22 = vld [vmem:[%s9671_s2 + $0x1b8] sm:$0xff] }
  0x5e   :  { %581 = vperm.xlu0 %5282, %v407_v23   ;;  %761 = vperm.xlu2 %5284, %v443_v24   ;;  %v80_v23 = vld [vmem:[%s9669_s0 + $0x148] sm:$0xff]  ;;  %v79_v24 = vld [vmem:[%s9669_s0 + $0x140] sm:$0xff] }
  0x5f   :  { %5261 = vmatpush.msra.mxu2 %v80_v23  ;;  %1502 = vmatpush.msrb.mxu0 %v81_v19 }
  0x60   :  { %5044 = vmatmul.msk.f32.gmra.mxu3 %vm814_vm0, %v149_v63  ;;  %v415_v63 = vld [vmem:[%s9671_s2 + $0x108] sm:$0xff] }
  0x61   :  { %5262 = vmatpush.msra.mxu2 %v79_v24  ;;  %1503 = vmatpush.msrb.mxu0 %v80_v23  ;;  %v2310_v23 = vld [vmem:[%s9673_s4 + $0x178] sm:$0xff] }
  0x63   :  { %1071 = vmatmul.f32.gmra.mxu0 %v126_v27  ;;  %v78_v27 = vld [vmem:[%s9669_s0 + $0x138] sm:$0xff] }
  0x64   :  { %1292 = vmatmul.f32.gmra.mxu1 %v111_v30  ;;  %v143_v30 = vld [vmem:[%s9670_s1 + $0x188] sm:$0xff]  ;;  %5263 = vmatpush.msra.mxu2 %v78_v27 }
  0x65   :  { %576 = vperm.xlu1 %5283, %v406_v31   ;;  %v161_v31 = vld [vmem:[%s9670_s1 + $0x218] sm:$0xff]  ;;  %1504 = vmatpush.msrb.mxu0 %v79_v24 }
  0x66   :  { %656 = vperm.xlu2 %5284, %v422_v32   ;;  %476 = vperm.xlu0 %5282, %v386_v33   ;;  %v77_v32 = vld [vmem:[%s9669_s0 + $0x130] sm:$0xff]  ;;  %v5855_v33 = vpop.permute.xlu2 %521  ;;  %v2278_v24 = vld [vmem:[%s9673_s4 + $0x78] sm:$0xff] }
  0x67   :  { %9687 = vst [vmem:[#allocation11_spill] sm:$0xff] %v5855_v33  ;;  %5264 = vmatpush.msra.mxu2 %v77_v32  ;;  %1505 = vmatpush.msrb.mxu0 %v78_v27 }
  0x68   :  { %5045 = vmatmul.msk.f32.gmra.mxu3 %vm814_vm0, %v153_v7 }
  0x69   :  { %1506 = vmatpush.msrb.mxu0 %v77_v32 }
  0x6b   :  { %1074 = vmatmul.f32.gmra.mxu0 %v130_v34  ;;  %v453_v34 = vld [vmem:[%s9671_s2 + $0x238] sm:$0xff] }
  0x6c   :  { %1295 = vmatmul.f32.gmra.mxu1 %v115_v36  ;;  %v436_v36 = vld [vmem:[%s9671_s2 + $0x1b0] sm:$0xff] }
  0x6d   :  { %471 = vperm.xlu1 %5283, %v385_v37   ;;  %v76_v37 = vld [vmem:[%s9669_s0 + $0x128] sm:$0xff] }
  0x6e   :  { %571 = vperm.xlu2 %5284, %v405_v38   ;;  %756 = vperm.xlu0 %5282, %v442_v39   ;;  %v75_v38 = vld [vmem:[%s9669_s0 + $0x120] sm:$0xff] }
  0x6f   :  { %5265 = vmatpush.msra.mxu2 %v76_v37  ;;  %1507 = vmatpush.msrb.mxu0 %v76_v37 }
  0x70   :  { %5046 = vmatmul.msk.f32.gmra.mxu3 %vm814_vm0, %v157_v18  ;;  %v174_v18 = vld [vmem:[%s9670_s1 + $0x280] sm:$0xff] }
  0x71   :  { %5266 = vmatpush.msra.mxu2 %v75_v38  ;;  %1508 = vmatpush.msrb.mxu0 %v75_v38  ;;  %v2309_v38 = vld [vmem:[%s9673_s4 + $0x170] sm:$0xff] }
  0x73   :  { %1077 = vmatmul.f32.gmra.mxu0 %v134_v40  ;;  %v162_v40 = vld [vmem:[%s9670_s1 + $0x220] sm:$0xff]  ;;  %5267 = vmatpush.msra.mxu2 %v74_v41 }
  0x74   :  { %1298 = vmatmul.f32.gmra.mxu1 %v119_v42  ;;  %1509 = vmatpush.msrb.mxu0 %v74_v41  ;;  %v2326_v41 = vld [vmem:[%s9673_s4 + $0x1f8] sm:$0xff] }
  0x75   :  { %751 = vperm.xlu1 %5283, %v441_v43   ;;  %5268 = vmatpush.msra.mxu2 %v73_v48 }
  0x76   :  { %651 = vperm.xlu0 %5282, %v421_v44   ;;  %466 = vperm.xlu2 %5284, %v384_v45   ;;  %v5705_v46 = vpop.permute.xlu1 %526  ;;  %v147_v44 = vld [vmem:[%s9670_s1 + $0x1a8] sm:$0xff]  ;;  %v165_v45 = vld [vmem:[%s9670_s1 + $0x238] sm:$0xff] }
  0x77   :  { %9681 = vst [vmem:[#allocation5_spill] sm:$0xff] %v5705_v46  ;;  %1510 = vmatpush.msrb.mxu0 %v73_v48  ;;  %v2314_v46 = vld [vmem:[%s9673_s4 + $0x198] sm:$0xff] }
  0x78   :  { %5047 = vmatmul.msk.f32.gmra.mxu3 %vm814_vm0, %v161_v31  ;;  %v178_v31 = vld [vmem:[%s9670_s1 + $0x2a0] sm:$0xff] }
  0x7b   :  { %1080 = vmatmul.f32.gmra.mxu0 %v138_v47  ;;  %v435_v47 = vld [vmem:[%s9671_s2 + $0x1a8] sm:$0xff] }
  0x7c   :  { %1301 = vmatmul.f32.gmra.mxu1 %v123_v49  ;;  %v452_v49 = vld [vmem:[%s9671_s2 + $0x230] sm:$0xff] }
  0x7d   :  { %646 = vperm.xlu1 %5283, %v420_v50   ;;  %v416_v50 = vld [vmem:[%s9671_s2 + $0x110] sm:$0xff] }
  0x7e   :  { %566 = vperm.xlu0 %5282, %v404_v51   ;;  %746 = vperm.xlu2 %5284, %v440_v52   ;;  %v5726_v53 = vpop.permute.xlu1 %706  ;;  %v5904_v51 = vpop.permute.xlu2 %701  ;;  %v72_v52 = vld [vmem:[%s9669_s0 + $0x108] sm:$0xff] }
  0x7f   :  { %9682 = vst [vmem:[#allocation6_spill] sm:$0xff] %v5726_v53  ;;  %5269 = vmatpush.msra.mxu2 %v72_v52  ;;  %1511 = vmatpush.msrb.mxu0 %v72_v52  ;;  %v185_v52 = vld [vmem:[%s9670_s1 + $0x2d8] sm:$0xff] }
  0x80   :  { %5048 = vmatmul.msk.f32.gmra.mxu3 %vm814_vm0, %v165_v45  ;;  %9690 = vst [vmem:[#allocation14_spill] sm:$0xff] %v5904_v51  ;;  %v184_v45 = vld [vmem:[%s9670_s1 + $0x2d0] sm:$0xff]  ;;  %v242_v51 = vld [vmem:[%s9670_s1 + $0x4a0] sm:$0xff] }
  0x83   :  { %1083 = vmatmul.f32.gmra.mxu0 %v142_v54  ;;  %v71_v54 = vld [vmem:[%s9669_s0 + $0x100] sm:$0xff] }
  0x84   :  { %1304 = vmatmul.f32.gmra.mxu1 %v127_v55  ;;  %5270 = vmatpush.msra.mxu2 %v71_v54 }
  0x85   :  { %561 = vperm.xlu1 %5283, %v403_v57   ;;  %v166_v57 = vld [vmem:[%s9670_s1 + $0x240] sm:$0xff]  ;;  %1567 = vmatmul.f32.vlgmr.msra.gmra.mxu2 %v168_v56  ;;  %v2276_v56 = vld [vmem:[%s9673_s4 + $0x68] sm:$0xff] }
  0x86   :  { %641 = vperm.xlu2 %5284, %v419_v58   ;;  %461 = vperm.xlu0 %5282, %v383_v59   ;;  %v5747_v60 = vpop.permute.xlu1 %696 }
  0x87   :  { %9683 = vst [vmem:[#allocation7_spill] sm:$0xff] %v5747_v60  ;;  %1512 = vmatpush.msrb.mxu0 %v71_v54  ;;  %v2293_v54 = vld [vmem:[%s9673_s4 + $0xf0] sm:$0xff]  ;;  %v238_v60 = vld [vmem:[%s9670_s1 + $0x480] sm:$0xff] }
  0x8b   :  { %1086 = vmatmul.f32.gmra.mxu0 %v146_v61  ;;  %v151_v61 = vld [vmem:[%s9670_s1 + $0x1c8] sm:$0xff] }
  0x8c   :  { %1307 = vmatmul.f32.gmra.mxu1 %v131_v62  ;;  %v169_v62 = vld [vmem:[%s9670_s1 + $0x258] sm:$0xff] }
  0x8d   :  { %456 = vperm.xlu1 %5283, %v382_v0   ;;  %5049 = vmatmul.msk.f32.gmra.mxu3 %vm814_vm0, %v169_v62  ;;  %v434_v0 = vld [vmem:[%s9671_s2 + $0x1a0] sm:$0xff] }
  0x8e   :  { %556 = vperm.xlu2 %5284, %v402_v1   ;;  %741 = vperm.xlu0 %5282, %v439_v2   ;;  %v398_v1 = vld [vmem:[%s9671_s2 + $0x80] sm:$0xff]  ;;  %v5940_v2 = vpop.permute.xlu2 %511 }
  0x8f   :  { %v5768_v3 = vpop.permute.xlu1 %691  ;;  %9693 = vst [vmem:[#allocation17_spill] sm:$0xff] %v5940_v2  ;;  %1570 = vmatmul.f32.gmra.mxu2 %v172_v5 }
  0x93   :  { %1089 = vmatmul.f32.gmra.mxu0 %v150_v4 }
  0x94   :  { %1310 = vmatmul.f32.gmra.mxu1 %v135_v6  ;;  %v170_v6 = vld [vmem:[%s9670_s1 + $0x260] sm:$0xff] }
  0x95   :  { %736 = vperm.xlu1 %5283, %v438_v9   ;;  %v155_v9 = vld [vmem:[%s9670_s1 + $0x1e8] sm:$0xff] }
  0x96   :  { %551 = vperm.xlu2 %5284, %v401_v10   ;;  %636 = vperm.xlu0 %5282, %v418_v11   ;;  %v173_v10 = vld [vmem:[%s9670_s1 + $0x278] sm:$0xff]  ;;  %v414_v11 = vld [vmem:[%s9671_s2 + $0x100] sm:$0xff] }
  0x97   :  { %v5801_v14 = vpop.permute.xlu1 %606  ;;  %5050 = vmatmul.msk.f32.gmra.mxu3 %vm814_vm0, %v173_v10  ;;  %1573 = vmatmul.f32.gmra.mxu2 %v176_v16  ;;  %v189_v10 = vld [vmem:[%s9670_s1 + $0x2f8] sm:$0xff] }
  0x9b   :  { %1092 = vmatmul.f32.gmra.mxu0 %v154_v15 }
  0x9c   :  { %1313 = vmatmul.f32.gmra.mxu1 %v139_v17  ;;  %v5975_v17 = vpop.permute.xlu2 %791 }
  0x9d   :  { %546 = vperm.xlu1 %5283, %v400_v20  }
  0x9e   :  { %631 = vperm.xlu2 %5284, %v417_v21   ;;  %731 = vperm.xlu0 %5282, %v437_v22   ;;  %v159_v21 = vld [vmem:[%s9670_s1 + $0x208] sm:$0xff]  ;;  %v177_v22 = vld [vmem:[%s9670_s1 + $0x298] sm:$0xff] }
  0x9f   :  { %v5834_v25 = vpop.permute.xlu1 %501  ;;  %5051 = vmatmul.msk.f32.gmra.mxu3 %vm814_vm0, %v177_v22 }
  0xa0   :  { %9684 = vst [vmem:[#allocation8_spill] sm:$0xff] %v5834_v25  ;;  %v5842_v28 = vpop.f32.mrf.mxu0 }
  0xa1   :  { %9685 = vst [vmem:[#allocation9_spill] sm:$0xff] %v5842_v28  ;;  %v5844_v29 = vpop.f32.mrf.mxu1 }
  0xa2   :  { %9686 = vst [vmem:[#allocation10_spill] sm:$0xff] %v5844_v29 }
  0xa3   :  { %1095 = vmatmul.f32.gmra.mxu0 %v158_v26  ;;  %v2277_v26 = vld [vmem:[%s9673_s4 + $0x70] sm:$0xff] }
  0xa4   :  { %1316 = vmatmul.f32.gmra.mxu1 %v143_v30  ;;  %v180_v30 = vld [vmem:[%s9670_s1 + $0x2b0] sm:$0xff]  ;;  %v6018_v37 = vpop.permute.xlu2 %686 }
  0xa5   :  { %811 = vperm.xlu1 %5283, %v453_v34   ;;  %1576 = vmatmul.f32.gmra.mxu2 %v180_v30  ;;  %v175_v30 = vld [vmem:[%s9670_s1 + $0x288] sm:$0xff] }
  0xa6   :  { %541 = vperm.xlu2 %5284, %v399_v35   ;;  %726 = vperm.xlu0 %5282, %v436_v36   ;;  %v163_v35 = vld [vmem:[%s9670_s1 + $0x228] sm:$0xff]  ;;  %v181_v36 = vld [vmem:[%s9670_s1 + $0x2b8] sm:$0xff] }
  0xa7   :  { %v5873_v39 = vpop.permute.xlu1 %781  ;;  %5052 = vmatmul.msk.f32.gmra.mxu3 %vm814_vm0, %v181_v36 }
  0xa8   :  { %v5881_v42 = vpop.f32.mrf.mxu0 }
  0xa9   :  { %9688 = vst [vmem:[#allocation12_spill] sm:$0xff] %v5881_v42  ;;  %v5883_v43 = vpop.f32.mrf.mxu1  ;;  %v254_v42 = vld [vmem:[%s9670_s1 + $0x500] sm:$0xff] }
  0xaa   :  { %9689 = vst [vmem:[#allocation13_spill] sm:$0xff] %v5883_v43 }
  0xab   :  { %1098 = vmatmul.f32.gmra.mxu0 %v162_v40  ;;  %v2294_v40 = vld [vmem:[%s9673_s4 + $0xf8] sm:$0xff] }
  0xac   :  { %1319 = vmatmul.f32.gmra.mxu1 %v147_v44 }
  0xad   :  { %721 = vperm.xlu1 %5283, %v435_v47   ;;  %v182_v47 = vld [vmem:[%s9670_s1 + $0x2c0] sm:$0xff]  ;;  %1579 = vmatmul.f32.gmra.mxu2 %v184_v45  ;;  %v196_v45 = vld [vmem:[%s9670_s1 + $0x330] sm:$0xff] }
  0xae   :  { %806 = vperm.xlu2 %5284, %v452_v49   ;;  %626 = vperm.xlu0 %5282, %v416_v50   ;;  %v167_v50 = vld [vmem:[%s9670_s1 + $0x248] sm:$0xff] }
  0xaf   :  { %v5912_v55 = vpop.permute.xlu1 %676  ;;  %5053 = vmatmul.msk.f32.gmra.mxu3 %vm814_vm0, %v185_v52 }
  0xb0   :  { %v5920_v58 = vpop.f32.mrf.mxu0 }
  0xb1   :  { %9691 = vst [vmem:[#allocation15_spill] sm:$0xff] %v5920_v58  ;;  %v5922_v59 = vpop.f32.mrf.mxu1 }
  0xb2   :  { %9692 = vst [vmem:[#allocation16_spill] sm:$0xff] %v5922_v59 }
  0xb3   :  { %1101 = vmatmul.f32.gmra.mxu0 %v166_v57  ;;  %v2308_v57 = vld [vmem:[%s9673_s4 + $0x168] sm:$0xff] }
  0xb4   :  { %1322 = vmatmul.f32.gmra.mxu1 %v151_v61  ;;  %v6058_v61 = vpop.permute.xlu2 %601 }
  0xb5   :  { %621 = vperm.xlu1 %5283, %v415_v63   ;;  %v188_v63 = vld [vmem:[%s9670_s1 + $0x2f0] sm:$0xff] }
  0xb6   :  { %716 = vperm.xlu2 %5284, %v434_v0   ;;  %536 = vperm.xlu0 %5282, %v398_v1   ;;  %v6065_v0 = vpop.permute.xlu0 %531  ;;  %v186_v1 = vld [vmem:[%s9670_s1 + $0x2e0] sm:$0xff] }
  0xb7   :  { %v5942_v4 = vpop.permute.xlu1 %591  ;;  %9702 = vst [vmem:[#allocation26_spill] sm:$0xff] %v6065_v0  ;;  %1582 = vmatmul.f32.gmra.mxu2 %v188_v63  ;;  %5054 = vmatmul.msk.f32.gmra.mxu3 %vm814_vm0, %v189_v10  ;;  %v2306_v63 = vld [vmem:[%s9673_s4 + $0x158] sm:$0xff] }
  0xb8   :  { %v5950_v7 = vpop.f32.mrf.mxu0 }
  0xb9   :  { %v5952_v8 = vpop.f32.mrf.mxu1 }
  0xba   :  { %9694 = vst [vmem:[#allocation18_spill] sm:$0xff] %v5952_v8  ;;  %v304_v8 = vld [vmem:[%s9670_s1 + $0x690] sm:$0xff] }
  0xbb   :  { %1104 = vmatmul.f32.gmra.mxu0 %v170_v6 }
  0xbc   :  { %1325 = vmatmul.f32.gmra.mxu1 %v155_v9  ;;  %v171_v9 = vld [vmem:[%s9670_s1 + $0x268] sm:$0xff]  ;;  %v6088_v16 = vpop.permute.xlu2 %496 }
  0xbd   :  { %616 = vperm.xlu1 %5283, %v414_v11   ;;  %v2275_v11 = vld [vmem:[%s9673_s4 + $0x60] sm:$0xff]  ;;  %9704 = vst [vmem:[#allocation28_spill] sm:$0xff] %v6088_v16 }
  0xbe   :  { %796 = vperm.xlu2 %5284, %v450_v12   ;;  %801 = vperm.xlu0 %5282, %v451_v13   ;;  %v2325_v12 = vld [vmem:[%s9673_s4 + $0x1f0] sm:$0xff]  ;;  %v2292_v13 = vld [vmem:[%s9673_s4 + $0xe8] sm:$0xff] }
  0xbf   :  { %v5970_v15 = vpop.permute.xlu1 %486 }
  0xc0   :  { %9695 = vst [vmem:[#allocation19_spill] sm:$0xff] %v5970_v15  ;;  %v5980_v19 = vpop.f32.mrf.mxu0 }
  0xc1   :  { %9696 = vst [vmem:[#allocation20_spill] sm:$0xff] %v5980_v19  ;;  %v5982_v20 = vpop.f32.mrf.mxu1 }
  0xc2   :  { %9697 = vst [vmem:[#allocation21_spill] sm:$0xff] %v5982_v20 }
  0xc3   :  { %1107 = vmatmul.f32.gmra.mxu0 %v174_v18 }
  0xc4   :  { %1328 = vmatmul.f32.gmra.mxu1 %v159_v21  ;;  %v192_v21 = vld [vmem:[%s9670_s1 + $0x310] sm:$0xff] }
  0xc5   :  { %2564 = vperm.xlu1 %5283, %v2310_v23   ;;  %v190_v23 = vld [vmem:[%s9670_s1 + $0x300] sm:$0xff]  ;;  %1585 = vmatmul.f32.gmra.mxu2 %v192_v21  ;;  %v183_v21 = vld [vmem:[%s9670_s1 + $0x2c8] sm:$0xff] }
  0xc6   :  { %2404 = vperm.xlu0 %5282, %v2278_v24   ;;  %2399 = vperm.xlu2 %5284, %v2277_v26  }
  0xc7   :  { %v6000_v27 = vpop.permute.xlu1 %766 }
  0xc8   :  { %v6008_v32 = vpop.f32.mrf.mxu0 }
  0xc9   :  { %9698 = vst [vmem:[#allocation22_spill] sm:$0xff] %v6008_v32  ;;  %v6010_v34 = vpop.f32.mrf.mxu1  ;;  %v234_v32 = vld [vmem:[%s9670_s1 + $0x460] sm:$0xff] }
  0xca   :  { %9699 = vst [vmem:[#allocation23_spill] sm:$0xff] %v6010_v34 }
  0xcb   :  { %1110 = vmatmul.f32.gmra.mxu0 %v178_v31  ;;  %v193_v31 = vld [vmem:[%s9670_s1 + $0x318] sm:$0xff] }
  0xcc   :  { %1331 = vmatmul.f32.gmra.mxu1 %v163_v35  ;;  %v6107_v35 = vpop.permute.xlu0 %711  ;;  %5055 = vmatmul.msk.f32.gmra.mxu3 %vm814_vm0, %v193_v31  ;;  %v2273_v31 = vld [vmem:[%s9673_s4 + $0x50] sm:$0xff] }
  0xcd   :  { %2559 = vperm.xlu1 %5283, %v2309_v38   ;;  %9707 = vst [vmem:[#allocation31_spill] sm:$0xff] %v6107_v35  ;;  %v2307_v38 = vld [vmem:[%s9673_s4 + $0x160] sm:$0xff]  ;;  %1588 = vmatmul.f32.gmra.mxu2 %v196_v45  ;;  %v204_v45 = vld [vmem:[%s9670_s1 + $0x370] sm:$0xff] }
  0xce   :  { %2484 = vperm.xlu0 %5282, %v2294_v40   ;;  %2644 = vperm.xlu2 %5284, %v2326_v41   ;;  %v2274_v40 = vld [vmem:[%s9673_s4 + $0x58] sm:$0xff]  ;;  %v6121_v41 = vpop.f32.mrf.mxu3 }
  0xcf   :  { %v6030_v44 = vpop.permute.xlu1 %661  ;;  %9709 = vst [vmem:[#allocation33_spill] sm:$0xff] %v6121_v41 }
  0xd0   :  { %v6038_v48 = vpop.f32.mrf.mxu0 }
  0xd1   :  { %9700 = vst [vmem:[#allocation24_spill] sm:$0xff] %v6038_v48  ;;  %v6040_v49 = vpop.f32.mrf.mxu1 }
  0xd2   :  { %9701 = vst [vmem:[#allocation25_spill] sm:$0xff] %v6040_v49 }
  0xd3   :  { %1113 = vmatmul.f32.gmra.mxu0 %v182_v47  ;;  %v6126_v47 = vpop.permute.xlu2 %776 }
  0xd4   :  { %1334 = vmatmul.f32.gmra.mxu1 %v167_v50  ;;  %v194_v50 = vld [vmem:[%s9670_s1 + $0x320] sm:$0xff] }
  0xd5   :  { %2479 = vperm.xlu1 %5283, %v2293_v54  }
  0xd6   :  { %2394 = vperm.xlu0 %5282, %v2276_v56   ;;  %2554 = vperm.xlu2 %5284, %v2308_v57   ;;  %v179_v56 = vld [vmem:[%s9670_s1 + $0x2a8] sm:$0xff]  ;;  %v197_v57 = vld [vmem:[%s9670_s1 + $0x338] sm:$0xff]  ;;  %v6153_v10 = vpop.f32.mrf.mxu3 }
  0xd7   :  { %v6060_v62 = vpop.permute.xlu1 %576  ;;  %5056 = vmatmul.msk.f32.gmra.mxu3 %vm814_vm0, %v197_v57  ;;  %9713 = vst [vmem:[#allocation37_spill] sm:$0xff] %v6153_v10 }
  0xd8   :  { %v6070_v5 = vpop.f32.mrf.mxu0 }
  0xd9   :  { %9703 = vst [vmem:[#allocation27_spill] sm:$0xff] %v6070_v5  ;;  %v1290_v6 = vpop.f32.mrf.mxu1 }
  0xdb   :  { %1116 = vmatmul.f32.gmra.mxu0 %v186_v1  ;;  %v2291_v1 = vld [vmem:[%s9673_s4 + $0xe0] sm:$0xff] }
  0xdc   :  { %1337 = vmatmul.f32.gmra.mxu1 %v171_v9  ;;  %v6151_v9 = vpop.permute.xlu0 %516 }
  0xdd   :  { %2389 = vperm.xlu1 %5283, %v2275_v11   ;;  %9712 = vst [vmem:[#allocation36_spill] sm:$0xff] %v6151_v9  ;;  %v200_v11 = vld [vmem:[%s9670_s1 + $0x350] sm:$0xff] }
  0xde   :  { %2639 = vperm.xlu0 %5282, %v2325_v12   ;;  %2474 = vperm.xlu2 %5284, %v2292_v13   ;;  %v198_v12 = vld [vmem:[%s9670_s1 + $0x340] sm:$0xff] }
  0xdf   :  { %v472_v18 = vpop.permute.xlu1 %471  ;;  %1591 = vmatmul.f32.gmra.mxu2 %v200_v11  ;;  %v2322_v11 = vld [vmem:[%s9673_s4 + $0x1d8] sm:$0xff] }
  0xe0   :  { %v1058_v22 = vadd.f32 %v5950_v7, %v472_v18  ;;  %v6097_v24 = vpop.f32.mrf.mxu0  ;;  %v2324_v7 = vld [vmem:[%s9673_s4 + $0x1e8] sm:$0xff] }
  0xe1   :  { %9705 = vst [vmem:[#allocation29_spill] sm:$0xff] %v6097_v24  ;;  %v6099_v26 = vpop.f32.mrf.mxu1 }
  0xe2   :  { %9706 = vst [vmem:[#allocation30_spill] sm:$0xff] %v6099_v26  ;;  %v6113_v36 = vadd.f32 %v1290_v6, %v1058_v22  ;;  %v2323_v6 = vld [vmem:[%s9673_s4 + $0x1e0] sm:$0xff]  ;;  %v201_v22 = vld [vmem:[%s9670_s1 + $0x358] sm:$0xff] }
  0xe3   :  { %1119 = vmatmul.f32.gmra.mxu0 %v190_v23  ;;  %v6171_v23 = vpop.permute.xlu2 %671  ;;  %5057 = vmatmul.msk.f32.gmra.mxu3 %vm814_vm0, %v201_v22 }
  0xe4   :  { %9708 = vst [vmem:[#allocation32_spill] sm:$0xff] %v6113_v36  ;;  %1340 = vmatmul.f32.gmra.mxu1 %v175_v30  ;;  %v2290_v30 = vld [vmem:[%s9673_s4 + $0xd8] sm:$0xff]  ;;  %v246_v36 = vld [vmem:[%s9670_s1 + $0x4c0] sm:$0xff] }
  0xe5   :  { %2634 = vperm.xlu1 %5283, %v2324_v7   ;;  %v2305_v7 = vld [vmem:[%s9673_s4 + $0x150] sm:$0xff] }
  0xe6   :  { %2549 = vperm.xlu0 %5282, %v2307_v38   ;;  %2384 = vperm.xlu2 %5284, %v2274_v40   ;;  %v6183_v38 = vpop.f32.mrf.mxu3  ;;  %v6185_v40 = vpop.permute.xlu0 %611 }
  0xe7   :  { %9716 = vst [vmem:[#allocation40_spill] sm:$0xff] %v6183_v38  ;;  %1594 = vmatmul.f32.gmra.mxu2 %v204_v45 }
  0xe8   :  { %v6131_v52 = vpop.f32.mrf.mxu0 }
  0xe9   :  { %9710 = vst [vmem:[#allocation34_spill] sm:$0xff] %v6131_v52  ;;  %v6133_v54 = vpop.f32.mrf.mxu1 }
  0xea   :  { %9711 = vst [vmem:[#allocation35_spill] sm:$0xff] %v6133_v54 }
  0xeb   :  { %1122 = vmatmul.f32.gmra.mxu0 %v194_v50  ;;  %v202_v50 = vld [vmem:[%s9670_s1 + $0x360] sm:$0xff] }
  0xec   :  { %1343 = vmatmul.f32.gmra.mxu1 %v179_v56 }
  0xed   :  { %2544 = vperm.xlu1 %5283, %v2306_v63   ;;  %v187_v63 = vld [vmem:[%s9670_s1 + $0x2e8] sm:$0xff] }
  0xee   :  { %2469 = vperm.xlu0 %5282, %v2291_v1   ;;  %2629 = vperm.xlu2 %5284, %v2323_v6   ;;  %v205_v1 = vld [vmem:[%s9670_s1 + $0x378] sm:$0xff]  ;;  %v2272_v6 = vld [vmem:[%s9673_s4 + $0x48] sm:$0xff]  ;;  %v6215_v22 = vpop.f32.mrf.mxu3 }
  0xef   :  { %5058 = vmatmul.msk.f32.gmra.mxu3 %vm814_vm0, %v205_v1  ;;  %9719 = vst [vmem:[#allocation43_spill] sm:$0xff] %v6215_v22  ;;  %v209_v1 = vld [vmem:[%s9670_s1 + $0x398] sm:$0xff] }
  0xf0   :  { %v6161_v13 = vpop.f32.mrf.mxu0 }
  0xf1   :  { %9714 = vst [vmem:[#allocation38_spill] sm:$0xff] %v6161_v13  ;;  %v6163_v18 = vpop.f32.mrf.mxu1 }
  0xf2   :  { %9715 = vst [vmem:[#allocation39_spill] sm:$0xff] %v6163_v18  ;;  %v2320_v18 = vld [vmem:[%s9673_s4 + $0x1c8] sm:$0xff] }
  0xf3   :  { %1125 = vmatmul.f32.gmra.mxu0 %v198_v12  ;;  %v2289_v12 = vld [vmem:[%s9673_s4 + $0xd0] sm:$0xff] }
  0xf4   :  { %1346 = vmatmul.f32.gmra.mxu1 %v183_v21  ;;  %v6213_v21 = vpop.permute.xlu2 %586 }
  0xf5   :  { %2464 = vperm.xlu1 %5283, %v2290_v30   ;;  %v208_v30 = vld [vmem:[%s9670_s1 + $0x390] sm:$0xff] }
  0xf6   :  { %2379 = vperm.xlu0 %5282, %v2273_v31   ;;  %2539 = vperm.xlu2 %5284, %v2305_v7   ;;  %v6220_v31 = vpop.permute.xlu0 %506  ;;  %v206_v7 = vld [vmem:[%s9670_s1 + $0x380] sm:$0xff] }
  0xf7   :  { %9720 = vst [vmem:[#allocation44_spill] sm:$0xff] %v6220_v31  ;;  %1597 = vmatmul.f32.gmra.mxu2 %v208_v30  ;;  %5059 = vmatmul.msk.f32.gmra.mxu3 %vm814_vm0, %v209_v1  ;;  %v6245_v30 = vpop.f32.mrf.mxu3  ;;  %v210_v1 = vld [vmem:[%s9670_s1 + $0x3a0] sm:$0xff] }
  0xf8   :  { %v6193_v56 = vpop.f32.mrf.mxu0  ;;  %9723 = vst [vmem:[#allocation47_spill] sm:$0xff] %v6245_v30  ;;  %v226_v31 = vld [vmem:[%s9670_s1 + $0x420] sm:$0xff] }
  0xf9   :  { %9717 = vst [vmem:[#allocation41_spill] sm:$0xff] %v6193_v56  ;;  %v6195_v57 = vpop.f32.mrf.mxu1  ;;  %v2299_v56 = vld [vmem:[%s9673_s4 + $0x120] sm:$0xff] }
  0xfa   :  { %9718 = vst [vmem:[#allocation42_spill] sm:$0xff] %v6195_v57 }
  0xfb   :  { %1128 = vmatmul.f32.gmra.mxu0 %v202_v50 }
  0xfc   :  { %1349 = vmatmul.f32.gmra.mxu1 %v187_v63  ;;  %v191_v63 = vld [vmem:[%s9670_s1 + $0x308] sm:$0xff]  ;;  %v6247_v41 = vpop.permute.xlu2 %481 }
  0xfd   :  { %2374 = vperm.xlu1 %5283, %v2272_v6   ;;  %v2321_v6 = vld [vmem:[%s9673_s4 + $0x1d0] sm:$0xff]  ;;  %9724 = vst [vmem:[#allocation48_spill] sm:$0xff] %v6247_v41 }
  0xfe   :  { %2624 = vperm.xlu0 %5282, %v2322_v11   ;;  %2459 = vperm.xlu2 %5284, %v2289_v12   ;;  %v2304_v11 = vld [vmem:[%s9673_s4 + $0x148] sm:$0xff]  ;;  %v2271_v12 = vld [vmem:[%s9673_s4 + $0x40] sm:$0xff] }
  0xff   :  { %v6277_v38 = vpop.f32.mrf.mxu3 }
 0x100   :  { %v6225_v45 = vpop.f32.mrf.mxu0  ;;  %9727 = vst [vmem:[#allocation51_spill] sm:$0xff] %v6277_v38 }
 0x101   :  { %9721 = vst [vmem:[#allocation45_spill] sm:$0xff] %v6225_v45  ;;  %v6227_v50 = vpop.f32.mrf.mxu1 }
 0x102   :  { %9722 = vst [vmem:[#allocation46_spill] sm:$0xff] %v6227_v50 }
 0x103   :  { %1131 = vmatmul.f32.gmra.mxu0 %v206_v7  ;;  %v212_v7 = vld [vmem:[%s9670_s1 + $0x3b0] sm:$0xff] }
 0x104   :  { %1352 = vmatmul.f32.gmra.mxu1 %v191_v63  ;;  %1600 = vmatmul.f32.gmra.mxu2 %v212_v7  ;;  %v195_v63 = vld [vmem:[%s9670_s1 + $0x328] sm:$0xff]  ;;  %v6282_v22 = vpop.permute.xlu2 %761 }
 0x105   :  { %2619 = vperm.xlu1 %5283, %v2321_v6   ;;  %v213_v6 = vld [vmem:[%s9670_s1 + $0x3b8] sm:$0xff]  ;;  %v2288_v7 = vld [vmem:[%s9673_s4 + $0xc8] sm:$0xff] }
 0x106   :  { %2534 = vperm.xlu0 %5282, %v2304_v11   ;;  %2369 = vperm.xlu2 %5284, %v2271_v12   ;;  %v6265_v11 = vpop.permute.xlu0 %786  ;;  %v2303_v12 = vld [vmem:[%s9673_s4 + $0x140] sm:$0xff] }
 0x107   :  { %5060 = vmatmul.msk.f32.gmra.mxu3 %vm814_vm0, %v213_v6  ;;  %v216_v6 = vld [vmem:[%s9670_s1 + $0x3d0] sm:$0xff]  ;;  %v6309_v54 = vpop.f32.mrf.mxu3 }
 0x108   :  { %v6255_v10 = vpop.f32.mrf.mxu0  ;;  %9730 = vst [vmem:[#allocation54_spill] sm:$0xff] %v6309_v54  ;;  %v6436_v15 = vpop.f32.mrf.mxu2 }
 0x109   :  { %9725 = vst [vmem:[#allocation49_spill] sm:$0xff] %v6255_v10  ;;  %v6257_v57 = vpop.f32.mrf.mxu1 }
 0x10a   :  { %9726 = vst [vmem:[#allocation50_spill] sm:$0xff] %v6257_v57 }
 0x10b   :  { %1134 = vmatmul.f32.gmra.mxu0 %v210_v1  ;;  %v214_v1 = vld [vmem:[%s9670_s1 + $0x3c0] sm:$0xff] }
 0x10c   :  { %1355 = vmatmul.f32.gmra.mxu1 %v195_v63  ;;  %1603 = vmatmul.f32.gmra.mxu2 %v216_v6  ;;  %v199_v63 = vld [vmem:[%s9670_s1 + $0x348] sm:$0xff]  ;;  %v2302_v6 = vld [vmem:[%s9673_s4 + $0x138] sm:$0xff]  ;;  %v6327_v16 = vpop.permute.xlu2 %656 }
 0x10d   :  { %2529 = vperm.xlu1 %5283, %v2303_v12   ;;  %v2287_v12 = vld [vmem:[%s9673_s4 + $0xc0] sm:$0xff] }
 0x10e   :  { %2454 = vperm.xlu0 %5282, %v2288_v7   ;;  %2614 = vperm.xlu2 %5284, %v2320_v18   ;;  %v217_v18 = vld [vmem:[%s9670_s1 + $0x3d8] sm:$0xff]  ;;  %v6307_v57 = vpop.permute.xlu0 %681 }
 0x10f   :  { %5061 = vmatmul.msk.f32.gmra.mxu3 %vm814_vm0, %v217_v18  ;;  %v2270_v7 = vld [vmem:[%s9673_s4 + $0x38] sm:$0xff]  ;;  %v220_v18 = vld [vmem:[%s9670_s1 + $0x3f0] sm:$0xff]  ;;  %v6341_v52 = vpop.f32.mrf.mxu3 }
 0x110   :  { %v6287_v50 = vpop.f32.mrf.mxu0  ;;  %9733 = vst [vmem:[#allocation57_spill] sm:$0xff] %v6341_v52 }
 0x111   :  { %9728 = vst [vmem:[#allocation52_spill] sm:$0xff] %v6287_v50  ;;  %v6289_v30 = vpop.f32.mrf.mxu1 }
 0x112   :  { %9729 = vst [vmem:[#allocation53_spill] sm:$0xff] %v6289_v30  ;;  %v6339_v30 = vpop.permute.xlu1 %751 }
 0x113   :  { %1137 = vmatmul.f32.gmra.mxu0 %v214_v1  ;;  %v218_v1 = vld [vmem:[%s9670_s1 + $0x3e0] sm:$0xff] }
 0x114   :  { %1358 = vmatmul.f32.gmra.mxu1 %v199_v63  ;;  %1606 = vmatmul.f32.gmra.mxu2 %v220_v18  ;;  %v203_v63 = vld [vmem:[%s9670_s1 + $0x368] sm:$0xff]  ;;  %v2286_v18 = vld [vmem:[%s9673_s4 + $0xb8] sm:$0xff] }
 0x115   :  { %2449 = vperm.xlu1 %5283, %v2287_v12   ;;  %v221_v12 = vld [vmem:[%s9670_s1 + $0x3f8] sm:$0xff] }
 0x116   :  { %2364 = vperm.xlu0 %5282, %v2270_v7   ;;  %2524 = vperm.xlu2 %5284, %v2302_v6   ;;  %v2269_v7 = vld [vmem:[%s9673_s4 + $0x30] sm:$0xff]  ;;  %v2319_v6 = vld [vmem:[%s9673_s4 + $0x1c0] sm:$0xff]  ;;  %v6346_v25 = vpop.permute.xlu0 %596 }
 0x117   :  { %5062 = vmatmul.msk.f32.gmra.mxu3 %vm814_vm0, %v221_v12  ;;  %v224_v12 = vld [vmem:[%s9670_s1 + $0x410] sm:$0xff]  ;;  %v6373_v52 = vpop.f32.mrf.mxu3 }
 0x118   :  { %v6317_v38 = vpop.f32.mrf.mxu0  ;;  %9736 = vst [vmem:[#allocation60_spill] sm:$0xff] %v6373_v52  ;;  %v2317_v52 = vld [vmem:[%s9673_s4 + $0x1b0] sm:$0xff] }
 0x119   :  { %9731 = vst [vmem:[#allocation55_spill] sm:$0xff] %v6317_v38  ;;  %v6319_v24 = vpop.f32.mrf.mxu1  ;;  %v2283_v38 = vld [vmem:[%s9673_s4 + $0xa0] sm:$0xff] }
 0x11a   :  { %9732 = vst [vmem:[#allocation56_spill] sm:$0xff] %v6319_v24  ;;  %v6378_v13 = vpop.permute.xlu1 %646 }
 0x11b   :  { %1140 = vmatmul.f32.gmra.mxu0 %v218_v1  ;;  %v222_v1 = vld [vmem:[%s9670_s1 + $0x400] sm:$0xff] }
 0x11c   :  { %1361 = vmatmul.f32.gmra.mxu1 %v203_v63  ;;  %1609 = vmatmul.f32.gmra.mxu2 %v224_v12  ;;  %v207_v63 = vld [vmem:[%s9670_s1 + $0x388] sm:$0xff] }
 0x11d   :  { %2359 = vperm.xlu1 %5283, %v2269_v7   ;;  %v225_v7 = vld [vmem:[%s9670_s1 + $0x418] sm:$0xff]  ;;  %v2268_v12 = vld [vmem:[%s9673_s4 + $0x28] sm:$0xff] }
 0x11e   :  { %2609 = vperm.xlu0 %5282, %v2319_v6   ;;  %2444 = vperm.xlu2 %5284, %v2286_v18   ;;  %v2318_v6 = vld [vmem:[%s9673_s4 + $0x1b8] sm:$0xff]  ;;  %v2301_v18 = vld [vmem:[%s9673_s4 + $0x130] sm:$0xff] }
 0x11f   :  { %5063 = vmatmul.msk.f32.gmra.mxu3 %vm814_vm0, %v225_v7  ;;  %v228_v7 = vld [vmem:[%s9670_s1 + $0x430] sm:$0xff] }
 0x120   :  { %v6351_v54 = vpop.f32.mrf.mxu0 }
 0x121   :  { %9734 = vst [vmem:[#allocation58_spill] sm:$0xff] %v6351_v54  ;;  %v6353_v24 = vpop.f32.mrf.mxu1  ;;  %v6371_v54 = vpop.permute.xlu2 %571 }
 0x122   :  { %9735 = vst [vmem:[#allocation59_spill] sm:$0xff] %v6353_v24  ;;  %v230_v24 = vld [vmem:[%s9670_s1 + $0x440] sm:$0xff] }
 0x123   :  { %1143 = vmatmul.f32.gmra.mxu0 %v222_v1  ;;  %v6380_v1 = vpop.permute.xlu0 %491 }
 0x124   :  { %1364 = vmatmul.f32.gmra.mxu1 %v207_v63  ;;  %9737 = vst [vmem:[#allocation61_spill] sm:$0xff] %v6380_v1  ;;  %1612 = vmatmul.f32.gmra.mxu2 %v228_v7  ;;  %v2285_v7 = vld [vmem:[%s9673_s4 + $0xb0] sm:$0xff] }
 0x125   :  { %2604 = vperm.xlu1 %5283, %v2318_v6   ;;  %v211_v6 = vld [vmem:[%s9670_s1 + $0x3a8] sm:$0xff] }
 0x126   :  { %2519 = vperm.xlu0 %5282, %v2301_v18   ;;  %2354 = vperm.xlu2 %5284, %v2268_v12   ;;  %v229_v18 = vld [vmem:[%s9670_s1 + $0x438] sm:$0xff]  ;;  %v2300_v12 = vld [vmem:[%s9673_s4 + $0x128] sm:$0xff] }
 0x127   :  { %5064 = vmatmul.msk.f32.gmra.mxu3 %vm814_vm0, %v229_v18  ;;  %v232_v18 = vld [vmem:[%s9670_s1 + $0x450] sm:$0xff] }
 0x128   :  { %v6385_v5 = vpop.f32.mrf.mxu0 }
 0x129   :  { %9738 = vst [vmem:[#allocation62_spill] sm:$0xff] %v6385_v5  ;;  %v6387_v63 = vpop.f32.mrf.mxu1  ;;  %v6405_v5 = vpop.f32.mrf.mxu3 }
 0x12a   :  { %9739 = vst [vmem:[#allocation63_spill] sm:$0xff] %v6387_v63  ;;  %v6410_v1 = vpop.permute.xlu2 %466 }
 0x12b   :  { %1146 = vmatmul.f32.gmra.mxu0 %v226_v31  ;;  %9740 = vst [vmem:[#allocation64_spill] sm:$0xff] %v6405_v5  ;;  %v6412_v31 = vpop.permute.xlu1 %561  ;;  %v2267_v5 = vld [vmem:[%s9673_s4 + $0x20] sm:$0xff] }
 0x12c   :  { %1367 = vmatmul.f32.gmra.mxu1 %v211_v6  ;;  %9741 = vst [vmem:[#allocation65_spill] sm:$0xff] %v6410_v1  ;;  %1615 = vmatmul.f32.gmra.mxu2 %v232_v18  ;;  %v2284_v18 = vld [vmem:[%s9673_s4 + $0xa8] sm:$0xff] }
 0x12d   :  { %2514 = vperm.xlu1 %5283, %v2300_v12   ;;  %v215_v12 = vld [vmem:[%s9670_s1 + $0x3c8] sm:$0xff] }
 0x12e   :  { %2439 = vperm.xlu0 %5282, %v2285_v7   ;;  %2599 = vperm.xlu2 %5284, %v2317_v52   ;;  %v233_v7 = vld [vmem:[%s9670_s1 + $0x458] sm:$0xff]  ;;  %v6427_v52 = vpop.permute.xlu0 %771 }
 0x12f   :  { %5065 = vmatmul.msk.f32.gmra.mxu3 %vm814_vm0, %v233_v7 }
 0x130   :  { %v6417_v48 = vpop.f32.mrf.mxu0 }
 0x131   :  { %v6419_v6 = vpop.f32.mrf.mxu1  ;;  %v6441_v2 = vpop.f32.mrf.mxu3 }
 0x132   :  { %9742 = vst [vmem:[#allocation66_spill] sm:$0xff] %v6419_v6  ;;  %v6446_v7 = vpop.permute.xlu2 %746  ;;  %v2265_v6 = vld [vmem:[%s9673_s4 + $0x10] sm:$0xff] }
 0x133   :  { %1149 = vmatmul.f32.gmra.mxu0 %v230_v24  ;;  %v236_v24 = vld [vmem:[%s9670_s1 + $0x470] sm:$0xff] }
 0x134   :  { %1370 = vmatmul.f32.gmra.mxu1 %v215_v12  ;;  %1618 = vmatmul.f32.gmra.mxu2 %v236_v24  ;;  %v2266_v12 = vld [vmem:[%s9673_s4 + $0x18] sm:$0xff]  ;;  %v2316_v24 = vld [vmem:[%s9673_s4 + $0x1a8] sm:$0xff] }
 0x135   :  { %2434 = vperm.xlu1 %5283, %v2284_v18   ;;  %v6465_v18 = vpop.permute.xlu1 %456 }
 0x136   :  { %2349 = vperm.xlu0 %5282, %v2267_v5   ;;  %2509 = vperm.xlu2 %5284, %v2299_v56   ;;  %v219_v5 = vld [vmem:[%s9670_s1 + $0x3e8] sm:$0xff]  ;;  %v237_v56 = vld [vmem:[%s9670_s1 + $0x478] sm:$0xff]  ;;  %9744 = vst [vmem:[#allocation68_spill] sm:$0xff] %v6465_v18  ;;  %v6475_v0 = vpop.permute.xlu0 %666 }
 0x137   :  { %5066 = vmatmul.msk.f32.gmra.mxu3 %vm814_vm0, %v237_v56 }
 0x138   :  { %v6451_v41 = vpop.f32.mrf.mxu0 }
 0x139   :  { %v6453_v63 = vpop.f32.mrf.mxu1  ;;  %v6477_v56 = vpop.f32.mrf.mxu3 }
 0x13a   :  { %9743 = vst [vmem:[#allocation67_spill] sm:$0xff] %v6453_v63  ;;  %v6470_v63 = vpop.f32.mrf.mxu2 }
 0x13b   :  { %1152 = vmatmul.f32.gmra.mxu0 %v234_v32  ;;  %v240_v32 = vld [vmem:[%s9670_s1 + $0x490] sm:$0xff] }
 0x13c   :  { %1373 = vmatmul.f32.gmra.mxu1 %v219_v5  ;;  %1621 = vmatmul.f32.gmra.mxu2 %v240_v32  ;;  %v223_v5 = vld [vmem:[%s9670_s1 + $0x408] sm:$0xff]  ;;  %v2298_v32 = vld [vmem:[%s9673_s4 + $0x118] sm:$0xff] }
 0x13d   :  { %2344 = vperm.xlu1 %5283, %v2266_v12   ;;  %v2315_v12 = vld [vmem:[%s9673_s4 + $0x1a0] sm:$0xff]  ;;  %v6509_v10 = vpop.permute.xlu1 %736 }
 0x13e   :  { %2594 = vperm.xlu0 %5282, %v2316_v24   ;;  %2429 = vperm.xlu2 %5284, %v2283_v38   ;;  %v241_v38 = vld [vmem:[%s9670_s1 + $0x498] sm:$0xff]  ;;  %v6499_v24 = vpop.permute.xlu2 %641  ;;  %v6513_v33 = vpop.permute.xlu0 %581 }
 0x13f   :  { %5067 = vmatmul.msk.f32.gmra.mxu3 %vm814_vm0, %v241_v38 }
 0x140   :  { %v6485_v45 = vpop.f32.mrf.mxu0 }
 0x141   :  { %v6487_v9 = vpop.f32.mrf.mxu1  ;;  %v6511_v38 = vpop.f32.mrf.mxu3 }
 0x142   :  { %9745 = vst [vmem:[#allocation69_spill] sm:$0xff] %v6487_v9  ;;  %v6504_v9 = vpop.f32.mrf.mxu2 }
 0x143   :  { %1155 = vmatmul.f32.gmra.mxu0 %v238_v60  ;;  %v244_v60 = vld [vmem:[%s9670_s1 + $0x4b0] sm:$0xff] }
 0x144   :  { %1376 = vmatmul.f32.gmra.mxu1 %v223_v5  ;;  %1624 = vmatmul.f32.gmra.mxu2 %v244_v60  ;;  %v2282_v60 = vld [vmem:[%s9673_s4 + $0x98] sm:$0xff] }
 0x145   :  { %2589 = vperm.xlu1 %5283, %v2315_v12   ;;  %v227_v12 = vld [vmem:[%s9670_s1 + $0x428] sm:$0xff] }
 0x146   :  { %2504 = vperm.xlu0 %5282, %v2298_v32   ;;  %2339 = vperm.xlu2 %5284, %v2265_v6   ;;  %v245_v6 = vld [vmem:[%s9670_s1 + $0x4b8] sm:$0xff]  ;;  %v2297_v32 = vld [vmem:[%s9673_s4 + $0x110] sm:$0xff]  ;;  %v557_v53 = vpop.permute.xlu2 %556  ;;  %v6548_v26 = vpop.permute.xlu0 %476 }
 0x147   :  { %5068 = vmatmul.msk.f32.gmra.mxu3 %vm814_vm0, %v245_v6  ;;  %v547_v6 = vpop.permute.xlu1 %546  ;;  %9747 = vst [vmem:[#allocation71_spill] sm:$0xff] %v6548_v26  ;;  %v2296_v26 = vld [vmem:[%s9673_s4 + $0x108] sm:$0xff]  ;;  %v1109_v34 = vadd.f32 %v6485_v45, %v557_v53  ;;  %v2295_v45 = vld [vmem:[%s9673_s4 + $0x100] sm:$0xff] }
 0x148   :  { %v6521_v50 = vpop.f32.mrf.mxu0  ;;  %v1103_v19 = vadd.f32 %v6417_v48, %v547_v6  ;;  %v2281_v48 = vld [vmem:[%s9673_s4 + $0x90] sm:$0xff]  ;;  %v2264_v6 = vld [vmem:[%s9673_s4 + $0x8] sm:$0xff] }
 0x149   :  { %v6523_v5 = vpop.f32.mrf.mxu1  ;;  %v6543_v35 = vpop.f32.mrf.mxu3  ;;  %v2312_v53 = vld [vmem:[%s9673_s4 + $0x188] sm:$0xff] }
 0x14a   :  { %9746 = vst [vmem:[#allocation70_spill] sm:$0xff] %v6523_v5  ;;  %v6538_v5 = vpop.f32.mrf.mxu2 }
 0x14b   :  { %1158 = vmatmul.f32.gmra.mxu0 %v242_v51  ;;  %v248_v51 = vld [vmem:[%s9670_s1 + $0x4d0] sm:$0xff] }
 0x14c   :  { %1379 = vmatmul.f32.gmra.mxu1 %v227_v12  ;;  %1627 = vmatmul.f32.gmra.mxu2 %v248_v51 }
 0x14d   :  { %2499 = vperm.xlu1 %5283, %v2297_v32  }
 0x14e   :  { %2424 = vperm.xlu0 %5282, %v2282_v60   ;;  %2584 = vperm.xlu2 %5284, %v2314_v46   ;;  %v231_v46 = vld [vmem:[%s9670_s1 + $0x448] sm:$0xff]  ;;  %v249_v60 = vld [vmem:[%s9670_s1 + $0x4d8] sm:$0xff] }
 0x14f   :  { %5069 = vmatmul.msk.f32.gmra.mxu3 %vm814_vm0, %v249_v60  ;;  %v252_v60 = vld [vmem:[%s9670_s1 + $0x4f0] sm:$0xff] }
 0x150   :  { %v6554_v12 = vpop.f32.mrf.mxu0 }
 0x151   :  { %v1335_v32 = vpop.f32.mrf.mxu1 }
 0x152   :  { %v1336_v49 = vadd.f32 %v1335_v32, %v1103_v19  ;;  %v6569_v51 = vpop.f32.mrf.mxu2  ;;  %v6575_v19 = vpop.f32.mrf.mxu3 }
 0x153   :  { %1161 = vmatmul.f32.gmra.mxu0 %v246_v36  ;;  %v552_v36 = vpop.permute.xlu2 %551 }
 0x154   :  { %v1569_v58 = vadd.f32 %v6436_v15, %v1336_v49  ;;  %1382 = vmatmul.f32.gmra.mxu1 %v231_v46  ;;  %v1106_v1 = vadd.f32 %v6451_v41, %v552_v36  ;;  %v250_v15 = vld [vmem:[%s9670_s1 + $0x4e0] sm:$0xff]  ;;  %1630 = vmatmul.f32.gmra.mxu2 %v252_v60  ;;  %v2280_v60 = vld [vmem:[%s9673_s4 + $0x88] sm:$0xff] }
 0x155   :  { %2419 = vperm.xlu1 %5283, %v2281_v48   ;;  %v2263_v41 = vld [vmem:[%s9673_s4] sm:$0xff]  ;;  %v6599_v48 = vpop.permute.xlu0 %756 }
 0x156   :  { %v6578_v32 = vadd.f32 %v6441_v2, %v1569_v58  ;;  %2334 = vperm.xlu0 %5282, %v2264_v6   ;;  %2494 = vperm.xlu2 %5284, %v2296_v26   ;;  %v235_v58 = vld [vmem:[%s9670_s1 + $0x468] sm:$0xff]  ;;  %v253_v2 = vld [vmem:[%s9670_s1 + $0x4f8] sm:$0xff]  ;;  %v2313_v6 = vld [vmem:[%s9673_s4 + $0x190] sm:$0xff] }
 0x157   :  { %5070 = vmatmul.msk.f32.gmra.mxu3 %vm814_vm0, %v253_v2 }
 0x158   :  { %9748 = vst [vmem:[#allocation72_spill] sm:$0xff] %v6578_v32  ;;  %v6587_v49 = vpop.f32.mrf.mxu0  ;;  %v6892_v32 = vpop.permute.xlu1 %811 }
 0x159   :  { %v1338_v46 = vpop.f32.mrf.mxu1  ;;  %9759 = vst [vmem:[#allocation83_spill] sm:$0xff] %v6892_v32 }
 0x15a   :  { %v1339_v26 = vadd.f32 %v1338_v46, %v1106_v1  ;;  %v6604_v36 = vpop.f32.mrf.mxu2  ;;  %v6610_v46 = vpop.f32.mrf.mxu3 }
 0x15b   :  { %1164 = vmatmul.f32.gmra.mxu0 %v250_v15  ;;  %v256_v15 = vld [vmem:[%s9670_s1 + $0x510] sm:$0xff] }
 0x15c   :  { %v1572_v1 = vadd.f32 %v6470_v63, %v1339_v26  ;;  %1385 = vmatmul.f32.gmra.mxu1 %v235_v58  ;;  %1633 = vmatmul.f32.gmra.mxu2 %v256_v15  ;;  %v257_v26 = vld [vmem:[%s9670_s1 + $0x518] sm:$0xff] }
 0x15d   :  { %2329 = vperm.xlu1 %5283, %v2263_v41  }
 0x15e   :  { %v6613_v2 = vadd.f32 %v6477_v56, %v1572_v1  ;;  %2579 = vperm.xlu0 %5282, %v2313_v6   ;;  %2414 = vperm.xlu2 %5284, %v2280_v60   ;;  %v239_v56 = vld [vmem:[%s9670_s1 + $0x488] sm:$0xff]  ;;  %v2279_v60 = vld [vmem:[%s9673_s4 + $0x80] sm:$0xff] }
 0x15f   :  { %5071 = vmatmul.msk.f32.gmra.mxu3 %vm814_vm0, %v257_v26  ;;  %v1112_v26 = vadd.f32 %v6521_v50, %v6412_v31  ;;  %v3622_v50 = vld [vmem:[%s9675_s6 + $0x58] sm:$0xff]  ;;  %v2311_v31 = vld [vmem:[%s9673_s4 + $0x180] sm:$0xff] }
 0x160   :  { %9749 = vst [vmem:[#allocation73_spill] sm:$0xff] %v6613_v2  ;;  %v6622_v63 = vpop.f32.mrf.mxu0 }
 0x161   :  { %v1341_v58 = vpop.f32.mrf.mxu1 }
 0x162   :  { %v1342_v41 = vadd.f32 %v1341_v58, %v1109_v34  ;;  %v6637_v6 = vpop.f32.mrf.mxu2  ;;  %v6643_v34 = vpop.permute.xlu0 %651  ;;  %v260_v58 = vld [vmem:[%s9670_s1 + $0x530] sm:$0xff] }
 0x163   :  { %1167 = vmatmul.f32.gmra.mxu0 %v254_v42  ;;  %v6645_v15 = vpop.f32.mrf.mxu3 }
 0x164   :  { %v1575_v1 = vadd.f32 %v6504_v9, %v1342_v41  ;;  %1388 = vmatmul.f32.gmra.mxu1 %v239_v56  ;;  %v258_v9 = vld [vmem:[%s9670_s1 + $0x520] sm:$0xff]  ;;  %1636 = vmatmul.f32.gmra.mxu2 %v260_v58 }
 0x165   :  { %2574 = vperm.xlu1 %5283, %v2312_v53   ;;  %v261_v53 = vld [vmem:[%s9670_s1 + $0x538] sm:$0xff] }
 0x166   :  { %v6648_v42 = vadd.f32 %v6511_v38, %v1575_v1  ;;  %2489 = vperm.xlu0 %5282, %v2295_v45   ;;  %2409 = vperm.xlu2 %5284, %v2279_v60   ;;  %v243_v38 = vld [vmem:[%s9670_s1 + $0x4a8] sm:$0xff]  ;;  %v3634_v1 = vld [vmem:[%s9675_s6 + $0xb8] sm:$0xff] }
 0x167   :  { %5072 = vmatmul.msk.f32.gmra.mxu3 %vm814_vm0, %v261_v53  ;;  %v264_v53 = vld [vmem:[%s9670_s1 + $0x550] sm:$0xff] }
 0x168   :  { %9750 = vst [vmem:[#allocation74_spill] sm:$0xff] %v6648_v42  ;;  %v6658_v56 = vpop.f32.mrf.mxu0 }
 0x169   :  { %v1344_v41 = vpop.f32.mrf.mxu1 }
 0x16a   :  { %v1345_v45 = vadd.f32 %v1344_v41, %v1112_v26  ;;  %v6673_v60 = vpop.f32.mrf.mxu2 }
 0x16b   :  { %1170 = vmatmul.f32.gmra.mxu0 %v258_v9  ;;  %v6679_v26 = vpop.f32.mrf.mxu3  ;;  %v567_v9 = vpop.permute.xlu0 %566 }
 0x16c   :  { %v1578_v58 = vadd.f32 %v6538_v5, %v1345_v45  ;;  %1391 = vmatmul.f32.gmra.mxu1 %v243_v38  ;;  %v1115_v20 = vadd.f32 %v6554_v12, %v567_v9  ;;  %v262_v5 = vld [vmem:[%s9670_s1 + $0x540] sm:$0xff]  ;;  %1639 = vmatmul.f32.gmra.mxu2 %v264_v53  ;;  %v3633_v12 = vld [vmem:[%s9675_s6 + $0xb0] sm:$0xff]  ;;  %v3620_v9 = vld [vmem:[%s9675_s6 + $0x48] sm:$0xff] }
 0x16d   :  { %3692 = vperm.xlu1 %5283, %v3622_v50   ;;  %v265_v50 = vld [vmem:[%s9670_s1 + $0x558] sm:$0xff] }
 0x16e   :  { %v6682_v41 = vadd.f32 %v6543_v35, %v1578_v58  ;;  %2569 = vperm.xlu0 %5282, %v2311_v31   ;;  %3752 = vperm.xlu2 %5284, %v3634_v1   ;;  %v247_v35 = vld [vmem:[%s9670_s1 + $0x4c8] sm:$0xff]  ;;  %v3621_v1 = vld [vmem:[%s9675_s6 + $0x50] sm:$0xff] }
 0x16f   :  { %5073 = vmatmul.msk.f32.gmra.mxu3 %vm814_vm0, %v265_v50  ;;  %v1118_v50 = vadd.f32 %v6587_v49, %v6371_v54  ;;  %v3619_v54 = vld [vmem:[%s9675_s6 + $0x40] sm:$0xff]  ;;  %v3632_v49 = vld [vmem:[%s9675_s6 + $0xa8] sm:$0xff] }
 0x170   :  { %9751 = vst [vmem:[#allocation75_spill] sm:$0xff] %v6682_v41  ;;  %v6691_v38 = vpop.f32.mrf.mxu0 }
 0x171   :  { %v1347_v45 = vpop.f32.mrf.mxu1 }
 0x172   :  { %v1348_v31 = vadd.f32 %v1347_v45, %v1115_v20  ;;  %v6706_v58 = vpop.f32.mrf.mxu2 }
 0x173   :  { %1173 = vmatmul.f32.gmra.mxu0 %v262_v5  ;;  %v6712_v20 = vpop.f32.mrf.mxu3  ;;  %v268_v5 = vld [vmem:[%s9670_s1 + $0x570] sm:$0xff] }
 0x174   :  { %v1581_v53 = vadd.f32 %v6569_v51, %v1348_v31  ;;  %1394 = vmatmul.f32.gmra.mxu1 %v247_v35  ;;  %v266_v51 = vld [vmem:[%s9670_s1 + $0x560] sm:$0xff]  ;;  %1642 = vmatmul.f32.gmra.mxu2 %v268_v5 }
 0x175   :  { %3747 = vperm.xlu1 %5283, %v3633_v12   ;;  %v269_v12 = vld [vmem:[%s9670_s1 + $0x578] sm:$0xff] }
 0x176   :  { %v6715_v45 = vadd.f32 %v6575_v19, %v1581_v53  ;;  %3687 = vperm.xlu0 %5282, %v3621_v1   ;;  %3682 = vperm.xlu2 %5284, %v3620_v9   ;;  %v251_v19 = vld [vmem:[%s9670_s1 + $0x4e8] sm:$0xff]  ;;  %v3631_v53 = vld [vmem:[%s9675_s6 + $0xa0] sm:$0xff] }
 0x177   :  { %5074 = vmatmul.msk.f32.gmra.mxu3 %vm814_vm0, %v269_v12  ;;  %v1121_v12 = vadd.f32 %v6622_v63, %v6060_v62  ;;  %v3630_v62 = vld [vmem:[%s9675_s6 + $0x98] sm:$0xff] }
 0x178   :  { %9752 = vst [vmem:[#allocation76_spill] sm:$0xff] %v6715_v45  ;;  %v6725_v35 = vpop.f32.mrf.mxu0  ;;  %v3618_v63 = vld [vmem:[%s9675_s6 + $0x38] sm:$0xff] }
 0x179   :  { %v1350_v31 = vpop.f32.mrf.mxu1 }
 0x17a   :  { %v1351_v1 = vadd.f32 %v1350_v31, %v1118_v50  ;;  %v6740_v9 = vpop.f32.mrf.mxu2 }
 0x17b   :  { %1176 = vmatmul.f32.gmra.mxu0 %v266_v51  ;;  %v6746_v50 = vpop.f32.mrf.mxu3  ;;  %v272_v51 = vld [vmem:[%s9670_s1 + $0x590] sm:$0xff] }
 0x17c   :  { %v1584_v5 = vadd.f32 %v6604_v36, %v1351_v1  ;;  %1397 = vmatmul.f32.gmra.mxu1 %v251_v19  ;;  %v270_v36 = vld [vmem:[%s9670_s1 + $0x580] sm:$0xff]  ;;  %1645 = vmatmul.f32.gmra.mxu2 %v272_v51 }
 0x17d   :  { %3677 = vperm.xlu1 %5283, %v3619_v54   ;;  %v273_v54 = vld [vmem:[%s9670_s1 + $0x598] sm:$0xff] }
 0x17e   :  { %v6749_v31 = vadd.f32 %v6610_v46, %v1584_v5  ;;  %3742 = vperm.xlu0 %5282, %v3632_v49   ;;  %3737 = vperm.xlu2 %5284, %v3631_v53   ;;  %v255_v46 = vld [vmem:[%s9670_s1 + $0x508] sm:$0xff]  ;;  %v3617_v5 = vld [vmem:[%s9675_s6 + $0x30] sm:$0xff] }
 0x17f   :  { %5075 = vmatmul.msk.f32.gmra.mxu3 %vm814_vm0, %v273_v54  ;;  %v1124_v54 = vadd.f32 %v6658_v56, %v6513_v33  ;;  %v3616_v33 = vld [vmem:[%s9675_s6 + $0x28] sm:$0xff]  ;;  %v3629_v56 = vld [vmem:[%s9675_s6 + $0x90] sm:$0xff] }
 0x180   :  { %9753 = vst [vmem:[#allocation77_spill] sm:$0xff] %v6749_v31  ;;  %v6759_v19 = vpop.f32.mrf.mxu0  ;;  %v121_v31 = vld [vmem:[%s9670_s1 + $0xd8] sm:$0xff] }
 0x181   :  { %v1353_v1 = vpop.f32.mrf.mxu1 }
 0x182   :  { %v1354_v49 = vadd.f32 %v1353_v1, %v1121_v12  ;;  %v6774_v53 = vpop.f32.mrf.mxu2 }
 0x183   :  { %1179 = vmatmul.f32.gmra.mxu0 %v270_v36  ;;  %v6780_v12 = vpop.f32.mrf.mxu3  ;;  %v276_v36 = vld [vmem:[%s9670_s1 + $0x5b0] sm:$0xff] }
 0x184   :  { %v1587_v51 = vadd.f32 %v6637_v6, %v1354_v49  ;;  %1400 = vmatmul.f32.gmra.mxu1 %v255_v46  ;;  %v274_v6 = vld [vmem:[%s9670_s1 + $0x5a0] sm:$0xff]  ;;  %1648 = vmatmul.f32.gmra.mxu2 %v276_v36 }
 0x185   :  { %3732 = vperm.xlu1 %5283, %v3630_v62   ;;  %v277_v62 = vld [vmem:[%s9670_s1 + $0x5b8] sm:$0xff] }
 0x186   :  { %v6783_v1 = vadd.f32 %v6645_v15, %v1587_v51  ;;  %3672 = vperm.xlu0 %5282, %v3618_v63   ;;  %3667 = vperm.xlu2 %5284, %v3617_v5   ;;  %v259_v15 = vld [vmem:[%s9670_s1 + $0x528] sm:$0xff] }
 0x187   :  { %5076 = vmatmul.msk.f32.gmra.mxu3 %vm814_vm0, %v277_v62  ;;  %v3628_v51 = vld [vmem:[%s9675_s6 + $0x88] sm:$0xff]  ;;  %v1127_v62 = vadd.f32 %v6691_v38, %v6213_v21  ;;  %v3627_v21 = vld [vmem:[%s9675_s6 + $0x80] sm:$0xff] }
 0x188   :  { %9754 = vst [vmem:[#allocation78_spill] sm:$0xff] %v6783_v1  ;;  %v6793_v46 = vpop.f32.mrf.mxu0  ;;  %v3615_v38 = vld [vmem:[%s9675_s6 + $0x20] sm:$0xff] }
 0x189   :  { %v1356_v49 = vpop.f32.mrf.mxu1  ;;  %v1136_v28 = vadd.f32 %v6793_v46, %v6058_v61  ;;  %v3984_v61 = vld [vmem:[%s9677_s8 + $0x38] sm:$0xff]  ;;  %v6947_v46 = vpop.permute.xlu1 %721 }
 0x18a   :  { %v1357_v63 = vadd.f32 %v1356_v49, %v1124_v54  ;;  %v6808_v5 = vpop.f32.mrf.mxu2  ;;  %9760 = vst [vmem:[#allocation84_spill] sm:$0xff] %v6947_v46 }
 0x18b   :  { %1182 = vmatmul.f32.gmra.mxu0 %v274_v6  ;;  %v6814_v54 = vpop.f32.mrf.mxu3  ;;  %v280_v6 = vld [vmem:[%s9670_s1 + $0x5d0] sm:$0xff] }
 0x18c   :  { %v1590_v36 = vadd.f32 %v6673_v60, %v1357_v63  ;;  %1403 = vmatmul.f32.gmra.mxu1 %v259_v15  ;;  %v278_v60 = vld [vmem:[%s9670_s1 + $0x5c0] sm:$0xff]  ;;  %1651 = vmatmul.f32.gmra.mxu2 %v280_v6 }
 0x18d   :  { %3662 = vperm.xlu1 %5283, %v3616_v33   ;;  %v281_v33 = vld [vmem:[%s9670_s1 + $0x5d8] sm:$0xff] }
 0x18e   :  { %v6817_v49 = vadd.f32 %v6679_v26, %v1590_v36  ;;  %3727 = vperm.xlu0 %5282, %v3629_v56   ;;  %3722 = vperm.xlu2 %5284, %v3628_v51   ;;  %v263_v26 = vld [vmem:[%s9670_s1 + $0x548] sm:$0xff]  ;;  %v3614_v36 = vld [vmem:[%s9675_s6 + $0x18] sm:$0xff] }
 0x18f   :  { %5077 = vmatmul.msk.f32.gmra.mxu3 %vm814_vm0, %v281_v33  ;;  %v1130_v33 = vadd.f32 %v6725_v35, %v5942_v4  ;;  %v3613_v4 = vld [vmem:[%s9675_s6 + $0x10] sm:$0xff]  ;;  %v3626_v35 = vld [vmem:[%s9675_s6 + $0x78] sm:$0xff] }
 0x190   :  { %9755 = vst [vmem:[#allocation79_spill] sm:$0xff] %v6817_v49  ;;  %v6827_v15 = vpop.f32.mrf.mxu0 }
 0x191   :  { %v1359_v63 = vpop.f32.mrf.mxu1  ;;  %v1139_v18 = vadd.f32 %v6827_v15, %v5801_v14  ;;  %v3981_v14 = vld [vmem:[%s9677_s8 + $0x20] sm:$0xff]  ;;  %v3982_v15 = vld [vmem:[%s9677_s8 + $0x28] sm:$0xff] }
 0x192   :  { %v1360_v56 = vadd.f32 %v1359_v63, %v1127_v62  ;;  %v6842_v51 = vpop.f32.mrf.mxu2 }
 0x193   :  { %1185 = vmatmul.f32.gmra.mxu0 %v278_v60  ;;  %v6848_v62 = vpop.f32.mrf.mxu3  ;;  %v284_v60 = vld [vmem:[%s9670_s1 + $0x5f0] sm:$0xff] }
 0x194   :  { %v1593_v6 = vadd.f32 %v6706_v58, %v1360_v56  ;;  %1406 = vmatmul.f32.gmra.mxu1 %v263_v26  ;;  %v282_v58 = vld [vmem:[%s9670_s1 + $0x5e0] sm:$0xff]  ;;  %1654 = vmatmul.f32.gmra.mxu2 %v284_v60  ;;  %v6881_v60 = vpop.permute.xlu0 %461 }
 0x195   :  { %3717 = vperm.xlu1 %5283, %v3627_v21   ;;  %v285_v21 = vld [vmem:[%s9670_s1 + $0x5f8] sm:$0xff]  ;;  %9757 = vst [vmem:[#allocation81_spill] sm:$0xff] %v6881_v60  ;;  %v1133_v60 = vadd.f32 %v6759_v19, %v6346_v25  ;;  %v3624_v25 = vld [vmem:[%s9675_s6 + $0x68] sm:$0xff] }
 0x196   :  { %v6851_v63 = vadd.f32 %v6712_v20, %v1593_v6  ;;  %3657 = vperm.xlu0 %5282, %v3615_v38   ;;  %3652 = vperm.xlu2 %5284, %v3614_v36   ;;  %v267_v20 = vld [vmem:[%s9670_s1 + $0x568] sm:$0xff]  ;;  %v3625_v6 = vld [vmem:[%s9675_s6 + $0x70] sm:$0xff] }
 0x197   :  { %5078 = vmatmul.msk.f32.gmra.mxu3 %vm814_vm0, %v285_v21  ;;  %v288_v21 = vld [vmem:[%s9670_s1 + $0x610] sm:$0xff]  ;;  %v3612_v19 = vld [vmem:[%s9675_s6 + $0x8] sm:$0xff] }
 0x198   :  { %9756 = vst [vmem:[#allocation80_spill] sm:$0xff] %v6851_v63  ;;  %v6861_v26 = vpop.f32.mrf.mxu0 }
 0x199   :  { %v1362_v56 = vpop.f32.mrf.mxu1  ;;  %v1142_v2 = vadd.f32 %v6861_v26, %v6185_v40  ;;  %v3978_v40 = vld [vmem:[%s9677_s8 + $0x8] sm:$0xff] }
 0x19a   :  { %v1363_v38 = vadd.f32 %v1362_v56, %v1130_v33  ;;  %v6876_v36 = vpop.f32.mrf.mxu2 }
 0x19b   :  { %1188 = vmatmul.f32.gmra.mxu0 %v282_v58  ;;  %v6884_v56 = vpop.f32.mrf.mxu3 }
 0x19c   :  { %v1596_v33 = vadd.f32 %v6740_v9, %v1363_v38  ;;  %1409 = vmatmul.f32.gmra.mxu1 %v267_v20  ;;  %v286_v9 = vld [vmem:[%s9670_s1 + $0x600] sm:$0xff]  ;;  %1657 = vmatmul.f32.gmra.mxu2 %v288_v21  ;;  %v271_v38 = vld [vmem:[%s9670_s1 + $0x588] sm:$0xff] }
 0x19d   :  { %3647 = vperm.xlu1 %5283, %v3613_v4   ;;  %v289_v4 = vld [vmem:[%s9670_s1 + $0x618] sm:$0xff] }
 0x19e   :  { %v6887_v58 = vadd.f32 %v6746_v50, %v1596_v33  ;;  %3712 = vperm.xlu0 %5282, %v3626_v35   ;;  %3707 = vperm.xlu2 %5284, %v3625_v6   ;;  %v3611_v33 = vld [vmem:[%s9675_s6] sm:$0xff] }
 0x19f   :  { %5079 = vmatmul.msk.f32.gmra.mxu3 %vm814_vm0, %v289_v4  ;;  %v292_v4 = vld [vmem:[%s9670_s1 + $0x630] sm:$0xff] }
 0x1a0   :  { %9758 = vst [vmem:[#allocation82_spill] sm:$0xff] %v6887_v58  ;;  %v6899_v20 = vpop.f32.mrf.mxu0 }
 0x1a1   :  { %v1365_v50 = vpop.f32.mrf.mxu1 }
 0x1a2   :  { %v1366_v35 = vadd.f32 %v1365_v50, %v1133_v60  ;;  %v6914_v6 = vpop.f32.mrf.mxu2  ;;  %v6922_v50 = vpop.permute.xlu0 %741 }
 0x1a3   :  { %1191 = vmatmul.f32.gmra.mxu0 %v286_v9  ;;  %v6920_v60 = vpop.f32.mrf.mxu3 }
 0x1a4   :  { %v1599_v21 = vadd.f32 %v6774_v53, %v1366_v35  ;;  %1412 = vmatmul.f32.gmra.mxu1 %v271_v38  ;;  %v290_v53 = vld [vmem:[%s9670_s1 + $0x620] sm:$0xff]  ;;  %1660 = vmatmul.f32.gmra.mxu2 %v292_v4  ;;  %v3983_v4 = vld [vmem:[%s9677_s8 + $0x30] sm:$0xff] }
 0x1a5   :  { %3702 = vperm.xlu1 %5283, %v3624_v25   ;;  %v293_v25 = vld [vmem:[%s9670_s1 + $0x638] sm:$0xff] }
 0x1a6   :  { %v6925_v9 = vadd.f32 %v6780_v12, %v1599_v21  ;;  %3642 = vperm.xlu0 %5282, %v3612_v19   ;;  %3637 = vperm.xlu2 %5284, %v3611_v33   ;;  %v275_v12 = vld [vmem:[%s9670_s1 + $0x5a8] sm:$0xff]  ;;  %v3623_v33 = vld [vmem:[%s9675_s6 + $0x60] sm:$0xff] }
 0x1a7   :  { %5080 = vmatmul.msk.f32.gmra.mxu3 %vm814_vm0, %v293_v25 }
 0x1a8   :  { %v6935_v38 = vpop.f32.mrf.mxu0 }
 0x1a9   :  { %v1368_v35 = vpop.f32.mrf.mxu1 }
 0x1aa   :  { %v1369_v19 = vadd.f32 %v1368_v35, %v1136_v28  ;;  %v6952_v21 = vpop.f32.mrf.mxu2  ;;  %v6966_v46 = vpop.permute.xlu0 %636 }
 0x1ab   :  { %1194 = vmatmul.f32.gmra.mxu0 %v290_v53  ;;  %v6958_v35 = vpop.f32.mrf.mxu3  ;;  %v296_v53 = vld [vmem:[%s9670_s1 + $0x650] sm:$0xff] }
 0x1ac   :  { %v1602_v28 = vadd.f32 %v6808_v5, %v1369_v19  ;;  %1415 = vmatmul.f32.gmra.mxu1 %v275_v12  ;;  %v294_v5 = vld [vmem:[%s9670_s1 + $0x640] sm:$0xff]  ;;  %1663 = vmatmul.f32.gmra.mxu2 %v296_v53  ;;  %v279_v19 = vld [vmem:[%s9670_s1 + $0x5c8] sm:$0xff] }
 0x1ad   :  { %4022 = vperm.xlu1 %5283, %v3984_v61   ;;  %v297_v61 = vld [vmem:[%s9670_s1 + $0x658] sm:$0xff] }
 0x1ae   :  { %v6961_v25 = vadd.f32 %v6814_v54, %v1602_v28  ;;  %3697 = vperm.xlu0 %5282, %v3623_v33   ;;  %4017 = vperm.xlu2 %5284, %v3983_v4   ;;  %v3980_v28 = vld [vmem:[%s9677_s8 + $0x18] sm:$0xff] }
 0x1af   :  { %5081 = vmatmul.msk.f32.gmra.mxu3 %vm814_vm0, %v297_v61 }
 0x1b0   :  { %v6973_v12 = vpop.f32.mrf.mxu0 }
 0x1b1   :  { %v1371_v54 = vpop.f32.mrf.mxu1 }
 0x1b2   :  { %v1372_v33 = vadd.f32 %v1371_v54, %v1139_v18  ;;  %v6988_v4 = vpop.f32.mrf.mxu2  ;;  %v622_v18 = vpop.permute.xlu1 %621 }
 0x1b3   :  { %1197 = vmatmul.f32.gmra.mxu0 %v294_v5  ;;  %v6994_v54 = vpop.f32.mrf.mxu3  ;;  %v300_v5 = vld [vmem:[%s9670_s1 + $0x670] sm:$0xff]  ;;  %v7019_v26 = vpop.permute.xlu0 %731  ;;  %v1148_v42 = vadd.f32 %v6935_v38, %v622_v18  ;;  %v4167_v38 = vld [vmem:[%s9679_s10 + $0x20] sm:$0xff]  ;;  %v4166_v18 = vld [vmem:[%s9679_s10 + $0x18] sm:$0xff] }
 0x1b4   :  { %v1605_v53 = vadd.f32 %v6842_v51, %v1372_v33  ;;  %1418 = vmatmul.f32.gmra.mxu1 %v279_v19  ;;  %v298_v51 = vld [vmem:[%s9670_s1 + $0x660] sm:$0xff]  ;;  %1666 = vmatmul.f32.gmra.mxu2 %v300_v5  ;;  %9761 = vst [vmem:[#allocation85_spill] sm:$0xff] %v7019_v26 }
 0x1b5   :  { %4007 = vperm.xlu1 %5283, %v3981_v14   ;;  %v301_v14 = vld [vmem:[%s9670_s1 + $0x678] sm:$0xff]  ;;  %v3977_v5 = vld [vmem:[%s9677_s8] sm:$0xff] }
 0x1b6   :  { %v6997_v61 = vadd.f32 %v6848_v62, %v1605_v53  ;;  %4012 = vperm.xlu0 %5282, %v3982_v15   ;;  %4002 = vperm.xlu2 %5284, %v3980_v28   ;;  %v283_v62 = vld [vmem:[%s9670_s1 + $0x5e8] sm:$0xff]  ;;  %v3979_v28 = vld [vmem:[%s9677_s8 + $0x10] sm:$0xff] }
 0x1b7   :  { %5082 = vmatmul.msk.f32.gmra.mxu3 %vm814_vm0, %v301_v14 }
 0x1b8   :  { %v7007_v19 = vpop.f32.mrf.mxu0 }
 0x1b9   :  { %v1374_v33 = vpop.f32.mrf.mxu1 }
 0x1ba   :  { %v1375_v15 = vadd.f32 %v1374_v33, %v1142_v2  ;;  %v7024_v53 = vpop.f32.mrf.mxu2 }
 0x1bb   :  { %1200 = vmatmul.f32.gmra.mxu0 %v298_v51  ;;  %v7030_v33 = vpop.f32.mrf.mxu3  ;;  %v617_v51 = vpop.permute.xlu1 %616 }
 0x1bc   :  { %v1608_v2 = vadd.f32 %v6876_v36, %v1375_v15  ;;  %1421 = vmatmul.f32.gmra.mxu1 %v283_v62  ;;  %v1145_v32 = vadd.f32 %v6899_v20, %v617_v51  ;;  %v302_v36 = vld [vmem:[%s9670_s1 + $0x680] sm:$0xff]  ;;  %1669 = vmatmul.f32.gmra.mxu2 %v304_v8  ;;  %v4164_v20 = vld [vmem:[%s9679_s10 + $0x8] sm:$0xff] }
 0x1bd   :  { %3992 = vperm.xlu1 %5283, %v3978_v40   ;;  %v305_v40 = vld [vmem:[%s9670_s1 + $0x698] sm:$0xff]  ;;  %v4163_v8 = vld [vmem:[%s9679_s10] sm:$0xff] }
 0x1be   :  { %v7033_v14 = vadd.f32 %v6884_v56, %v1608_v2  ;;  %3997 = vperm.xlu0 %5282, %v3979_v28   ;;  %3987 = vperm.xlu2 %5284, %v3977_v5   ;;  %v287_v56 = vld [vmem:[%s9670_s1 + $0x608] sm:$0xff]  ;;  %v4165_v2 = vld [vmem:[%s9679_s10 + $0x10] sm:$0xff] }
 0x1bf   :  { %5083 = vmatmul.msk.f32.gmra.mxu3 %vm814_vm0, %v305_v40  ;;  %v308_v40 = vld [vmem:[%s9670_s1 + $0x6b0] sm:$0xff] }
 0x1c0   :  { %v7042_v62 = vpop.f32.mrf.mxu0 }
 0x1c1   :  { %v1377_v15 = vpop.f32.mrf.mxu1 }
 0x1c2   :  { %v1378_v28 = vadd.f32 %v1377_v15, %v1145_v32  ;;  %v7057_v5 = vpop.f32.mrf.mxu2  ;;  %v7063_v32 = vpop.permute.xlu0 %726 }
 0x1c3   :  { %1203 = vmatmul.f32.gmra.mxu0 %v302_v36  ;;  %9762 = vst [vmem:[#allocation86_spill] sm:$0xff] %v7063_v32  ;;  %v7065_v15 = vpop.f32.mrf.mxu3 }
 0x1c4   :  { %v1611_v51 = vadd.f32 %v6914_v6, %v1378_v28  ;;  %1424 = vmatmul.f32.gmra.mxu1 %v287_v56  ;;  %v306_v6 = vld [vmem:[%s9670_s1 + $0x6a0] sm:$0xff]  ;;  %1672 = vmatmul.f32.gmra.mxu2 %v308_v40 }
 0x1c5   :  { %4234 = vperm.xlu1 %5283, %v4164_v20   ;;  %v309_v20 = vld [vmem:[%s9670_s1 + $0x6b8] sm:$0xff] }
 0x1c6   :  { %v7068_v36 = vadd.f32 %v6920_v60, %v1611_v51  ;;  %4229 = vperm.xlu0 %5282, %v4163_v8   ;;  %4239 = vperm.xlu2 %5284, %v4165_v2   ;;  %v291_v60 = vld [vmem:[%s9670_s1 + $0x628] sm:$0xff] }
 0x1c7   :  { %5084 = vmatmul.msk.f32.gmra.mxu3 %vm814_vm0, %v309_v20  ;;  %v4168_v51 = vld [vmem:[%s9679_s10 + $0x28] sm:$0xff]  ;;  %v312_v20 = vld [vmem:[%s9670_s1 + $0x6d0] sm:$0xff] }
 0x1c8   :  { %9763 = vst [vmem:[#allocation87_spill] sm:$0xff] %v7068_v36  ;;  %v7077_v56 = vpop.f32.mrf.mxu0 }
 0x1c9   :  { %v1380_v28 = vpop.f32.mrf.mxu1 }
 0x1ca   :  { %v1381_v8 = vadd.f32 %v1380_v28, %v1148_v42  ;;  %v7092_v2 = vpop.f32.mrf.mxu2 }
 0x1cb   :  { %1206 = vmatmul.f32.gmra.mxu0 %v306_v6  ;;  %v7098_v42 = vpop.f32.mrf.mxu3  ;;  %v627_v6 = vpop.permute.xlu0 %626 }
 0x1cc   :  { %v1614_v40 = vadd.f32 %v6952_v21, %v1381_v8  ;;  %1427 = vmatmul.f32.gmra.mxu1 %v291_v60  ;;  %v1151_v36 = vadd.f32 %v6973_v12, %v627_v6  ;;  %v310_v21 = vld [vmem:[%s9670_s1 + $0x6c0] sm:$0xff]  ;;  %1675 = vmatmul.f32.gmra.mxu2 %v312_v20  ;;  %v4170_v12 = vld [vmem:[%s9679_s10 + $0x38] sm:$0xff] }
 0x1cd   :  { %4249 = vperm.xlu1 %5283, %v4167_v38   ;;  %v313_v38 = vld [vmem:[%s9670_s1 + $0x6d8] sm:$0xff]  ;;  %v4171_v6 = vld [vmem:[%s9679_s10 + $0x40] sm:$0xff] }
 0x1ce   :  { %v7101_v28 = vadd.f32 %v6958_v35, %v1614_v40  ;;  %4244 = vperm.xlu0 %5282, %v4166_v18   ;;  %4254 = vperm.xlu2 %5284, %v4168_v51   ;;  %v295_v35 = vld [vmem:[%s9670_s1 + $0x648] sm:$0xff]  ;;  %v4169_v51 = vld [vmem:[%s9679_s10 + $0x30] sm:$0xff] }
 0x1cf   :  { %5085 = vmatmul.msk.f32.gmra.mxu3 %vm814_vm0, %v313_v38  ;;  %v316_v38 = vld [vmem:[%s9670_s1 + $0x6f0] sm:$0xff] }
 0x1d0   :  { %9764 = vst [vmem:[#allocation88_spill] sm:$0xff] %v7101_v28  ;;  %v7110_v60 = vpop.f32.mrf.mxu0 }
 0x1d1   :  { %v1383_v8 = vpop.f32.mrf.mxu1 }
 0x1d2   :  { %v1384_v18 = vadd.f32 %v1383_v8, %v1151_v36  ;;  %v7125_v40 = vpop.f32.mrf.mxu2 }
 0x1d3   :  { %1209 = vmatmul.f32.gmra.mxu0 %v310_v21  ;;  %v7131_v36 = vpop.f32.mrf.mxu3  ;;  %v632_v21 = vpop.permute.xlu2 %631 }
 0x1d4   :  { %v1617_v20 = vadd.f32 %v6988_v4, %v1384_v18  ;;  %1430 = vmatmul.f32.gmra.mxu1 %v295_v35  ;;  %v1154_v28 = vadd.f32 %v7007_v19, %v632_v21  ;;  %v314_v4 = vld [vmem:[%s9670_s1 + $0x6e0] sm:$0xff]  ;;  %1678 = vmatmul.f32.gmra.mxu2 %v316_v38  ;;  %v4173_v19 = vld [vmem:[%s9679_s10 + $0x50] sm:$0xff]  ;;  %v4174_v21 = vld [vmem:[%s9679_s10 + $0x58] sm:$0xff] }
 0x1d5   :  { %4264 = vperm.xlu1 %5283, %v4170_v12   ;;  %v317_v12 = vld [vmem:[%s9670_s1 + $0x6f8] sm:$0xff] }
 0x1d6   :  { %v7134_v8 = vadd.f32 %v6994_v54, %v1617_v20  ;;  %4259 = vperm.xlu0 %5282, %v4169_v51   ;;  %4269 = vperm.xlu2 %5284, %v4171_v6   ;;  %v299_v54 = vld [vmem:[%s9670_s1 + $0x668] sm:$0xff] }
 0x1d7   :  { %5086 = vmatmul.msk.f32.gmra.mxu3 %vm814_vm0, %v317_v12  ;;  %v4172_v6 = vld [vmem:[%s9679_s10 + $0x48] sm:$0xff]  ;;  %v1157_v12 = vadd.f32 %v7042_v62, %v6966_v46  ;;  %v4175_v62 = vld [vmem:[%s9679_s10 + $0x60] sm:$0xff] }
 0x1d8   :  { %9765 = vst [vmem:[#allocation89_spill] sm:$0xff] %v7134_v8  ;;  %v7143_v35 = vpop.f32.mrf.mxu0  ;;  %v4176_v46 = vld [vmem:[%s9679_s10 + $0x68] sm:$0xff]  ;;  %v105_v8 = vld [vmem:[%s9670_s1 + $0x58] sm:$0xff] }
 0x1d9   :  { %v1386_v18 = vpop.f32.mrf.mxu1 }
 0x1da   :  { %v1387_v51 = vadd.f32 %v1386_v18, %v1154_v28  ;;  %v7158_v20 = vpop.f32.mrf.mxu2 }
 0x1db   :  { %1212 = vmatmul.f32.gmra.mxu0 %v314_v4  ;;  %v7164_v28 = vpop.f32.mrf.mxu3  ;;  %v320_v4 = vld [vmem:[%s9670_s1 + $0x710] sm:$0xff] }
 0x1dc   :  { %v1620_v38 = vadd.f32 %v7024_v53, %v1387_v51  ;;  %1433 = vmatmul.f32.gmra.mxu1 %v299_v54  ;;  %v318_v53 = vld [vmem:[%s9670_s1 + $0x700] sm:$0xff]  ;;  %1681 = vmatmul.f32.gmra.mxu2 %v320_v4 }
 0x1dd   :  { %4279 = vperm.xlu1 %5283, %v4173_v19   ;;  %v321_v19 = vld [vmem:[%s9670_s1 + $0x718] sm:$0xff] }
 0x1de   :  { %v7167_v18 = vadd.f32 %v7030_v33, %v1620_v38  ;;  %4274 = vperm.xlu0 %5282, %v4172_v6   ;;  %4284 = vperm.xlu2 %5284, %v4174_v21   ;;  %v303_v33 = vld [vmem:[%s9670_s1 + $0x688] sm:$0xff]  ;;  %v4177_v38 = vld [vmem:[%s9679_s10 + $0x70] sm:$0xff] }
 0x1df   :  { %5087 = vmatmul.msk.f32.gmra.mxu3 %vm814_vm0, %v321_v19  ;;  %v1160_v19 = vadd.f32 %v7077_v56, %v6499_v24  ;;  %v4179_v24 = vld [vmem:[%s9679_s10 + $0x80] sm:$0xff]  ;;  %v4178_v56 = vld [vmem:[%s9679_s10 + $0x78] sm:$0xff] }
 0x1e0   :  { %9766 = vst [vmem:[#allocation90_spill] sm:$0xff] %v7167_v18  ;;  %v7177_v54 = vpop.f32.mrf.mxu0  ;;  %v140_v18 = vld [vmem:[%s9670_s1 + $0x170] sm:$0xff] }
 0x1e1   :  { %v1389_v51 = vpop.f32.mrf.mxu1 }
 0x1e2   :  { %v1390_v6 = vadd.f32 %v1389_v51, %v1157_v12  ;;  %v7192_v21 = vpop.f32.mrf.mxu2 }
 0x1e3   :  { %1215 = vmatmul.f32.gmra.mxu0 %v318_v53  ;;  %v7198_v12 = vpop.f32.mrf.mxu3  ;;  %v324_v53 = vld [vmem:[%s9670_s1 + $0x730] sm:$0xff] }
 0x1e4   :  { %v1623_v4 = vadd.f32 %v7057_v5, %v1390_v6  ;;  %1436 = vmatmul.f32.gmra.mxu1 %v303_v33  ;;  %v322_v5 = vld [vmem:[%s9670_s1 + $0x720] sm:$0xff]  ;;  %1684 = vmatmul.f32.gmra.mxu2 %v324_v53 }
 0x1e5   :  { %4294 = vperm.xlu1 %5283, %v4176_v46   ;;  %v325_v46 = vld [vmem:[%s9670_s1 + $0x738] sm:$0xff] }
 0x1e6   :  { %v7201_v51 = vadd.f32 %v7065_v15, %v1623_v4  ;;  %4289 = vperm.xlu0 %5282, %v4175_v62   ;;  %4299 = vperm.xlu2 %5284, %v4177_v38   ;;  %v307_v15 = vld [vmem:[%s9670_s1 + $0x6a8] sm:$0xff] }
 0x1e7   :  { %5088 = vmatmul.msk.f32.gmra.mxu3 %vm814_vm0, %v325_v46  ;;  %v4180_v4 = vld [vmem:[%s9679_s10 + $0x88] sm:$0xff]  ;;  %v1163_v46 = vadd.f32 %v7110_v60, %v6378_v13  ;;  %v4182_v13 = vld [vmem:[%s9679_s10 + $0x98] sm:$0xff]  ;;  %v4181_v60 = vld [vmem:[%s9679_s10 + $0x90] sm:$0xff] }
 0x1e8   :  { %9767 = vst [vmem:[#allocation91_spill] sm:$0xff] %v7201_v51  ;;  %v7211_v33 = vpop.f32.mrf.mxu0 }
 0x1e9   :  { %v1392_v6 = vpop.f32.mrf.mxu1 }
 0x1ea   :  { %v1393_v62 = vadd.f32 %v1392_v6, %v1160_v19  ;;  %v7226_v38 = vpop.f32.mrf.mxu2 }
 0x1eb   :  { %1218 = vmatmul.f32.gmra.mxu0 %v322_v5  ;;  %v7232_v19 = vpop.f32.mrf.mxu3  ;;  %v328_v5 = vld [vmem:[%s9670_s1 + $0x750] sm:$0xff] }
 0x1ec   :  { %v1626_v53 = vadd.f32 %v7092_v2, %v1393_v62  ;;  %1439 = vmatmul.f32.gmra.mxu1 %v307_v15  ;;  %v326_v2 = vld [vmem:[%s9670_s1 + $0x740] sm:$0xff]  ;;  %1687 = vmatmul.f32.gmra.mxu2 %v328_v5 }
 0x1ed   :  { %4309 = vperm.xlu1 %5283, %v4179_v24   ;;  %v329_v24 = vld [vmem:[%s9670_s1 + $0x758] sm:$0xff] }
 0x1ee   :  { %v7235_v6 = vadd.f32 %v7098_v42, %v1626_v53  ;;  %4304 = vperm.xlu0 %5282, %v4178_v56   ;;  %4314 = vperm.xlu2 %5284, %v4180_v4   ;;  %v311_v42 = vld [vmem:[%s9670_s1 + $0x6c8] sm:$0xff]  ;;  %v4183_v53 = vld [vmem:[%s9679_s10 + $0xa0] sm:$0xff] }
 0x1ef   :  { %5089 = vmatmul.msk.f32.gmra.mxu3 %vm814_vm0, %v329_v24  ;;  %v1166_v24 = vadd.f32 %v7143_v35, %v6643_v34  ;;  %v4185_v34 = vld [vmem:[%s9679_s10 + $0xb0] sm:$0xff]  ;;  %v4184_v35 = vld [vmem:[%s9679_s10 + $0xa8] sm:$0xff] }
 0x1f0   :  { %9768 = vst [vmem:[#allocation92_spill] sm:$0xff] %v7235_v6  ;;  %v7245_v15 = vpop.f32.mrf.mxu0 }
 0x1f1   :  { %v1395_v62 = vpop.f32.mrf.mxu1 }
 0x1f2   :  { %v1396_v56 = vadd.f32 %v1395_v62, %v1163_v46  ;;  %v7260_v4 = vpop.f32.mrf.mxu2 }
 0x1f3   :  { %1221 = vmatmul.f32.gmra.mxu0 %v326_v2  ;;  %v7266_v46 = vpop.f32.mrf.mxu3  ;;  %v332_v2 = vld [vmem:[%s9670_s1 + $0x770] sm:$0xff] }
 0x1f4   :  { %v1629_v5 = vadd.f32 %v7125_v40, %v1396_v56  ;;  %1442 = vmatmul.f32.gmra.mxu1 %v311_v42  ;;  %v330_v40 = vld [vmem:[%s9670_s1 + $0x760] sm:$0xff]  ;;  %1690 = vmatmul.f32.gmra.mxu2 %v332_v2 }
 0x1f5   :  { %4324 = vperm.xlu1 %5283, %v4182_v13   ;;  %v333_v13 = vld [vmem:[%s9670_s1 + $0x778] sm:$0xff] }
 0x1f6   :  { %v7269_v62 = vadd.f32 %v7131_v36, %v1629_v5  ;;  %4319 = vperm.xlu0 %5282, %v4181_v60   ;;  %4329 = vperm.xlu2 %5284, %v4183_v53   ;;  %v315_v36 = vld [vmem:[%s9670_s1 + $0x6e8] sm:$0xff]  ;;  %v4186_v5 = vld [vmem:[%s9679_s10 + $0xb8] sm:$0xff] }
 0x1f7   :  { %5090 = vmatmul.msk.f32.gmra.mxu3 %vm814_vm0, %v333_v13  ;;  %v1169_v13 = vadd.f32 %v7177_v54, %v6327_v16  ;;  %v4188_v16 = vld [vmem:[%s9679_s10 + $0xc8] sm:$0xff]  ;;  %v4187_v54 = vld [vmem:[%s9679_s10 + $0xc0] sm:$0xff] }
 0x1f8   :  { %9769 = vst [vmem:[#allocation93_spill] sm:$0xff] %v7269_v62  ;;  %v7279_v42 = vpop.f32.mrf.mxu0 }
 0x1f9   :  { %v1398_v56 = vpop.f32.mrf.mxu1 }
 0x1fa   :  { %v1399_v60 = vadd.f32 %v1398_v56, %v1166_v24  ;;  %v7294_v53 = vpop.f32.mrf.mxu2 }
 0x1fb   :  { %1224 = vmatmul.f32.gmra.mxu0 %v330_v40  ;;  %v7300_v24 = vpop.f32.mrf.mxu3  ;;  %v336_v40 = vld [vmem:[%s9670_s1 + $0x790] sm:$0xff] }
 0x1fc   :  { %v1632_v2 = vadd.f32 %v7158_v20, %v1399_v60  ;;  %1445 = vmatmul.f32.gmra.mxu1 %v315_v36  ;;  %v334_v20 = vld [vmem:[%s9670_s1 + $0x780] sm:$0xff]  ;;  %1693 = vmatmul.f32.gmra.mxu2 %v336_v40 }
 0x1fd   :  { %4339 = vperm.xlu1 %5283, %v4185_v34   ;;  %v337_v34 = vld [vmem:[%s9670_s1 + $0x798] sm:$0xff] }
 0x1fe   :  { %v7303_v56 = vadd.f32 %v7164_v28, %v1632_v2  ;;  %4334 = vperm.xlu0 %5282, %v4184_v35   ;;  %4344 = vperm.xlu2 %5284, %v4186_v5   ;;  %v319_v28 = vld [vmem:[%s9670_s1 + $0x708] sm:$0xff]  ;;  %v4189_v2 = vld [vmem:[%s9679_s10 + $0xd0] sm:$0xff] }
 0x1ff   :  { %5091 = vmatmul.msk.f32.gmra.mxu3 %vm814_vm0, %v337_v34  ;;  %v1172_v34 = vadd.f32 %v7211_v33, %v6030_v44  ;;  %v4191_v44 = vld [vmem:[%s9679_s10 + $0xe0] sm:$0xff]  ;;  %v4190_v33 = vld [vmem:[%s9679_s10 + $0xd8] sm:$0xff] }
 0x200   :  { %9770 = vst [vmem:[#allocation94_spill] sm:$0xff] %v7303_v56  ;;  %v7313_v36 = vpop.f32.mrf.mxu0  ;;  %v101_v56 = vld [vmem:[%s9670_s1 + $0x38] sm:$0xff] }
 0x201   :  { %v1401_v60 = vpop.f32.mrf.mxu1 }
 0x202   :  { %v1402_v35 = vadd.f32 %v1401_v60, %v1169_v13  ;;  %v7328_v5 = vpop.f32.mrf.mxu2 }
 0x203   :  { %1227 = vmatmul.f32.gmra.mxu0 %v334_v20  ;;  %v7334_v13 = vpop.f32.mrf.mxu3  ;;  %v340_v20 = vld [vmem:[%s9670_s1 + $0x7b0] sm:$0xff] }
 0x204   :  { %v1635_v40 = vadd.f32 %v7192_v21, %v1402_v35  ;;  %1448 = vmatmul.f32.gmra.mxu1 %v319_v28  ;;  %v338_v21 = vld [vmem:[%s9670_s1 + $0x7a0] sm:$0xff]  ;;  %1696 = vmatmul.f32.gmra.mxu2 %v340_v20 }
 0x205   :  { %4354 = vperm.xlu1 %5283, %v4188_v16   ;;  %v341_v16 = vld [vmem:[%s9670_s1 + $0x7b8] sm:$0xff] }
 0x206   :  { %v7337_v60 = vadd.f32 %v7198_v12, %v1635_v40  ;;  %4349 = vperm.xlu0 %5282, %v4187_v54   ;;  %4359 = vperm.xlu2 %5284, %v4189_v2   ;;  %v323_v12 = vld [vmem:[%s9670_s1 + $0x728] sm:$0xff] }
 0x207   :  { %5092 = vmatmul.msk.f32.gmra.mxu3 %vm814_vm0, %v341_v16  ;;  %v4192_v40 = vld [vmem:[%s9679_s10 + $0xe8] sm:$0xff]  ;;  %v1175_v16 = vadd.f32 %v7245_v15, %v6475_v0  ;;  %v4194_v0 = vld [vmem:[%s9679_s10 + $0xf8] sm:$0xff]  ;;  %v4193_v15 = vld [vmem:[%s9679_s10 + $0xf0] sm:$0xff] }
 0x208   :  { %9771 = vst [vmem:[#allocation95_spill] sm:$0xff] %v7337_v60  ;;  %v7347_v28 = vpop.f32.mrf.mxu0 }
 0x209   :  { %v1404_v35 = vpop.f32.mrf.mxu1 }
 0x20a   :  { %v1405_v54 = vadd.f32 %v1404_v35, %v1172_v34  ;;  %v7362_v2 = vpop.f32.mrf.mxu2 }
 0x20b   :  { %1230 = vmatmul.f32.gmra.mxu0 %v338_v21  ;;  %v7368_v34 = vpop.f32.mrf.mxu3  ;;  %v344_v21 = vld [vmem:[%s9670_s1 + $0x7d0] sm:$0xff] }
 0x20c   :  { %v1638_v20 = vadd.f32 %v7226_v38, %v1405_v54  ;;  %1451 = vmatmul.f32.gmra.mxu1 %v323_v12  ;;  %v342_v38 = vld [vmem:[%s9670_s1 + $0x7c0] sm:$0xff]  ;;  %1699 = vmatmul.f32.gmra.mxu2 %v344_v21 }
 0x20d   :  { %4369 = vperm.xlu1 %5283, %v4191_v44   ;;  %v345_v44 = vld [vmem:[%s9670_s1 + $0x7d8] sm:$0xff] }
 0x20e   :  { %v7371_v35 = vadd.f32 %v7232_v19, %v1638_v20  ;;  %4364 = vperm.xlu0 %5282, %v4190_v33   ;;  %4374 = vperm.xlu2 %5284, %v4192_v40   ;;  %v327_v19 = vld [vmem:[%s9670_s1 + $0x748] sm:$0xff]  ;;  %v4195_v20 = vld [vmem:[%s9679_s10 + $0x100] sm:$0xff] }
 0x20f   :  { %5093 = vmatmul.msk.f32.gmra.mxu3 %vm814_vm0, %v345_v44  ;;  %v1178_v44 = vadd.f32 %v7279_v42, %v6171_v23  ;;  %v4197_v23 = vld [vmem:[%s9679_s10 + $0x110] sm:$0xff]  ;;  %v4196_v42 = vld [vmem:[%s9679_s10 + $0x108] sm:$0xff] }
 0x210   :  { %9772 = vst [vmem:[#allocation96_spill] sm:$0xff] %v7371_v35  ;;  %v7381_v12 = vpop.f32.mrf.mxu0  ;;  %v1181_v35 = vadd.f32 %v7313_v36, %v5912_v55  ;;  %v4200_v55 = vld [vmem:[%s9679_s10 + $0x128] sm:$0xff]  ;;  %v4199_v36 = vld [vmem:[%s9679_s10 + $0x120] sm:$0xff] }
 0x211   :  { %v1407_v54 = vpop.f32.mrf.mxu1 }
 0x212   :  { %v1408_v33 = vadd.f32 %v1407_v54, %v1175_v16  ;;  %v7396_v40 = vpop.f32.mrf.mxu2 }
 0x213   :  { %1233 = vmatmul.f32.gmra.mxu0 %v342_v38  ;;  %v7402_v16 = vpop.f32.mrf.mxu3  ;;  %v348_v38 = vld [vmem:[%s9670_s1 + $0x7f0] sm:$0xff] }
 0x214   :  { %v1641_v21 = vadd.f32 %v7260_v4, %v1408_v33  ;;  %1454 = vmatmul.f32.gmra.mxu1 %v327_v19  ;;  %v346_v4 = vld [vmem:[%s9670_s1 + $0x7e0] sm:$0xff]  ;;  %1702 = vmatmul.f32.gmra.mxu2 %v348_v38 }
 0x215   :  { %4384 = vperm.xlu1 %5283, %v4194_v0   ;;  %v349_v0 = vld [vmem:[%s9670_s1 + $0x7f8] sm:$0xff] }
 0x216   :  { %v7405_v54 = vadd.f32 %v7266_v46, %v1641_v21  ;;  %4379 = vperm.xlu0 %5282, %v4193_v15   ;;  %4389 = vperm.xlu2 %5284, %v4195_v20   ;;  %v331_v46 = vld [vmem:[%s9670_s1 + $0x768] sm:$0xff]  ;;  %v4198_v21 = vld [vmem:[%s9679_s10 + $0x118] sm:$0xff] }
 0x217   :  { %5094 = vmatmul.msk.f32.gmra.mxu3 %vm814_vm0, %v349_v0  ;;  %v7444_v0 = vpop.permute.xlu2 %541 }
 0x218   :  { %9773 = vst [vmem:[#allocation97_spill] sm:$0xff] %v7405_v54  ;;  %v7415_v19 = vpop.f32.mrf.mxu0 }
 0x219   :  { %v1410_v33 = vpop.f32.mrf.mxu1  ;;  %9775 = vst [vmem:[#allocation99_spill] sm:$0xff] %v7444_v0 }
 0x21a   :  { %v1411_v15 = vadd.f32 %v1410_v33, %v1178_v44  ;;  %v7430_v20 = vpop.f32.mrf.mxu2 }
 0x21b   :  { %1236 = vmatmul.f32.gmra.mxu0 %v346_v4  ;;  %v7436_v44 = vpop.f32.mrf.mxu3  ;;  %v352_v4 = vld [vmem:[%s9670_s1 + $0x810] sm:$0xff] }
 0x21c   :  { %v1644_v38 = vadd.f32 %v7294_v53, %v1411_v15  ;;  %1457 = vmatmul.f32.gmra.mxu1 %v331_v46  ;;  %v350_v53 = vld [vmem:[%s9670_s1 + $0x800] sm:$0xff]  ;;  %1705 = vmatmul.f32.gmra.mxu2 %v352_v4  ;;  %v335_v15 = vld [vmem:[%s9670_s1 + $0x788] sm:$0xff] }
 0x21d   :  { %4399 = vperm.xlu1 %5283, %v4197_v23   ;;  %v353_v23 = vld [vmem:[%s9670_s1 + $0x818] sm:$0xff] }
 0x21e   :  { %v7439_v33 = vadd.f32 %v7300_v24, %v1644_v38  ;;  %4394 = vperm.xlu0 %5282, %v4196_v42   ;;  %4404 = vperm.xlu2 %5284, %v4198_v21   ;;  %v4201_v38 = vld [vmem:[%s9679_s10 + $0x130] sm:$0xff] }
 0x21f   :  { %5095 = vmatmul.msk.f32.gmra.mxu3 %vm814_vm0, %v353_v23  ;;  %v1184_v23 = vadd.f32 %v7347_v28, %v6307_v57  ;;  %v4203_v57 = vld [vmem:[%s9679_s10 + $0x140] sm:$0xff]  ;;  %v4202_v28 = vld [vmem:[%s9679_s10 + $0x138] sm:$0xff] }
 0x220   :  { %9774 = vst [vmem:[#allocation98_spill] sm:$0xff] %v7439_v33  ;;  %v7451_v46 = vpop.f32.mrf.mxu0 }
 0x221   :  { %9776 = vst [vmem:[#allocation100_spill] sm:$0xff] %v7451_v46  ;;  %v1413_v24 = vpop.f32.mrf.mxu1 }
 0x222   :  { %v1414_v42 = vadd.f32 %v1413_v24, %v1181_v35  ;;  %v7466_v21 = vpop.f32.mrf.mxu2 }
 0x223   :  { %1239 = vmatmul.f32.gmra.mxu0 %v350_v53  ;;  %9777 = vst [vmem:[#allocation101_spill] sm:$0xff] %v7466_v21  ;;  %v7472_v35 = vpop.f32.mrf.mxu3  ;;  %v356_v53 = vld [vmem:[%s9670_s1 + $0x830] sm:$0xff] }
 0x224   :  { %v1647_v4 = vadd.f32 %v7328_v5, %v1414_v42  ;;  %1460 = vmatmul.f32.gmra.mxu1 %v335_v15  ;;  %9778 = vst [vmem:[#allocation102_spill] sm:$0xff] %v7472_v35  ;;  %v354_v5 = vld [vmem:[%s9670_s1 + $0x820] sm:$0xff]  ;;  %1708 = vmatmul.f32.gmra.mxu2 %v356_v53  ;;  %v4204_v53 = vld [vmem:[%s9679_s10 + $0x148] sm:$0xff] }
 0x225   :  { %4414 = vperm.xlu1 %5283, %v4200_v55   ;;  %v357_v55 = vld [vmem:[%s9670_s1 + $0x838] sm:$0xff]  ;;  %v4220_v35 = vld [vmem:[%s9679_s10 + $0x1c8] sm:$0xff] }
 0x226   :  { %v7475_v24 = vadd.f32 %v7334_v13, %v1647_v4  ;;  %4409 = vperm.xlu0 %5282, %v4199_v36   ;;  %4419 = vperm.xlu2 %5284, %v4201_v38   ;;  %v339_v13 = vld [vmem:[%s9670_s1 + $0x7a8] sm:$0xff]  ;;  %v7493_v36 = vpop.permute.xlu2 %806 }
 0x227   :  { %9781 = vst [vmem:[#allocation105_spill] sm:$0xff] %v7493_v36  ;;  %5096 = vmatmul.msk.f32.gmra.mxu3 %vm814_vm0, %v357_v55  ;;  %v1187_v55 = vadd.f32 %v7381_v12, %v6018_v37  ;;  %v4206_v37 = vld [vmem:[%s9679_s10 + $0x158] sm:$0xff]  ;;  %v4205_v12 = vld [vmem:[%s9679_s10 + $0x150] sm:$0xff] }
 0x228   :  { %9779 = vst [vmem:[#allocation103_spill] sm:$0xff] %v7475_v24  ;;  %v7485_v15 = vpop.f32.mrf.mxu0  ;;  %v1190_v24 = vadd.f32 %v7415_v19, %v5768_v3  ;;  %v4209_v3 = vld [vmem:[%s9679_s10 + $0x170] sm:$0xff]  ;;  %v4208_v19 = vld [vmem:[%s9679_s10 + $0x168] sm:$0xff]  ;;  %v117_v36 = vld [vmem:[%s9670_s1 + $0xb8] sm:$0xff] }
 0x229   :  { %9780 = vst [vmem:[#allocation104_spill] sm:$0xff] %v7485_v15  ;;  %v1416_v42 = vpop.f32.mrf.mxu1 }
 0x22a   :  { %v1417_v38 = vadd.f32 %v1416_v42, %v1184_v23  ;;  %v7502_v4 = vpop.f32.mrf.mxu2 }
 0x22b   :  { %1242 = vmatmul.f32.gmra.mxu0 %v354_v5  ;;  %9782 = vst [vmem:[#allocation106_spill] sm:$0xff] %v7502_v4  ;;  %v7508_v23 = vpop.f32.mrf.mxu3  ;;  %v360_v5 = vld [vmem:[%s9670_s1 + $0x850] sm:$0xff] }
 0x22c   :  { %v1650_v54 = vadd.f32 %v7362_v2, %v1417_v38  ;;  %1463 = vmatmul.f32.gmra.mxu1 %v339_v13  ;;  %9783 = vst [vmem:[#allocation107_spill] sm:$0xff] %v7508_v23  ;;  %v358_v2 = vld [vmem:[%s9670_s1 + $0x840] sm:$0xff]  ;;  %1711 = vmatmul.f32.gmra.mxu2 %v360_v5 }
 0x22d   :  { %4429 = vperm.xlu1 %5283, %v4203_v57   ;;  %v7529_v57 = vpop.permute.xlu0 %536  ;;  %v4207_v5 = vld [vmem:[%s9679_s10 + $0x160] sm:$0xff] }
 0x22e   :  { %v7511_v42 = vadd.f32 %v7368_v34, %v1650_v54  ;;  %4424 = vperm.xlu0 %5282, %v4202_v28   ;;  %4434 = vperm.xlu2 %5284, %v4204_v53   ;;  %v343_v34 = vld [vmem:[%s9670_s1 + $0x7c8] sm:$0xff]  ;;  %v361_v54 = vld [vmem:[%s9670_s1 + $0x858] sm:$0xff]  ;;  %9786 = vst [vmem:[#allocation110_spill] sm:$0xff] %v7529_v57  ;;  %v7543_v33 = vpop.permute.xlu2 %716 }
 0x22f   :  { %5097 = vmatmul.msk.f32.gmra.mxu3 %vm814_vm0, %v361_v54  ;;  %9788 = vst [vmem:[#allocation112_spill] sm:$0xff] %v7543_v33  ;;  %v364_v54 = vld [vmem:[%s9670_s1 + $0x870] sm:$0xff] }
 0x230   :  { %9784 = vst [vmem:[#allocation108_spill] sm:$0xff] %v7511_v42  ;;  %v7521_v13 = vpop.f32.mrf.mxu0  ;;  %v96_v42 = vld [vmem:[%s9670_s1 + $0x10] sm:$0xff] }
 0x231   :  { %9785 = vst [vmem:[#allocation109_spill] sm:$0xff] %v7521_v13  ;;  %v1419_v38 = vpop.f32.mrf.mxu1  ;;  %v97_v13 = vld [vmem:[%s9670_s1 + $0x18] sm:$0xff] }
 0x232   :  { %v1420_v28 = vadd.f32 %v1419_v38, %v1187_v55  ;;  %v7538_v53 = vpop.f32.mrf.mxu2 }
 0x233   :  { %1245 = vmatmul.f32.gmra.mxu0 %v358_v2  ;;  %9787 = vst [vmem:[#allocation111_spill] sm:$0xff] %v7538_v53  ;;  %v7546_v38 = vpop.f32.mrf.mxu3 }
 0x234   :  { %v1653_v55 = vadd.f32 %v7396_v40, %v1420_v28  ;;  %1466 = vmatmul.f32.gmra.mxu1 %v343_v34  ;;  %9789 = vst [vmem:[#allocation113_spill] sm:$0xff] %v7546_v38  ;;  %v362_v40 = vld [vmem:[%s9670_s1 + $0x860] sm:$0xff]  ;;  %1714 = vmatmul.f32.gmra.mxu2 %v364_v54  ;;  %v4222_v38 = vld [vmem:[%s9679_s10 + $0x1d8] sm:$0xff] }
 0x235   :  { %4444 = vperm.xlu1 %5283, %v4206_v37   ;;  %v365_v37 = vld [vmem:[%s9670_s1 + $0x878] sm:$0xff]  ;;  %v7579_v54 = vpop.permute.xlu0 %801 }
 0x236   :  { %v7549_v2 = vadd.f32 %v7402_v16, %v1653_v55  ;;  %4439 = vperm.xlu0 %5282, %v4205_v12   ;;  %4449 = vperm.xlu2 %5284, %v4207_v5   ;;  %v347_v16 = vld [vmem:[%s9670_s1 + $0x7e8] sm:$0xff]  ;;  %v4210_v55 = vld [vmem:[%s9679_s10 + $0x178] sm:$0xff]  ;;  %9793 = vst [vmem:[#allocation117_spill] sm:$0xff] %v7579_v54 }
 0x237   :  { %5098 = vmatmul.msk.f32.gmra.mxu3 %vm814_vm0, %v365_v37  ;;  %v7584_v37 = vpop.permute.xlu2 %796 }
 0x238   :  { %9790 = vst [vmem:[#allocation114_spill] sm:$0xff] %v7549_v2  ;;  %v7559_v34 = vpop.f32.mrf.mxu0  ;;  %v368_v2 = vld [vmem:[%s9670_s1 + $0x890] sm:$0xff] }
 0x239   :  { %9791 = vst [vmem:[#allocation115_spill] sm:$0xff] %v7559_v34  ;;  %v1422_v28 = vpop.f32.mrf.mxu1 }
 0x23a   :  { %v1423_v12 = vadd.f32 %v1422_v28, %v1190_v24  ;;  %v7574_v5 = vpop.f32.mrf.mxu2  ;;  %9795 = vst [vmem:[#allocation119_spill] sm:$0xff] %v7584_v37 }
 0x23b   :  { %1248 = vmatmul.f32.gmra.mxu0 %v362_v40  ;;  %9792 = vst [vmem:[#allocation116_spill] sm:$0xff] %v7574_v5  ;;  %v7582_v28 = vpop.f32.mrf.mxu3 }
 0x23c   :  { %v1656_v24 = vadd.f32 %v7430_v20, %v1423_v12  ;;  %1469 = vmatmul.f32.gmra.mxu1 %v347_v16  ;;  %9794 = vst [vmem:[#allocation118_spill] sm:$0xff] %v7582_v28  ;;  %1717 = vmatmul.f32.gmra.mxu2 %v368_v2  ;;  %v369_v12 = vld [vmem:[%s9670_s1 + $0x898] sm:$0xff]  ;;  %v4211_v2 = vld [vmem:[%s9679_s10 + $0x180] sm:$0xff]  ;;  %v367_v28 = vld [vmem:[%s9670_s1 + $0x888] sm:$0xff] }
 0x23d   :  { %4459 = vperm.xlu1 %5283, %v4209_v3   ;;  %v4212_v3 = vld [vmem:[%s9679_s10 + $0x188] sm:$0xff] }
 0x23e   :  { %v7587_v40 = vadd.f32 %v7436_v44, %v1656_v24  ;;  %4454 = vperm.xlu0 %5282, %v4208_v19   ;;  %4464 = vperm.xlu2 %5284, %v4210_v55   ;;  %v351_v44 = vld [vmem:[%s9670_s1 + $0x808] sm:$0xff]  ;;  %v4213_v55 = vld [vmem:[%s9679_s10 + $0x190] sm:$0xff] }
 0x23f   :  { %5099 = vmatmul.msk.f32.gmra.mxu3 %vm814_vm0, %v369_v12  ;;  %v7619_v12 = vpop.permute.xlu0 %2404  ;;  %v7626_v0 = vpop.permute.xlu2 %2399 }
 0x240   :  { %9796 = vst [vmem:[#allocation120_spill] sm:$0xff] %v7587_v40  ;;  %v7595_v20 = vpop.f32.mrf.mxu0  ;;  %v7621_v40 = vpop.permute.xlu1 %2564 }
 0x241   :  { %9797 = vst [vmem:[#allocation121_spill] sm:$0xff] %v7595_v20  ;;  %v7597_v16 = vpop.f32.mrf.mxu1 }
 0x242   :  { %9798 = vst [vmem:[#allocation122_spill] sm:$0xff] %v7597_v16  ;;  %v7612_v19 = vpop.f32.mrf.mxu2 }
 0x243   :  { %1513 = vmatmul.f32.vlgmr.msrb.gmra.mxu0 %v96_v42  ;;  %9799 = vst [vmem:[#allocation123_spill] sm:$0xff] %v7612_v19  ;;  %v7617_v24 = vpop.f32.mrf.mxu3  ;;  %v372_v42 = vld [vmem:[%s9670_s1 + $0x8b0] sm:$0xff] }
 0x244   :  { %1472 = vmatmul.f32.gmra.mxu1 %v351_v44  ;;  %9800 = vst [vmem:[#allocation124_spill] sm:$0xff] %v7617_v24  ;;  %v100_v19 = vld [vmem:[%s9670_s1 + $0x30] sm:$0xff]  ;;  %1720 = vmatmul.f32.gmra.mxu2 %v372_v42  ;;  %v4214_v42 = vld [vmem:[%s9679_s10 + $0x198] sm:$0xff] }
 0x245   :  { %4474 = vperm.xlu1 %5283, %v4212_v3   ;;  %9801 = vst [vmem:[#allocation125_spill] sm:$0xff] %v7619_v12 }
 0x246   :  { %9802 = vst [vmem:[#allocation126_spill] sm:$0xff] %v7621_v40  ;;  %4469 = vperm.xlu0 %5282, %v4211_v2   ;;  %4479 = vperm.xlu2 %5284, %v4213_v55   ;;  %v355_v2 = vld [vmem:[%s9670_s1 + $0x828] sm:$0xff]  ;;  %v373_v55 = vld [vmem:[%s9670_s1 + $0x8b8] sm:$0xff]  ;;  %v4215_v40 = vld [vmem:[%s9679_s10 + $0x1a0] sm:$0xff] }
 0x247   :  { %9803 = vst [vmem:[#allocation127_spill] sm:$0xff] %v7626_v0  ;;  %5100 = vmatmul.msk.f32.gmra.mxu3 %vm814_vm0, %v373_v55  ;;  %v4216_v0 = vld [vmem:[%s9679_s10 + $0x1a8] sm:$0xff]  ;;  %v7658_v55 = vpop.permute.xlu0 %2484 }
 0x248   :  { %v7631_v44 = vpop.f32.mrf.mxu0  ;;  %9808 = vst [vmem:[#allocation132_spill] sm:$0xff] %v7658_v55  ;;  %v7660_v20 = vpop.permute.xlu1 %2559 }
 0x249   :  { %9804 = vst [vmem:[#allocation128_spill] sm:$0xff] %v7631_v44  ;;  %v7633_v3 = vpop.f32.mrf.mxu1 }
 0x24a   :  { %9805 = vst [vmem:[#allocation129_spill] sm:$0xff] %v7633_v3  ;;  %v7648_v12 = vpop.f32.mrf.mxu2 }
 0x24b   :  { %1516 = vmatmul.f32.gmra.mxu0 %v100_v19  ;;  %9806 = vst [vmem:[#allocation130_spill] sm:$0xff] %v7648_v12  ;;  %v7653_v24 = vpop.f32.mrf.mxu3  ;;  %v376_v19 = vld [vmem:[%s9670_s1 + $0x8d0] sm:$0xff] }
 0x24c   :  { %1475 = vmatmul.f32.gmra.mxu1 %v355_v2  ;;  %9807 = vst [vmem:[#allocation131_spill] sm:$0xff] %v7653_v24  ;;  %v104_v12 = vld [vmem:[%s9670_s1 + $0x50] sm:$0xff]  ;;  %1723 = vmatmul.f32.gmra.mxu2 %v376_v19  ;;  %v377_v2 = vld [vmem:[%s9670_s1 + $0x8d8] sm:$0xff]  ;;  %v4219_v24 = vld [vmem:[%s9679_s10 + $0x1c0] sm:$0xff] }
 0x24d   :  { %4489 = vperm.xlu1 %5283, %v4215_v40   ;;  %9809 = vst [vmem:[#allocation133_spill] sm:$0xff] %v7660_v20  ;;  %v4218_v19 = vld [vmem:[%s9679_s10 + $0x1b8] sm:$0xff]  ;;  %v4217_v20 = vld [vmem:[%s9679_s10 + $0x1b0] sm:$0xff] }
 0x24e   :  { %4484 = vperm.xlu0 %5282, %v4214_v42   ;;  %4494 = vperm.xlu2 %5284, %v4216_v0   ;;  %v359_v0 = vld [vmem:[%s9670_s1 + $0x848] sm:$0xff]  ;;  %v7675_v42 = vpop.permute.xlu2 %2644 }
 0x24f   :  { %9812 = vst [vmem:[#allocation136_spill] sm:$0xff] %v7675_v42  ;;  %5101 = vmatmul.msk.f32.gmra.mxu3 %vm814_vm0, %v377_v2  ;;  %v108_v2 = vld [vmem:[%s9670_s1 + $0x70] sm:$0xff] }
 0x250   :  { %v7665_v33 = vpop.f32.mrf.mxu0 }
 0x251   :  { %9810 = vst [vmem:[#allocation134_spill] sm:$0xff] %v7665_v33  ;;  %v7667_v40 = vpop.f32.mrf.mxu1 }
 0x252   :  { %9811 = vst [vmem:[#allocation135_spill] sm:$0xff] %v7667_v40  ;;  %v7684_v55 = vpop.f32.mrf.mxu2  ;;  %v379_v40 = vld [vmem:[%s9670_s1 + $0x8e8] sm:$0xff] }
 0x253   :  { %1519 = vmatmul.f32.gmra.mxu0 %v104_v12  ;;  %9813 = vst [vmem:[#allocation137_spill] sm:$0xff] %v7684_v55  ;;  %v7689_v42 = vpop.f32.mrf.mxu3  ;;  %v380_v12 = vld [vmem:[%s9670_s1 + $0x8f0] sm:$0xff] }
 0x254   :  { %1478 = vmatmul.f32.gmra.mxu1 %v359_v0  ;;  %9814 = vst [vmem:[#allocation138_spill] sm:$0xff] %v7689_v42  ;;  %1726 = vmatmul.f32.gmra.mxu2 %v380_v12  ;;  %v363_v0 = vld [vmem:[%s9670_s1 + $0x868] sm:$0xff]  ;;  %v7713_v12 = vpop.permute.xlu1 %2479  ;;  %v109_v42 = vld [vmem:[%s9670_s1 + $0x78] sm:$0xff] }
 0x255   :  { %4504 = vperm.xlu1 %5283, %v4218_v19   ;;  %v4221_v19 = vld [vmem:[%s9679_s10 + $0x1d0] sm:$0xff]  ;;  %9818 = vst [vmem:[#allocation142_spill] sm:$0xff] %v7713_v12 }
 0x256   :  { %4499 = vperm.xlu0 %5282, %v4217_v20   ;;  %4509 = vperm.xlu2 %5284, %v4219_v24   ;;  %v381_v20 = vld [vmem:[%s9670_s1 + $0x8f8] sm:$0xff]  ;;  %v7707_v24 = vpop.permute.xlu0 %2394 }
 0x257   :  { %9817 = vst [vmem:[#allocation141_spill] sm:$0xff] %v7707_v24  ;;  %5102 = vmatmul.msk.f32.gmra.mxu3 %vm814_vm0, %v381_v20  ;;  %v7723_v24 = vpop.permute.xlu2 %2554 }
 0x258   :  { %v7697_v57 = vpop.f32.mrf.mxu0  ;;  %9820 = vst [vmem:[#allocation144_spill] sm:$0xff] %v7723_v24 }
 0x259   :  { %9815 = vst [vmem:[#allocation139_spill] sm:$0xff] %v7697_v57  ;;  %v7699_v44 = vpop.f32.mrf.mxu1 }
 0x25a   :  { %9816 = vst [vmem:[#allocation140_spill] sm:$0xff] %v7699_v44  ;;  %v7718_v23 = vpop.f32.mrf.mxu2 }
 0x25b   :  { %1522 = vmatmul.f32.gmra.mxu0 %v108_v2  ;;  %9819 = vst [vmem:[#allocation143_spill] sm:$0xff] %v7718_v23  ;;  %v7725_v20 = vpop.f32.mrf.mxu3  ;;  %v112_v2 = vld [vmem:[%s9670_s1 + $0x90] sm:$0xff] }
 0x25c   :  { %1481 = vmatmul.f32.gmra.mxu1 %v363_v0  ;;  %9821 = vst [vmem:[#allocation145_spill] sm:$0xff] %v7725_v20  ;;  %v4224_v0 = vld [vmem:[%s9679_s10 + $0x1e8] sm:$0xff]  ;;  %v113_v20 = vld [vmem:[%s9670_s1 + $0x98] sm:$0xff] }
 0x25d   :  { %4519 = vperm.xlu1 %5283, %v4221_v19   ;;  %v4225_v19 = vld [vmem:[%s9679_s10 + $0x1f0] sm:$0xff] }
 0x25e   :  { %4514 = vperm.xlu0 %5282, %v4220_v35   ;;  %4524 = vperm.xlu2 %5284, %v4222_v38   ;;  %v4223_v35 = vld [vmem:[%s9679_s10 + $0x1e0] sm:$0xff]  ;;  %v7748_v24 = vpop.permute.xlu0 %2639 }
 0x25f   :  { %9824 = vst [vmem:[#allocation148_spill] sm:$0xff] %v7748_v24  ;;  %v7754_v53 = vpop.permute.xlu2 %2474 }
 0x260   :  { %v7730_v12 = vpop.f32.mrf.mxu0  ;;  %9827 = vst [vmem:[#allocation151_spill] sm:$0xff] %v7754_v53  ;;  %v120_v53 = vld [vmem:[%s9670_s1 + $0xd0] sm:$0xff] }
 0x261   :  { %v7732_v21 = vpop.f32.mrf.mxu1 }
 0x262   :  { %9822 = vst [vmem:[#allocation146_spill] sm:$0xff] %v7732_v21  ;;  %v7743_v38 = vpop.f32.mrf.mxu2  ;;  %v7750_v21 = vpop.permute.xlu1 %2389 }
 0x263   :  { %1525 = vmatmul.f32.gmra.mxu0 %v112_v2  ;;  %9823 = vst [vmem:[#allocation147_spill] sm:$0xff] %v7743_v38  ;;  %v7752_v4 = vpop.f32.mrf.mxu3  ;;  %v116_v2 = vld [vmem:[%s9670_s1 + $0xb0] sm:$0xff] }
 0x264   :  { %1484 = vmatmul.f32.gmra.mxu1 %v367_v28  ;;  %9825 = vst [vmem:[#allocation149_spill] sm:$0xff] %v7750_v21  ;;  %v371_v28 = vld [vmem:[%s9670_s1 + $0x8a8] sm:$0xff] }
 0x265   :  { %4534 = vperm.xlu1 %5283, %v4224_v0   ;;  %9826 = vst [vmem:[#allocation150_spill] sm:$0xff] %v7752_v4  ;;  %v4226_v0 = vld [vmem:[%s9679_s10 + $0x1f8] sm:$0xff]  ;;  %s5314_s10 = smov 8  }
 0x266   :  { %4529 = vperm.xlu0 %5282, %v4223_v35   ;;  %4539 = vperm.xlu2 %5284, %v4225_v19   ;;  %v7771_v19 = vpop.permute.xlu0 %2549 }
 0x267   :  { %9830 = vst [vmem:[#allocation154_spill] sm:$0xff] %v7771_v19 }
 0x268   :  { %v7759_v16 = vpop.f32.mrf.mxu0 }
 0x269   :  { %v7761_v5 = vpop.f32.mrf.mxu1 }
 0x26a   :  { %9828 = vst [vmem:[#allocation152_spill] sm:$0xff] %v7761_v5  ;;  %v7769_v35 = vpop.f32.mrf.mxu2 }
 0x26b   :  { %1528 = vmatmul.f32.gmra.mxu0 %v116_v2  ;;  %9829 = vst [vmem:[#allocation153_spill] sm:$0xff] %v7769_v35  ;;  %v7773_v24 = vpop.f32.mrf.mxu3  ;;  %v375_v2 = vld [vmem:[%s9670_s1 + $0x8c8] sm:$0xff]  ;;  %v164_v35 = vld [vmem:[%s9670_s1 + $0x230] sm:$0xff] }
 0x26c   :  { %1487 = vmatmul.f32.gmra.mxu1 %v371_v28  ;;  %9831 = vst [vmem:[#allocation155_spill] sm:$0xff] %v7773_v24 }
 0x26e   :  { %4544 = vperm.xlu0 %5282, %v4226_v0   ;;  %v124_v0 = vld [vmem:[%s9670_s1 + $0xf0] sm:$0xff] }
 0x270   :  { %v7778_v21 = vpop.f32.mrf.mxu0 }
 0x271   :  { %v7780_v5 = vpop.f32.mrf.mxu1 }
 0x272   :  { %9832 = vst [vmem:[#allocation156_spill] sm:$0xff] %v7780_v5  ;;  %v7785_v28 = vpop.f32.mrf.mxu2 }
 0x273   :  { %1531 = vmatmul.f32.gmra.mxu0 %v120_v53  ;;  %9833 = vst [vmem:[#allocation157_spill] sm:$0xff] %v7785_v28  ;;  %v7790_v19 = vpop.f32.mrf.mxu3  ;;  %v128_v53 = vld [vmem:[%s9670_s1 + $0x110] sm:$0xff] }
 0x274   :  { %1490 = vmatmul.f32.gmra.mxu1 %v375_v2  ;;  %9834 = vst [vmem:[#allocation158_spill] sm:$0xff] %v7790_v19  ;;  %v125_v19 = vld [vmem:[%s9670_s1 + $0xf8] sm:$0xff] }
 0x278   :  { %v7792_v3 = vpop.f32.mrf.mxu0 }
 0x279   :  { %v7794_v46 = vpop.f32.mrf.mxu1 }
 0x27a   :  { %9835 = vst [vmem:[#allocation159_spill] sm:$0xff] %v7794_v46  ;;  %v7802_v2 = vpop.f32.mrf.mxu2 }
 0x27b   :  { %1534 = vmatmul.f32.gmra.mxu0 %v124_v0  ;;  %9836 = vst [vmem:[#allocation160_spill] sm:$0xff] %v7802_v2  ;;  %v7811_v34 = vpop.f32.mrf.mxu3 }
 0x27c   :  { %1493 = vmatmul.f32.gmra.mxu1 %v379_v40  ;;  %9838 = vst [vmem:[#allocation162_spill] sm:$0xff] %v7811_v34  ;;  %v132_v40 = vld [vmem:[%s9670_s1 + $0x130] sm:$0xff] }
 0x280   :  { %v7804_v15 = vpop.f32.mrf.mxu0 }
 0x281   :  { %v7806_v44 = vpop.f32.mrf.mxu1 }
 0x282   :  { %9837 = vst [vmem:[#allocation161_spill] sm:$0xff] %v7806_v44  ;;  %v7824_v62 = vpop.f32.mrf.mxu2 }
 0x283   :  { %1537 = vmatmul.f32.gmra.mxu0 %v128_v53  ;;  %v7827_v53 = vpop.f32.mrf.mxu3 }
 0x284   :  { %5031 = vmatmul.msk.f32.vlgmr.msra.gmra.mxu1 %vm814_vm0, %v97_v13  ;;  %9840 = vst [vmem:[#allocation164_spill] sm:$0xff] %v7827_v53  ;;  %v136_v13 = vld [vmem:[%s9670_s1 + $0x150] sm:$0xff] }
 0x288   :  { %v7817_v0 = vpop.f32.mrf.mxu0 }
 0x289   :  { %v7819_v60 = vpop.f32.mrf.mxu1 }
 0x28a   :  { %9839 = vst [vmem:[#allocation163_spill] sm:$0xff] %v7819_v60 }
 0x28b   :  { %1540 = vmatmul.f32.gmra.mxu0 %v132_v40  ;;  %v7840_v40 = vpop.f32.mrf.mxu2 }
 0x28c   :  { %5032 = vmatmul.msk.f32.gmra.mxu1 %vm814_vm0, %v101_v56  ;;  %v7842_v56 = vpop.f32.mrf.mxu3 }
 0x28d   :  { %9841 = vst [vmem:[#allocation165_spill] sm:$0xff] %v7842_v56 }
 0x290   :  { %v7832_v6 = vpop.f32.mrf.mxu0 }
 0x291   :  { %v7834_v51 = vpop.f32.mrf.mxu1 }
 0x293   :  { %1543 = vmatmul.f32.gmra.mxu0 %v136_v13  ;;  %v7853_v13 = vpop.f32.mrf.mxu2 }
 0x294   :  { %5033 = vmatmul.msk.f32.gmra.mxu1 %vm814_vm0, %v105_v8  ;;  %v144_v8 = vld [vmem:[%s9670_s1 + $0x190] sm:$0xff]  ;;  %v7858_v41 = vpop.f32.mrf.mxu3 }
 0x298   :  { %v1237_v29 = vpop.f32.mrf.mxu0 }
 0x299   :  { %v7847_v37 = vpop.f32.mrf.mxu1  ;;  %v1238_v26 = vadd.f32 %v1237_v29, %v6427_v52 }
 0x29b   :  { %1546 = vmatmul.f32.gmra.mxu0 %v140_v18  ;;  %v148_v18 = vld [vmem:[%s9670_s1 + $0x1b0] sm:$0xff] }
 0x29c   :  { %5034 = vmatmul.msk.f32.gmra.mxu1 %vm814_vm0, %v109_v42  ;;  %v1703_v42 = vpop.f32.mrf.mxu2  ;;  %v7872_v4 = vpop.f32.mrf.mxu3 }
 0x2a0   :  { %v1240_v43 = vpop.f32.mrf.mxu0 }
 0x2a1   :  { %v7860_v54 = vpop.f32.mrf.mxu1  ;;  %v1241_v44 = vadd.f32 %v1240_v43, %v6126_v47  ;;  %v1232_v43 = vadd.f32 %v7817_v0, %v6282_v22 }
 0x2a3   :  { %1549 = vmatmul.f32.gmra.mxu0 %v144_v8 }
 0x2a4   :  { %5035 = vmatmul.msk.f32.gmra.mxu1 %vm814_vm0, %v113_v20  ;;  %v152_v20 = vld [vmem:[%s9670_s1 + $0x1d0] sm:$0xff]  ;;  %v1706_v24 = vpop.f32.mrf.mxu2  ;;  %v1939_v23 = vpop.f32.mrf.mxu3 }
 0x2a8   :  { %v1243_v45 = vpop.f32.mrf.mxu0 }
 0x2a9   :  { %v1464_v59 = vpop.f32.mrf.mxu1 }
 0x2ab   :  { %1552 = vmatmul.f32.gmra.mxu0 %v148_v18  ;;  %v156_v18 = vld [vmem:[%s9670_s1 + $0x1f0] sm:$0xff] }
 0x2ac   :  { %5036 = vmatmul.msk.f32.gmra.mxu1 %vm814_vm0, %v117_v36  ;;  %v1709_v38 = vpop.f32.mrf.mxu2  ;;  %v1942_v5 = vpop.f32.mrf.mxu3 }
 0x2b0   :  { %v1246_v8 = vpop.f32.mrf.mxu0 }
 0x2b1   :  { %v1467_v55 = vpop.f32.mrf.mxu1  ;;  %v1247_v53 = vadd.f32 %v1246_v8, %v6265_v11 }
 0x2b3   :  { %1555 = vmatmul.f32.gmra.mxu0 %v152_v20 }
 0x2b4   :  { %5037 = vmatmul.msk.f32.gmra.mxu1 %vm814_vm0, %v121_v31  ;;  %v160_v31 = vld [vmem:[%s9670_s1 + $0x210] sm:$0xff]  ;;  %v1712_v34 = vpop.f32.mrf.mxu2  ;;  %v1945_v46 = vpop.f32.mrf.mxu3 }
 0x2b8   :  { %v1249_v36 = vpop.f32.mrf.mxu0 }
 0x2b9   :  { %v1470_v1 = vpop.f32.mrf.mxu1  ;;  %v1250_v58 = vadd.f32 %v1249_v36, %v5975_v17 }
 0x2ba   :  { %v1471_v11 = vadd.f32 %v1470_v1, %v1238_v26  ;;  %v1226_v26 = vadd.f32 %v7792_v3, %v6339_v30 }
 0x2bb   :  { %1558 = vmatmul.f32.gmra.mxu0 %v156_v18 }
 0x2bc   :  { %5038 = vmatmul.msk.f32.gmra.mxu1 %vm814_vm0, %v125_v19  ;;  %v1715_v19 = vpop.f32.mrf.mxu2  ;;  %v1948_v28 = vpop.f32.mrf.mxu3 }
 0x2c0   :  { %v7892_v49 = vpop.f32.mrf.mxu0 }
 0x2c1   :  { %v1473_v20 = vpop.f32.mrf.mxu1  ;;  %9842 = vst [vmem:[#allocation166_spill] sm:$0xff] %v7892_v49  ;;  %v1244_v49 = vadd.f32 %v1243_v45, %v5873_v39 }
 0x2c2   :  { %v1474_v56 = vadd.f32 %v1473_v20, %v1241_v44  ;;  %v9852_v20 = vld [vmem:[#allocation157_spill] sm:$0xff] }
 0x2c3   :  { %1561 = vmatmul.f32.gmra.mxu0 %v160_v31 }
 0x2c4   :  { %v7910_v39 = vpop.f32.mrf.mxu2  ;;  %v1707_v29 = vadd.f32 %v1706_v24, %v1474_v56  ;;  %v7914_v45 = vpop.f32.mrf.mxu3  ;;  %v1217_v24 = vadd.f32 %v7730_v12, %v6509_v10  ;;  %v9849_v56 = vld [vmem:[#allocation85_spill] sm:$0xff]  ;;  %v9853_v12 = vld [vmem:[#allocation164_spill] sm:$0xff] }
 0x2c8   :  { %v7897_v18 = vpop.f32.mrf.mxu0 }
 0x2c9   :  { %v1476_v33 = vpop.f32.mrf.mxu1  ;;  %9843 = vst [vmem:[#allocation167_spill] sm:$0xff] %v7897_v18 }
 0x2ca   :  { %v1477_v57 = vadd.f32 %v1476_v33, %v1244_v49  ;;  %v1229_v49 = vadd.f32 %v7804_v15, %v6599_v48  ;;  %v1704_v33 = vadd.f32 %v1703_v42, %v1471_v11  ;;  %v1459_v48 = vadd.f32 %v7847_v37, %v1226_v26 }
 0x2cb   :  { %1564 = vmatmul.f32.gmra.mxu0 %v164_v35 }
 0x2cc   :  { %v1710_v8 = vadd.f32 %v1709_v38, %v1477_v57  ;;  %v1462_v22 = vadd.f32 %v7860_v54, %v1229_v49  ;;  %v1993_v57 = vmax.f32 %v6997_v61, 0.0  ;;  %v1220_v61 = vadd.f32 %v7759_v16, %v6922_v50  ;;  %v9847_v16 = vld [vmem:[#allocation165_spill] sm:$0xff] }
 0x2d0   :  { %v7899_v63 = vpop.f32.mrf.mxu0 }
 0x2d1   :  { %v1479_v32 = vpop.f32.mrf.mxu1  ;;  %9844 = vst [vmem:[#allocation168_spill] sm:$0xff] %v7899_v63  ;;  %v1235_v63 = vadd.f32 %v7832_v6, %v6000_v27  ;;  %v1943_v27 = vadd.f32 %v1942_v5, %v1710_v8  ;;  %v1940_v6 = vadd.f32 %v1939_v23, %v1707_v29  ;;  %v1992_v23 = vmax.f32 %v6961_v25, 0.0  ;;  %v9845_v25 = vld [vmem:[#allocation163_spill] sm:$0xff]  ;;  %v9855_v8 = vld [vmem:[#allocation86_spill] sm:$0xff] }
 0x2d2   :  { %v1480_v31 = vadd.f32 %v1479_v32, %v1247_v53  ;;  %v1465_v32 = vadd.f32 %v1464_v59, %v1232_v43  ;;  %v1223_v59 = vadd.f32 %v7778_v21, %v6446_v7  ;;  %v1695_v7 = vadd.f32 %v7824_v62, %v1462_v22  ;;  %v9848_v53 = vld [vmem:[#allocation82_spill] sm:$0xff]  ;;  %v9857_v29 = vld [vmem:[#allocation159_spill] sm:$0xff] }
 0x2d3   :  { %v1468_v47 = vadd.f32 %v1467_v55, %v1235_v63  ;;  %v2028_v5 = vmax.f32 %v1943_v27, 0.0  ;;  %v2027_v37 = vmax.f32 %v1940_v6, 0.0  ;;  %v7939_v55 = vpop.f32.mrf.mxu2  ;;  %v1453_v38 = vadd.f32 %v9845_v25, %v1220_v61  ;;  %v9856_v43 = vld [vmem:[#allocation134_spill] sm:$0xff]  ;;  %v9860_v22 = vld [vmem:[#allocation79_spill] sm:$0xff]  ;;  %v9861_v6 = vld [vmem:[#allocation156_spill] sm:$0xff] }
 0x2d4   :  { %v1713_v18 = vadd.f32 %v1712_v34, %v1480_v31  ;;  %v1698_v30 = vadd.f32 %v7840_v40, %v1465_v32  ;;  %v1937_v34 = vadd.f32 %v7872_v4, %v1704_v33  ;;  %v1456_v44 = vadd.f32 %v7834_v51, %v1223_v59  ;;  %v9858_v32 = vld [vmem:[#allocation153_spill] sm:$0xff]  ;;  %v9859_v27 = vld [vmem:[#allocation162_spill] sm:$0xff] }
 0x2d5   :  { %v1701_v63 = vadd.f32 %v7853_v13, %v1468_v47  ;;  %v1991_v4 = vmax.f32 %v6925_v9, 0.0  ;;  %v2064_v62 = vmax.f32 %v1992_v23, %v2028_v5  ;;  %v1990_v40 = vmax.f32 %v9848_v53, 0.0  ;;  %v9850_v13 = vld [vmem:[#allocation139_spill] sm:$0xff]  ;;  %v9851_v9 = vld [vmem:[#allocation161_spill] sm:$0xff]  ;;  %v9863_v59 = vld [vmem:[#allocation158_spill] sm:$0xff] }
 0x2d6   :  { %v1946_v52 = vadd.f32 %v1945_v46, %v1713_v18  ;;  %v1931_v51 = vadd.f32 %v9847_v16, %v1698_v30  ;;  %v2026_v0 = vmax.f32 %v1937_v34, 0.0  ;;  %v1214_v42 = vadd.f32 %v9850_v13, %v9849_v56  ;;  %v9864_v5 = vld [vmem:[#allocation78_spill] sm:$0xff]  ;;  %v9865_v23 = vld [vmem:[#allocation143_spill] sm:$0xff]  ;;  %v9868_v25 = vld [vmem:[#allocation137_spill] sm:$0xff] }
 0x2d7   :  { %v1934_v21 = vadd.f32 %v7858_v41, %v1701_v63  ;;  %v7947_v41 = vpop.f32.mrf.mxu3  ;;  %v1450_v36 = vadd.f32 %v9851_v9, %v1217_v24  ;;  %v1689_v10 = vadd.f32 %v9852_v20, %v1456_v44  ;;  %v1928_v18 = vadd.f32 %v9853_v12, %v1695_v7  ;;  %v9866_v44 = vld [vmem:[#allocation155_spill] sm:$0xff]  ;;  %v9871_v53 = vld [vmem:[#allocation16_spill] sm:$0xff] }
 0x2d8   :  { %v7906_v2 = vpop.f32.mrf.mxu0  ;;  %v2063_v31 = vmax.f32 %v1991_v4, %v2027_v37  ;;  %v1211_v47 = vadd.f32 %v9856_v43, %v9855_v8  ;;  %v1686_v33 = vadd.f32 %v9858_v32, %v1453_v38  ;;  %v2062_v26 = vmax.f32 %v1990_v40, %v2026_v0  ;;  %v9867_v4 = vld [vmem:[#allocation77_spill] sm:$0xff]  ;;  %v9877_v8 = vld [vmem:[#allocation138_spill] sm:$0xff]  ;;  %v9878_v32 = vld [vmem:[#allocation119_spill] sm:$0xff] }
 0x2d9   :  { %v1482_v35 = vpop.f32.mrf.mxu1  ;;  %v1988_v63 = vmax.f32 %v9860_v22, 0.0  ;;  %v2023_v30 = vmax.f32 %v1928_v18, 0.0  ;;  %v1986_v24 = vmax.f32 %v9867_v4, 0.0  ;;  %v9874_v18 = vld [vmem:[#allocation117_spill] sm:$0xff] }
 0x2da   :  { %v1483_v60 = vadd.f32 %v1482_v35, %v1250_v58  ;;  %v1994_v58 = vmax.f32 %v7033_v14, 0.0  ;;  %v9854_v35 = vld [vmem:[#allocation80_spill] sm:$0xff]  ;;  %v1919_v7 = vadd.f32 %v9866_v44, %v1686_v33  ;;  %v9879_v33 = vld [vmem:[#allocation10_spill] sm:$0xff] }
 0x2db   :  { %v1989_v11 = vmax.f32 %v9854_v35, 0.0  ;;  %v9876_v35 = vld [vmem:[#allocation75_spill] sm:$0xff] }
 0x2dc   :  { %v1716_v17 = vadd.f32 %v1715_v19, %v1483_v60  ;;  %v2029_v60 = vmax.f32 %v1946_v52, 0.0  ;;  %v2025_v19 = vmax.f32 %v1934_v21, 0.0  ;;  %v1447_v52 = vadd.f32 %v9857_v29, %v1214_v42  ;;  %v9872_v42 = vld [vmem:[#allocation76_spill] sm:$0xff] }
 0x2dd   :  { %v1985_v9 = vmax.f32 %v9872_v42, 0.0  ;;  %v9889_v42 = vld [vmem:[#allocation166_spill] sm:$0xff] }
 0x2de   :  { %v1949_v1 = vadd.f32 %v1948_v28, %v1716_v17  ;;  %v2065_v3 = vmax.f32 %v1993_v57, %v2029_v60  ;;  %v9846_v28 = vld [vmem:[#allocation160_spill] sm:$0xff]  ;;  %v1444_v60 = vadd.f32 %v9861_v6, %v1211_v47  ;;  %v2061_v34 = vmax.f32 %v1989_v11, %v2025_v19  ;;  %v9875_v19 = vld [vmem:[#allocation13_spill] sm:$0xff]  ;;  %v9881_v6 = vld [vmem:[#allocation83_spill] sm:$0xff] }
 0x2df   :  { %v1692_v50 = vadd.f32 %v9846_v28, %v1459_v48  ;;  %v1922_v48 = vadd.f32 %v9863_v59, %v1689_v10  ;;  %v1680_v61 = vadd.f32 %v9865_v23, %v1447_v52  ;;  %v9869_v28 = vld [vmem:[#allocation150_spill] sm:$0xff]  ;;  %v1957_v0 = vpop.f32.mrf.mxu3  ;;  %v2020_v10 = vmax.f32 %v1919_v7, 0.0  ;;  %v9884_v23 = vld [vmem:[#allocation68_spill] sm:$0xff] }
 0x2e0   :  { %v2030_v46 = vmax.f32 %v1949_v1, 0.0  ;;  %v7929_v14 = vpop.f32.mrf.mxu0  ;;  %v1677_v38 = vadd.f32 %v9868_v25, %v1444_v60  ;;  %v1984_v11 = vmax.f32 %v9876_v35, 0.0  ;;  %v9882_v60 = vld [vmem:[#allocation18_spill] sm:$0xff] }
 0x2e1   :  { %v7927_v15 = vpop.f32.mrf.mxu1  ;;  %v1925_v1 = vadd.f32 %v9859_v27, %v1692_v50  ;;  %v2021_v16 = vmax.f32 %v1922_v48, 0.0  ;;  %v1253_v27 = vadd.f32 %v9879_v33, %v9878_v32  ;;  %v9895_v33 = vld [vmem:[#allocation87_spill] sm:$0xff] }
 0x2e2   :  { %v2066_v54 = vmax.f32 %v1994_v58, %v2030_v46  ;;  %v2024_v58 = vmax.f32 %v1931_v51, 0.0  ;;  %v9862_v46 = vld [vmem:[#allocation147_spill] sm:$0xff]  ;;  %v1910_v43 = vadd.f32 %v9877_v8, %v1677_v38  ;;  %v9893_v8 = vld [vmem:[#allocation88_spill] sm:$0xff] }
 0x2e3   :  { %v1683_v57 = vadd.f32 %v9862_v46, %v1450_v36  ;;  %v2022_v21 = vmax.f32 %v1925_v1, 0.0  ;;  %v9873_v36 = vld [vmem:[#allocation145_spill] sm:$0xff]  ;;  %v2057_v52 = vmax.f32 %v1985_v9, %v2021_v16  ;;  %v9880_v1 = vld [vmem:[#allocation74_spill] sm:$0xff]  ;;  %v1262_v46 = vadd.f32 %v9882_v60, %v9881_v6 }
 0x2e4   :  { %3049 = vmatpush.msra.mxu0 %v2066_v54  ;;  %v1987_v54 = vmax.f32 %v9864_v5, 0.0  ;;  %v2060_v37 = vmax.f32 %v1988_v63, %v2024_v58  ;;  %v1913_v20 = vadd.f32 %v9873_v36, %v1680_v61  ;;  %v1983_v58 = vmax.f32 %v9880_v1, 0.0  ;;  %v9885_v61 = vld [vmem:[#allocation9_spill] sm:$0xff]  ;;  %v9896_v1 = vld [vmem:[#allocation23_spill] sm:$0xff] }
 0x2e5   :  { %v1916_v50 = vadd.f32 %v9869_v28, %v1683_v57  ;;  %v2058_v12 = vmax.f32 %v1986_v24, %v2022_v21  ;;  %v2056_v63 = vmax.f32 %v1984_v11, %v2020_v10  ;;  %v9883_v57 = vld [vmem:[#allocation73_spill] sm:$0xff]  ;;  %v2017_v48 = vmax.f32 %v1910_v43, 0.0 }
 0x2e6   :  { %3050 = vmatpush.msra.mxu0 %v2065_v3  ;;  %v1724_v3 = vpop.f32.mrf.mxu2  ;;  %v2059_v51 = vmax.f32 %v1987_v54, %v2023_v30  ;;  %v1982_v59 = vmax.f32 %v9883_v57, 0.0  ;;  %v1486_v30 = vadd.f32 %v7927_v15, %v1253_v27  ;;  %v1049_v44 = vadd.f32 %v9885_v61, %v9884_v23  ;;  %v9887_v16 = vld [vmem:[#allocation21_spill] sm:$0xff] }
 0x2e7   :  { %v2019_v47 = vmax.f32 %v1916_v50, 0.0  ;;  %v1960_v38 = vpop.f32.mrf.mxu3  ;;  %v9890_v10 = vld [vmem:[#allocation81_spill] sm:$0xff]  ;;  %v1996_v43 = vmax.f32 %v9893_v8, 0.0  ;;  %v1995_v27 = vmax.f32 %v9895_v33, 0.0 }
 0x2e8   :  { %3051 = vmatpush.msra.mxu0 %v2064_v62  ;;  %v7959_v49 = vpop.f32.mrf.mxu0  ;;  %v9870_v62 = vld [vmem:[#allocation105_spill] sm:$0xff]  ;;  %v1719_v15 = vadd.f32 %v7910_v39, %v1486_v30  ;;  %v9891_v39 = vld [vmem:[#allocation12_spill] sm:$0xff] }
 0x2e9   :  { %v1488_v17 = vpop.f32.mrf.mxu1  ;;  %v1259_v40 = vadd.f32 %v9871_v53, %v9870_v62  ;;  %v2055_v5 = vmax.f32 %v1983_v58, %v2019_v47  ;;  %v9894_v47 = vld [vmem:[#allocation91_spill] sm:$0xff]  ;;  %v9901_v61 = vld [vmem:[#allocation25_spill] sm:$0xff] }
 0x2ea   :  { %3052 = vmatpush.msra.mxu0 %v2063_v31  ;;  %v1256_v31 = vadd.f32 %v9875_v19, %v9874_v18  ;;  %v1952_v9 = vadd.f32 %v7914_v45, %v1719_v15  ;;  %v9892_v19 = vld [vmem:[#allocation89_spill] sm:$0xff] }
 0x2ec   :  { %3053 = vmatpush.msra.mxu0 %v2062_v26  ;;  %v2018_v26 = vmax.f32 %v1913_v20, 0.0  ;;  %v1489_v22 = vadd.f32 %v1488_v17, %v1256_v31  ;;  %v9886_v17 = vld [vmem:[#allocation72_spill] sm:$0xff]  ;;  %v1997_v31 = vmax.f32 %v9892_v19, 0.0 }
 0x2ee   :  { %3054 = vmatpush.msra.mxu0 %v2061_v34  ;;  %v1727_v54 = vpop.f32.mrf.mxu2  ;;  %v1722_v4 = vadd.f32 %v7939_v55, %v1489_v22  ;;  %v2054_v25 = vmax.f32 %v1982_v59, %v2018_v26  ;;  %v9898_v59 = vld [vmem:[#allocation65_spill] sm:$0xff] }
 0x2f0   :  { %3055 = vmatpush.msra.mxu0 %v2060_v37  ;;  %v7975_v13 = vpop.f32.mrf.mxu0  ;;  %v1981_v37 = vmax.f32 %v9886_v17, 0.0  ;;  %v1955_v62 = vadd.f32 %v7947_v41, %v1722_v4  ;;  %v9902_v17 = vld [vmem:[#allocation168_spill] sm:$0xff] }
 0x2f1   :  { %v1491_v56 = vpop.f32.mrf.mxu1 }
 0x2f2   :  { %3056 = vmatpush.msra.mxu0 %v2059_v51  ;;  %v1492_v29 = vadd.f32 %v1491_v56, %v1259_v40  ;;  %v2053_v50 = vmax.f32 %v1981_v37, %v2017_v48  ;;  %v1282_v51 = vadd.f32 %v9887_v16, %v1049_v44  ;;  %v9888_v40 = vld [vmem:[#allocation90_spill] sm:$0xff]  ;;  %v2032_v35 = vmax.f32 %v1955_v62, 0.0  ;;  %v9899_v48 = vld [vmem:[#allocation15_spill] sm:$0xff] }
 0x2f3   :  { %v1998_v56 = vmax.f32 %v9888_v40, 0.0  ;;  %v1055_v30 = vadd.f32 %v9899_v48, %v9898_v59  ;;  %v9905_v40 = vld [vmem:[#allocation71_spill] sm:$0xff] }
 0x2f4   :  { %3057 = vmatpush.msra.mxu0 %v2058_v12  ;;  %v1725_v34 = vadd.f32 %v1724_v3, %v1492_v29  ;;  %v1515_v55 = vadd.f32 %v9889_v42, %v1282_v51  ;;  %v1999_v29 = vmax.f32 %v9894_v47, 0.0  ;;  %v2068_v26 = vmax.f32 %v1996_v43, %v2032_v35  ;;  %v9909_v35 = vld [vmem:[#allocation95_spill] sm:$0xff] }
 0x2f5   :  { %v1288_v44 = vadd.f32 %v9901_v61, %v1055_v30  ;;  %v9910_v43 = vld [vmem:[#allocation31_spill] sm:$0xff]  ;;  %v9923_v61 = vld [vmem:[#allocation36_spill] sm:$0xff] }
 0x2f6   :  { %3058 = vmatpush.msra.mxu0 %v2057_v52  ;;  %v1958_v3 = vadd.f32 %v1957_v0, %v1725_v34  ;;  %v1052_v0 = vadd.f32 %v9891_v39, %v9890_v10  ;;  %v2031_v52 = vmax.f32 %v1952_v9, 0.0  ;;  %v9911_v47 = vld [vmem:[#allocation115_spill] sm:$0xff] }
 0x2f7   :  { %v1521_v37 = vadd.f32 %v9902_v17, %v1288_v44  ;;  %v9919_v59 = vld [vmem:[#allocation135_spill] sm:$0xff]  ;;  %v9924_v44 = vld [vmem:[#allocation45_spill] sm:$0xff] }
 0x2f8   :  { %3059 = vmatpush.msra.mxu0 %v2056_v63  ;;  %v7992_v21 = vpop.f32.mrf.mxu0  ;;  %v2033_v36 = vmax.f32 %v1958_v3, 0.0  ;;  %v1285_v58 = vadd.f32 %v9896_v1, %v1052_v0  ;;  %v9897_v63 = vld [vmem:[#allocation167_spill] sm:$0xff]  ;;  %v2067_v60 = vmax.f32 %v1995_v27, %v2031_v52  ;;  %v9912_v52 = vld [vmem:[#allocation6_spill] sm:$0xff]  ;;  %v9914_v1 = vld [vmem:[#allocation5_spill] sm:$0xff]  ;;  %v1085_v17 = vadd.f32 %v9924_v44, %v9923_v61 }
 0x2f9   :  { %v1494_v7 = vpop.f32.mrf.mxu1  ;;  %v9920_v30 = vld [vmem:[#allocation11_spill] sm:$0xff] }
 0x2fa   :  { %v1495_v24 = vadd.f32 %v1494_v7, %v1262_v46  ;;  %3060 = vmatpush.msra.mxu0 %v2055_v5  ;;  %v2069_v45 = vmax.f32 %v1997_v31, %v2033_v36  ;;  %v1518_v6 = vadd.f32 %v9897_v63, %v1285_v58  ;;  %v9900_v5 = vld [vmem:[#allocation92_spill] sm:$0xff] }
 0x2fc   :  { %v1728_v28 = vadd.f32 %v1727_v54, %v1495_v24  ;;  %3061 = vmatpush.msra.mxu0 %v2054_v25  ;;  %v2000_v54 = vmax.f32 %v9900_v5, 0.0 }
 0x2fe   :  { %v1961_v53 = vadd.f32 %v1960_v38, %v1728_v28  ;;  %3062 = vmatpush.msra.mxu0 %v2053_v50  ;;  %v9903_v38 = vld [vmem:[#allocation93_spill] sm:$0xff]  ;;  %v9904_v50 = vld [vmem:[#allocation32_spill] sm:$0xff] }
 0x2ff   :  { %v2001_v15 = vmax.f32 %v9903_v38, 0.0  ;;  %v1524_v16 = vadd.f32 %v7906_v2, %v9904_v50  ;;  %v2003_v2 = vmax.f32 %v9909_v35, 0.0  ;;  %v9927_v38 = vld [vmem:[#allocation129_spill] sm:$0xff]  ;;  %v9929_v50 = vld [vmem:[#allocation55_spill] sm:$0xff] }
 0x300   :  { %v2034_v20 = vmax.f32 %v1961_v53, 0.0  ;;  %v8004_v12 = vpop.f32.mrf.mxu0  ;;  %v9937_v35 = vld [vmem:[#allocation111_spill] sm:$0xff] }
 0x301   :  { %v1747_v18 = vpop.f32.mrf.mxu1 }
 0x302   :  { %v2070_v41 = vmax.f32 %v1998_v56, %v2034_v20  ;;  %v1748_v11 = vadd.f32 %v1747_v18, %v1515_v55  ;;  %v9906_v56 = vld [vmem:[#allocation20_spill] sm:$0xff]  ;;  %v9907_v55 = vld [vmem:[#allocation94_spill] sm:$0xff] }
 0x303   :  { %v1061_v42 = vadd.f32 %v9906_v56, %v9905_v40  ;;  %v2002_v9 = vmax.f32 %v9907_v55, 0.0  ;;  %v9908_v20 = vld [vmem:[#allocation30_spill] sm:$0xff]  ;;  %v9931_v40 = vld [vmem:[#allocation116_spill] sm:$0xff] }
 0x304   :  { %v1963_v32 = vmax.f32 %v1748_v11, 0.0  ;;  %3270 = vmatpush.msrb.mxu1 %v2070_v41  ;;  %v9932_v55 = vld [vmem:[#allocation48_spill] sm:$0xff] }
 0x305   :  { %v1294_v10 = vadd.f32 %v9908_v20, %v1061_v42  ;;  %v9934_v20 = vld [vmem:[#allocation17_spill] sm:$0xff] }
 0x306   :  { %3271 = vmatpush.msrb.mxu1 %v2069_v45  ;;  %v8011_v22 = vmax.f32 %v1963_v32, %v1999_v29  ;;  %v1202_v29 = vadd.f32 %v9911_v47, %v9910_v43  ;;  %v9913_v32 = vld [vmem:[#allocation109_spill] sm:$0xff]  ;;  %v9939_v43 = vld [vmem:[#allocation24_spill] sm:$0xff] }
 0x307   :  { %v1527_v0 = vadd.f32 %v7929_v14, %v1294_v10  ;;  %v1199_v45 = vadd.f32 %v9913_v32, %v9912_v52  ;;  %v9915_v14 = vld [vmem:[#allocation52_spill] sm:$0xff]  ;;  %v9935_v10 = vld [vmem:[#allocation41_spill] sm:$0xff]  ;;  %v9941_v32 = vld [vmem:[#allocation67_spill] sm:$0xff] }
 0x308   :  { %3272 = vmatpush.msrb.mxu1 %v2068_v26  ;;  %v8014_v46 = vpop.f32.mrf.mxu0  ;;  %v1091_v58 = vadd.f32 %v9915_v14, %v9914_v1  ;;  %v9916_v26 = vld [vmem:[#allocation140_spill] sm:$0xff]  ;;  %v9942_v14 = vld [vmem:[#allocation61_spill] sm:$0xff] }
 0x309   :  { %v1750_v57 = vpop.f32.mrf.mxu1  ;;  %v1435_v63 = vadd.f32 %v9916_v26, %v1202_v29  ;;  %v1432_v48 = vadd.f32 %v9919_v59, %v1199_v45  ;;  %v9940_v29 = vld [vmem:[#allocation59_spill] sm:$0xff]  ;;  %v9944_v26 = vld [vmem:[#allocation44_spill] sm:$0xff]  ;;  %v9947_v59 = vld [vmem:[#allocation106_spill] sm:$0xff] }
 0x30a   :  { %v1751_v34 = vadd.f32 %v1750_v57, %v1518_v6  ;;  %3273 = vmatpush.msrb.mxu1 %v2067_v60  ;;  %v9917_v6 = vld [vmem:[#allocation14_spill] sm:$0xff]  ;;  %v9918_v60 = vld [vmem:[#allocation104_spill] sm:$0xff]  ;;  %v1318_v52 = vadd.f32 %v9940_v29, %v1085_v17 }
 0x30b   :  { %v1196_v57 = vadd.f32 %v9918_v60, %v9917_v6  ;;  %v1668_v56 = vadd.f32 %v9931_v40, %v1435_v63  ;;  %v9945_v63 = vld [vmem:[#allocation38_spill] sm:$0xff]  ;;  %v9946_v60 = vld [vmem:[#allocation56_spill] sm:$0xff] }
 0x30c   :  { %v1964_v23 = vmax.f32 %v1751_v34, 0.0  ;;  %v9921_v34 = vld [vmem:[#allocation49_spill] sm:$0xff]  ;;  %v1079_v6 = vadd.f32 %v9945_v63, %v9944_v26  ;;  %v9950_v17 = vld [vmem:[#allocation8_spill] sm:$0xff] }
 0x30d   :  { %v1088_v5 = vadd.f32 %v9921_v34, %v9920_v30  ;;  %v9966_v26 = vld [vmem:[#allocation128_spill] sm:$0xff] }
 0x30e   :  { %v8020_v7 = vmax.f32 %v1964_v23, %v2000_v54  ;;  %v9922_v54 = vld [vmem:[#allocation66_spill] sm:$0xff] }
 0x30f   :  { %v1324_v23 = vadd.f32 %v9922_v54, %v1091_v58 }
 0x310   :  { %v8023_v4 = vpop.f32.mrf.mxu0 }
 0x311   :  { %v1753_v24 = vpop.f32.mrf.mxu1 }
 0x312   :  { %v1754_v25 = vadd.f32 %v1753_v24, %v1521_v37  ;;  %v9925_v37 = vld [vmem:[#allocation7_spill] sm:$0xff]  ;;  %v9926_v24 = vld [vmem:[#allocation100_spill] sm:$0xff] }
 0x314   :  { %v1965_v3 = vmax.f32 %v1754_v25, 0.0  ;;  %v1193_v25 = vadd.f32 %v9926_v24, %v9925_v37  ;;  %v9951_v37 = vld [vmem:[#allocation34_spill] sm:$0xff]  ;;  %v9952_v24 = vld [vmem:[#allocation53_spill] sm:$0xff] }
 0x316   :  { %v8026_v28 = vmax.f32 %v1965_v3, %v2001_v15  ;;  %v1429_v15 = vadd.f32 %v9927_v38, %v1196_v57  ;;  %v9928_v3 = vld [vmem:[#allocation26_spill] sm:$0xff]  ;;  %v9953_v38 = vld [vmem:[#allocation101_spill] sm:$0xff] }
 0x318   :  { %v1547_v51 = vpop.f32.mrf.mxu0  ;;  %v1662_v30 = vadd.f32 %v9947_v59, %v1429_v15  ;;  %v9956_v15 = vld [vmem:[#allocation29_spill] sm:$0xff] }
 0x319   :  { %v1756_v62 = vpop.f32.mrf.mxu1 }
 0x31a   :  { %v1757_v53 = vadd.f32 %v1756_v62, %v1524_v16  ;;  %v1094_v16 = vadd.f32 %v9929_v50, %v9928_v3  ;;  %v9930_v62 = vld [vmem:[#allocation63_spill] sm:$0xff]  ;;  %v9954_v50 = vld [vmem:[#allocation113_spill] sm:$0xff] }
 0x31c   :  { %v1966_v36 = vmax.f32 %v1757_v53, 0.0  ;;  %v1321_v53 = vadd.f32 %v9930_v62, %v1088_v5  ;;  %v1327_v45 = vadd.f32 %v9941_v32, %v1094_v16 }
 0x31e   :  { %v8034_v39 = vmax.f32 %v1966_v36, %v2002_v9  ;;  %v9933_v9 = vld [vmem:[#allocation22_spill] sm:$0xff] }
 0x31f   :  { %v1064_v36 = vadd.f32 %v9933_v9, %v9932_v55  ;;  %v9958_v9 = vld [vmem:[#allocation57_spill] sm:$0xff] }
 0x320   :  { %v1550_v18 = vpop.f32.mrf.mxu0 }
 0x321   :  { %v1759_v19 = vpop.f32.mrf.mxu1  ;;  %v1551_v54 = vadd.f32 %v1550_v18, %v1318_v52 }
 0x322   :  { %v1760_v31 = vadd.f32 %v1759_v19, %v1527_v0  ;;  %v1082_v0 = vadd.f32 %v9935_v10, %v9934_v20  ;;  %v9936_v19 = vld [vmem:[#allocation122_spill] sm:$0xff]  ;;  %v9959_v20 = vld [vmem:[#allocation35_spill] sm:$0xff] }
 0x323   :  { %v1297_v10 = vadd.f32 %v9959_v20, %v1064_v36 }
 0x324   :  { %v1967_v41 = vmax.f32 %v1760_v31, 0.0  ;;  %v1426_v31 = vadd.f32 %v9936_v19, %v1193_v25  ;;  %v1315_v57 = vadd.f32 %v9946_v60, %v1082_v0  ;;  %v1312_v25 = vadd.f32 %v9952_v24, %v1079_v6  ;;  %v9960_v0 = vld [vmem:[#allocation50_spill] sm:$0xff]  ;;  %v9967_v60 = vld [vmem:[#allocation43_spill] sm:$0xff] }
 0x326   :  { %v8038_v11 = vmax.f32 %v1967_v41, %v2003_v2  ;;  %v1665_v2 = vadd.f32 %v9937_v35, %v1432_v48  ;;  %v9938_v41 = vld [vmem:[#allocation19_spill] sm:$0xff]  ;;  %v9948_v48 = vld [vmem:[#allocation118_spill] sm:$0xff]  ;;  %v1659_v3 = vadd.f32 %v9953_v38, %v1426_v31  ;;  %v1548_v55 = vadd.f32 %v1547_v51, %v1315_v57 }
 0x327   :  { %v1067_v47 = vadd.f32 %v9939_v43, %v9938_v41  ;;  %v1901_v5 = vadd.f32 %v9948_v48, %v1668_v56  ;;  %v9957_v56 = vld [vmem:[#allocation51_spill] sm:$0xff]  ;;  %v1545_v31 = vadd.f32 %v8023_v4, %v1312_v25  ;;  %v9964_v51 = vld [vmem:[#allocation102_spill] sm:$0xff] }
 0x328   :  { %v1553_v8 = vpop.f32.mrf.mxu0  ;;  %v1898_v16 = vadd.f32 %v9954_v50, %v1665_v2  ;;  %v9961_v35 = vld [vmem:[#allocation107_spill] sm:$0xff]  ;;  %v1781_v57 = vadd.f32 %v9967_v60, %v1548_v55  ;;  %v9968_v4 = vld [vmem:[#allocation110_spill] sm:$0xff] }
 0x329   :  { %v8044_v33 = vpop.f32.mrf.mxu1  ;;  %v1554_v1 = vadd.f32 %v1553_v8, %v1321_v53  ;;  %v1076_v8 = vadd.f32 %v9951_v37, %v9950_v17  ;;  %v9955_v53 = vld [vmem:[#allocation28_spill] sm:$0xff]  ;;  %v1895_v41 = vadd.f32 %v9961_v35, %v1662_v30  ;;  %v2014_v43 = vmax.f32 %v1901_v5, 0.0  ;;  %v9962_v2 = vld [vmem:[#allocation47_spill] sm:$0xff]  ;;  %v9977_v55 = vld [vmem:[#allocation146_spill] sm:$0xff] }
 0x32a   :  { %v1073_v40 = vadd.f32 %v9956_v15, %v9955_v53  ;;  %v1784_v29 = vadd.f32 %v9962_v2, %v1551_v54  ;;  %v2013_v6 = vmax.f32 %v1898_v16, 0.0  ;;  %v9970_v5 = vld [vmem:[#allocation112_spill] sm:$0xff]  ;;  %v9971_v54 = vld [vmem:[#allocation121_spill] sm:$0xff]  ;;  %v9975_v16 = vld [vmem:[#allocation42_spill] sm:$0xff] }
 0x32b   :  { %v1787_v18 = vadd.f32 %v9957_v56, %v1554_v1  ;;  %v1309_v19 = vadd.f32 %v9960_v0, %v1076_v8  ;;  %v9965_v1 = vld [vmem:[#allocation84_spill] sm:$0xff]  ;;  %v2012_v24 = vmax.f32 %v1895_v41, 0.0  ;;  %v9976_v15 = vld [vmem:[#allocation69_spill] sm:$0xff]  ;;  %v1974_v0 = vmax.f32 %v1781_v57, 0.0  ;;  %v9980_v35 = vld [vmem:[#allocation62_spill] sm:$0xff] }
 0x32c   :  { %v1208_v63 = vadd.f32 %v9966_v26, %v9965_v1  ;;  %v9973_v17 = vld [vmem:[#allocation40_spill] sm:$0xff]  ;;  %v1975_v38 = vmax.f32 %v1784_v29, 0.0 }
 0x32d   :  { %v1542_v36 = vadd.f32 %v8014_v46, %v1309_v19  ;;  %v1976_v30 = vmax.f32 %v1787_v18, 0.0  ;;  %v1778_v37 = vadd.f32 %v9973_v17, %v1545_v31  ;;  %v9979_v19 = vld [vmem:[#allocation99_spill] sm:$0xff]  ;;  %v9981_v41 = vld [vmem:[#allocation120_spill] sm:$0xff] }
 0x32e   :  { %v2010_v31 = vmax.f32 %v9981_v41, 0.0  ;;  %v9985_v1 = vld [vmem:[#allocation108_spill] sm:$0xff] }
 0x32f   :  { %v2048_v20 = vmax.f32 %v1976_v30, %v2012_v24  ;;  %v1973_v29 = vmax.f32 %v1778_v37, 0.0  ;;  %v2008_v26 = vmax.f32 %v9985_v1, 0.0  ;;  %v2088_v1 = vld [vmem:[%s9672_s3 + $0x88] sm:$0xff] }
 0x330   :  { %v1556_v27 = vpop.f32.mrf.mxu0  ;;  %v2046_v30 = vmax.f32 %v1974_v0, %v2010_v31 }
 0x331   :  { %v1557_v42 = vadd.f32 %v1556_v27, %v1324_v23  ;;  %v9943_v27 = vld [vmem:[#allocation27_spill] sm:$0xff]  ;;  %v9949_v23 = vld [vmem:[#allocation54_spill] sm:$0xff]  ;;  %v8087_v62 = vpop.f32.mrf.mxu1 }
 0x332   :  { %v1070_v58 = vadd.f32 %v9943_v27, %v9942_v14  ;;  %v1892_v27 = vadd.f32 %v9964_v51, %v1659_v3  ;;  %v9974_v3 = vld [vmem:[#allocation39_spill] sm:$0xff]  ;;  %v9984_v51 = vld [vmem:[#allocation70_spill] sm:$0xff] }
 0x333   :  { %v1790_v61 = vadd.f32 %v9949_v23, %v1557_v42  ;;  %v1205_v23 = vadd.f32 %v9971_v54, %v9970_v5  ;;  %v1300_v50 = vadd.f32 %v9974_v3, %v1067_v47 }
 0x334   :  { %v1303_v53 = vadd.f32 %v9975_v16, %v1070_v58  ;;  %v2011_v18 = vmax.f32 %v1892_v27, 0.0  ;;  %v9993_v16 = vld [vmem:[#allocation98_spill] sm:$0xff] }
 0x335   :  { %v1977_v32 = vmax.f32 %v1790_v61, 0.0  ;;  %v9972_v61 = vld [vmem:[#allocation152_spill] sm:$0xff]  ;;  %v1438_v56 = vadd.f32 %v9977_v55, %v1205_v23  ;;  %v1533_v57 = vadd.f32 %v7975_v13, %v1300_v50  ;;  %v2073_v23 = vld [vmem:[%s9672_s3 + $0x10] sm:$0xff] }
 0x336   :  { %v1536_v58 = vadd.f32 %v7992_v21, %v1303_v53  ;;  %v9988_v21 = vld [vmem:[#allocation131_spill] sm:$0xff]  ;;  %5103 = vmatmul.msk.f32.vlgmr.msrb.gmra.mxu1 %vm2647_vm1, %v2073_v23 }
 0x337   :  { %v2049_v46 = vmax.f32 %v1977_v32, %v2013_v6 }
 0x338   :  { %v1559_v34 = vpop.f32.mrf.mxu0 }
 0x339   :  { %v1560_v44 = vadd.f32 %v1559_v34, %v1327_v45  ;;  %v9963_v45 = vld [vmem:[#allocation46_spill] sm:$0xff]  ;;  %v1768_v47 = vpop.f32.mrf.mxu1 }
 0x33a   :  { %v1306_v14 = vadd.f32 %v9963_v45, %v1073_v40  ;;  %v9969_v34 = vld [vmem:[#allocation58_spill] sm:$0xff] }
 0x33b   :  { %v1793_v42 = vadd.f32 %v9958_v9, %v1560_v44  ;;  %v1097_v48 = vadd.f32 %v9969_v34, %v9968_v4  ;;  %v1441_v44 = vadd.f32 %v9972_v61, %v1208_v63  ;;  %v9978_v9 = vld [vmem:[#allocation37_spill] sm:$0xff]  ;;  %v9986_v63 = vld [vmem:[#allocation114_spill] sm:$0xff]  ;;  %v1766_v61 = vadd.f32 %v8087_v62, %v1533_v57 }
 0x33c   :  { %v1539_v25 = vadd.f32 %v8004_v12, %v1306_v14  ;;  %v1100_v12 = vadd.f32 %v9980_v35, %v9979_v19  ;;  %v2047_v14 = vmax.f32 %v1975_v38, %v2011_v18  ;;  %v2009_v6 = vmax.f32 %v9986_v63, 0.0  ;;  %v9992_v38 = vld [vmem:[#allocation64_spill] sm:$0xff]  ;;  %v2076_v35 = vld [vmem:[%s9672_s3 + $0x28] sm:$0xff]  ;;  %v2087_v57 = vld [vmem:[%s9672_s3 + $0x80] sm:$0xff] }
 0x33d   :  { %v1978_v52 = vmax.f32 %v1793_v42, 0.0  ;;  %v1330_v40 = vadd.f32 %v9976_v15, %v1097_v48  ;;  %v1775_v42 = vadd.f32 %v9978_v9, %v1542_v36  ;;  %v9987_v36 = vld [vmem:[#allocation123_spill] sm:$0xff]  ;;  %v1530_v48 = vadd.f32 %v7959_v49, %v1297_v10  ;;  %v8140_v15 = vpop.permute.xlu1 %2634  ;;  %v9995_v9 = vld [vmem:[#allocation97_spill] sm:$0xff] }
 0x33e   :  { %v1333_v27 = vadd.f32 %v9984_v51, %v1100_v12  ;;  %v1671_v60 = vadd.f32 %v9987_v36, %v1438_v56  ;;  %v2045_v54 = vmax.f32 %v1973_v29, %v2009_v6  ;;  %v2006_v62 = vmax.f32 %v9993_v16, 0.0  ;;  %9994 = vst [vmem:[#allocation163_spill] sm:$0xff] %v8140_v15  ;;  %v9996_v12 = vld [vmem:[#allocation96_spill] sm:$0xff]  ;;  %5104 = vmatmul.msk.f32.gmra.mxu1 %vm2647_vm1, %v2076_v35  ;;  %v2080_v36 = vld [vmem:[%s9672_s3 + $0x48] sm:$0xff] }
 0x33f   :  { %v2050_v59 = vmax.f32 %v1978_v52, %v2014_v43  ;;  %v9982_v43 = vld [vmem:[#allocation130_spill] sm:$0xff]  ;;  %v9983_v52 = vld [vmem:[#allocation33_spill] sm:$0xff]  ;;  %v1972_v4 = vmax.f32 %v1775_v42, 0.0  ;;  %v1763_v10 = vadd.f32 %v8044_v33, %v1530_v48  ;;  %v2005_v42 = vmax.f32 %v9995_v9, 0.0  ;;  %v2090_v48 = vld [vmem:[%s9672_s3 + $0x98] sm:$0xff] }
 0x340   :  { %v1562_v8 = vpop.f32.mrf.mxu0  ;;  %v1674_v2 = vadd.f32 %v9982_v43, %v1441_v44  ;;  %v1772_v32 = vadd.f32 %v9983_v52, %v1539_v25  ;;  %v9989_v44 = vld [vmem:[#allocation60_spill] sm:$0xff]  ;;  %v2004_v41 = vmax.f32 %v9996_v12, 0.0  ;;  %v2075_v52 = vld [vmem:[%s9672_s3 + $0x20] sm:$0xff]  ;;  %v2112_v35 = vld [vmem:[%s9672_s3 + $0x148] sm:$0xff] }
 0x341   :  { %2840 = vmatpush.msrb.mxu3 %v2050_v59  ;;  %v1563_v45 = vadd.f32 %v1562_v8, %v1330_v40  ;;  %v1769_v59 = vadd.f32 %v1768_v47, %v1536_v58  ;;  %v9990_v8 = vld [vmem:[#allocation103_spill] sm:$0xff]  ;;  %v9991_v25 = vld [vmem:[#allocation124_spill] sm:$0xff]  ;;  %v2044_v50 = vmax.f32 %v1972_v4, %v2008_v26  ;;  %v1969_v40 = vmax.f32 %v1766_v61, 0.0  ;;  %v2079_v58 = vld [vmem:[%s9672_s3 + $0x40] sm:$0xff] }
 0x342   :  { %v1907_v34 = vadd.f32 %v9988_v21, %v1674_v2  ;;  %v1971_v37 = vmax.f32 %v1772_v32, 0.0  ;;  %v2007_v24 = vmax.f32 %v9990_v8, 0.0  ;;  %v1904_v49 = vadd.f32 %v9991_v25, %v1671_v60  ;;  %v2072_v2 = vld [vmem:[%s9672_s3 + $0x8] sm:$0xff]  ;;  %v2091_v60 = vld [vmem:[%s9672_s3 + $0xa0] sm:$0xff]  ;;  %v2097_v61 = vld [vmem:[%s9672_s3 + $0xd0] sm:$0xff] }
 0x343   :  { %2841 = vmatpush.msrb.mxu3 %v2049_v46  ;;  %v1796_v17 = vadd.f32 %v9989_v44, %v1563_v45  ;;  %v1970_v46 = vmax.f32 %v1769_v59, 0.0  ;;  %v1968_v0 = vmax.f32 %v1763_v10, 0.0  ;;  %v2041_v31 = vmax.f32 %v1969_v40, %v2005_v42  ;;  %v8183_v45 = vpop.permute.xlu0 %2469  ;;  %v2084_v26 = vld [vmem:[%s9672_s3 + $0x68] sm:$0xff]  ;;  %v8215_v59 = vpop.permute.xlu2 %2384  ;;  %v2083_v4 = vld [vmem:[%s9672_s3 + $0x60] sm:$0xff]  ;;  %v2102_v40 = vld [vmem:[%s9672_s3 + $0xf8] sm:$0xff] }
 0x344   :  { %v2016_v53 = vmax.f32 %v1907_v34, 0.0  ;;  %v2043_v18 = vmax.f32 %v1971_v37, %v2007_v24  ;;  %v2094_v34 = vld [vmem:[%s9672_s3 + $0xb8] sm:$0xff]  ;;  %v2100_v8 = vld [vmem:[%s9672_s3 + $0xe8] sm:$0xff]  ;;  %v2109_v42 = vld [vmem:[%s9672_s3 + $0x130] sm:$0xff] }
 0x345   :  { %2842 = vmatpush.msrb.mxu3 %v2048_v20  ;;  %v1979_v55 = vmax.f32 %v1796_v17, 0.0  ;;  %v2015_v20 = vmax.f32 %v1904_v49, 0.0  ;;  %v2042_v33 = vmax.f32 %v1970_v46, %v2006_v62  ;;  %v2040_v47 = vmax.f32 %v1968_v0, %v2004_v41  ;;  %v8151_v29 = vpop.permute.xlu1 %2544  ;;  %v2093_v17 = vld [vmem:[%s9672_s3 + $0xb0] sm:$0xff]  ;;  %v2096_v25 = vld [vmem:[%s9672_s3 + $0xc8] sm:$0xff]  ;;  %v2103_v46 = vld [vmem:[%s9672_s3 + $0x100] sm:$0xff] }
 0x346   :  { %5105 = vmatmul.msk.f32.gmra.mxu1 %vm2647_vm1, %v2079_v58  ;;  %v2092_v10 = vld [vmem:[%s9672_s3 + $0xa8] sm:$0xff]  ;;  %v2095_v62 = vld [vmem:[%s9672_s3 + $0xc0] sm:$0xff]  ;;  %v10028_v15 = vld [vmem:[#allocation144_spill] sm:$0xff] }
 0x347   :  { %2843 = vmatpush.msrb.mxu3 %v2047_v14  ;;  %v2051_v43 = vmax.f32 %v1979_v55, %v2015_v20  ;;  %v2081_v14 = vld [vmem:[%s9672_s3 + $0x50] sm:$0xff]  ;;  %v2108_v41 = vld [vmem:[%s9672_s3 + $0x128] sm:$0xff]  ;;  %v2111_v58 = vld [vmem:[%s9672_s3 + $0x140] sm:$0xff] }
 0x348   :  { %v1565_v5 = vpop.f32.mrf.mxu0  ;;  %v2105_v20 = vld [vmem:[%s9672_s3 + $0x110] sm:$0xff] }
 0x349   :  { %v1566_v13 = vadd.f32 %v1565_v5, %v1333_v27  ;;  %2844 = vmatpush.msrb.mxu3 %v2046_v30  ;;  %v2077_v27 = vld [vmem:[%s9672_s3 + $0x30] sm:$0xff] }
 0x34b   :  { %v1799_v3 = vadd.f32 %v9992_v38, %v1566_v13  ;;  %2845 = vmatpush.msrb.mxu3 %v2045_v54  ;;  %v8201_v63 = vpop.permute.xlu0 %2379  ;;  %v8231_v5 = vpop.permute.xlu2 %2629  ;;  %v2086_v54 = vld [vmem:[%s9672_s3 + $0x78] sm:$0xff]  ;;  %v2089_v13 = vld [vmem:[%s9672_s3 + $0x90] sm:$0xff] }
 0x34c   :  { %9999 = vst [vmem:[#allocation82_spill] sm:$0xff] %v8231_v5  ;;  %v2177_v5 = vld [vmem:[%s9672_s3 + $0x350] sm:$0xff] }
 0x34d   :  { %v1980_v56 = vmax.f32 %v1799_v3, 0.0  ;;  %2846 = vmatpush.msrb.mxu3 %v2044_v50  ;;  %v8171_v32 = vpop.permute.xlu1 %2464  ;;  %v2099_v3 = vld [vmem:[%s9672_s3 + $0xe0] sm:$0xff] }
 0x34f   :  { %2847 = vmatpush.msrb.mxu3 %v2043_v18  ;;  %v2052_v19 = vmax.f32 %v1980_v56, %v2016_v53  ;;  %v2106_v53 = vld [vmem:[%s9672_s3 + $0x118] sm:$0xff] }
 0x350   :  { %v2098_v18 = vld [vmem:[%s9672_s3 + $0xd8] sm:$0xff] }
 0x351   :  { %2848 = vmatpush.msrb.mxu3 %v2042_v33  ;;  %3063 = vmatpush.msra.mxu0 %v2052_v19  ;;  %v2101_v33 = vld [vmem:[%s9672_s3 + $0xf0] sm:$0xff] }
 0x353   :  { %2849 = vmatpush.msrb.mxu3 %v2041_v31  ;;  %3064 = vmatpush.msra.mxu0 %v2051_v43  ;;  %v8217_v30 = vpop.permute.xlu0 %2624  ;;  %v8250_v37 = vpop.permute.xlu2 %2539  ;;  %v2104_v31 = vld [vmem:[%s9672_s3 + $0x108] sm:$0xff] }
 0x354   :  { %3065 = vmatmul.f32.vlgmr.msra.gmra.mxu0 %v2072_v2  ;;  %9998 = vst [vmem:[#allocation165_spill] sm:$0xff] %v8217_v30  ;;  %v2115_v2 = vld [vmem:[%s9672_s3 + $0x160] sm:$0xff]  ;;  %v2174_v30 = vld [vmem:[%s9672_s3 + $0x338] sm:$0xff] }
 0x355   :  { %2850 = vmatpush.msrb.mxu3 %v2040_v47  ;;  %v8189_v51 = vpop.permute.xlu1 %2374 }
 0x357   :  { %2851 = vmatpush.msrb.mxu3 %v8038_v11  ;;  %v2071_v11 = vld [vmem:[%s9672_s3] sm:$0xff] }
 0x359   :  { %2852 = vmatpush.msrb.mxu3 %v8034_v39  ;;  %v2082_v39 = vld [vmem:[%s9672_s3 + $0x58] sm:$0xff] }
 0x35a   :  { %5106 = vmatmul.msk.f32.gmra.mxu1 %vm2647_vm1, %v2082_v39  ;;  %v2118_v39 = vld [vmem:[%s9672_s3 + $0x178] sm:$0xff] }
 0x35b   :  { %2853 = vmatpush.msrb.mxu3 %v8026_v28  ;;  %v2078_v28 = vld [vmem:[%s9672_s3 + $0x38] sm:$0xff]  ;;  %v8236_v23 = vpop.permute.xlu0 %2534  ;;  %v8269_v38 = vpop.permute.xlu2 %2459 }
 0x35c   :  { %3068 = vmatmul.f32.gmra.mxu0 %v2075_v52 }
 0x35d   :  { %2854 = vmatpush.msrb.mxu3 %v8020_v7  ;;  %v2074_v7 = vld [vmem:[%s9672_s3 + $0x18] sm:$0xff]  ;;  %v8203_v6 = vpop.permute.xlu1 %2619 }
 0x35e   :  { %9997 = vst [vmem:[#allocation160_spill] sm:$0xff] %v8203_v6  ;;  %v2171_v6 = vld [vmem:[%s9672_s3 + $0x320] sm:$0xff] }
 0x35f   :  { %2855 = vmatpush.msrb.mxu3 %v8011_v22  ;;  %v2085_v22 = vld [vmem:[%s9672_s3 + $0x70] sm:$0xff] }
 0x360   :  { %2856 = vmatmul.f32.vlgmr.msrb.gmra.mxu3 %v2071_v11  ;;  %v2107_v11 = vld [vmem:[%s9672_s3 + $0x120] sm:$0xff] }
 0x362   :  { %5107 = vmatmul.msk.f32.gmra.mxu1 %vm2647_vm1, %v2085_v22 }
 0x363   :  { %v8255_v24 = vpop.permute.xlu0 %2454  ;;  %v8289_v55 = vpop.permute.xlu2 %2369 }
 0x364   :  { %3071 = vmatmul.f32.gmra.mxu0 %v2078_v28 }
 0x365   :  { %v8222_v21 = vpop.permute.xlu1 %2529 }
 0x368   :  { %2859 = vmatmul.f32.gmra.mxu3 %v2074_v7  ;;  %v2114_v7 = vld [vmem:[%s9672_s3 + $0x158] sm:$0xff] }
 0x36a   :  { %5108 = vmatmul.msk.f32.gmra.mxu1 %vm2647_vm1, %v2088_v1 }
 0x36b   :  { %v8275_v50 = vpop.permute.xlu0 %2364  ;;  %v8305_v0 = vpop.permute.xlu2 %2614 }
 0x36c   :  { %3074 = vmatmul.f32.gmra.mxu0 %v2081_v14  ;;  %10002 = vst [vmem:[#allocation161_spill] sm:$0xff] %v8305_v0 }
 0x36d   :  { %v8241_v44 = vpop.permute.xlu1 %2449 }
 0x370   :  { %2862 = vmatmul.f32.gmra.mxu3 %v2077_v27  ;;  %v2110_v27 = vld [vmem:[%s9672_s3 + $0x138] sm:$0xff] }
 0x372   :  { %5109 = vmatmul.msk.f32.gmra.mxu1 %vm2647_vm1, %v2091_v60 }
 0x373   :  { %v8291_v56 = vpop.permute.xlu0 %2609  ;;  %v8324_v43 = vpop.permute.xlu2 %2524 }
 0x374   :  { %3077 = vmatmul.f32.gmra.mxu0 %v2084_v26  ;;  %10001 = vst [vmem:[#allocation139_spill] sm:$0xff] %v8291_v56  ;;  %v2117_v26 = vld [vmem:[%s9672_s3 + $0x170] sm:$0xff] }
 0x375   :  { %v8261_v49 = vpop.permute.xlu1 %2359 }
 0x378   :  { %2865 = vmatmul.f32.gmra.mxu3 %v2080_v36  ;;  %v2121_v36 = vld [vmem:[%s9672_s3 + $0x190] sm:$0xff] }
 0x37a   :  { %5110 = vmatmul.msk.f32.gmra.mxu1 %vm2647_vm1, %v2094_v34 }
 0x37b   :  { %v8310_v19 = vpop.permute.xlu0 %2519  ;;  %v8343_v28 = vpop.permute.xlu2 %2444 }
 0x37c   :  { %3080 = vmatmul.f32.gmra.mxu0 %v2087_v57 }
 0x37d   :  { %v8277_v16 = vpop.permute.xlu1 %2604 }
 0x37e   :  { %10000 = vst [vmem:[#allocation85_spill] sm:$0xff] %v8277_v16 }
 0x380   :  { %2868 = vmatmul.f32.gmra.mxu3 %v2083_v4  ;;  %v2113_v4 = vld [vmem:[%s9672_s3 + $0x150] sm:$0xff] }
 0x382   :  { %5111 = vmatmul.msk.f32.gmra.mxu1 %vm2647_vm1, %v2097_v61  ;;  %v2120_v61 = vld [vmem:[%s9672_s3 + $0x188] sm:$0xff] }
 0x383   :  { %v8329_v47 = vpop.permute.xlu0 %2439  ;;  %v8363_v60 = vpop.permute.xlu2 %2354 }
 0x384   :  { %3083 = vmatmul.f32.gmra.mxu0 %v2090_v48 }
 0x385   :  { %v8296_v9 = vpop.permute.xlu1 %2514 }
 0x388   :  { %2871 = vmatmul.f32.gmra.mxu3 %v2086_v54 }
 0x38a   :  { %5112 = vmatmul.msk.f32.gmra.mxu1 %vm2647_vm1, %v2100_v8  ;;  %v2116_v8 = vld [vmem:[%s9672_s3 + $0x168] sm:$0xff] }
 0x38b   :  { %v8349_v22 = vpop.permute.xlu0 %2349 }
 0x38c   :  { %3086 = vmatmul.f32.gmra.mxu0 %v2093_v17  ;;  %v2124_v17 = vld [vmem:[%s9672_s3 + $0x1a8] sm:$0xff] }
 0x38d   :  { %v8315_v12 = vpop.permute.xlu1 %2434 }
 0x390   :  { %2874 = vmatmul.f32.gmra.mxu3 %v2089_v13  ;;  %v8379_v13 = vpop.permute.xlu2 %2599 }
 0x391   :  { %10005 = vst [vmem:[#allocation80_spill] sm:$0xff] %v8379_v13 }
 0x392   :  { %5113 = vmatmul.msk.f32.gmra.mxu1 %vm2647_vm1, %v2103_v46 }
 0x393   :  { %v8365_v57 = vpop.permute.xlu0 %2594 }
 0x394   :  { %3089 = vmatmul.f32.gmra.mxu0 %v2096_v25  ;;  %10004 = vst [vmem:[#allocation164_spill] sm:$0xff] %v8365_v57  ;;  %v10030_v57 = vld [vmem:[#allocation126_spill] sm:$0xff] }
 0x395   :  { %v8335_v52 = vpop.permute.xlu1 %2344 }
 0x398   :  { %2877 = vmatmul.f32.gmra.mxu3 %v2092_v10 }
 0x39a   :  { %5114 = vmatmul.msk.f32.gmra.mxu1 %vm2647_vm1, %v2106_v53  ;;  %v2127_v53 = vld [vmem:[%s9672_s3 + $0x1c0] sm:$0xff] }
 0x39b   :  { %v8384_v25 = vpop.permute.xlu0 %2504 }
 0x39c   :  { %3092 = vmatmul.f32.gmra.mxu0 %v2099_v3 }
 0x39d   :  { %v8351_v14 = vpop.permute.xlu1 %2589 }
 0x39e   :  { %10003 = vst [vmem:[#allocation157_spill] sm:$0xff] %v8351_v14 }
 0x3a0   :  { %2880 = vmatmul.f32.gmra.mxu3 %v2095_v62  ;;  %v2123_v62 = vld [vmem:[%s9672_s3 + $0x1a0] sm:$0xff] }
 0x3a2   :  { %5115 = vmatmul.msk.f32.gmra.mxu1 %vm2647_vm1, %v2109_v42 }
 0x3a4   :  { %3095 = vmatmul.f32.gmra.mxu0 %v2102_v40  ;;  %v2119_v40 = vld [vmem:[%s9672_s3 + $0x180] sm:$0xff] }
 0x3a5   :  { %v8370_v34 = vpop.permute.xlu1 %2499 }
 0x3a8   :  { %2883 = vmatmul.f32.gmra.mxu3 %v2098_v18  ;;  %v8398_v18 = vpop.permute.xlu2 %2509 }
 0x3aa   :  { %5116 = vmatmul.msk.f32.gmra.mxu1 %vm2647_vm1, %v2112_v35  ;;  %v2126_v35 = vld [vmem:[%s9672_s3 + $0x1b8] sm:$0xff] }
 0x3ac   :  { %3098 = vmatmul.f32.gmra.mxu0 %v2105_v20  ;;  %v8400_v20 = vpop.permute.xlu0 %2424 }
 0x3ad   :  { %v8386_v46 = vpop.permute.xlu1 %2419 }
 0x3b0   :  { %2886 = vmatmul.f32.gmra.mxu3 %v2101_v33 }
 0x3b2   :  { %5117 = vmatmul.msk.f32.gmra.mxu1 %vm2647_vm1, %v2115_v2 }
 0x3b3   :  { %v3275_v1 = vpop.f32.mrf.mxu1 }
 0x3b4   :  { %3101 = vmatmul.f32.gmra.mxu0 %v2108_v41  ;;  %v2130_v41 = vld [vmem:[%s9672_s3 + $0x1d8] sm:$0xff] }
 0x3b8   :  { %2889 = vmatmul.f32.gmra.mxu3 %v2104_v31  ;;  %v2330_v31 = vpop.permute.xlu1 %2329 }
 0x3ba   :  { %5118 = vmatmul.msk.f32.gmra.mxu1 %vm2647_vm1, %v2118_v39 }
 0x3bb   :  { %v3278_v48 = vpop.f32.mrf.mxu1 }
 0x3bc   :  { %3104 = vmatmul.f32.gmra.mxu0 %v2111_v58 }
 0x3c0   :  { %2892 = vmatmul.f32.gmra.mxu3 %v2107_v11  ;;  %v2122_v11 = vld [vmem:[%s9672_s3 + $0x198] sm:$0xff] }
 0x3c2   :  { %5119 = vmatmul.msk.f32.gmra.mxu1 %vm2647_vm1, %v2121_v36 }
 0x3c3   :  { %v3281_v10 = vpop.f32.mrf.mxu1 }
 0x3c4   :  { %3107 = vmatmul.f32.gmra.mxu0 %v2114_v7 }
 0x3c8   :  { %2895 = vmatmul.f32.gmra.mxu3 %v2110_v27 }
 0x3ca   :  { %5120 = vmatmul.msk.f32.gmra.mxu1 %vm2647_vm1, %v2124_v17  ;;  %v2335_v17 = vpop.permute.xlu0 %2334 }
 0x3cc   :  { %3110 = vmatmul.f32.gmra.mxu0 %v2117_v26  ;;  %v8414_v26 = vpop.permute.xlu2 %2429 }
 0x3d0   :  { %2898 = vmatmul.f32.gmra.mxu3 %v2113_v4  ;;  %v2129_v4 = vld [vmem:[%s9672_s3 + $0x1d0] sm:$0xff] }
 0x3d1   :  { %v3066_v54 = vpop.f32.mrf.mxu0 }
 0x3d2   :  { %5121 = vmatmul.msk.f32.gmra.mxu1 %vm2647_vm1, %v2127_v53 }
 0x3d4   :  { %3113 = vmatmul.f32.gmra.mxu0 %v2120_v61  ;;  %v2133_v61 = vld [vmem:[%s9672_s3 + $0x1f0] sm:$0xff] }
 0x3d7   :  { %v3284_v42 = vpop.f32.mrf.mxu1 }
 0x3d8   :  { %2901 = vmatmul.f32.gmra.mxu3 %v2116_v8 }
 0x3d9   :  { %v3069_v3 = vpop.f32.mrf.mxu0 }
 0x3da   :  { %5122 = vmatmul.msk.f32.gmra.mxu1 %vm2647_vm1, %v2130_v41  ;;  %v2132_v41 = vld [vmem:[%s9672_s3 + $0x1e8] sm:$0xff] }
 0x3dc   :  { %3116 = vmatmul.f32.gmra.mxu0 %v2123_v62 }
 0x3df   :  { %v3287_v7 = vpop.f32.mrf.mxu1 }
 0x3e0   :  { %2904 = vmatmul.f32.gmra.mxu3 %v2119_v40 }
 0x3e1   :  { %v3072_v33 = vpop.f32.mrf.mxu0 }
 0x3e2   :  { %5123 = vmatmul.msk.f32.gmra.mxu1 %vm2647_vm1, %v2133_v61 }
 0x3e3   :  { %v2857_v2 = vpop.f32.mrf.mxu3 }
 0x3e4   :  { %v2858_v58 = vadd.f32 %v2857_v2, %v2330_v31  ;;  %3119 = vmatmul.f32.gmra.mxu0 %v2126_v35  ;;  %v2136_v31 = vld [vmem:[%s9672_s3 + $0x208] sm:$0xff]  ;;  %v2340_v2 = vpop.permute.xlu2 %2339 }
 0x3e6   :  { %v3067_v39 = vadd.f32 %v3066_v54, %v2858_v58 }
 0x3e7   :  { %v3290_v53 = vpop.f32.mrf.mxu1 }
 0x3e8   :  { %v8412_v27 = vadd.f32 %v3275_v1, %v3067_v39  ;;  %2907 = vmatmul.f32.gmra.mxu3 %v2122_v11  ;;  %v2125_v1 = vld [vmem:[%s9672_s3 + $0x1b0] sm:$0xff] }
 0x3e9   :  { %v3075_v36 = vpop.f32.mrf.mxu0 }
 0x3ea   :  { %5124 = vmatmul.msk.f32.gmra.mxu1 %vm2647_vm1, %v2136_v31 }
 0x3eb   :  { %v2860_v8 = vpop.f32.mrf.mxu3 }
 0x3ec   :  { %v2861_v54 = vadd.f32 %v2860_v8, %v2335_v17  ;;  %3122 = vmatmul.f32.gmra.mxu0 %v2129_v4  ;;  %v2135_v17 = vld [vmem:[%s9672_s3 + $0x200] sm:$0xff] }
 0x3ed   :  { %v2139_v8 = vld [vmem:[%s9672_s3 + $0x220] sm:$0xff] }
 0x3ee   :  { %v3070_v62 = vadd.f32 %v3069_v3, %v2861_v54 }
 0x3ef   :  { %v3293_v39 = vpop.f32.mrf.mxu1 }
 0x3f0   :  { %v8426_v40 = vadd.f32 %v3278_v48, %v3070_v62  ;;  %2910 = vmatmul.f32.gmra.mxu3 %v2125_v1  ;;  %v2128_v48 = vld [vmem:[%s9672_s3 + $0x1c8] sm:$0xff] }
 0x3f1   :  { %v3078_v35 = vpop.f32.mrf.mxu0 }
 0x3f2   :  { %5125 = vmatmul.msk.f32.gmra.mxu1 %vm2647_vm1, %v2139_v8  ;;  %v2141_v8 = vld [vmem:[%s9672_s3 + $0x230] sm:$0xff] }
 0x3f3   :  { %v2863_v58 = vpop.f32.mrf.mxu3 }
 0x3f4   :  { %v2864_v11 = vadd.f32 %v2863_v58, %v2340_v2  ;;  %3125 = vmatmul.f32.gmra.mxu0 %v2132_v41  ;;  %v2138_v2 = vld [vmem:[%s9672_s3 + $0x218] sm:$0xff] }
 0x3f5   :  { %v2142_v58 = vld [vmem:[%s9672_s3 + $0x238] sm:$0xff] }
 0x3f6   :  { %v3073_v3 = vadd.f32 %v3072_v33, %v2864_v11 }
 0x3f7   :  { %v3296_v62 = vpop.f32.mrf.mxu1 }
 0x3f8   :  { %v8438_v4 = vadd.f32 %v3281_v10, %v3073_v3  ;;  %2913 = vmatmul.f32.gmra.mxu3 %v2128_v48  ;;  %v2131_v10 = vld [vmem:[%s9672_s3 + $0x1e0] sm:$0xff] }
 0x3f9   :  { %v3081_v61 = vpop.f32.mrf.mxu0 }
 0x3fa   :  { %5126 = vmatmul.msk.f32.gmra.mxu1 %vm2647_vm1, %v2142_v58  ;;  %v2144_v58 = vld [vmem:[%s9672_s3 + $0x248] sm:$0xff] }
 0x3fb   :  { %v2866_v54 = vpop.f32.mrf.mxu3 }
 0x3fc   :  { %v2867_v1 = vadd.f32 %v2866_v54, %v8335_v52  ;;  %3128 = vmatmul.f32.gmra.mxu0 %v2135_v17  ;;  %v2145_v54 = vld [vmem:[%s9672_s3 + $0x250] sm:$0xff] }
 0x3fe   :  { %v3076_v33 = vadd.f32 %v3075_v36, %v2867_v1 }
 0x3ff   :  { %v3299_v48 = vpop.f32.mrf.mxu1 }
 0x400   :  { %v8451_v41 = vadd.f32 %v3284_v42, %v3076_v33  ;;  %2916 = vmatmul.f32.gmra.mxu3 %v2131_v10  ;;  %v2134_v42 = vld [vmem:[%s9672_s3 + $0x1f8] sm:$0xff] }
 0x401   :  { %v3084_v31 = vpop.f32.mrf.mxu0 }
 0x402   :  { %5127 = vmatmul.msk.f32.gmra.mxu1 %vm2647_vm1, %v2145_v54  ;;  %v2147_v54 = vld [vmem:[%s9672_s3 + $0x260] sm:$0xff] }
 0x403   :  { %v2869_v52 = vpop.f32.mrf.mxu3 }
 0x404   :  { %v2870_v11 = vadd.f32 %v2869_v52, %v8349_v22  ;;  %3131 = vmatmul.f32.gmra.mxu0 %v2138_v2  ;;  %v2148_v52 = vld [vmem:[%s9672_s3 + $0x268] sm:$0xff] }
 0x406   :  { %v3079_v36 = vadd.f32 %v3078_v35, %v2870_v11 }
 0x407   :  { %v3302_v10 = vpop.f32.mrf.mxu1 }
 0x408   :  { %v8464_v3 = vadd.f32 %v3287_v7, %v3079_v36  ;;  %2919 = vmatmul.f32.gmra.mxu3 %v2134_v42  ;;  %v2137_v7 = vld [vmem:[%s9672_s3 + $0x210] sm:$0xff] }
 0x409   :  { %v3087_v17 = vpop.f32.mrf.mxu0 }
 0x40a   :  { %5128 = vmatmul.msk.f32.gmra.mxu1 %vm2647_vm1, %v2148_v52  ;;  %v2150_v52 = vld [vmem:[%s9672_s3 + $0x278] sm:$0xff] }
 0x40b   :  { %v2872_v22 = vpop.f32.mrf.mxu3 }
 0x40c   :  { %v2873_v1 = vadd.f32 %v2872_v22, %v8363_v60  ;;  %3134 = vmatmul.f32.gmra.mxu0 %v2141_v8  ;;  %v2151_v22 = vld [vmem:[%s9672_s3 + $0x280] sm:$0xff] }
 0x40e   :  { %v3082_v35 = vadd.f32 %v3081_v61, %v2873_v1 }
 0x40f   :  { %v3305_v42 = vpop.f32.mrf.mxu1 }
 0x410   :  { %v8477_v33 = vadd.f32 %v3290_v53, %v3082_v35  ;;  %2922 = vmatmul.f32.gmra.mxu3 %v2137_v7  ;;  %v2140_v53 = vld [vmem:[%s9672_s3 + $0x228] sm:$0xff] }
 0x411   :  { %v3090_v2 = vpop.f32.mrf.mxu0 }
 0x412   :  { %5129 = vmatmul.msk.f32.gmra.mxu1 %vm2647_vm1, %v2151_v22  ;;  %v2153_v22 = vld [vmem:[%s9672_s3 + $0x290] sm:$0xff] }
 0x413   :  { %v2875_v60 = vpop.f32.mrf.mxu3 }
 0x414   :  { %v2876_v11 = vadd.f32 %v2875_v60, %v8261_v49  ;;  %3137 = vmatmul.f32.gmra.mxu0 %v2144_v58  ;;  %v2154_v60 = vld [vmem:[%s9672_s3 + $0x298] sm:$0xff] }
 0x416   :  { %v3085_v61 = vadd.f32 %v3084_v31, %v2876_v11 }
 0x417   :  { %v3308_v7 = vpop.f32.mrf.mxu1 }
 0x418   :  { %v8490_v36 = vadd.f32 %v3293_v39, %v3085_v61  ;;  %2925 = vmatmul.f32.gmra.mxu3 %v2140_v53  ;;  %v2143_v39 = vld [vmem:[%s9672_s3 + $0x240] sm:$0xff] }
 0x419   :  { %v3093_v8 = vpop.f32.mrf.mxu0 }
 0x41a   :  { %5130 = vmatmul.msk.f32.gmra.mxu1 %vm2647_vm1, %v2154_v60  ;;  %v2156_v60 = vld [vmem:[%s9672_s3 + $0x2a8] sm:$0xff] }
 0x41b   :  { %v2878_v49 = vpop.f32.mrf.mxu3 }
 0x41c   :  { %v2879_v1 = vadd.f32 %v2878_v49, %v8275_v50  ;;  %3140 = vmatmul.f32.gmra.mxu0 %v2147_v54  ;;  %v2157_v49 = vld [vmem:[%s9672_s3 + $0x2b0] sm:$0xff] }
 0x41e   :  { %v3088_v31 = vadd.f32 %v3087_v17, %v2879_v1 }
 0x41f   :  { %v3311_v53 = vpop.f32.mrf.mxu1 }
 0x420   :  { %v8503_v35 = vadd.f32 %v3296_v62, %v3088_v31  ;;  %2928 = vmatmul.f32.gmra.mxu3 %v2143_v39  ;;  %v2146_v62 = vld [vmem:[%s9672_s3 + $0x258] sm:$0xff] }
 0x421   :  { %v3096_v58 = vpop.f32.mrf.mxu0 }
 0x422   :  { %5131 = vmatmul.msk.f32.gmra.mxu1 %vm2647_vm1, %v2157_v49  ;;  %v2159_v49 = vld [vmem:[%s9672_s3 + $0x2c0] sm:$0xff] }
 0x423   :  { %v2881_v50 = vpop.f32.mrf.mxu3 }
 0x424   :  { %v2882_v11 = vadd.f32 %v2881_v50, %v8289_v55  ;;  %3143 = vmatmul.f32.gmra.mxu0 %v2150_v52  ;;  %v2160_v50 = vld [vmem:[%s9672_s3 + $0x2c8] sm:$0xff] }
 0x426   :  { %v3091_v17 = vadd.f32 %v3090_v2, %v2882_v11 }
 0x427   :  { %v3314_v39 = vpop.f32.mrf.mxu1 }
 0x428   :  { %v8516_v61 = vadd.f32 %v3299_v48, %v3091_v17  ;;  %2931 = vmatmul.f32.gmra.mxu3 %v2146_v62  ;;  %v2149_v48 = vld [vmem:[%s9672_s3 + $0x270] sm:$0xff] }
 0x429   :  { %v3099_v54 = vpop.f32.mrf.mxu0 }
 0x42a   :  { %5132 = vmatmul.msk.f32.gmra.mxu1 %vm2647_vm1, %v2160_v50  ;;  %v2162_v50 = vld [vmem:[%s9672_s3 + $0x2d8] sm:$0xff] }
 0x42b   :  { %v2884_v55 = vpop.f32.mrf.mxu3 }
 0x42c   :  { %v2885_v1 = vadd.f32 %v2884_v55, %v8189_v51  ;;  %3146 = vmatmul.f32.gmra.mxu0 %v2153_v22  ;;  %v2163_v55 = vld [vmem:[%s9672_s3 + $0x2e0] sm:$0xff] }
 0x42e   :  { %v3094_v2 = vadd.f32 %v3093_v8, %v2885_v1 }
 0x42f   :  { %v3317_v62 = vpop.f32.mrf.mxu1 }
 0x430   :  { %v8529_v31 = vadd.f32 %v3302_v10, %v3094_v2  ;;  %2934 = vmatmul.f32.gmra.mxu3 %v2149_v48  ;;  %v2152_v10 = vld [vmem:[%s9672_s3 + $0x288] sm:$0xff] }
 0x431   :  { %v3102_v52 = vpop.f32.mrf.mxu0 }
 0x432   :  { %5133 = vmatmul.msk.f32.gmra.mxu1 %vm2647_vm1, %v2163_v55 }
 0x433   :  { %v2887_v51 = vpop.f32.mrf.mxu3 }
 0x434   :  { %v2888_v11 = vadd.f32 %v2887_v51, %v8201_v63  ;;  %3149 = vmatmul.f32.gmra.mxu0 %v2156_v60  ;;  %v2166_v51 = vld [vmem:[%s9672_s3 + $0x2f8] sm:$0xff] }
 0x436   :  { %v3097_v8 = vadd.f32 %v3096_v58, %v2888_v11  ;;  %v10006_v11 = vld [vmem:[#allocation149_spill] sm:$0xff] }
 0x437   :  { %v3320_v48 = vpop.f32.mrf.mxu1 }
 0x438   :  { %v8542_v17 = vadd.f32 %v3305_v42, %v3097_v8  ;;  %2937 = vmatmul.f32.gmra.mxu3 %v2152_v10  ;;  %v2155_v42 = vld [vmem:[%s9672_s3 + $0x2a0] sm:$0xff] }
 0x439   :  { %v3105_v22 = vpop.f32.mrf.mxu0 }
 0x43a   :  { %5134 = vmatmul.msk.f32.gmra.mxu1 %vm2647_vm1, %v2166_v51 }
 0x43b   :  { %v2890_v63 = vpop.f32.mrf.mxu3 }
 0x43c   :  { %v2891_v1 = vadd.f32 %v2890_v63, %v8215_v59  ;;  %3152 = vmatmul.f32.gmra.mxu0 %v2159_v49 }
 0x43e   :  { %v3100_v58 = vadd.f32 %v3099_v54, %v2891_v1  ;;  %v8565_v54 = vpop.permute.xlu2 %2584  ;;  %v2165_v1 = vld [vmem:[%s9672_s3 + $0x2f0] sm:$0xff] }
 0x43f   :  { %v3323_v49 = vpop.f32.mrf.mxu1 }
 0x440   :  { %v8555_v2 = vadd.f32 %v3308_v7, %v3100_v58  ;;  %2940 = vmatmul.f32.gmra.mxu3 %v2155_v42  ;;  %v2158_v7 = vld [vmem:[%s9672_s3 + $0x2b8] sm:$0xff]  ;;  %v2169_v42 = vld [vmem:[%s9672_s3 + $0x310] sm:$0xff] }
 0x441   :  { %v3108_v60 = vpop.f32.mrf.mxu0 }
 0x442   :  { %5135 = vmatmul.msk.f32.gmra.mxu1 %vm2647_vm1, %v2169_v42 }
 0x443   :  { %v2893_v59 = vpop.f32.mrf.mxu3 }
 0x444   :  { %v2894_v10 = vadd.f32 %v2893_v59, %v10006_v11  ;;  %3155 = vmatmul.f32.gmra.mxu0 %v2162_v50  ;;  %v10007_v50 = vld [vmem:[#allocation141_spill] sm:$0xff] }
 0x446   :  { %v3103_v8 = vadd.f32 %v3102_v52, %v2894_v10  ;;  %v8583_v59 = vpop.permute.xlu2 %2494 }
 0x447   :  { %v3326_v11 = vpop.f32.mrf.mxu1 }
 0x448   :  { %v8570_v55 = vadd.f32 %v3311_v53, %v3103_v8  ;;  %2943 = vmatmul.f32.gmra.mxu3 %v2158_v7  ;;  %v2161_v53 = vld [vmem:[%s9672_s3 + $0x2d0] sm:$0xff]  ;;  %v2168_v8 = vld [vmem:[%s9672_s3 + $0x308] sm:$0xff] }
 0x449   :  { %v3111_v63 = vpop.f32.mrf.mxu0 }
 0x44b   :  { %v2896_v58 = vpop.f32.mrf.mxu3 }
 0x44c   :  { %v2897_v51 = vadd.f32 %v2896_v58, %v10007_v50  ;;  %3158 = vmatmul.f32.gmra.mxu0 %v2165_v1  ;;  %v2172_v1 = vld [vmem:[%s9672_s3 + $0x328] sm:$0xff]  ;;  %v10008_v58 = vld [vmem:[#allocation127_spill] sm:$0xff] }
 0x44d   :  { %5136 = vmatmul.msk.f32.gmra.mxu1 %vm2647_vm1, %v2172_v1  ;;  %v2175_v1 = vld [vmem:[%s9672_s3 + $0x340] sm:$0xff] }
 0x44e   :  { %v3106_v52 = vadd.f32 %v3105_v22, %v2897_v51 }
 0x44f   :  { %v3329_v51 = vpop.f32.mrf.mxu1 }
 0x450   :  { %v8585_v10 = vadd.f32 %v3314_v39, %v3106_v52  ;;  %2946 = vmatmul.f32.gmra.mxu3 %v2161_v53  ;;  %v2164_v39 = vld [vmem:[%s9672_s3 + $0x2e8] sm:$0xff]  ;;  %v2415_v52 = vpop.permute.xlu2 %2414 }
 0x451   :  { %v3114_v7 = vpop.f32.mrf.mxu0 }
 0x453   :  { %v2899_v42 = vpop.f32.mrf.mxu3 }
 0x454   :  { %v2900_v22 = vadd.f32 %v2899_v42, %v10008_v58  ;;  %3161 = vmatmul.f32.gmra.mxu0 %v2168_v8  ;;  %v10009_v42 = vld [vmem:[#allocation125_spill] sm:$0xff] }
 0x455   :  { %5137 = vmatmul.msk.f32.gmra.mxu1 %vm2647_vm1, %v2175_v1  ;;  %v2178_v1 = vld [vmem:[%s9672_s3 + $0x358] sm:$0xff] }
 0x456   :  { %v3109_v50 = vadd.f32 %v3108_v60, %v2900_v22 }
 0x457   :  { %v3332_v22 = vpop.f32.mrf.mxu1 }
 0x458   :  { %v8598_v53 = vadd.f32 %v3317_v62, %v3109_v50  ;;  %2949 = vmatmul.f32.gmra.mxu3 %v2164_v39  ;;  %v2167_v62 = vld [vmem:[%s9672_s3 + $0x300] sm:$0xff] }
 0x459   :  { %v3117_v0 = vpop.f32.mrf.mxu0 }
 0x45b   :  { %v2902_v8 = vpop.f32.mrf.mxu3 }
 0x45c   :  { %v2903_v58 = vadd.f32 %v2902_v8, %v10009_v42  ;;  %3164 = vmatmul.f32.gmra.mxu0 %v2171_v6  ;;  %v2410_v6 = vpop.permute.xlu2 %2409 }
 0x45d   :  { %5138 = vmatmul.msk.f32.gmra.mxu1 %vm2647_vm1, %v2178_v1  ;;  %v2181_v1 = vld [vmem:[%s9672_s3 + $0x370] sm:$0xff] }
 0x45e   :  { %v3112_v60 = vadd.f32 %v3111_v63, %v2903_v58 }
 0x45f   :  { %v3335_v58 = vpop.f32.mrf.mxu1 }
 0x460   :  { %v8611_v39 = vadd.f32 %v3320_v48, %v3112_v60  ;;  %2952 = vmatmul.f32.gmra.mxu3 %v2167_v62  ;;  %v2170_v48 = vld [vmem:[%s9672_s3 + $0x318] sm:$0xff] }
 0x461   :  { %v3120_v50 = vpop.f32.mrf.mxu0 }
 0x463   :  { %v2905_v8 = vpop.f32.mrf.mxu3 }
 0x464   :  { %v2906_v42 = vadd.f32 %v2905_v8, %v2410_v6  ;;  %3167 = vmatmul.f32.gmra.mxu0 %v2174_v30 }
 0x465   :  { %5139 = vmatmul.msk.f32.gmra.mxu1 %vm2647_vm1, %v2181_v1  ;;  %v2184_v1 = vld [vmem:[%s9672_s3 + $0x388] sm:$0xff] }
 0x466   :  { %v3115_v63 = vadd.f32 %v3114_v7, %v2906_v42 }
 0x467   :  { %v3338_v8 = vpop.f32.mrf.mxu1 }
 0x468   :  { %v8623_v62 = vadd.f32 %v3323_v49, %v3115_v63  ;;  %2955 = vmatmul.f32.gmra.mxu3 %v2170_v48  ;;  %v2173_v49 = vld [vmem:[%s9672_s3 + $0x330] sm:$0xff]  ;;  %v2180_v63 = vld [vmem:[%s9672_s3 + $0x368] sm:$0xff] }
 0x469   :  { %v3123_v60 = vpop.f32.mrf.mxu0 }
 0x46b   :  { %v2908_v30 = vpop.f32.mrf.mxu3 }
 0x46c   :  { %v2909_v6 = vadd.f32 %v2908_v30, %v2415_v52  ;;  %3170 = vmatmul.f32.gmra.mxu0 %v2177_v5 }
 0x46d   :  { %5140 = vmatmul.msk.f32.gmra.mxu1 %vm2647_vm1, %v2184_v1  ;;  %v2187_v1 = vld [vmem:[%s9672_s3 + $0x3a0] sm:$0xff] }
 0x46e   :  { %v3118_v7 = vadd.f32 %v3117_v0, %v2909_v6  ;;  %v2176_v0 = vld [vmem:[%s9672_s3 + $0x348] sm:$0xff] }
 0x46f   :  { %v3341_v30 = vpop.f32.mrf.mxu1 }
 0x470   :  { %v8635_v42 = vadd.f32 %v3326_v11, %v3118_v7  ;;  %2958 = vmatmul.f32.gmra.mxu3 %v2173_v49  ;;  %v2183_v7 = vld [vmem:[%s9672_s3 + $0x380] sm:$0xff] }
 0x471   :  { %v3126_v48 = vpop.f32.mrf.mxu0 }
 0x473   :  { %v2911_v5 = vpop.f32.mrf.mxu3 }
 0x474   :  { %v2912_v52 = vadd.f32 %v2911_v5, %v8386_v46  ;;  %3173 = vmatmul.f32.gmra.mxu0 %v2180_v63 }
 0x475   :  { %5141 = vmatmul.msk.f32.gmra.mxu1 %vm2647_vm1, %v2187_v1  ;;  %v2190_v1 = vld [vmem:[%s9672_s3 + $0x3b8] sm:$0xff] }
 0x476   :  { %v3121_v11 = vadd.f32 %v3120_v50, %v2912_v52 }
 0x477   :  { %v3344_v5 = vpop.f32.mrf.mxu1 }
 0x478   :  { %v8648_v6 = vadd.f32 %v3329_v51, %v3121_v11  ;;  %2961 = vmatmul.f32.gmra.mxu3 %v2176_v0  ;;  %v2179_v51 = vld [vmem:[%s9672_s3 + $0x360] sm:$0xff]  ;;  %v2186_v11 = vld [vmem:[%s9672_s3 + $0x398] sm:$0xff] }
 0x479   :  { %v3129_v49 = vpop.f32.mrf.mxu0 }
 0x47b   :  { %v2914_v46 = vpop.f32.mrf.mxu3 }
 0x47c   :  { %v2915_v63 = vadd.f32 %v2914_v46, %v8400_v20  ;;  %3176 = vmatmul.f32.gmra.mxu0 %v2183_v7 }
 0x47d   :  { %5142 = vmatmul.msk.f32.gmra.mxu1 %vm2647_vm1, %v2190_v1  ;;  %v2193_v1 = vld [vmem:[%s9672_s3 + $0x3d0] sm:$0xff] }
 0x47e   :  { %v3124_v50 = vadd.f32 %v3123_v60, %v2915_v63 }
 0x47f   :  { %v3347_v46 = vpop.f32.mrf.mxu1 }
 0x480   :  { %v8661_v52 = vadd.f32 %v3332_v22, %v3124_v50  ;;  %2964 = vmatmul.f32.gmra.mxu3 %v2179_v51  ;;  %v2182_v22 = vld [vmem:[%s9672_s3 + $0x378] sm:$0xff]  ;;  %v2189_v50 = vld [vmem:[%s9672_s3 + $0x3b0] sm:$0xff] }
 0x481   :  { %v3132_v0 = vpop.f32.mrf.mxu0 }
 0x483   :  { %v2917_v20 = vpop.f32.mrf.mxu3 }
 0x484   :  { %v2918_v7 = vadd.f32 %v2917_v20, %v8414_v26  ;;  %3179 = vmatmul.f32.gmra.mxu0 %v2186_v11 }
 0x485   :  { %5143 = vmatmul.msk.f32.gmra.mxu1 %vm2647_vm1, %v2193_v1  ;;  %v2196_v1 = vld [vmem:[%s9672_s3 + $0x3e8] sm:$0xff] }
 0x486   :  { %v3127_v60 = vadd.f32 %v3126_v48, %v2918_v7 }
 0x487   :  { %v3350_v20 = vpop.f32.mrf.mxu1 }
 0x488   :  { %v8674_v63 = vadd.f32 %v3335_v58, %v3127_v60  ;;  %2967 = vmatmul.f32.gmra.mxu3 %v2182_v22  ;;  %v2185_v58 = vld [vmem:[%s9672_s3 + $0x390] sm:$0xff]  ;;  %v2192_v60 = vld [vmem:[%s9672_s3 + $0x3c8] sm:$0xff] }
 0x489   :  { %v3135_v51 = vpop.f32.mrf.mxu0 }
 0x48a   :  { %10010 = vst [vmem:[#allocation86_spill] sm:$0xff] %v8674_v63 }
 0x48b   :  { %v2920_v26 = vpop.f32.mrf.mxu3 }
 0x48c   :  { %v2921_v11 = vadd.f32 %v2920_v26, %v8315_v12  ;;  %3182 = vmatmul.f32.gmra.mxu0 %v2189_v50 }
 0x48d   :  { %5144 = vmatmul.msk.f32.gmra.mxu1 %vm2647_vm1, %v2196_v1  ;;  %v2199_v1 = vld [vmem:[%s9672_s3 + $0x400] sm:$0xff] }
 0x48e   :  { %v3130_v48 = vadd.f32 %v3129_v49, %v2921_v11 }
 0x48f   :  { %v3353_v26 = vpop.f32.mrf.mxu1 }
 0x490   :  { %v8687_v7 = vadd.f32 %v3338_v8, %v3130_v48  ;;  %2970 = vmatmul.f32.gmra.mxu3 %v2185_v58  ;;  %v2188_v8 = vld [vmem:[%s9672_s3 + $0x3a8] sm:$0xff]  ;;  %v2195_v48 = vld [vmem:[%s9672_s3 + $0x3e0] sm:$0xff] }
 0x491   :  { %v3138_v22 = vpop.f32.mrf.mxu0 }
 0x492   :  { %10011 = vst [vmem:[#allocation134_spill] sm:$0xff] %v8687_v7 }
 0x493   :  { %v2923_v12 = vpop.f32.mrf.mxu3 }
 0x494   :  { %v2924_v50 = vadd.f32 %v2923_v12, %v8329_v47  ;;  %3185 = vmatmul.f32.gmra.mxu0 %v2192_v60 }
 0x495   :  { %5145 = vmatmul.msk.f32.gmra.mxu1 %vm2647_vm1, %v2199_v1  ;;  %v2202_v1 = vld [vmem:[%s9672_s3 + $0x418] sm:$0xff] }
 0x496   :  { %v3133_v49 = vadd.f32 %v3132_v0, %v2924_v50 }
 0x497   :  { %v3356_v12 = vpop.f32.mrf.mxu1 }
 0x498   :  { %v8700_v11 = vadd.f32 %v3341_v30, %v3133_v49  ;;  %2973 = vmatmul.f32.gmra.mxu3 %v2188_v8  ;;  %v2191_v30 = vld [vmem:[%s9672_s3 + $0x3c0] sm:$0xff]  ;;  %v2198_v49 = vld [vmem:[%s9672_s3 + $0x3f8] sm:$0xff] }
 0x499   :  { %v3141_v58 = vpop.f32.mrf.mxu0 }
 0x49a   :  { %10012 = vst [vmem:[#allocation159_spill] sm:$0xff] %v8700_v11 }
 0x49b   :  { %v2926_v47 = vpop.f32.mrf.mxu3 }
 0x49c   :  { %v2927_v60 = vadd.f32 %v2926_v47, %v8343_v28  ;;  %3188 = vmatmul.f32.gmra.mxu0 %v2195_v48 }
 0x49d   :  { %5146 = vmatmul.msk.f32.gmra.mxu1 %vm2647_vm1, %v2202_v1  ;;  %v2205_v1 = vld [vmem:[%s9672_s3 + $0x430] sm:$0xff] }
 0x49e   :  { %v3136_v0 = vadd.f32 %v3135_v51, %v2927_v60 }
 0x49f   :  { %v3359_v47 = vpop.f32.mrf.mxu1 }
 0x4a0   :  { %v8713_v50 = vadd.f32 %v3344_v5, %v3136_v0  ;;  %2976 = vmatmul.f32.gmra.mxu3 %v2191_v30  ;;  %v2194_v5 = vld [vmem:[%s9672_s3 + $0x3d8] sm:$0xff]  ;;  %v2201_v0 = vld [vmem:[%s9672_s3 + $0x410] sm:$0xff] }
 0x4a1   :  { %v3144_v8 = vpop.f32.mrf.mxu0 }
 0x4a2   :  { %10013 = vst [vmem:[#allocation153_spill] sm:$0xff] %v8713_v50 }
 0x4a3   :  { %v2929_v28 = vpop.f32.mrf.mxu3 }
 0x4a4   :  { %v2930_v48 = vadd.f32 %v2929_v28, %v8241_v44  ;;  %3191 = vmatmul.f32.gmra.mxu0 %v2198_v49 }
 0x4a5   :  { %5147 = vmatmul.msk.f32.gmra.mxu1 %vm2647_vm1, %v2205_v1  ;;  %v2208_v1 = vld [vmem:[%s9672_s3 + $0x448] sm:$0xff] }
 0x4a6   :  { %v3139_v51 = vadd.f32 %v3138_v22, %v2930_v48 }
 0x4a7   :  { %v3362_v28 = vpop.f32.mrf.mxu1 }
 0x4a8   :  { %v8726_v60 = vadd.f32 %v3347_v46, %v3139_v51  ;;  %2979 = vmatmul.f32.gmra.mxu3 %v2194_v5  ;;  %v2197_v46 = vld [vmem:[%s9672_s3 + $0x3f0] sm:$0xff]  ;;  %v2204_v51 = vld [vmem:[%s9672_s3 + $0x428] sm:$0xff] }
 0x4a9   :  { %v3147_v30 = vpop.f32.mrf.mxu0 }
 0x4aa   :  { %10014 = vst [vmem:[#allocation162_spill] sm:$0xff] %v8726_v60 }
 0x4ab   :  { %v2932_v44 = vpop.f32.mrf.mxu3 }
 0x4ac   :  { %v2933_v49 = vadd.f32 %v2932_v44, %v8255_v24  ;;  %3194 = vmatmul.f32.gmra.mxu0 %v2201_v0 }
 0x4ad   :  { %5148 = vmatmul.msk.f32.gmra.mxu1 %vm2647_vm1, %v2208_v1  ;;  %v2211_v1 = vld [vmem:[%s9672_s3 + $0x460] sm:$0xff] }
 0x4ae   :  { %v3142_v22 = vadd.f32 %v3141_v58, %v2933_v49 }
 0x4af   :  { %v3365_v44 = vpop.f32.mrf.mxu1 }
 0x4b0   :  { %v8739_v48 = vadd.f32 %v3350_v20, %v3142_v22  ;;  %2982 = vmatmul.f32.gmra.mxu3 %v2197_v46  ;;  %v2200_v20 = vld [vmem:[%s9672_s3 + $0x408] sm:$0xff]  ;;  %v2207_v22 = vld [vmem:[%s9672_s3 + $0x440] sm:$0xff] }
 0x4b1   :  { %v3150_v5 = vpop.f32.mrf.mxu0 }
 0x4b2   :  { %10015 = vst [vmem:[#allocation79_spill] sm:$0xff] %v8739_v48  ;;  %v2216_v48 = vld [vmem:[%s9672_s3 + $0x488] sm:$0xff] }
 0x4b3   :  { %v2935_v24 = vpop.f32.mrf.mxu3 }
 0x4b4   :  { %v2936_v0 = vadd.f32 %v2935_v24, %v8269_v38  ;;  %3197 = vmatmul.f32.gmra.mxu0 %v2204_v51 }
 0x4b5   :  { %5149 = vmatmul.msk.f32.gmra.mxu1 %vm2647_vm1, %v2211_v1  ;;  %v2214_v1 = vld [vmem:[%s9672_s3 + $0x478] sm:$0xff] }
 0x4b6   :  { %v3145_v58 = vadd.f32 %v3144_v8, %v2936_v0 }
 0x4b7   :  { %v3368_v24 = vpop.f32.mrf.mxu1 }
 0x4b8   :  { %v8752_v49 = vadd.f32 %v3353_v26, %v3145_v58  ;;  %2985 = vmatmul.f32.gmra.mxu3 %v2200_v20  ;;  %v2203_v26 = vld [vmem:[%s9672_s3 + $0x420] sm:$0xff]  ;;  %v2210_v58 = vld [vmem:[%s9672_s3 + $0x458] sm:$0xff] }
 0x4b9   :  { %v3153_v46 = vpop.f32.mrf.mxu0 }
 0x4ba   :  { %10016 = vst [vmem:[#allocation156_spill] sm:$0xff] %v8752_v49 }
 0x4bb   :  { %v2938_v38 = vpop.f32.mrf.mxu3 }
 0x4bc   :  { %v2939_v51 = vadd.f32 %v2938_v38, %v8171_v32  ;;  %3200 = vmatmul.f32.gmra.mxu0 %v2207_v22 }
 0x4bd   :  { %5150 = vmatmul.msk.f32.gmra.mxu1 %vm2647_vm1, %v2214_v1  ;;  %v2217_v1 = vld [vmem:[%s9672_s3 + $0x490] sm:$0xff] }
 0x4be   :  { %v3148_v8 = vadd.f32 %v3147_v30, %v2939_v51 }
 0x4bf   :  { %v3371_v38 = vpop.f32.mrf.mxu1 }
 0x4c0   :  { %v8765_v0 = vadd.f32 %v3356_v12, %v3148_v8  ;;  %2988 = vmatmul.f32.gmra.mxu3 %v2203_v26  ;;  %v2206_v12 = vld [vmem:[%s9672_s3 + $0x438] sm:$0xff]  ;;  %v2213_v8 = vld [vmem:[%s9672_s3 + $0x470] sm:$0xff] }
 0x4c1   :  { %v3156_v20 = vpop.f32.mrf.mxu0 }
 0x4c2   :  { %10017 = vst [vmem:[#allocation147_spill] sm:$0xff] %v8765_v0 }
 0x4c3   :  { %v2941_v32 = vpop.f32.mrf.mxu3 }
 0x4c4   :  { %v2942_v22 = vadd.f32 %v2941_v32, %v8183_v45  ;;  %3203 = vmatmul.f32.gmra.mxu0 %v2210_v58  ;;  %v10019_v58 = vld [vmem:[#allocation151_spill] sm:$0xff] }
 0x4c5   :  { %5151 = vmatmul.msk.f32.gmra.mxu1 %vm2647_vm1, %v2217_v1  ;;  %v2220_v1 = vld [vmem:[%s9672_s3 + $0x4a8] sm:$0xff] }
 0x4c6   :  { %v3151_v30 = vadd.f32 %v3150_v5, %v2942_v22 }
 0x4c8   :  { %v8778_v51 = vadd.f32 %v3359_v47, %v3151_v30  ;;  %2991 = vmatmul.f32.gmra.mxu3 %v2206_v12  ;;  %v2209_v47 = vld [vmem:[%s9672_s3 + $0x450] sm:$0xff] }
 0x4c9   :  { %v3159_v26 = vpop.f32.mrf.mxu0 }
 0x4ca   :  { %10018 = vst [vmem:[#allocation158_spill] sm:$0xff] %v8778_v51  ;;  %v3374_v22 = vpop.f32.mrf.mxu1  ;;  %v2222_v51 = vld [vmem:[%s9672_s3 + $0x4b8] sm:$0xff] }
 0x4cb   :  { %v2944_v45 = vpop.f32.mrf.mxu3 }
 0x4cc   :  { %v2945_v32 = vadd.f32 %v2944_v45, %v10019_v58  ;;  %3206 = vmatmul.f32.gmra.mxu0 %v2213_v8  ;;  %v10021_v45 = vld [vmem:[#allocation142_spill] sm:$0xff] }
 0x4cd   :  { %5152 = vmatmul.msk.f32.gmra.mxu1 %vm2647_vm1, %v2220_v1  ;;  %v2219_v1 = vld [vmem:[%s9672_s3 + $0x4a0] sm:$0xff] }
 0x4ce   :  { %v3154_v5 = vadd.f32 %v3153_v46, %v2945_v32 }
 0x4d0   :  { %v8791_v12 = vadd.f32 %v3362_v28, %v3154_v5  ;;  %2994 = vmatmul.f32.gmra.mxu3 %v2209_v47  ;;  %v2212_v28 = vld [vmem:[%s9672_s3 + $0x468] sm:$0xff]  ;;  %v8806_v5 = vpop.permute.xlu0 %2579 }
 0x4d1   :  { %v3162_v30 = vpop.f32.mrf.mxu0 }
 0x4d2   :  { %10020 = vst [vmem:[#allocation78_spill] sm:$0xff] %v8791_v12  ;;  %v3377_v32 = vpop.f32.mrf.mxu1  ;;  %v2225_v12 = vld [vmem:[%s9672_s3 + $0x4d0] sm:$0xff] }
 0x4d3   :  { %v2947_v8 = vpop.f32.mrf.mxu3 }
 0x4d4   :  { %v2948_v58 = vadd.f32 %v2947_v8, %v10021_v45  ;;  %3209 = vmatmul.f32.gmra.mxu0 %v2216_v48  ;;  %v2223_v48 = vld [vmem:[%s9672_s3 + $0x4c0] sm:$0xff]  ;;  %v10023_v45 = vld [vmem:[#allocation132_spill] sm:$0xff] }
 0x4d5   :  { %5153 = vmatmul.msk.f32.gmra.mxu1 %vm2647_vm1, %v2223_v48  ;;  %v2226_v48 = vld [vmem:[%s9672_s3 + $0x4d8] sm:$0xff] }
 0x4d6   :  { %v3157_v46 = vadd.f32 %v3156_v20, %v2948_v58 }
 0x4d8   :  { %v8804_v47 = vadd.f32 %v3365_v44, %v3157_v46  ;;  %2997 = vmatmul.f32.gmra.mxu3 %v2212_v28  ;;  %v2215_v44 = vld [vmem:[%s9672_s3 + $0x480] sm:$0xff] }
 0x4d9   :  { %v3165_v49 = vpop.f32.mrf.mxu0 }
 0x4da   :  { %10022 = vst [vmem:[#allocation143_spill] sm:$0xff] %v8804_v47  ;;  %v3380_v28 = vpop.f32.mrf.mxu1 }
 0x4db   :  { %v2950_v8 = vpop.f32.mrf.mxu3 }
 0x4dc   :  { %v2951_v20 = vadd.f32 %v2950_v8, %v10023_v45  ;;  %3212 = vmatmul.f32.gmra.mxu0 %v2219_v1  ;;  %v2490_v1 = vpop.permute.xlu0 %2489 }
 0x4dd   :  { %5154 = vmatmul.msk.f32.gmra.mxu1 %vm2647_vm1, %v2226_v48  ;;  %v2229_v48 = vld [vmem:[%s9672_s3 + $0x4f0] sm:$0xff] }
 0x4de   :  { %v3160_v58 = vadd.f32 %v3159_v26, %v2951_v20 }
 0x4e0   :  { %v8819_v46 = vadd.f32 %v3368_v24, %v3160_v58  ;;  %3000 = vmatmul.f32.gmra.mxu3 %v2215_v44  ;;  %v2218_v24 = vld [vmem:[%s9672_s3 + $0x498] sm:$0xff] }
 0x4e1   :  { %v3168_v0 = vpop.f32.mrf.mxu0 }
 0x4e2   :  { %10024 = vst [vmem:[#allocation155_spill] sm:$0xff] %v8819_v46  ;;  %v3383_v20 = vpop.f32.mrf.mxu1 }
 0x4e3   :  { %v2953_v8 = vpop.f32.mrf.mxu3 }
 0x4e4   :  { %v2954_v45 = vadd.f32 %v2953_v8, %v2490_v1  ;;  %3215 = vmatmul.f32.gmra.mxu0 %v2222_v51  ;;  %v3467_v1 = vmax.f32 %v8412_v27, 0.0  ;;  %v2228_v27 = vld [vmem:[%s9672_s3 + $0x4e8] sm:$0xff] }
 0x4e5   :  { %5155 = vmatmul.msk.f32.gmra.mxu1 %vm2647_vm1, %v2229_v48 }
 0x4e6   :  { %v3163_v26 = vadd.f32 %v3162_v30, %v2954_v45  ;;  %v2221_v45 = vld [vmem:[%s9672_s3 + $0x4b0] sm:$0xff] }
 0x4e8   :  { %v3372_v44 = vadd.f32 %v3371_v38, %v3163_v26  ;;  %3003 = vmatmul.f32.gmra.mxu3 %v2218_v24 }
 0x4e9   :  { %v3171_v58 = vpop.f32.mrf.mxu0 }
 0x4ea   :  { %v3499_v51 = vmax.f32 %v3372_v44, 0.0  ;;  %v3386_v26 = vpop.f32.mrf.mxu1 }
 0x4eb   :  { %v2956_v8 = vpop.f32.mrf.mxu3 }
 0x4ec   :  { %v2957_v30 = vadd.f32 %v2956_v8, %v8583_v59  ;;  %3218 = vmatmul.f32.gmra.mxu0 %v2225_v12  ;;  %v8840_v38 = vmax.f32 %v3467_v1, %v3499_v51  ;;  %v2232_v59 = vld [vmem:[%s9672_s3 + $0x508] sm:$0xff]  ;;  %v3468_v12 = vmax.f32 %v8426_v40, 0.0  ;;  %v2231_v40 = vld [vmem:[%s9672_s3 + $0x500] sm:$0xff] }
 0x4ed   :  { %5156 = vmatmul.msk.f32.gmra.mxu1 %vm2647_vm1, %v2232_v59  ;;  %v2224_v1 = vld [vmem:[%s9672_s3 + $0x4c8] sm:$0xff]  ;;  %v2227_v59 = vld [vmem:[%s9672_s3 + $0x4e0] sm:$0xff] }
 0x4ee   :  { %10025 = vst [vmem:[#allocation77_spill] sm:$0xff] %v8840_v38  ;;  %v3166_v24 = vadd.f32 %v3165_v49, %v2957_v30 }
 0x4f0   :  { %v3375_v47 = vadd.f32 %v3374_v22, %v3166_v24  ;;  %3006 = vmatmul.f32.gmra.mxu3 %v2221_v45 }
 0x4f1   :  { %v3174_v46 = vpop.f32.mrf.mxu0 }
 0x4f2   :  { %v3500_v44 = vmax.f32 %v3375_v47, 0.0  ;;  %v3389_v8 = vpop.f32.mrf.mxu1  ;;  %v3469_v47 = vmax.f32 %v8438_v4, 0.0  ;;  %v2234_v4 = vld [vmem:[%s9672_s3 + $0x518] sm:$0xff] }
 0x4f3   :  { %v2959_v48 = vpop.f32.mrf.mxu3 }
 0x4f4   :  { %v2960_v49 = vadd.f32 %v2959_v48, %v8370_v34  ;;  %3221 = vmatmul.f32.gmra.mxu0 %v2228_v27  ;;  %v8854_v22 = vmax.f32 %v3468_v12, %v3500_v44  ;;  %v2235_v34 = vld [vmem:[%s9672_s3 + $0x520] sm:$0xff] }
 0x4f5   :  { %5157 = vmatmul.msk.f32.gmra.mxu1 %vm2647_vm1, %v2235_v34 }
 0x4f6   :  { %10026 = vst [vmem:[#allocation137_spill] sm:$0xff] %v8854_v22  ;;  %v3169_v51 = vadd.f32 %v3168_v0, %v2960_v49 }
 0x4f8   :  { %v3378_v30 = vadd.f32 %v3377_v32, %v3169_v51  ;;  %3009 = vmatmul.f32.gmra.mxu3 %v2224_v1  ;;  %v3470_v1 = vmax.f32 %v8451_v41, 0.0  ;;  %v2237_v41 = vld [vmem:[%s9672_s3 + $0x530] sm:$0xff] }
 0x4f9   :  { %v3177_v45 = vpop.f32.mrf.mxu0 }
 0x4fa   :  { %v3501_v24 = vmax.f32 %v3378_v30, 0.0  ;;  %v3392_v44 = vpop.f32.mrf.mxu1 }
 0x4fb   :  { %v2962_v27 = vpop.f32.mrf.mxu3 }
 0x4fc   :  { %v2963_v0 = vadd.f32 %v2962_v27, %v8384_v25  ;;  %3224 = vmatmul.f32.gmra.mxu0 %v2231_v40  ;;  %v8868_v32 = vmax.f32 %v3469_v47, %v3501_v24  ;;  %v2238_v25 = vld [vmem:[%s9672_s3 + $0x538] sm:$0xff] }
 0x4fd   :  { %5158 = vmatmul.msk.f32.gmra.mxu1 %vm2647_vm1, %v2238_v25  ;;  %v2230_v40 = vld [vmem:[%s9672_s3 + $0x4f8] sm:$0xff] }
 0x4fe   :  { %v3172_v12 = vadd.f32 %v3171_v58, %v2963_v0  ;;  %v3471_v0 = vmax.f32 %v8464_v3, 0.0  ;;  %v2240_v3 = vld [vmem:[%s9672_s3 + $0x548] sm:$0xff] }
 0x500   :  { %v3381_v48 = vadd.f32 %v3380_v28, %v3172_v12  ;;  %3012 = vmatmul.f32.gmra.mxu3 %v2227_v59 }
 0x501   :  { %v3180_v49 = vpop.f32.mrf.mxu0 }
 0x502   :  { %v3502_v51 = vmax.f32 %v3381_v48, 0.0  ;;  %v3395_v47 = vpop.f32.mrf.mxu1  ;;  %v2233_v48 = vld [vmem:[%s9672_s3 + $0x510] sm:$0xff] }
 0x503   :  { %v2965_v30 = vpop.f32.mrf.mxu3 }
 0x504   :  { %v2966_v58 = vadd.f32 %v2965_v30, %v8398_v18  ;;  %3227 = vmatmul.f32.gmra.mxu0 %v2234_v4  ;;  %v8882_v28 = vmax.f32 %v3470_v1, %v3502_v51  ;;  %v2241_v18 = vld [vmem:[%s9672_s3 + $0x550] sm:$0xff]  ;;  %v3472_v30 = vmax.f32 %v8477_v33, 0.0  ;;  %v2243_v33 = vld [vmem:[%s9672_s3 + $0x560] sm:$0xff] }
 0x505   :  { %5159 = vmatmul.msk.f32.gmra.mxu1 %vm2647_vm1, %v2241_v18 }
 0x506   :  { %v3175_v34 = vadd.f32 %v3174_v46, %v2966_v58 }
 0x508   :  { %v3384_v24 = vadd.f32 %v3383_v20, %v3175_v34  ;;  %3015 = vmatmul.f32.gmra.mxu3 %v2230_v40  ;;  %v2236_v34 = vld [vmem:[%s9672_s3 + $0x528] sm:$0xff] }
 0x509   :  { %v3183_v27 = vpop.f32.mrf.mxu0 }
 0x50a   :  { %v3503_v59 = vmax.f32 %v3384_v24, 0.0  ;;  %v8901_v25 = vpop.f32.mrf.mxu1 }
 0x50b   :  { %v2968_v12 = vpop.f32.mrf.mxu3 }
 0x50c   :  { %v2969_v46 = vadd.f32 %v2968_v12, %v8296_v9  ;;  %3230 = vmatmul.f32.gmra.mxu0 %v2237_v41  ;;  %v8896_v20 = vmax.f32 %v3471_v0, %v3503_v59  ;;  %v2244_v9 = vld [vmem:[%s9672_s3 + $0x568] sm:$0xff]  ;;  %v3473_v59 = vmax.f32 %v8490_v36, 0.0  ;;  %v2246_v36 = vld [vmem:[%s9672_s3 + $0x578] sm:$0xff] }
 0x50d   :  { %5160 = vmatmul.msk.f32.gmra.mxu1 %vm2647_vm1, %v2244_v9 }
 0x50e   :  { %v3178_v4 = vadd.f32 %v3177_v45, %v2969_v46 }
 0x510   :  { %v3387_v1 = vadd.f32 %v3386_v26, %v3178_v4  ;;  %3018 = vmatmul.f32.gmra.mxu3 %v2233_v48  ;;  %v2239_v48 = vld [vmem:[%s9672_s3 + $0x540] sm:$0xff] }
 0x511   :  { %v3186_v51 = vpop.f32.mrf.mxu0 }
 0x512   :  { %v3504_v58 = vmax.f32 %v3387_v1, 0.0  ;;  %v8917_v41 = vpop.f32.mrf.mxu1 }
 0x513   :  { %v2971_v40 = vpop.f32.mrf.mxu3 }
 0x514   :  { %v2972_v45 = vadd.f32 %v2971_v40, %v8310_v19  ;;  %3233 = vmatmul.f32.gmra.mxu0 %v2240_v3  ;;  %v8912_v26 = vmax.f32 %v3472_v30, %v3504_v58  ;;  %v2247_v19 = vld [vmem:[%s9672_s3 + $0x580] sm:$0xff]  ;;  %v3474_v30 = vmax.f32 %v8503_v35, 0.0  ;;  %v2249_v35 = vld [vmem:[%s9672_s3 + $0x590] sm:$0xff] }
 0x515   :  { %5161 = vmatmul.msk.f32.gmra.mxu1 %vm2647_vm1, %v2247_v19  ;;  %v3475_v19 = vmax.f32 %v8516_v61, 0.0  ;;  %v2256_v61 = vld [vmem:[%s9672_s3 + $0x5c8] sm:$0xff] }
 0x516   :  { %v3181_v24 = vadd.f32 %v3180_v49, %v2972_v45  ;;  %v2242_v45 = vld [vmem:[%s9672_s3 + $0x558] sm:$0xff] }
 0x518   :  { %v3390_v18 = vadd.f32 %v3389_v8, %v3181_v24  ;;  %3021 = vmatmul.f32.gmra.mxu3 %v2236_v34 }
 0x519   :  { %v8919_v0 = vpop.f32.mrf.mxu0 }
 0x51a   :  { %v3505_v12 = vmax.f32 %v3390_v18, 0.0  ;;  %v8935_v1 = vpop.f32.mrf.mxu1 }
 0x51b   :  { %v2974_v49 = vpop.f32.mrf.mxu3 }
 0x51c   :  { %v2975_v46 = vadd.f32 %v2974_v49, %v8324_v43  ;;  %3236 = vmatmul.f32.gmra.mxu0 %v2243_v33  ;;  %v8930_v8 = vmax.f32 %v3473_v59, %v3505_v12  ;;  %v2250_v43 = vld [vmem:[%s9672_s3 + $0x598] sm:$0xff] }
 0x51d   :  { %5162 = vmatmul.msk.f32.gmra.mxu1 %vm2647_vm1, %v2250_v43 }
 0x51e   :  { %v3184_v4 = vadd.f32 %v3183_v27, %v2975_v46 }
 0x520   :  { %v3393_v3 = vadd.f32 %v3392_v44, %v3184_v4  ;;  %3024 = vmatmul.f32.gmra.mxu3 %v2239_v48  ;;  %v2252_v48 = vld [vmem:[%s9672_s3 + $0x5a8] sm:$0xff] }
 0x521   :  { %v8937_v9 = vpop.f32.mrf.mxu0 }
 0x522   :  { %v3506_v58 = vmax.f32 %v3393_v3, 0.0  ;;  %v8953_v24 = vpop.f32.mrf.mxu1  ;;  %v2248_v3 = vld [vmem:[%s9672_s3 + $0x588] sm:$0xff] }
 0x523   :  { %v2977_v27 = vpop.f32.mrf.mxu3 }
 0x524   :  { %v2978_v40 = vadd.f32 %v2977_v27, %v8222_v21  ;;  %3239 = vmatmul.f32.gmra.mxu0 %v2246_v36  ;;  %v8948_v44 = vmax.f32 %v3474_v30, %v3506_v58  ;;  %v2253_v21 = vld [vmem:[%s9672_s3 + $0x5b0] sm:$0xff]  ;;  %v2255_v30 = vld [vmem:[%s9672_s3 + $0x5c0] sm:$0xff] }
 0x525   :  { %5163 = vmatmul.msk.f32.gmra.mxu1 %vm2647_vm1, %v2253_v21  ;;  %v2259_v58 = vld [vmem:[%s9672_s3 + $0x5e0] sm:$0xff] }
 0x526   :  { %v3187_v34 = vadd.f32 %v3186_v51, %v2978_v40  ;;  %v2251_v40 = vld [vmem:[%s9672_s3 + $0x5a0] sm:$0xff] }
 0x528   :  { %v3396_v18 = vadd.f32 %v3395_v47, %v3187_v34  ;;  %3027 = vmatmul.f32.gmra.mxu3 %v2242_v45  ;;  %v2245_v47 = vld [vmem:[%s9672_s3 + $0x570] sm:$0xff] }
 0x529   :  { %v8955_v33 = vpop.f32.mrf.mxu0 }
 0x52a   :  { %v3507_v59 = vmax.f32 %v3396_v18, 0.0  ;;  %v3410_v49 = vpop.f32.mrf.mxu1  ;;  %v2258_v18 = vld [vmem:[%s9672_s3 + $0x5d8] sm:$0xff] }
 0x52b   :  { %v2980_v51 = vpop.f32.mrf.mxu3 }
 0x52c   :  { %v8965_v12 = vmax.f32 %v3475_v19, %v3507_v59  ;;  %3242 = vmatmul.f32.gmra.mxu0 %v2249_v35  ;;  %v2262_v35 = vld [vmem:[%s9672_s3 + $0x5f8] sm:$0xff] }
 0x52d   :  { %5164 = vmatmul.msk.f32.gmra.mxu1 %vm2647_vm1, %v2256_v61  ;;  %v2254_v19 = vld [vmem:[%s9672_s3 + $0x5b8] sm:$0xff] }
 0x530   :  { %3030 = vmatmul.f32.gmra.mxu3 %v2245_v47 }
 0x531   :  { %v3198_v46 = vpop.f32.mrf.mxu0 }
 0x532   :  { %v3413_v36 = vpop.f32.mrf.mxu1 }
 0x533   :  { %v2983_v4 = vpop.f32.mrf.mxu3 }
 0x534   :  { %3245 = vmatmul.f32.gmra.mxu0 %v2252_v48  ;;  %v2261_v48 = vld [vmem:[%s9672_s3 + $0x5f0] sm:$0xff]  ;;  %v2984_v38 = vadd.f32 %v2983_v4, %v8250_v37  ;;  %v3481_v37 = vmax.f32 %v8598_v53, 0.0 }
 0x535   :  { %5165 = vmatmul.msk.f32.gmra.mxu1 %vm2647_vm1, %v2259_v58 }
 0x538   :  { %3033 = vmatmul.f32.gmra.mxu3 %v2248_v3  ;;  %v2257_v3 = vld [vmem:[%s9672_s3 + $0x5d0] sm:$0xff] }
 0x539   :  { %v3201_v43 = vpop.f32.mrf.mxu0 }
 0x53a   :  { %v3416_v45 = vpop.f32.mrf.mxu1 }
 0x53b   :  { %v2986_v27 = vpop.f32.mrf.mxu3 }
 0x53c   :  { %3248 = vmatmul.f32.gmra.mxu0 %v2255_v30 }
 0x53d   :  { %5166 = vmatmul.msk.f32.gmra.mxu1 %vm2647_vm1, %v2262_v35  ;;  %v10027_v35 = vld [vmem:[#allocation133_spill] sm:$0xff] }
 0x540   :  { %3036 = vmatmul.f32.gmra.mxu3 %v2251_v40 }
 0x541   :  { %v3204_v34 = vpop.f32.mrf.mxu0 }
 0x542   :  { %v3419_v59 = vpop.f32.mrf.mxu1 }
 0x543   :  { %v2989_v21 = vpop.f32.mrf.mxu3 }
 0x544   :  { %3251 = vmatmul.f32.gmra.mxu0 %v2258_v18  ;;  %v2260_v18 = vld [vmem:[%s9672_s3 + $0x5e8] sm:$0xff] }
 0x548   :  { %3039 = vmatmul.f32.gmra.mxu3 %v2254_v19 }
 0x549   :  { %v3207_v47 = vpop.f32.mrf.mxu0 }
 0x54a   :  { %v9006_v58 = vpop.f32.mrf.mxu1 }
 0x54b   :  { %v2992_v61 = vpop.f32.mrf.mxu3 }
 0x54c   :  { %3254 = vmatmul.f32.gmra.mxu0 %v2261_v48  ;;  %v2993_v60 = vadd.f32 %v2992_v61, %v10028_v15  ;;  %v10029_v48 = vld [vmem:[#allocation154_spill] sm:$0xff]  ;;  %v2981_v15 = vadd.f32 %v2980_v51, %v8236_v23 }
 0x54d   :  { %v2990_v50 = vadd.f32 %v2989_v21, %v10029_v48 }
 0x54e   :  { %v3202_v7 = vadd.f32 %v3201_v43, %v2993_v60 }
 0x54f   :  { %v3199_v14 = vadd.f32 %v3198_v46, %v2990_v50 }
 0x550   :  { %3042 = vmatmul.f32.gmra.mxu3 %v2257_v3  ;;  %v2987_v3 = vadd.f32 %v2986_v27, %v8151_v29  ;;  %v2575_v27 = vpop.permute.xlu1 %2574 }
 0x551   :  { %v3210_v30 = vpop.f32.mrf.mxu0  ;;  %v3408_v29 = vadd.f32 %v8953_v24, %v3199_v14  ;;  %v3479_v24 = vmax.f32 %v8570_v55, 0.0 }
 0x552   :  { %v9014_v13 = vpop.f32.mrf.mxu1  ;;  %v3196_v61 = vadd.f32 %v8955_v33, %v2987_v3 }
 0x553   :  { %v2995_v40 = vpop.f32.mrf.mxu3 }
 0x554   :  { %v2996_v19 = vadd.f32 %v2995_v40, %v10027_v35  ;;  %v3405_v23 = vadd.f32 %v8935_v1, %v3196_v61  ;;  %v3478_v1 = vmax.f32 %v8555_v2, 0.0 }
 0x556   :  { %v3205_v16 = vadd.f32 %v3204_v34, %v2996_v19  ;;  %v3482_v34 = vmax.f32 %v8611_v39, 0.0  ;;  %v3193_v19 = vadd.f32 %v8937_v9, %v2984_v38  ;;  %v3480_v39 = vmax.f32 %v8585_v10, 0.0 }
 0x557   :  { %v3511_v9 = vmax.f32 %v3408_v29, 0.0  ;;  %v3483_v10 = vmax.f32 %v8623_v62, 0.0 }
 0x558   :  { %3045 = vmatmul.f32.gmra.mxu3 %v2260_v18  ;;  %v3414_v22 = vadd.f32 %v3413_v36, %v3205_v16  ;;  %v3411_v18 = vadd.f32 %v3410_v49, %v3202_v7  ;;  %v3190_v16 = vadd.f32 %v8919_v0, %v2981_v15  ;;  %v3402_v38 = vadd.f32 %v8917_v41, %v3193_v19 }
 0x559   :  { %v3213_v56 = vpop.f32.mrf.mxu0  ;;  %v3510_v0 = vmax.f32 %v3405_v23, 0.0  ;;  %v3543_v43 = vmax.f32 %v3479_v24, %v3511_v9 }
 0x55a   :  { %v3513_v60 = vmax.f32 %v3414_v22, 0.0  ;;  %v3512_v50 = vmax.f32 %v3411_v18, 0.0  ;;  %v3428_v51 = vpop.f32.mrf.mxu1  ;;  %v3399_v53 = vadd.f32 %v8901_v25, %v3190_v16  ;;  %v3509_v36 = vmax.f32 %v3402_v38, 0.0  ;;  %v10035_v38 = vld [vmem:[#allocation164_spill] sm:$0xff] }
 0x55b   :  { %v2998_v11 = vpop.f32.mrf.mxu3 }
 0x55c   :  { %v2999_v63 = vadd.f32 %v2998_v11, %v10030_v57  ;;  %v2570_v11 = vpop.permute.xlu0 %2569  ;;  %v3545_v14 = vmax.f32 %v3481_v37, %v3513_v60  ;;  %v3544_v49 = vmax.f32 %v3480_v39, %v3512_v50  ;;  %v3508_v55 = vmax.f32 %v3399_v53, 0.0  ;;  %v10032_v37 = vld [vmem:[#allocation157_spill] sm:$0xff]  ;;  %v10034_v50 = vld [vmem:[#allocation86_spill] sm:$0xff] }
 0x55e   :  { %v3208_v40 = vadd.f32 %v3207_v47, %v2999_v63 }
 0x560   :  { %v3417_v21 = vadd.f32 %v3416_v45, %v3208_v40  ;;  %v3477_v45 = vmax.f32 %v8542_v17, 0.0  ;;  %v3484_v17 = vmax.f32 %v8635_v42, 0.0  ;;  %v3485_v42 = vmax.f32 %v8648_v6, 0.0 }
 0x561   :  { %v3216_v35 = vpop.f32.mrf.mxu0 }
 0x562   :  { %v3514_v57 = vmax.f32 %v3417_v21, 0.0  ;;  %v3541_v2 = vmax.f32 %v3477_v45, %v3509_v36  ;;  %v3431_v62 = vpop.f32.mrf.mxu1 }
 0x563   :  { %v3001_v63 = vpop.f32.mrf.mxu3 }
 0x564   :  { %v3546_v7 = vmax.f32 %v3482_v34, %v3514_v57  ;;  %v3002_v33 = vadd.f32 %v3001_v63, %v2570_v11  ;;  %v10031_v11 = vld [vmem:[#allocation137_spill] sm:$0xff] }
 0x565   :  { %v10033_v63 = vld [vmem:[#allocation77_spill] sm:$0xff] }
 0x566   :  { %v3211_v22 = vadd.f32 %v3210_v30, %v3002_v33  ;;  %3755 = vmatpush.msra.mxu3 %v3546_v7  ;;  %v3542_v30 = vmax.f32 %v3478_v1, %v3510_v0  ;;  %v3565_v33 = vld [vmem:[%s9674_s5 + $0x10] sm:$0xff]  ;;  %v10036_v0 = vld [vmem:[#allocation134_spill] sm:$0xff]  ;;  %v3567_v1 = vld [vmem:[%s9674_s5 + $0x20] sm:$0xff] }
 0x568   :  { %v3420_v46 = vadd.f32 %v3419_v59, %v3211_v22  ;;  %3756 = vmatpush.msra.mxu3 %v3545_v14  ;;  %v3476_v59 = vmax.f32 %v8529_v31, 0.0 }
 0x569   :  { %v3219_v4 = vpop.f32.mrf.mxu0 }
 0x56a   :  { %v3515_v41 = vmax.f32 %v3420_v46, 0.0  ;;  %3757 = vmatpush.msra.mxu3 %v3544_v49  ;;  %v3540_v40 = vmax.f32 %v3476_v59, %v3508_v55  ;;  %v3434_v29 = vpop.f32.mrf.mxu1  ;;  %v3488_v49 = vmax.f32 %v10036_v0, 0.0  ;;  %v10038_v55 = vld [vmem:[#allocation159_spill] sm:$0xff] }
 0x56b   :  { %v3004_v47 = vpop.f32.mrf.mxu3  ;;  %v3569_v59 = vld [vmem:[%s9674_s5 + $0x30] sm:$0xff] }
 0x56c   :  { %v3005_v25 = vadd.f32 %v3004_v47, %v2575_v27  ;;  %3758 = vmatpush.msra.mxu3 %v3543_v43  ;;  %v9034_v48 = vmax.f32 %v3483_v10, %v3515_v41  ;;  %v10037_v10 = vld [vmem:[#allocation80_spill] sm:$0xff] }
 0x56e   :  { %v3214_v3 = vadd.f32 %v3213_v56, %v3005_v25  ;;  %3759 = vmatpush.msra.mxu3 %v3542_v30  ;;  %v3489_v30 = vmax.f32 %v10038_v55, 0.0  ;;  %v10046_v55 = vld [vmem:[#allocation165_spill] sm:$0xff] }
 0x570   :  { %v3423_v15 = vadd.f32 %v9006_v58, %v3214_v3  ;;  %3760 = vmatpush.msra.mxu3 %v3541_v2  ;;  %v10039_v3 = vld [vmem:[#allocation85_spill] sm:$0xff] }
 0x571   :  { %v3222_v61 = vpop.f32.mrf.mxu0 }
 0x572   :  { %v3516_v18 = vmax.f32 %v3423_v15, 0.0  ;;  %3761 = vmatpush.msra.mxu3 %v3540_v40 }
 0x573   :  { %v3007_v21 = vpop.f32.mrf.mxu3 }
 0x574   :  { %v3008_v34 = vadd.f32 %v3007_v21, %v8806_v5  ;;  %3762 = vmatpush.msra.mxu3 %v8965_v12  ;;  %v9041_v19 = vmax.f32 %v3484_v17, %v3516_v18  ;;  %v10040_v21 = vld [vmem:[#allocation153_spill] sm:$0xff] }
 0x576   :  { %v3217_v31 = vadd.f32 %v3216_v35, %v3008_v34  ;;  %3763 = vmatpush.msra.mxu3 %v8948_v44  ;;  %v3486_v44 = vmax.f32 %v8661_v52, 0.0  ;;  %v3487_v52 = vmax.f32 %v10034_v50, 0.0  ;;  %v3490_v34 = vmax.f32 %v10040_v21, 0.0 }
 0x578   :  { %v3426_v56 = vadd.f32 %v9014_v13, %v3217_v31  ;;  %3764 = vmatpush.msra.mxu3 %v8930_v8 }
 0x579   :  { %v3225_v58 = vpop.f32.mrf.mxu0 }
 0x57a   :  { %v3517_v60 = vmax.f32 %v3426_v56, 0.0  ;;  %3765 = vmatpush.msra.mxu3 %v8912_v26  ;;  %v3571_v56 = vld [vmem:[%s9674_s5 + $0x40] sm:$0xff] }
 0x57b   :  { %v3010_v57 = vpop.f32.mrf.mxu3 }
 0x57c   :  { %v3011_v5 = vadd.f32 %v3010_v57, %v8565_v54  ;;  %3766 = vmatpush.msra.mxu3 %v8896_v20  ;;  %v9050_v12 = vmax.f32 %v3485_v42, %v3517_v60  ;;  %v3563_v54 = vld [vmem:[%s9674_s5] sm:$0xff]  ;;  %v3437_v20 = vpop.f32.mrf.mxu1 }
 0x57e   :  { %v3220_v35 = vadd.f32 %v3219_v4, %v3011_v5  ;;  %3767 = vmatpush.msra.mxu3 %v8882_v28 }
 0x580   :  { %v3429_v13 = vadd.f32 %v3428_v51, %v3220_v35  ;;  %3768 = vmatpush.msra.mxu3 %v8868_v32 }
 0x581   :  { %v3228_v8 = vpop.f32.mrf.mxu0 }
 0x582   :  { %v3518_v6 = vmax.f32 %v3429_v13, 0.0  ;;  %3769 = vmatpush.msra.mxu3 %v10031_v11  ;;  %v10042_v13 = vld [vmem:[#allocation162_spill] sm:$0xff] }
 0x583   :  { %v3013_v26 = vpop.f32.mrf.mxu3 }
 0x584   :  { %v3014_v16 = vadd.f32 %v3013_v26, %v10032_v37  ;;  %3770 = vmatpush.msra.mxu3 %v10033_v63  ;;  %v9061_v28 = vmax.f32 %v3486_v44, %v3518_v6  ;;  %v3440_v22 = vpop.f32.mrf.mxu1  ;;  %v3573_v6 = vld [vmem:[%s9674_s5 + $0x50] sm:$0xff] }
 0x585   :  { %3771 = vmatmul.f32.vlgmr.msra.gmra.mxu3 %v3563_v54 }
 0x586   :  { %v3223_v32 = vadd.f32 %v3222_v61, %v3014_v16 }
 0x588   :  { %v3432_v23 = vadd.f32 %v3431_v62, %v3223_v32  ;;  %v3577_v32 = vld [vmem:[%s9674_s5 + $0x70] sm:$0xff] }
 0x589   :  { %v3231_v51 = vpop.f32.mrf.mxu0 }
 0x58a   :  { %v3519_v7 = vmax.f32 %v3432_v23, 0.0 }
 0x58b   :  { %v3016_v39 = vpop.f32.mrf.mxu3 }
 0x58c   :  { %v3017_v9 = vadd.f32 %v3016_v39, %v10035_v38  ;;  %v9068_v14 = vmax.f32 %v3487_v52, %v3519_v7  ;;  %v3443_v45 = vpop.f32.mrf.mxu1  ;;  %v3579_v7 = vld [vmem:[%s9674_s5 + $0x80] sm:$0xff]  ;;  %v3581_v38 = vld [vmem:[%s9674_s5 + $0x90] sm:$0xff] }
 0x58d   :  { %3774 = vmatmul.f32.gmra.mxu3 %v3565_v33 }
 0x58e   :  { %v3226_v24 = vadd.f32 %v3225_v58, %v3017_v9 }
 0x590   :  { %v3435_v53 = vadd.f32 %v3434_v29, %v3226_v24  ;;  %v10041_v29 = vld [vmem:[#allocation139_spill] sm:$0xff]  ;;  %v3583_v24 = vld [vmem:[%s9674_s5 + $0xa0] sm:$0xff] }
 0x591   :  { %v3234_v41 = vpop.f32.mrf.mxu0 }
 0x592   :  { %v3520_v46 = vmax.f32 %v3435_v53, 0.0 }
 0x593   :  { %v3019_v4 = vpop.f32.mrf.mxu3 }
 0x594   :  { %v3020_v36 = vadd.f32 %v3019_v4, %v10037_v10  ;;  %v9075_v43 = vmax.f32 %v3488_v49, %v3520_v46  ;;  %v9086_v18 = vpop.f32.mrf.mxu1  ;;  %v10043_v49 = vld [vmem:[#allocation148_spill] sm:$0xff]  ;;  %v10045_v10 = vld [vmem:[#allocation82_spill] sm:$0xff] }
 0x595   :  { %3777 = vmatmul.f32.gmra.mxu3 %v3567_v1  ;;  %v10044_v1 = vld [vmem:[#allocation163_spill] sm:$0xff] }
 0x596   :  { %v3229_v27 = vadd.f32 %v3228_v8, %v3020_v36  ;;  %v3491_v8 = vmax.f32 %v10042_v13, 0.0 }
 0x598   :  { %v3438_v47 = vadd.f32 %v3437_v20, %v3229_v27  ;;  %v3575_v20 = vld [vmem:[%s9674_s5 + $0x60] sm:$0xff]  ;;  %v3585_v27 = vld [vmem:[%s9674_s5 + $0xb0] sm:$0xff] }
 0x599   :  { %v9084_v61 = vpop.f32.mrf.mxu0 }
 0x59a   :  { %v3521_v25 = vmax.f32 %v3438_v47, 0.0 }
 0x59b   :  { %v3022_v2 = vpop.f32.mrf.mxu3 }
 0x59c   :  { %v3023_v62 = vadd.f32 %v3022_v2, %v10039_v3  ;;  %v9082_v40 = vmax.f32 %v3489_v30, %v3521_v25  ;;  %v3449_v54 = vpop.f32.mrf.mxu1 }
 0x59d   :  { %3780 = vmatmul.f32.gmra.mxu3 %v3569_v59  ;;  %v10047_v59 = vld [vmem:[#allocation136_spill] sm:$0xff] }
 0x59e   :  { %v3232_v15 = vadd.f32 %v3231_v51, %v3023_v62  ;;  %v10048_v62 = vld [vmem:[#allocation160_spill] sm:$0xff] }
 0x5a0   :  { %v3441_v17 = vadd.f32 %v3440_v22, %v3232_v15 }
 0x5a1   :  { %v3240_v35 = vpop.f32.mrf.mxu0 }
 0x5a2   :  { %v3522_v31 = vmax.f32 %v3441_v17, 0.0 }
 0x5a3   :  { %v3025_v58 = vpop.f32.mrf.mxu3 }
 0x5a4   :  { %v3026_v42 = vadd.f32 %v3025_v58, %v10041_v29  ;;  %v9093_v60 = vmax.f32 %v3490_v34, %v3522_v31  ;;  %v3452_v63 = vpop.f32.mrf.mxu1  ;;  %v10049_v31 = vld [vmem:[#allocation161_spill] sm:$0xff] }
 0x5a5   :  { %3783 = vmatmul.f32.gmra.mxu3 %v3571_v56 }
 0x5a6   :  { %v3235_v57 = vadd.f32 %v3234_v41, %v3026_v42 }
 0x5a8   :  { %v3444_v5 = vadd.f32 %v3443_v45, %v3235_v57  ;;  %v10050_v57 = vld [vmem:[#allocation155_spill] sm:$0xff] }
 0x5a9   :  { %v3243_v16 = vpop.f32.mrf.mxu0 }
 0x5aa   :  { %v3523_v44 = vmax.f32 %v3444_v5, 0.0  ;;  %v3498_v5 = vmax.f32 %v10050_v57, 0.0 }
 0x5ab   :  { %v3028_v11 = vpop.f32.mrf.mxu3 }
 0x5ac   :  { %v9099_v26 = vmax.f32 %v3491_v8, %v3523_v44  ;;  %v3455_v52 = vpop.f32.mrf.mxu1  ;;  %v3029_v56 = vadd.f32 %v3028_v11, %v10049_v31 }
 0x5ad   :  { %3786 = vmatmul.f32.gmra.mxu3 %v3573_v6 }
 0x5b1   :  { %v3246_v50 = vpop.f32.mrf.mxu0 }
 0x5b3   :  { %v3031_v37 = vpop.f32.mrf.mxu3 }
 0x5b4   :  { %v3458_v51 = vpop.f32.mrf.mxu1  ;;  %v3032_v15 = vadd.f32 %v3031_v37, %v10048_v62  ;;  %v3580_v62 = vld [vmem:[%s9674_s5 + $0x88] sm:$0xff] }
 0x5b5   :  { %3789 = vmatmul.f32.gmra.mxu3 %v3575_v20  ;;  %v3587_v20 = vld [vmem:[%s9674_s5 + $0xc0] sm:$0xff] }
 0x5b6   :  { %v3241_v13 = vadd.f32 %v3240_v35, %v3032_v15  ;;  %v3582_v15 = vld [vmem:[%s9674_s5 + $0x98] sm:$0xff] }
 0x5b9   :  { %v3249_v39 = vpop.f32.mrf.mxu0 }
 0x5bb   :  { %v3034_v23 = vpop.f32.mrf.mxu3 }
 0x5bc   :  { %v3461_v0 = vpop.f32.mrf.mxu1  ;;  %v3035_v30 = vadd.f32 %v3034_v23, %v10046_v55  ;;  %v3238_v23 = vadd.f32 %v9084_v61, %v3029_v56  ;;  %v3605_v55 = vld [vmem:[%s9674_s5 + $0x150] sm:$0xff]  ;;  %v3588_v56 = vld [vmem:[%s9674_s5 + $0xc8] sm:$0xff] }
 0x5bd   :  { %3792 = vmatmul.f32.gmra.mxu3 %v3577_v32  ;;  %v10051_v32 = vld [vmem:[#allocation143_spill] sm:$0xff] }
 0x5be   :  { %v3244_v58 = vadd.f32 %v3243_v16, %v3035_v30  ;;  %v3497_v37 = vmax.f32 %v10051_v32, 0.0  ;;  %v10052_v16 = vld [vmem:[#allocation78_spill] sm:$0xff]  ;;  %v3574_v30 = vld [vmem:[%s9674_s5 + $0x58] sm:$0xff] }
 0x5c1   :  { %v3252_v22 = vpop.f32.mrf.mxu0 }
 0x5c3   :  { %v3037_v33 = vpop.f32.mrf.mxu3 }
 0x5c4   :  { %v3038_v36 = vadd.f32 %v3037_v33, %v10045_v10  ;;  %v3464_v3 = vpop.f32.mrf.mxu1  ;;  %v3496_v33 = vmax.f32 %v10052_v16, 0.0  ;;  %v10056_v10 = vld [vmem:[#allocation79_spill] sm:$0xff]  ;;  %v9260_v16 = vpop.permute.xlu2 %3752 }
 0x5c5   :  { %3795 = vmatmul.f32.gmra.mxu3 %v3579_v7 }
 0x5c6   :  { %v3247_v17 = vadd.f32 %v3246_v50, %v3038_v36  ;;  %v3453_v50 = vadd.f32 %v3452_v63, %v3244_v58 }
 0x5c8   :  { %v3456_v8 = vadd.f32 %v3455_v52, %v3247_v17  ;;  %v10053_v52 = vld [vmem:[#allocation158_spill] sm:$0xff] }
 0x5c9   :  { %v3255_v47 = vpop.f32.mrf.mxu0  ;;  %v3584_v17 = vld [vmem:[%s9674_s5 + $0xa8] sm:$0xff] }
 0x5cb   :  { %v3040_v9 = vpop.f32.mrf.mxu3 }
 0x5cc   :  { %v3041_v4 = vadd.f32 %v3040_v9, %v10044_v1  ;;  %v3447_v9 = vadd.f32 %v9086_v18, %v3238_v23  ;;  %v3492_v18 = vmax.f32 %v10056_v10, 0.0  ;;  %v3600_v23 = vld [vmem:[%s9674_s5 + $0x128] sm:$0xff] }
 0x5cd   :  { %3798 = vmatmul.f32.gmra.mxu3 %v3581_v38  ;;  %v3495_v38 = vmax.f32 %v10053_v52, 0.0  ;;  %v9271_v52 = vpop.permute.xlu2 %3682 }
 0x5ce   :  { %v3250_v25 = vadd.f32 %v3249_v39, %v3041_v4  ;;  %v3450_v39 = vadd.f32 %v3449_v54, %v3241_v13  ;;  %v10055_v54 = vld [vmem:[#allocation156_spill] sm:$0xff]  ;;  %v3524_v1 = vmax.f32 %v3447_v9, 0.0 }
 0x5d0   :  { %v3459_v29 = vadd.f32 %v3458_v51, %v3250_v25  ;;  %v3527_v51 = vmax.f32 %v3456_v8, 0.0  ;;  %v3525_v61 = vmax.f32 %v3450_v39, 0.0  ;;  %v3607_v25 = vld [vmem:[%s9674_s5 + $0x160] sm:$0xff]  ;;  %v3596_v8 = vld [vmem:[%s9674_s5 + $0x108] sm:$0xff] }
 0x5d2   :  { %v3528_v7 = vmax.f32 %v3459_v29, 0.0  ;;  %v3559_v63 = vmax.f32 %v3495_v38, %v3527_v51  ;;  %v3590_v29 = vld [vmem:[%s9674_s5 + $0xd8] sm:$0xff]  ;;  %v3604_v51 = vld [vmem:[%s9674_s5 + $0x148] sm:$0xff]  ;;  %v9273_v38 = vpop.permute.xlu1 %3692 }
 0x5d3   :  { %v3043_v53 = vpop.f32.mrf.mxu3 }
 0x5d4   :  { %v3044_v46 = vadd.f32 %v3043_v53, %v10043_v49  ;;  %v10054_v53 = vld [vmem:[#allocation147_spill] sm:$0xff] }
 0x5d5   :  { %3801 = vmatmul.f32.gmra.mxu3 %v3583_v24  ;;  %v3560_v24 = vmax.f32 %v3496_v33, %v3528_v7  ;;  %v3589_v49 = vld [vmem:[%s9674_s5 + $0xd0] sm:$0xff]  ;;  %v3602_v7 = vld [vmem:[%s9674_s5 + $0x138] sm:$0xff]  ;;  %v9262_v33 = vpop.permute.xlu0 %3687 }
 0x5d6   :  { %v3253_v41 = vadd.f32 %v3252_v22, %v3044_v46  ;;  %v3526_v22 = vmax.f32 %v3453_v50, 0.0  ;;  %v3493_v46 = vmax.f32 %v10055_v54, 0.0 }
 0x5d8   :  { %v3462_v21 = vadd.f32 %v3461_v0, %v3253_v41  ;;  %v3494_v0 = vmax.f32 %v10054_v53, 0.0  ;;  %v3557_v36 = vmax.f32 %v3493_v46, %v3525_v61  ;;  %v3556_v41 = vmax.f32 %v3492_v18, %v3524_v1  ;;  %v9286_v61 = vpop.permute.xlu2 %3737 }
 0x5da   :  { %v3529_v44 = vmax.f32 %v3462_v21, 0.0  ;;  %v3558_v4 = vmax.f32 %v3494_v0, %v3526_v22 }
 0x5db   :  { %v3046_v45 = vpop.f32.mrf.mxu3 }
 0x5dc   :  { %v3047_v2 = vadd.f32 %v3046_v45, %v10047_v59  ;;  %v3561_v35 = vmax.f32 %v3497_v37, %v3529_v44  ;;  %v3593_v45 = vld [vmem:[%s9674_s5 + $0xf0] sm:$0xff]  ;;  %v3576_v59 = vld [vmem:[%s9674_s5 + $0x68] sm:$0xff] }
 0x5dd   :  { %3804 = vmatmul.f32.gmra.mxu3 %v3585_v27  ;;  %v3591_v27 = vld [vmem:[%s9674_s5 + $0xe0] sm:$0xff]  ;;  %v9277_v22 = vpop.permute.xlu0 %3742 }
 0x5de   :  { %v3256_v34 = vadd.f32 %v3255_v47, %v3047_v2  ;;  %v3572_v47 = vld [vmem:[%s9674_s5 + $0x48] sm:$0xff]  ;;  %v3609_v2 = vld [vmem:[%s9674_s5 + $0x170] sm:$0xff] }
 0x5e0   :  { %v3465_v42 = vadd.f32 %v3464_v3, %v3256_v34  ;;  %v3578_v3 = vld [vmem:[%s9674_s5 + $0x78] sm:$0xff]  ;;  %v9302_v10 = vpop.permute.xlu2 %3667 }
 0x5e1   :  { %v3586_v34 = vld [vmem:[%s9674_s5 + $0xb8] sm:$0xff] }
 0x5e2   :  { %v3530_v6 = vmax.f32 %v3465_v42, 0.0  ;;  %v3592_v42 = vld [vmem:[%s9674_s5 + $0xe8] sm:$0xff] }
 0x5e4   :  { %v3562_v11 = vmax.f32 %v3498_v5, %v3530_v6  ;;  %v3594_v5 = vld [vmem:[%s9674_s5 + $0xf8] sm:$0xff] }
 0x5e5   :  { %3807 = vmatmul.f32.gmra.mxu3 %v3587_v20  ;;  %v3598_v20 = vld [vmem:[%s9674_s5 + $0x118] sm:$0xff]  ;;  %v9293_v54 = vpop.permute.xlu0 %3672 }
 0x5e6   :  { %3844 = vmatpush.msrb.mxu2 %v3562_v11 }
 0x5e8   :  { %3845 = vmatpush.msrb.mxu2 %v3561_v35 }
 0x5ea   :  { %3846 = vmatpush.msrb.mxu2 %v3560_v24  ;;  %v3606_v24 = vld [vmem:[%s9674_s5 + $0x158] sm:$0xff] }
 0x5ec   :  { %3847 = vmatpush.msrb.mxu2 %v3559_v63  ;;  %v9288_v63 = vpop.permute.xlu1 %3747 }
 0x5ed   :  { %3810 = vmatmul.f32.gmra.mxu3 %v3589_v49  ;;  %v3608_v49 = vld [vmem:[%s9674_s5 + $0x168] sm:$0xff] }
 0x5ee   :  { %3848 = vmatpush.msrb.mxu2 %v3558_v4  ;;  %v3610_v4 = vld [vmem:[%s9674_s5 + $0x178] sm:$0xff] }
 0x5f0   :  { %3849 = vmatpush.msrb.mxu2 %v3557_v36  ;;  %v9306_v36 = vpop.permute.xlu0 %3727 }
 0x5f2   :  { %3850 = vmatpush.msrb.mxu2 %v3556_v41 }
 0x5f4   :  { %3851 = vmatpush.msrb.mxu2 %v9099_v26  ;;  %v3603_v26 = vld [vmem:[%s9674_s5 + $0x140] sm:$0xff]  ;;  %v9304_v18 = vpop.permute.xlu1 %3677 }
 0x5f5   :  { %3813 = vmatmul.f32.gmra.mxu3 %v3591_v27 }
 0x5f6   :  { %3852 = vmatpush.msrb.mxu2 %v9093_v60  ;;  %v3595_v60 = vld [vmem:[%s9674_s5 + $0x100] sm:$0xff] }
 0x5f8   :  { %3853 = vmatpush.msrb.mxu2 %v9082_v40  ;;  %v3570_v40 = vld [vmem:[%s9674_s5 + $0x38] sm:$0xff] }
 0x5fa   :  { %3854 = vmatpush.msrb.mxu2 %v9075_v43  ;;  %v3564_v43 = vld [vmem:[%s9674_s5 + $0x8] sm:$0xff] }
 0x5fc   :  { %3855 = vmatpush.msrb.mxu2 %v9068_v14  ;;  %v3601_v14 = vld [vmem:[%s9674_s5 + $0x130] sm:$0xff] }
 0x5fd   :  { %3816 = vmatmul.f32.gmra.mxu3 %v3593_v45  ;;  %v9312_v45 = vpop.permute.xlu2 %3722 }
 0x5fe   :  { %3856 = vmatpush.msrb.mxu2 %v9061_v28  ;;  %v3597_v28 = vld [vmem:[%s9674_s5 + $0x110] sm:$0xff] }
 0x600   :  { %3857 = vmatpush.msrb.mxu2 %v9050_v12  ;;  %v3599_v12 = vld [vmem:[%s9674_s5 + $0x120] sm:$0xff] }
 0x602   :  { %3858 = vmatpush.msrb.mxu2 %v9041_v19  ;;  %v3566_v19 = vld [vmem:[%s9674_s5 + $0x18] sm:$0xff] }
 0x604   :  { %3859 = vmatpush.msrb.mxu2 %v9034_v48  ;;  %v3568_v48 = vld [vmem:[%s9674_s5 + $0x28] sm:$0xff] }
 0x605   :  { %3819 = vmatmul.f32.gmra.mxu3 %v3595_v60  ;;  %3860 = vmatmul.f32.vlgmr.msrb.gmra.mxu2 %v3564_v43  ;;  %v9314_v60 = vpop.permute.xlu1 %3732  ;;  %v3658_v43 = vpop.permute.xlu0 %3657 }
 0x608   :  { %v9213_v21 = vpop.f32.mrf.mxu3 }
 0x60d   :  { %3822 = vmatmul.f32.gmra.mxu3 %v3597_v28  ;;  %3863 = vmatmul.f32.gmra.mxu2 %v3566_v19 }
 0x610   :  { %v9218_v31 = vpop.f32.mrf.mxu3 }
 0x615   :  { %3825 = vmatmul.f32.gmra.mxu3 %v3599_v12  ;;  %3866 = vmatmul.f32.gmra.mxu2 %v3568_v48  ;;  %v3653_v12 = vpop.permute.xlu2 %3652  ;;  %v9318_v48 = vpop.permute.xlu1 %3662 }
 0x618   :  { %v9223_v58 = vpop.f32.mrf.mxu3 }
 0x61d   :  { %3828 = vmatmul.f32.gmra.mxu3 %v3601_v14  ;;  %3869 = vmatmul.f32.gmra.mxu2 %v3570_v40  ;;  %v3713_v40 = vpop.permute.xlu0 %3712 }
 0x620   :  { %v9231_v57 = vpop.f32.mrf.mxu3 }
 0x625   :  { %3831 = vmatmul.f32.gmra.mxu3 %v3603_v26  ;;  %3872 = vmatmul.f32.gmra.mxu2 %v3572_v47 }
 0x628   :  { %v9236_v13 = vpop.f32.mrf.mxu3 }
 0x62d   :  { %3834 = vmatmul.f32.gmra.mxu3 %v3605_v55  ;;  %3875 = vmatmul.f32.gmra.mxu2 %v3574_v30  ;;  %v3718_v55 = vpop.permute.xlu1 %3717  ;;  %v3708_v30 = vpop.permute.xlu2 %3707 }
 0x630   :  { %v9241_v44 = vpop.f32.mrf.mxu3 }
 0x635   :  { %3837 = vmatmul.f32.gmra.mxu3 %v3607_v25  ;;  %3878 = vmatmul.f32.gmra.mxu2 %v3576_v59  ;;  %v3643_v25 = vpop.permute.xlu0 %3642 }
 0x638   :  { %v9248_v37 = vpop.f32.mrf.mxu3 }
 0x63d   :  { %3840 = vmatmul.f32.gmra.mxu3 %v3609_v2  ;;  %3881 = vmatmul.f32.gmra.mxu2 %v3578_v3  ;;  %v3648_v3 = vpop.permute.xlu1 %3647 }
 0x640   :  { %v9258_v11 = vpop.f32.mrf.mxu3 }
 0x645   :  { %3884 = vmatmul.f32.gmra.mxu2 %v3580_v62  ;;  %v3638_v62 = vpop.permute.xlu2 %3637 }
 0x648   :  { %v9269_v35 = vpop.f32.mrf.mxu3 }
 0x64d   :  { %3887 = vmatmul.f32.gmra.mxu2 %v3582_v15  ;;  %v3773_v15 = vadd.f32 %v9213_v21, %v3638_v62 }
 0x650   :  { %v9282_v53 = vpop.f32.mrf.mxu3 }
 0x655   :  { %3890 = vmatmul.f32.gmra.mxu2 %v3584_v17  ;;  %v3698_v17 = vpop.permute.xlu0 %3697 }
 0x658   :  { %v9297_v1 = vpop.f32.mrf.mxu3 }
 0x65d   :  { %3893 = vmatmul.f32.gmra.mxu2 %v3586_v34 }
 0x660   :  { %v9310_v27 = vpop.f32.mrf.mxu3 }
 0x665   :  { %3896 = vmatmul.f32.gmra.mxu2 %v3588_v56 }
 0x668   :  { %v3808_v19 = vpop.f32.mrf.mxu3 }
 0x669   :  { %v3809_v34 = vadd.f32 %v3808_v19, %v3698_v17  ;;  %v3779_v19 = vadd.f32 %v9223_v58, %v3648_v3 }
 0x66d   :  { %3899 = vmatmul.f32.gmra.mxu2 %v3590_v29 }
 0x670   :  { %v3811_v26 = vpop.f32.mrf.mxu3 }
 0x675   :  { %3902 = vmatmul.f32.gmra.mxu2 %v3592_v42 }
 0x678   :  { %v3814_v2 = vpop.f32.mrf.mxu3 }
 0x67d   :  { %3905 = vmatmul.f32.gmra.mxu2 %v3594_v5 }
 0x685   :  { %3908 = vmatmul.f32.gmra.mxu2 %v3596_v8 }
 0x688   :  { %v3861_v6 = vpop.f32.mrf.mxu2 }
 0x689   :  { %v3862_v56 = vadd.f32 %v3861_v6, %v3773_v15  ;;  %v3815_v15 = vadd.f32 %v3814_v2, %v3708_v30  ;;  %v3785_v30 = vadd.f32 %v9236_v13, %v3658_v43 }
 0x68b   :  { %v3933_v5 = vmax.f32 %v3862_v56, 0.0 }
 0x68d   :  { %3911 = vmatmul.f32.gmra.mxu2 %v3598_v20  ;;  %v3817_v20 = vpop.f32.mrf.mxu3 }
 0x690   :  { %v9246_v32 = vpop.f32.mrf.mxu2 }
 0x695   :  { %3914 = vmatmul.f32.gmra.mxu2 %v3600_v23  ;;  %v3776_v23 = vadd.f32 %v9218_v31, %v3643_v25  ;;  %v3820_v62 = vpop.f32.mrf.mxu3 }
 0x698   :  { %v9253_v50 = vpop.f32.mrf.mxu2 }
 0x699   :  { %v3868_v17 = vadd.f32 %v9253_v50, %v3779_v19  ;;  %v3821_v50 = vadd.f32 %v3820_v62, %v3718_v55 }
 0x69b   :  { %v3935_v25 = vmax.f32 %v3868_v17, 0.0 }
 0x69d   :  { %3917 = vmatmul.f32.gmra.mxu2 %v3602_v7 }
 0x6a0   :  { %v9264_v39 = vpop.f32.mrf.mxu2 }
 0x6a5   :  { %3920 = vmatmul.f32.gmra.mxu2 %v3604_v51  ;;  %v3703_v51 = vpop.permute.xlu1 %3702 }
 0x6a8   :  { %v9275_v9 = vpop.f32.mrf.mxu2 }
 0x6ad   :  { %3923 = vmatmul.f32.gmra.mxu2 %v3606_v24  ;;  %v3812_v24 = vadd.f32 %v3811_v26, %v3703_v51  ;;  %v3782_v26 = vadd.f32 %v9231_v57, %v3653_v12 }
 0x6b0   :  { %v9284_v0 = vpop.f32.mrf.mxu2 }
 0x6b1   :  { %10057 = vst [vmem:[#allocation150_spill] sm:$0xff] %v9284_v0 }
 0x6b5   :  { %3926 = vmatmul.f32.gmra.mxu2 %v3608_v49  ;;  %v3865_v49 = vadd.f32 %v9246_v32, %v3776_v23  ;;  %v3818_v32 = vadd.f32 %v3817_v20, %v3713_v40 }
 0x6b8   :  { %v9295_v46 = vpop.f32.mrf.mxu2 }
 0x6b9   :  { %10058 = vst [vmem:[#allocation105_spill] sm:$0xff] %v9295_v46  ;;  %v3934_v46 = vmax.f32 %v3865_v49, 0.0 }
 0x6bd   :  { %3929 = vmatmul.f32.gmra.mxu2 %v3610_v4 }
 0x6c0   :  { %v9308_v41 = vpop.f32.mrf.mxu2 }
 0x6c8   :  { %v9316_v28 = vpop.f32.mrf.mxu2 }
 0x6d0   :  { %v9320_v14 = vpop.f32.mrf.mxu2 }
 0x6d8   :  { %v9322_v47 = vpop.f32.mrf.mxu2 }
 0x6e0   :  { %v9324_v59 = vpop.f32.mrf.mxu2 }
 0x6e8   :  { %v3897_v29 = vpop.f32.mrf.mxu2 }
 0x6e9   :  { %v3898_v42 = vadd.f32 %v3897_v29, %v3809_v34 }
 0x6eb   :  { %v3945_v8 = vmax.f32 %v3898_v42, 0.0  ;;  %v3871_v42 = vadd.f32 %v9264_v39, %v3782_v26 }
 0x6ed   :  { %v9328_v7 = vmax.f32 %v3933_v5, %v3945_v8  ;;  %v3874_v8 = vadd.f32 %v9275_v9, %v3785_v30  ;;  %v3806_v9 = vadd.f32 %v9310_v27, %v9273_v38 }
 0x6ef   :  { %v3937_v12 = vmax.f32 %v3874_v8, 0.0 }
 0x6f0   :  { %v3900_v4 = vpop.f32.mrf.mxu2 }
 0x6f1   :  { %v3901_v0 = vadd.f32 %v3900_v4, %v3812_v24 }
 0x6f3   :  { %v3946_v21 = vmax.f32 %v3901_v0, 0.0  ;;  %v3823_v0 = vpop.f32.mrf.mxu3 }
 0x6f5   :  { %v9332_v6 = vmax.f32 %v3934_v46, %v3946_v21  ;;  %v3936_v46 = vmax.f32 %v3871_v42, 0.0 }
 0x6f8   :  { %v3903_v34 = vpop.f32.mrf.mxu2 }
 0x6f9   :  { %v3904_v31 = vadd.f32 %v3903_v34, %v3815_v15  ;;  %v3803_v34 = vadd.f32 %v9297_v1, %v9262_v33  ;;  %v3797_v33 = vadd.f32 %v9269_v35, %v9304_v18  ;;  %v3791_v35 = vadd.f32 %v9248_v37, %v9302_v10  ;;  %v10060_v37 = vld [vmem:[#allocation150_spill] sm:$0xff] }
 0x6fa   :  { %v3824_v18 = vadd.f32 %v3823_v0, %v9312_v45 }
 0x6fb   :  { %v3947_v56 = vmax.f32 %v3904_v31, 0.0  ;;  %v3826_v57 = vpop.f32.mrf.mxu3  ;;  %v3892_v38 = vadd.f32 %v9322_v47, %v3803_v34  ;;  %v4023_v34 = vpop.permute.xlu1 %4022 }
 0x6fd   :  { %v9336_v29 = vmax.f32 %v3935_v25, %v3947_v56  ;;  %v3895_v56 = vadd.f32 %v9324_v59, %v3806_v9  ;;  %v3943_v47 = vmax.f32 %v3892_v38, 0.0 }
 0x6ff   :  { %v3944_v1 = vmax.f32 %v3895_v56, 0.0  ;;  %v4013_v56 = vpop.permute.xlu0 %4012 }
 0x700   :  { %v3906_v5 = vpop.f32.mrf.mxu2 }
 0x701   :  { %v3907_v58 = vadd.f32 %v3906_v5, %v3818_v32  ;;  %v3800_v32 = vadd.f32 %v9282_v53, %v9271_v52  ;;  %v3794_v52 = vadd.f32 %v9258_v11, %v9293_v54  ;;  %v3827_v53 = vadd.f32 %v3826_v57, %v9306_v36  ;;  %v10059_v36 = vld [vmem:[#allocation105_spill] sm:$0xff] }
 0x702   :  { %v3788_v54 = vadd.f32 %v9241_v44, %v9318_v48 }
 0x703   :  { %v3948_v3 = vmax.f32 %v3907_v58, 0.0  ;;  %v3829_v20 = vpop.f32.mrf.mxu3 }
 0x704   :  { %v3877_v10 = vadd.f32 %v10060_v37, %v3788_v54  ;;  %v4105_v54 = vld [vmem:[%s9678_s9 + $0x30] sm:$0xff]  ;;  %v4112_v37 = vld [vmem:[%s9678_s9 + $0x68] sm:$0xff] }
 0x705   :  { %v9340_v2 = vmax.f32 %v3936_v46, %v3948_v3 }
 0x708   :  { %v3909_v23 = vpop.f32.mrf.mxu2 }
 0x709   :  { %v3910_v51 = vadd.f32 %v3909_v23, %v3821_v50 }
 0x70b   :  { %v3949_v24 = vmax.f32 %v3910_v51, 0.0  ;;  %v3832_v4 = vpop.f32.mrf.mxu3 }
 0x70c   :  { %v3833_v5 = vadd.f32 %v3832_v4, %v9286_v61  ;;  %v3886_v61 = vadd.f32 %v9316_v28, %v3797_v33  ;;  %v3880_v28 = vadd.f32 %v10059_v36, %v3791_v35  ;;  %v4106_v36 = vld [vmem:[%s9678_s9 + $0x38] sm:$0xff] }
 0x70d   :  { %v9343_v40 = vmax.f32 %v3937_v12, %v3949_v24 }
 0x70e   :  { %v3941_v51 = vmax.f32 %v3886_v61, 0.0 }
 0x710   :  { %v3912_v39 = vpop.f32.mrf.mxu2 }
 0x711   :  { %v3913_v57 = vadd.f32 %v3912_v39, %v3824_v18  ;;  %v3969_v39 = vld [vmem:[%s9676_s7] sm:$0xff] }
 0x712   :  { %v4099_v18 = vld [vmem:[%s9678_s9] sm:$0xff] }
 0x713   :  { %v3835_v19 = vpop.f32.mrf.mxu3 }
 0x714   :  { %v3836_v31 = vadd.f32 %v3835_v19, %v9277_v22  ;;  %v3830_v22 = vadd.f32 %v3829_v20, %v9314_v60  ;;  %v3883_v60 = vadd.f32 %v9308_v41, %v3794_v52  ;;  %v3939_v20 = vmax.f32 %v3880_v28, 0.0  ;;  %v3970_v19 = vld [vmem:[%s9676_s7 + $0x8] sm:$0xff]  ;;  %v4107_v28 = vld [vmem:[%s9678_s9 + $0x40] sm:$0xff] }
 0x716   :  { %v3940_v45 = vmax.f32 %v3883_v60, 0.0  ;;  %v4100_v60 = vld [vmem:[%s9678_s9 + $0x8] sm:$0xff] }
 0x718   :  { %v3915_v49 = vpop.f32.mrf.mxu2 }
 0x719   :  { %v3916_v8 = vadd.f32 %v3915_v49, %v3827_v53  ;;  %v3950_v49 = vmax.f32 %v3913_v57, 0.0  ;;  %v4109_v57 = vld [vmem:[%s9678_s9 + $0x50] sm:$0xff] }
 0x71b   :  { %v3838_v43 = vpop.f32.mrf.mxu3  ;;  %v3951_v0 = vmax.f32 %v3916_v8, 0.0  ;;  %v4102_v8 = vld [vmem:[%s9678_s9 + $0x18] sm:$0xff] }
 0x71c   :  { %v3839_v62 = vadd.f32 %v3838_v43, %v9288_v63 }
 0x71d   :  { %v3963_v44 = vmax.f32 %v3939_v20, %v3951_v0  ;;  %v4115_v0 = vld [vmem:[%s9678_s9 + $0x80] sm:$0xff] }
 0x720   :  { %v3918_v21 = vpop.f32.mrf.mxu2 }
 0x721   :  { %v3919_v3 = vadd.f32 %v3918_v21, %v3830_v22  ;;  %v3938_v21 = vmax.f32 %v3877_v10, 0.0  ;;  %v4113_v10 = vld [vmem:[%s9678_s9 + $0x70] sm:$0xff] }
 0x723   :  { %v3841_v55 = vpop.f32.mrf.mxu3  ;;  %v3952_v12 = vmax.f32 %v3919_v3, 0.0  ;;  %v3962_v48 = vmax.f32 %v3938_v21, %v3950_v49 }
 0x724   :  { %v3842_v25 = vadd.f32 %v3841_v55, %v9260_v16  ;;  %v3889_v16 = vadd.f32 %v9320_v14, %v3800_v32 }
 0x725   :  { %v3964_v4 = vmax.f32 %v3940_v45, %v3952_v12  ;;  %v4110_v12 = vld [vmem:[%s9678_s9 + $0x58] sm:$0xff] }
 0x726   :  { %v3942_v14 = vmax.f32 %v3889_v16, 0.0  ;;  %v4114_v45 = vld [vmem:[%s9678_s9 + $0x78] sm:$0xff] }
 0x728   :  { %v3921_v15 = vpop.f32.mrf.mxu2 }
 0x729   :  { %v3922_v59 = vadd.f32 %v3921_v15, %v3833_v5  ;;  %v3976_v15 = vld [vmem:[%s9676_s7 + $0x38] sm:$0xff] }
 0x72b   :  { %v3953_v23 = vmax.f32 %v3922_v59, 0.0  ;;  %v3998_v59 = vpop.permute.xlu0 %3997 }
 0x72d   :  { %v3965_v41 = vmax.f32 %v3941_v51, %v3953_v23  ;;  %v4103_v23 = vld [vmem:[%s9678_s9 + $0x20] sm:$0xff]  ;;  %v4108_v51 = vld [vmem:[%s9678_s9 + $0x48] sm:$0xff] }
 0x730   :  { %v3924_v13 = vpop.f32.mrf.mxu2 }
 0x731   :  { %v3925_v27 = vadd.f32 %v3924_v13, %v3836_v31  ;;  %v4018_v31 = vpop.permute.xlu2 %4017 }
 0x733   :  { %v3954_v30 = vmax.f32 %v3925_v27, 0.0 }
 0x735   :  { %v3966_v24 = vmax.f32 %v3942_v14, %v3954_v30  ;;  %v4101_v14 = vld [vmem:[%s9678_s9 + $0x10] sm:$0xff] }
 0x738   :  { %v3927_v17 = vpop.f32.mrf.mxu2 }
 0x739   :  { %v3928_v26 = vadd.f32 %v3927_v17, %v3839_v62  ;;  %v4003_v38 = vpop.permute.xlu2 %4002 }
 0x73b   :  { %v3955_v58 = vmax.f32 %v3928_v26, 0.0  ;;  %v4008_v26 = vpop.permute.xlu1 %4007 }
 0x73d   :  { %v3967_v11 = vmax.f32 %v3943_v47, %v3955_v58 }
 0x740   :  { %v3930_v42 = vpop.f32.mrf.mxu2 }
 0x741   :  { %v3931_v63 = vadd.f32 %v3930_v42, %v3842_v25  ;;  %v3988_v47 = vpop.permute.xlu2 %3987 }
 0x743   :  { %v3956_v46 = vmax.f32 %v3931_v63, 0.0  ;;  %v3993_v52 = vpop.permute.xlu1 %3992 }
 0x745   :  { %v3968_v50 = vmax.f32 %v3944_v1, %v3956_v46 }
 0x747   :  { %4054 = vmatpush.msra.mxu2 %v3968_v50 }
 0x749   :  { %4055 = vmatpush.msra.mxu2 %v3967_v11  ;;  %v4104_v11 = vld [vmem:[%s9678_s9 + $0x28] sm:$0xff] }
 0x74b   :  { %4056 = vmatpush.msra.mxu2 %v3966_v24  ;;  %v4111_v24 = vld [vmem:[%s9678_s9 + $0x60] sm:$0xff]  ;;  %v4235_v21 = vpop.permute.xlu1 %4234 }
 0x74d   :  { %4057 = vmatpush.msra.mxu2 %v3965_v41  ;;  %v4230_v41 = vpop.permute.xlu0 %4229 }
 0x74f   :  { %4058 = vmatpush.msra.mxu2 %v3964_v4  ;;  %v4116_v4 = vld [vmem:[%s9678_s9 + $0x88] sm:$0xff] }
 0x751   :  { %4059 = vmatpush.msra.mxu2 %v3963_v44 }
 0x753   :  { %4060 = vmatpush.msra.mxu2 %v3962_v48 }
 0x755   :  { %4061 = vmatpush.msra.mxu2 %v9343_v40  ;;  %v3975_v40 = vld [vmem:[%s9676_s7 + $0x30] sm:$0xff] }
 0x757   :  { %4062 = vmatpush.msra.mxu2 %v9340_v2  ;;  %v3974_v2 = vld [vmem:[%s9676_s7 + $0x28] sm:$0xff] }
 0x759   :  { %4063 = vmatpush.msra.mxu2 %v9336_v29  ;;  %v3971_v29 = vld [vmem:[%s9676_s7 + $0x10] sm:$0xff] }
 0x75b   :  { %4064 = vmatpush.msra.mxu2 %v9332_v6  ;;  %v3972_v6 = vld [vmem:[%s9676_s7 + $0x18] sm:$0xff] }
 0x75d   :  { %4065 = vmatpush.msra.mxu2 %v9328_v7  ;;  %v3973_v7 = vld [vmem:[%s9676_s7 + $0x20] sm:$0xff] }
 0x75e   :  { %5167 = vmatmul.msk.f32.vlgmr.msra.gmra.mxu2 %vm4025_vm2, %v3969_v39  ;;  %v4117_v39 = vld [vmem:[%s9678_s9 + $0x90] sm:$0xff] }
 0x766   :  { %5168 = vmatmul.msk.f32.gmra.mxu2 %vm4025_vm2, %v3970_v19  ;;  %v4240_v19 = vpop.permute.xlu2 %4239 }
 0x76e   :  { %5169 = vmatmul.msk.f32.gmra.mxu2 %vm4025_vm2, %v3971_v29 }
 0x776   :  { %5170 = vmatmul.msk.f32.gmra.mxu2 %vm4025_vm2, %v3972_v6 }
 0x77e   :  { %5171 = vmatmul.msk.f32.gmra.mxu2 %vm4025_vm2, %v3973_v7  ;;  %v4118_v7 = vld [vmem:[%s9678_s9 + $0x98] sm:$0xff] }
 0x786   :  { %5172 = vmatmul.msk.f32.gmra.mxu2 %vm4025_vm2, %v3974_v2  ;;  %v4245_v2 = vpop.permute.xlu0 %4244 }
 0x78e   :  { %5173 = vmatmul.msk.f32.gmra.mxu2 %vm4025_vm2, %v3975_v40 }
 0x796   :  { %5174 = vmatmul.msk.f32.gmra.mxu2 %vm4025_vm2, %v3976_v15 }
 0x7e1   :  { %v4067_v13 = vpop.f32.mrf.mxu2 }
 0x7e2   :  { %v4068_v3 = vadd.f32 %v4067_v13, %v3988_v47  ;;  %v4119_v13 = vld [vmem:[%s9678_s9 + $0xa0] sm:$0xff] }
 0x7e4   :  { %v4091_v35 = vmax.f32 %v4068_v3, 0.0  ;;  %v4126_v3 = vld [vmem:[%s9678_s9 + $0xd8] sm:$0xff] }
 0x7e9   :  { %v4070_v43 = vpop.f32.mrf.mxu2 }
 0x7ea   :  { %v4071_v53 = vadd.f32 %v4070_v43, %v3993_v52  ;;  %v4250_v43 = vpop.permute.xlu1 %4249  ;;  %v4125_v52 = vld [vmem:[%s9678_s9 + $0xd0] sm:$0xff] }
 0x7ec   :  { %v4092_v50 = vmax.f32 %v4071_v53, 0.0 }
 0x7f1   :  { %v4073_v17 = vpop.f32.mrf.mxu2 }
 0x7f2   :  { %v4074_v58 = vadd.f32 %v4073_v17, %v3998_v59 }
 0x7f4   :  { %v4093_v30 = vmax.f32 %v4074_v58, 0.0 }
 0x7f9   :  { %v4076_v55 = vpop.f32.mrf.mxu2 }
 0x7fa   :  { %v4077_v16 = vadd.f32 %v4076_v55, %v4003_v38 }
 0x7fc   :  { %v4094_v61 = vmax.f32 %v4077_v16, 0.0 }
 0x801   :  { %v4079_v9 = vpop.f32.mrf.mxu2 }
 0x802   :  { %v4080_v33 = vadd.f32 %v4079_v9, %v4008_v26  ;;  %v4120_v9 = vld [vmem:[%s9678_s9 + $0xa8] sm:$0xff] }
 0x804   :  { %v4095_v46 = vmax.f32 %v4080_v33, 0.0 }
 0x809   :  { %v4082_v62 = vpop.f32.mrf.mxu2 }
 0x80a   :  { %v4083_v27 = vadd.f32 %v4082_v62, %v4013_v56  ;;  %v4255_v62 = vpop.permute.xlu2 %4254  ;;  %v4260_v56 = vpop.permute.xlu0 %4259 }
 0x80c   :  { %v4096_v1 = vmax.f32 %v4083_v27, 0.0 }
 0x811   :  { %v4085_v25 = vpop.f32.mrf.mxu2 }
 0x812   :  { %v4086_v42 = vadd.f32 %v4085_v25, %v4018_v31  ;;  %v4121_v25 = vld [vmem:[%s9678_s9 + $0xb0] sm:$0xff]  ;;  %v4270_v33 = vpop.permute.xlu2 %4269  ;;  %v4275_v59 = vpop.permute.xlu0 %4274 }
 0x814   :  { %v4097_v22 = vmax.f32 %v4086_v42, 0.0  ;;  %v4122_v42 = vld [vmem:[%s9678_s9 + $0xb8] sm:$0xff] }
 0x819   :  { %v4088_v32 = vpop.f32.mrf.mxu2 }
 0x81a   :  { %v4089_v5 = vadd.f32 %v4088_v32, %v4023_v34 }
 0x81c   :  { %v4098_v63 = vmax.f32 %v4089_v5, 0.0  ;;  %v4265_v5 = vpop.permute.xlu1 %4264 }
 0x81e   :  { %4748 = vmatpush.msrb.mxu2 %v4098_v63  ;;  %v4123_v63 = vld [vmem:[%s9678_s9 + $0xc0] sm:$0xff] }
 0x820   :  { %4749 = vmatpush.msrb.mxu2 %v4097_v22 }
 0x822   :  { %4750 = vmatpush.msrb.mxu2 %v4096_v1  ;;  %v4124_v1 = vld [vmem:[%s9678_s9 + $0xc8] sm:$0xff] }
 0x824   :  { %4751 = vmatpush.msrb.mxu2 %v4095_v46  ;;  %v4280_v53 = vpop.permute.xlu1 %4279 }
 0x826   :  { %4752 = vmatpush.msrb.mxu2 %v4094_v61 }
 0x828   :  { %4753 = vmatpush.msrb.mxu2 %v4093_v30  ;;  %v4285_v30 = vpop.permute.xlu2 %4284 }
 0x82a   :  { %4754 = vmatpush.msrb.mxu2 %v4092_v50 }
 0x82c   :  { %4755 = vmatpush.msrb.mxu2 %v4091_v35 }
 0x82d   :  { %5175 = vmatmul.msk.f32.vlgmr.msrb.gmra.mxu2 %vm4547_vm3, %v4099_v18  ;;  %v4127_v18 = vld [vmem:[%s9678_s9 + $0xe0] sm:$0xff] }
 0x835   :  { %5176 = vmatmul.msk.f32.gmra.mxu2 %vm4547_vm3, %v4100_v60  ;;  %v4290_v60 = vpop.permute.xlu0 %4289 }
 0x83d   :  { %5177 = vmatmul.msk.f32.gmra.mxu2 %vm4547_vm3, %v4101_v14 }
 0x845   :  { %5178 = vmatmul.msk.f32.gmra.mxu2 %vm4547_vm3, %v4102_v8 }
 0x84d   :  { %5179 = vmatmul.msk.f32.gmra.mxu2 %vm4547_vm3, %v4103_v23  ;;  %v4128_v23 = vld [vmem:[%s9678_s9 + $0xe8] sm:$0xff] }
 0x855   :  { %5180 = vmatmul.msk.f32.gmra.mxu2 %vm4547_vm3, %v4104_v11  ;;  %v4295_v11 = vpop.permute.xlu1 %4294 }
 0x85d   :  { %5181 = vmatmul.msk.f32.gmra.mxu2 %vm4547_vm3, %v4105_v54 }
 0x865   :  { %5182 = vmatmul.msk.f32.gmra.mxu2 %vm4547_vm3, %v4106_v36 }
 0x86d   :  { %5183 = vmatmul.msk.f32.gmra.mxu2 %vm4547_vm3, %v4107_v28  ;;  %v4129_v28 = vld [vmem:[%s9678_s9 + $0xf0] sm:$0xff] }
 0x875   :  { %5184 = vmatmul.msk.f32.gmra.mxu2 %vm4547_vm3, %v4108_v51  ;;  %v4300_v51 = vpop.permute.xlu2 %4299 }
 0x87d   :  { %5185 = vmatmul.msk.f32.gmra.mxu2 %vm4547_vm3, %v4109_v57 }
 0x885   :  { %5186 = vmatmul.msk.f32.gmra.mxu2 %vm4547_vm3, %v4110_v12 }
 0x88d   :  { %5187 = vmatmul.msk.f32.gmra.mxu2 %vm4547_vm3, %v4111_v24  ;;  %v4130_v24 = vld [vmem:[%s9678_s9 + $0xf8] sm:$0xff] }
 0x895   :  { %5188 = vmatmul.msk.f32.gmra.mxu2 %vm4547_vm3, %v4112_v37  ;;  %v4305_v37 = vpop.permute.xlu0 %4304 }
 0x89d   :  { %5189 = vmatmul.msk.f32.gmra.mxu2 %vm4547_vm3, %v4113_v10 }
 0x8a5   :  { %5190 = vmatmul.msk.f32.gmra.mxu2 %vm4547_vm3, %v4114_v45 }
 0x8ad   :  { %5191 = vmatmul.msk.f32.gmra.mxu2 %vm4547_vm3, %v4115_v0  ;;  %v4131_v0 = vld [vmem:[%s9678_s9 + $0x100] sm:$0xff] }
 0x8b0   :  { %v4757_v20 = vpop.f32.mrf.mxu2 }
 0x8b1   :  { %v4758_v49 = vadd.f32 %v4757_v20, %v4230_v41  ;;  %v4310_v41 = vpop.permute.xlu1 %4309 }
 0x8b3   :  { %4949 = vst [vmem:[#allocation2] sm:$0xff] %v4758_v49 }
 0x8b5   :  { %5192 = vmatmul.msk.f32.gmra.mxu2 %vm4547_vm3, %v4116_v4  ;;  %v4132_v4 = vld [vmem:[%s9678_s9 + $0x108] sm:$0xff] }
 0x8b8   :  { %v4760_v44 = vpop.f32.mrf.mxu2 }
 0x8b9   :  { %v4761_v48 = vadd.f32 %v4760_v44, %v4235_v21  ;;  %v4315_v21 = vpop.permute.xlu2 %4314 }
 0x8bb   :  { %4950 = vst [vmem:[#allocation2 + $0x8] sm:$0xff] %v4761_v48 }
 0x8bd   :  { %5193 = vmatmul.msk.f32.gmra.mxu2 %vm4547_vm3, %v4117_v39  ;;  %v4133_v39 = vld [vmem:[%s9678_s9 + $0x110] sm:$0xff] }
 0x8c0   :  { %v4763_v29 = vpop.f32.mrf.mxu2 }
 0x8c1   :  { %v4764_v6 = vadd.f32 %v4763_v29, %v4240_v19  ;;  %v4320_v19 = vpop.permute.xlu0 %4319 }
 0x8c3   :  { %4951 = vst [vmem:[#allocation2 + $0x10] sm:$0xff] %v4764_v6 }
 0x8c5   :  { %5194 = vmatmul.msk.f32.gmra.mxu2 %vm4547_vm3, %v4118_v7  ;;  %v4134_v7 = vld [vmem:[%s9678_s9 + $0x118] sm:$0xff] }
 0x8c8   :  { %v4766_v40 = vpop.f32.mrf.mxu2 }
 0x8c9   :  { %v4767_v15 = vadd.f32 %v4766_v40, %v4245_v2  ;;  %v4325_v2 = vpop.permute.xlu1 %4324 }
 0x8cb   :  { %4952 = vst [vmem:[#allocation2 + $0x18] sm:$0xff] %v4767_v15 }
 0x8cd   :  { %5195 = vmatmul.msk.f32.gmra.mxu2 %vm4547_vm3, %v4119_v13  ;;  %v4135_v13 = vld [vmem:[%s9678_s9 + $0x120] sm:$0xff] }
 0x8d0   :  { %v4769_v17 = vpop.f32.mrf.mxu2 }
 0x8d1   :  { %v4770_v55 = vadd.f32 %v4769_v17, %v4250_v43  ;;  %v4330_v43 = vpop.permute.xlu2 %4329 }
 0x8d3   :  { %4953 = vst [vmem:[#allocation2 + $0x20] sm:$0xff] %v4770_v55 }
 0x8d5   :  { %5196 = vmatmul.msk.f32.gmra.mxu2 %vm4547_vm3, %v4120_v9  ;;  %v4136_v9 = vld [vmem:[%s9678_s9 + $0x128] sm:$0xff] }
 0x8d8   :  { %v4772_v34 = vpop.f32.mrf.mxu2 }
 0x8d9   :  { %v4773_v31 = vadd.f32 %v4772_v34, %v4255_v62  ;;  %v4335_v62 = vpop.permute.xlu0 %4334 }
 0x8db   :  { %4954 = vst [vmem:[#allocation2 + $0x28] sm:$0xff] %v4773_v31 }
 0x8dd   :  { %5197 = vmatmul.msk.f32.gmra.mxu2 %vm4547_vm3, %v4121_v25  ;;  %v4137_v25 = vld [vmem:[%s9678_s9 + $0x130] sm:$0xff] }
 0x8e0   :  { %v4775_v26 = vpop.f32.mrf.mxu2 }
 0x8e1   :  { %v4776_v32 = vadd.f32 %v4775_v26, %v4260_v56  ;;  %v4340_v56 = vpop.permute.xlu1 %4339 }
 0x8e3   :  { %4955 = vst [vmem:[#allocation2 + $0x30] sm:$0xff] %v4776_v32 }
 0x8e5   :  { %5198 = vmatmul.msk.f32.gmra.mxu2 %vm4547_vm3, %v4122_v42  ;;  %v4138_v42 = vld [vmem:[%s9678_s9 + $0x138] sm:$0xff] }
 0x8e8   :  { %v4778_v38 = vpop.f32.mrf.mxu2 }
 0x8e9   :  { %v4779_v27 = vadd.f32 %v4778_v38, %v4265_v5  ;;  %v4345_v5 = vpop.permute.xlu2 %4344 }
 0x8eb   :  { %4956 = vst [vmem:[#allocation2 + $0x38] sm:$0xff] %v4779_v27 }
 0x8ed   :  { %5199 = vmatmul.msk.f32.gmra.mxu2 %vm4547_vm3, %v4123_v63  ;;  %v4139_v63 = vld [vmem:[%s9678_s9 + $0x140] sm:$0xff] }
 0x8f0   :  { %v4781_v22 = vpop.f32.mrf.mxu2 }
 0x8f1   :  { %v4782_v16 = vadd.f32 %v4781_v22, %v4270_v33  ;;  %v4350_v33 = vpop.permute.xlu0 %4349 }
 0x8f3   :  { %4957 = vst [vmem:[#allocation2 + $0x40] sm:$0xff] %v4782_v16 }
 0x8f5   :  { %5200 = vmatmul.msk.f32.gmra.mxu2 %vm4547_vm3, %v4124_v1  ;;  %v4140_v1 = vld [vmem:[%s9678_s9 + $0x148] sm:$0xff] }
 0x8f8   :  { %v4784_v58 = vpop.f32.mrf.mxu2 }
 0x8f9   :  { %v4785_v46 = vadd.f32 %v4784_v58, %v4275_v59  ;;  %v4355_v59 = vpop.permute.xlu1 %4354 }
 0x8fb   :  { %4958 = vst [vmem:[#allocation2 + $0x48] sm:$0xff] %v4785_v46 }
 0x8fd   :  { %5201 = vmatmul.msk.f32.gmra.mxu2 %vm4547_vm3, %v4125_v52  ;;  %v4141_v52 = vld [vmem:[%s9678_s9 + $0x150] sm:$0xff] }
 0x900   :  { %v4787_v61 = vpop.f32.mrf.mxu2 }
 0x901   :  { %v4788_v47 = vadd.f32 %v4787_v61, %v4280_v53  ;;  %v4360_v53 = vpop.permute.xlu2 %4359 }
 0x903   :  { %4959 = vst [vmem:[#allocation2 + $0x50] sm:$0xff] %v4788_v47 }
 0x905   :  { %5202 = vmatmul.msk.f32.gmra.mxu2 %vm4547_vm3, %v4126_v3  ;;  %v4142_v3 = vld [vmem:[%s9678_s9 + $0x158] sm:$0xff] }
 0x908   :  { %v4790_v50 = vpop.f32.mrf.mxu2 }
 0x909   :  { %v4791_v35 = vadd.f32 %v4790_v50, %v4285_v30  ;;  %v4365_v30 = vpop.permute.xlu0 %4364 }
 0x90b   :  { %4960 = vst [vmem:[#allocation2 + $0x58] sm:$0xff] %v4791_v35 }
 0x90d   :  { %5203 = vmatmul.msk.f32.gmra.mxu2 %vm4547_vm3, %v4127_v18  ;;  %v4143_v18 = vld [vmem:[%s9678_s9 + $0x160] sm:$0xff] }
 0x910   :  { %v4793_v14 = vpop.f32.mrf.mxu2 }
 0x911   :  { %v4794_v8 = vadd.f32 %v4793_v14, %v4290_v60  ;;  %v4370_v60 = vpop.permute.xlu1 %4369 }
 0x913   :  { %4961 = vst [vmem:[#allocation2 + $0x60] sm:$0xff] %v4794_v8 }
 0x915   :  { %5204 = vmatmul.msk.f32.gmra.mxu2 %vm4547_vm3, %v4128_v23  ;;  %v4144_v23 = vld [vmem:[%s9678_s9 + $0x168] sm:$0xff] }
 0x918   :  { %v4796_v54 = vpop.f32.mrf.mxu2 }
 0x919   :  { %v4797_v36 = vadd.f32 %v4796_v54, %v4295_v11  ;;  %v4375_v11 = vpop.permute.xlu2 %4374 }
 0x91b   :  { %4962 = vst [vmem:[#allocation2 + $0x68] sm:$0xff] %v4797_v36 }
 0x91d   :  { %5205 = vmatmul.msk.f32.gmra.mxu2 %vm4547_vm3, %v4129_v28  ;;  %v4145_v28 = vld [vmem:[%s9678_s9 + $0x170] sm:$0xff] }
 0x920   :  { %v4799_v57 = vpop.f32.mrf.mxu2 }
 0x921   :  { %v4800_v12 = vadd.f32 %v4799_v57, %v4300_v51  ;;  %v4380_v51 = vpop.permute.xlu0 %4379 }
 0x923   :  { %4963 = vst [vmem:[#allocation2 + $0x70] sm:$0xff] %v4800_v12 }
 0x925   :  { %5206 = vmatmul.msk.f32.gmra.mxu2 %vm4547_vm3, %v4130_v24  ;;  %v4146_v24 = vld [vmem:[%s9678_s9 + $0x178] sm:$0xff] }
 0x928   :  { %v4802_v10 = vpop.f32.mrf.mxu2 }
 0x929   :  { %v4803_v45 = vadd.f32 %v4802_v10, %v4305_v37  ;;  %v4385_v37 = vpop.permute.xlu1 %4384 }
 0x92b   :  { %4964 = vst [vmem:[#allocation2 + $0x78] sm:$0xff] %v4803_v45 }
 0x92d   :  { %5207 = vmatmul.msk.f32.gmra.mxu2 %vm4547_vm3, %v4131_v0  ;;  %v4147_v0 = vld [vmem:[%s9678_s9 + $0x180] sm:$0xff] }
 0x930   :  { %v4805_v20 = vpop.f32.mrf.mxu2 }
 0x931   :  { %v4806_v49 = vadd.f32 %v4805_v20, %v4310_v41  ;;  %v4390_v41 = vpop.permute.xlu2 %4389 }
 0x933   :  { %4965 = vst [vmem:[#allocation2 + $0x80] sm:$0xff] %v4806_v49 }
 0x935   :  { %5208 = vmatmul.msk.f32.gmra.mxu2 %vm4547_vm3, %v4132_v4  ;;  %v4148_v4 = vld [vmem:[%s9678_s9 + $0x188] sm:$0xff] }
 0x938   :  { %v4808_v44 = vpop.f32.mrf.mxu2 }
 0x939   :  { %v4809_v48 = vadd.f32 %v4808_v44, %v4315_v21  ;;  %v4395_v21 = vpop.permute.xlu0 %4394 }
 0x93b   :  { %4966 = vst [vmem:[#allocation2 + $0x88] sm:$0xff] %v4809_v48 }
 0x93d   :  { %5209 = vmatmul.msk.f32.gmra.mxu2 %vm4547_vm3, %v4133_v39  ;;  %v4149_v39 = vld [vmem:[%s9678_s9 + $0x190] sm:$0xff] }
 0x940   :  { %v4811_v29 = vpop.f32.mrf.mxu2 }
 0x941   :  { %v4812_v6 = vadd.f32 %v4811_v29, %v4320_v19  ;;  %v4400_v19 = vpop.permute.xlu1 %4399 }
 0x943   :  { %4967 = vst [vmem:[#allocation2 + $0x90] sm:$0xff] %v4812_v6 }
 0x945   :  { %5210 = vmatmul.msk.f32.gmra.mxu2 %vm4547_vm3, %v4134_v7  ;;  %v4150_v7 = vld [vmem:[%s9678_s9 + $0x198] sm:$0xff] }
 0x948   :  { %v4814_v40 = vpop.f32.mrf.mxu2 }
 0x949   :  { %v4815_v15 = vadd.f32 %v4814_v40, %v4325_v2  ;;  %v4405_v2 = vpop.permute.xlu2 %4404 }
 0x94b   :  { %4968 = vst [vmem:[#allocation2 + $0x98] sm:$0xff] %v4815_v15 }
 0x94d   :  { %5211 = vmatmul.msk.f32.gmra.mxu2 %vm4547_vm3, %v4135_v13  ;;  %v4151_v13 = vld [vmem:[%s9678_s9 + $0x1a0] sm:$0xff] }
 0x950   :  { %v4817_v17 = vpop.f32.mrf.mxu2 }
 0x951   :  { %v4818_v55 = vadd.f32 %v4817_v17, %v4330_v43  ;;  %v4410_v43 = vpop.permute.xlu0 %4409 }
 0x953   :  { %4969 = vst [vmem:[#allocation2 + $0xa0] sm:$0xff] %v4818_v55 }
 0x955   :  { %5212 = vmatmul.msk.f32.gmra.mxu2 %vm4547_vm3, %v4136_v9  ;;  %v4152_v9 = vld [vmem:[%s9678_s9 + $0x1a8] sm:$0xff] }
 0x958   :  { %v4820_v34 = vpop.f32.mrf.mxu2 }
 0x959   :  { %v4821_v31 = vadd.f32 %v4820_v34, %v4335_v62  ;;  %v4415_v62 = vpop.permute.xlu1 %4414 }
 0x95b   :  { %4970 = vst [vmem:[#allocation2 + $0xa8] sm:$0xff] %v4821_v31 }
 0x95d   :  { %5213 = vmatmul.msk.f32.gmra.mxu2 %vm4547_vm3, %v4137_v25  ;;  %v4153_v25 = vld [vmem:[%s9678_s9 + $0x1b0] sm:$0xff] }
 0x960   :  { %v4823_v26 = vpop.f32.mrf.mxu2 }
 0x961   :  { %v4824_v32 = vadd.f32 %v4823_v26, %v4340_v56  ;;  %v4420_v56 = vpop.permute.xlu2 %4419 }
 0x963   :  { %4971 = vst [vmem:[#allocation2 + $0xb0] sm:$0xff] %v4824_v32 }
 0x965   :  { %5214 = vmatmul.msk.f32.gmra.mxu2 %vm4547_vm3, %v4138_v42  ;;  %v4154_v42 = vld [vmem:[%s9678_s9 + $0x1b8] sm:$0xff] }
 0x968   :  { %v4826_v38 = vpop.f32.mrf.mxu2 }
 0x969   :  { %v4827_v27 = vadd.f32 %v4826_v38, %v4345_v5  ;;  %v4425_v5 = vpop.permute.xlu0 %4424 }
 0x96b   :  { %4972 = vst [vmem:[#allocation2 + $0xb8] sm:$0xff] %v4827_v27 }
 0x96d   :  { %5215 = vmatmul.msk.f32.gmra.mxu2 %vm4547_vm3, %v4139_v63  ;;  %v4155_v63 = vld [vmem:[%s9678_s9 + $0x1c0] sm:$0xff] }
 0x970   :  { %v4829_v22 = vpop.f32.mrf.mxu2 }
 0x971   :  { %v4830_v16 = vadd.f32 %v4829_v22, %v4350_v33  ;;  %v4430_v33 = vpop.permute.xlu1 %4429 }
 0x973   :  { %4973 = vst [vmem:[#allocation2 + $0xc0] sm:$0xff] %v4830_v16 }
 0x975   :  { %5216 = vmatmul.msk.f32.gmra.mxu2 %vm4547_vm3, %v4140_v1  ;;  %v4156_v1 = vld [vmem:[%s9678_s9 + $0x1c8] sm:$0xff] }
 0x978   :  { %v4832_v58 = vpop.f32.mrf.mxu2 }
 0x979   :  { %v4833_v46 = vadd.f32 %v4832_v58, %v4355_v59  ;;  %v4435_v59 = vpop.permute.xlu2 %4434 }
 0x97b   :  { %4974 = vst [vmem:[#allocation2 + $0xc8] sm:$0xff] %v4833_v46 }
 0x97d   :  { %5217 = vmatmul.msk.f32.gmra.mxu2 %vm4547_vm3, %v4141_v52  ;;  %v4157_v52 = vld [vmem:[%s9678_s9 + $0x1d0] sm:$0xff] }
 0x980   :  { %v4835_v61 = vpop.f32.mrf.mxu2 }
 0x981   :  { %v4836_v47 = vadd.f32 %v4835_v61, %v4360_v53  ;;  %v4440_v53 = vpop.permute.xlu0 %4439 }
 0x983   :  { %4975 = vst [vmem:[#allocation2 + $0xd0] sm:$0xff] %v4836_v47 }
 0x985   :  { %5218 = vmatmul.msk.f32.gmra.mxu2 %vm4547_vm3, %v4142_v3  ;;  %v4158_v3 = vld [vmem:[%s9678_s9 + $0x1d8] sm:$0xff] }
 0x988   :  { %v4838_v50 = vpop.f32.mrf.mxu2 }
 0x989   :  { %v4839_v35 = vadd.f32 %v4838_v50, %v4365_v30  ;;  %v4445_v30 = vpop.permute.xlu1 %4444 }
 0x98b   :  { %4976 = vst [vmem:[#allocation2 + $0xd8] sm:$0xff] %v4839_v35 }
 0x98d   :  { %5219 = vmatmul.msk.f32.gmra.mxu2 %vm4547_vm3, %v4143_v18  ;;  %v4159_v18 = vld [vmem:[%s9678_s9 + $0x1e0] sm:$0xff] }
 0x990   :  { %v4841_v14 = vpop.f32.mrf.mxu2 }
 0x991   :  { %v4842_v8 = vadd.f32 %v4841_v14, %v4370_v60  ;;  %v4450_v60 = vpop.permute.xlu2 %4449 }
 0x993   :  { %4977 = vst [vmem:[#allocation2 + $0xe0] sm:$0xff] %v4842_v8 }
 0x995   :  { %5220 = vmatmul.msk.f32.gmra.mxu2 %vm4547_vm3, %v4144_v23  ;;  %v4160_v23 = vld [vmem:[%s9678_s9 + $0x1e8] sm:$0xff] }
 0x998   :  { %v4844_v54 = vpop.f32.mrf.mxu2 }
 0x999   :  { %v4845_v36 = vadd.f32 %v4844_v54, %v4375_v11  ;;  %v4455_v11 = vpop.permute.xlu0 %4454 }
 0x99b   :  { %4978 = vst [vmem:[#allocation2 + $0xe8] sm:$0xff] %v4845_v36 }
 0x99d   :  { %5221 = vmatmul.msk.f32.gmra.mxu2 %vm4547_vm3, %v4145_v28  ;;  %v4161_v28 = vld [vmem:[%s9678_s9 + $0x1f0] sm:$0xff] }
 0x9a0   :  { %v4847_v57 = vpop.f32.mrf.mxu2 }
 0x9a1   :  { %v4848_v12 = vadd.f32 %v4847_v57, %v4380_v51  ;;  %v4460_v51 = vpop.permute.xlu1 %4459 }
 0x9a3   :  { %4979 = vst [vmem:[#allocation2 + $0xf0] sm:$0xff] %v4848_v12 }
 0x9a5   :  { %5222 = vmatmul.msk.f32.gmra.mxu2 %vm4547_vm3, %v4146_v24  ;;  %v4162_v24 = vld [vmem:[%s9678_s9 + $0x1f8] sm:$0xff]  ;;  %s5312_s9 = smov [#allocation2]  }
 0x9a6   :  { %s5017_s20 = sshll.u32 %s5312_s9, 4  ;;  %s5018_s20 = int_to_ptr.vmem [resolvable:$true] %s5017_s20 }
 0x9a8   :  { %v4850_v10 = vpop.f32.mrf.mxu2 }
 0x9a9   :  { %v4851_v45 = vadd.f32 %v4850_v10, %v4385_v37  ;;  %v4465_v37 = vpop.permute.xlu2 %4464 }
 0x9ab   :  { %4980 = vst [vmem:[#allocation2 + $0xf8] sm:$0xff] %v4851_v45 }
 0x9ad   :  { %5223 = vmatmul.msk.f32.gmra.mxu2 %vm4547_vm3, %v4147_v0  ;;  %v4470_v0 = vpop.permute.xlu0 %4469 }
 0x9b0   :  { %v4853_v20 = vpop.f32.mrf.mxu2 }
 0x9b1   :  { %v4854_v49 = vadd.f32 %v4853_v20, %v4390_v41 }
 0x9b3   :  { %4981 = vst [vmem:[#allocation2 + $0x100] sm:$0xff] %v4854_v49  ;;  %v4475_v49 = vpop.permute.xlu1 %4474 }
 0x9b5   :  { %5224 = vmatmul.msk.f32.gmra.mxu2 %vm4547_vm3, %v4148_v4 }
 0x9b8   :  { %v4856_v44 = vpop.f32.mrf.mxu2 }
 0x9b9   :  { %v4857_v48 = vadd.f32 %v4856_v44, %v4395_v21  ;;  %v4480_v44 = vpop.permute.xlu2 %4479 }
 0x9bb   :  { %4982 = vst [vmem:[#allocation2 + $0x108] sm:$0xff] %v4857_v48 }
 0x9bd   :  { %5225 = vmatmul.msk.f32.gmra.mxu2 %vm4547_vm3, %v4149_v39 }
 0x9c0   :  { %v4859_v29 = vpop.f32.mrf.mxu2 }
 0x9c1   :  { %v4860_v6 = vadd.f32 %v4859_v29, %v4400_v19  ;;  %v4485_v19 = vpop.permute.xlu0 %4484 }
 0x9c3   :  { %4983 = vst [vmem:[#allocation2 + $0x110] sm:$0xff] %v4860_v6 }
 0x9c5   :  { %5226 = vmatmul.msk.f32.gmra.mxu2 %vm4547_vm3, %v4150_v7  ;;  %v4490_v7 = vpop.permute.xlu1 %4489 }
 0x9c8   :  { %v4862_v40 = vpop.f32.mrf.mxu2 }
 0x9c9   :  { %v4863_v15 = vadd.f32 %v4862_v40, %v4405_v2 }
 0x9cb   :  { %4984 = vst [vmem:[#allocation2 + $0x118] sm:$0xff] %v4863_v15  ;;  %v4495_v15 = vpop.permute.xlu2 %4494 }
 0x9cd   :  { %5227 = vmatmul.msk.f32.gmra.mxu2 %vm4547_vm3, %v4151_v13 }
 0x9d0   :  { %v4865_v17 = vpop.f32.mrf.mxu2 }
 0x9d1   :  { %v4866_v55 = vadd.f32 %v4865_v17, %v4410_v43  ;;  %v4500_v17 = vpop.permute.xlu0 %4499 }
 0x9d3   :  { %4985 = vst [vmem:[#allocation2 + $0x120] sm:$0xff] %v4866_v55 }
 0x9d5   :  { %5228 = vmatmul.msk.f32.gmra.mxu2 %vm4547_vm3, %v4152_v9 }
 0x9d8   :  { %v4868_v34 = vpop.f32.mrf.mxu2 }
 0x9d9   :  { %v4869_v31 = vadd.f32 %v4868_v34, %v4415_v62  ;;  %v4505_v62 = vpop.permute.xlu1 %4504 }
 0x9db   :  { %4986 = vst [vmem:[#allocation2 + $0x128] sm:$0xff] %v4869_v31 }
 0x9dd   :  { %5229 = vmatmul.msk.f32.gmra.mxu2 %vm4547_vm3, %v4153_v25  ;;  %v4510_v25 = vpop.permute.xlu2 %4509 }
 0x9e0   :  { %v4871_v26 = vpop.f32.mrf.mxu2 }
 0x9e1   :  { %v4872_v32 = vadd.f32 %v4871_v26, %v4420_v56 }
 0x9e3   :  { %4987 = vst [vmem:[#allocation2 + $0x130] sm:$0xff] %v4872_v32  ;;  %v4515_v32 = vpop.permute.xlu0 %4514 }
 0x9e5   :  { %5230 = vmatmul.msk.f32.gmra.mxu2 %vm4547_vm3, %v4154_v42 }
 0x9e8   :  { %v4874_v38 = vpop.f32.mrf.mxu2 }
 0x9e9   :  { %v4875_v27 = vadd.f32 %v4874_v38, %v4425_v5  ;;  %v4520_v38 = vpop.permute.xlu1 %4519 }
 0x9eb   :  { %4988 = vst [vmem:[#allocation2 + $0x138] sm:$0xff] %v4875_v27 }
 0x9ed   :  { %5231 = vmatmul.msk.f32.gmra.mxu2 %vm4547_vm3, %v4155_v63 }
 0x9f0   :  { %v4877_v22 = vpop.f32.mrf.mxu2 }
 0x9f1   :  { %v4878_v16 = vadd.f32 %v4877_v22, %v4430_v33  ;;  %v4525_v33 = vpop.permute.xlu2 %4524 }
 0x9f3   :  { %4989 = vst [vmem:[#allocation2 + $0x140] sm:$0xff] %v4878_v16 }
 0x9f5   :  { %5232 = vmatmul.msk.f32.gmra.mxu2 %vm4547_vm3, %v4156_v1  ;;  %v4530_v1 = vpop.permute.xlu0 %4529 }
 0x9f8   :  { %v4880_v58 = vpop.f32.mrf.mxu2 }
 0x9f9   :  { %v4881_v46 = vadd.f32 %v4880_v58, %v4435_v59 }
 0x9fb   :  { %4990 = vst [vmem:[#allocation2 + $0x148] sm:$0xff] %v4881_v46  ;;  %v4535_v46 = vpop.permute.xlu1 %4534 }
 0x9fd   :  { %5233 = vmatmul.msk.f32.gmra.mxu2 %vm4547_vm3, %v4157_v52 }
 0xa00   :  { %v4883_v61 = vpop.f32.mrf.mxu2 }
 0xa01   :  { %v4884_v47 = vadd.f32 %v4883_v61, %v4440_v53  ;;  %v4540_v61 = vpop.permute.xlu2 %4539 }
 0xa03   :  { %4991 = vst [vmem:[#allocation2 + $0x150] sm:$0xff] %v4884_v47 }
 0xa05   :  { %5234 = vmatmul.msk.f32.gmra.mxu2 %vm4547_vm3, %v4158_v3 }
 0xa08   :  { %v4886_v50 = vpop.f32.mrf.mxu2 }
 0xa09   :  { %v4887_v35 = vadd.f32 %v4886_v50, %v4445_v30  ;;  %v4545_v30 = vpop.permute.xlu0 %4544 }
 0xa0b   :  { %4992 = vst [vmem:[#allocation2 + $0x158] sm:$0xff] %v4887_v35 }
 0xa0d   :  { %5235 = vmatmul.msk.f32.gmra.mxu2 %vm4547_vm3, %v4159_v18 }
 0xa10   :  { %v4889_v14 = vpop.f32.mrf.mxu2 }
 0xa11   :  { %v4890_v8 = vadd.f32 %v4889_v14, %v4450_v60 }
 0xa13   :  { %4993 = vst [vmem:[#allocation2 + $0x160] sm:$0xff] %v4890_v8 }
 0xa15   :  { %5236 = vmatmul.msk.f32.gmra.mxu2 %vm4547_vm3, %v4160_v23 }
 0xa18   :  { %v4892_v54 = vpop.f32.mrf.mxu2 }
 0xa19   :  { %v4893_v36 = vadd.f32 %v4892_v54, %v4455_v11 }
 0xa1b   :  { %4994 = vst [vmem:[#allocation2 + $0x168] sm:$0xff] %v4893_v36 }
 0xa1d   :  { %5237 = vmatmul.msk.f32.gmra.mxu2 %vm4547_vm3, %v4161_v28 }
 0xa20   :  { %v4895_v57 = vpop.f32.mrf.mxu2 }
 0xa21   :  { %v4896_v12 = vadd.f32 %v4895_v57, %v4460_v51 }
 0xa23   :  { %4995 = vst [vmem:[#allocation2 + $0x170] sm:$0xff] %v4896_v12 }
 0xa25   :  { %5238 = vmatmul.msk.f32.gmra.mxu2 %vm4547_vm3, %v4162_v24 }
 0xa28   :  { %v4898_v10 = vpop.f32.mrf.mxu2 }
 0xa29   :  { %v4899_v45 = vadd.f32 %v4898_v10, %v4465_v37 }
 0xa2b   :  { %4996 = vst [vmem:[#allocation2 + $0x178] sm:$0xff] %v4899_v45 }
 0xa30   :  { %v4901_v41 = vpop.f32.mrf.mxu2 }
 0xa31   :  { %v4902_v20 = vadd.f32 %v4901_v41, %v4470_v0 }
 0xa33   :  { %4997 = vst [vmem:[#allocation2 + $0x180] sm:$0xff] %v4902_v20 }
 0xa38   :  { %v4904_v4 = vpop.f32.mrf.mxu2 }
 0xa39   :  { %v4905_v21 = vadd.f32 %v4904_v4, %v4475_v49 }
 0xa3b   :  { %4998 = vst [vmem:[#allocation2 + $0x188] sm:$0xff] %v4905_v21 }
 0xa40   :  { %v4907_v48 = vpop.f32.mrf.mxu2 }
 0xa41   :  { %v4908_v39 = vadd.f32 %v4907_v48, %v4480_v44 }
 0xa43   :  { %4999 = vst [vmem:[#allocation2 + $0x190] sm:$0xff] %v4908_v39 }
 0xa48   :  { %v4910_v29 = vpop.f32.mrf.mxu2 }
 0xa49   :  { %v4911_v6 = vadd.f32 %v4910_v29, %v4485_v19 }
 0xa4b   :  { %5000 = vst [vmem:[#allocation2 + $0x198] sm:$0xff] %v4911_v6 }
 0xa50   :  { %v4913_v2 = vpop.f32.mrf.mxu2 }
 0xa51   :  { %v4914_v40 = vadd.f32 %v4913_v2, %v4490_v7 }
 0xa53   :  { %5001 = vst [vmem:[#allocation2 + $0x1a0] sm:$0xff] %v4914_v40 }
 0xa58   :  { %v4916_v13 = vpop.f32.mrf.mxu2 }
 0xa59   :  { %v4917_v43 = vadd.f32 %v4916_v13, %v4495_v15 }
 0xa5b   :  { %5002 = vst [vmem:[#allocation2 + $0x1a8] sm:$0xff] %v4917_v43 }
 0xa60   :  { %v4919_v55 = vpop.f32.mrf.mxu2 }
 0xa61   :  { %v4920_v9 = vadd.f32 %v4919_v55, %v4500_v17 }
 0xa63   :  { %5003 = vst [vmem:[#allocation2 + $0x1b0] sm:$0xff] %v4920_v9 }
 0xa68   :  { %v4922_v34 = vpop.f32.mrf.mxu2 }
 0xa69   :  { %v4923_v31 = vadd.f32 %v4922_v34, %v4505_v62 }
 0xa6b   :  { %5004 = vst [vmem:[#allocation2 + $0x1b8] sm:$0xff] %v4923_v31 }
 0xa70   :  { %v4925_v56 = vpop.f32.mrf.mxu2 }
 0xa71   :  { %v4926_v26 = vadd.f32 %v4925_v56, %v4510_v25 }
 0xa73   :  { %5005 = vst [vmem:[#allocation2 + $0x1c0] sm:$0xff] %v4926_v26 }
 0xa78   :  { %v4928_v42 = vpop.f32.mrf.mxu2 }
 0xa79   :  { %v4929_v5 = vadd.f32 %v4928_v42, %v4515_v32 }
 0xa7b   :  { %5006 = vst [vmem:[#allocation2 + $0x1c8] sm:$0xff] %v4929_v5 }
 0xa80   :  { %v4931_v27 = vpop.f32.mrf.mxu2 }
 0xa81   :  { %v4932_v63 = vadd.f32 %v4931_v27, %v4520_v38 }
 0xa83   :  { %5007 = vst [vmem:[#allocation2 + $0x1d0] sm:$0xff] %v4932_v63 }
 0xa88   :  { %v4934_v22 = vpop.f32.mrf.mxu2 }
 0xa89   :  { %v4935_v16 = vadd.f32 %v4934_v22, %v4525_v33 }
 0xa8b   :  { %5008 = vst [vmem:[#allocation2 + $0x1d8] sm:$0xff] %v4935_v16 }
 0xa90   :  { %v4937_v59 = vpop.f32.mrf.mxu2 }
 0xa91   :  { %v4938_v58 = vadd.f32 %v4937_v59, %v4530_v1 }
 0xa93   :  { %5009 = vst [vmem:[#allocation2 + $0x1e0] sm:$0xff] %v4938_v58 }
 0xa98   :  { %v4940_v52 = vpop.f32.mrf.mxu2 }
 0xa99   :  { %v4941_v53 = vadd.f32 %v4940_v52, %v4535_v46 }
 0xa9b   :  { %5010 = vst [vmem:[#allocation2 + $0x1e8] sm:$0xff] %v4941_v53 }
 0xaa0   :  { %v4943_v47 = vpop.f32.mrf.mxu2 }
 0xaa1   :  { %v4944_v3 = vadd.f32 %v4943_v47, %v4540_v61 }
 0xaa3   :  { %5011 = vst [vmem:[#allocation2 + $0x1f0] sm:$0xff] %v4944_v3 }
 0xaa8   :  { %v4946_v50 = vpop.f32.mrf.mxu2 }
 0xaa9   :  { %v4947_v35 = vadd.f32 %v4946_v50, %v4545_v30 }
 0xaab   :  { %5012 = vst [vmem:[#allocation2 + $0x1f8] sm:$0xff] %v4947_v35 }
 0xaac   :  { %5025 = dma.vmem_to_hbm [thread:$0]  %s5018_s20, 8192, %s5020_s22, [#allocation3], %s5313_s23, %s5313_s23, %s5314_s10  }
 0xaad   :  { %5309 = dma.done.wait [#allocation3], 8192  }
 0xaae   :  { %5310 = vsyncadd [#allocation3], 4294959104 }
 0xaaf   :  { %5030 = vsyncpa [#allocation3], 1 }

</bundles_post_ra>
